<compile_context>
chip_gen: v7x
topology: tpu7x:2x2x1
jax: 0.10.0
libtpu: 0.0.40
codegen_flags: <defaults>
</compile_context>

<pallas_src>
import jax
import jax.numpy as jnp
from jax import lax
from jax.experimental import pallas as pl
from jax.experimental.pallas import tpu as pltpu

# ------------------------- model configuration (small) -------------------------
IMAGE_SIZE = 8
PATCH = 4
NUM_CLASSES = 10
DIM = 32
DEPTH = 2
HEADS = 2
MLP_DIM = 16          # outer mlp_dim argument -> becomes dim_head AND head hidden
CHANNELS = 3

DIM_HEAD = MLP_DIM                      # due to arg order in Transformer(...)
INNER = HEADS * DIM_HEAD                # attention inner dim
FF_HIDDEN = 2048                        # hard-coded inside Transformer
NUM_PATCHES = (IMAGE_SIZE // PATCH) * (IMAGE_SIZE // PATCH) * 2
PATCH_DIM = CHANNELS * PATCH ** 3
SEQ = NUM_PATCHES + 1
SCALE = DIM_HEAD ** (-0.5)
LN_EPS = 1e-5
SQRT1_2 = 0.7071067811865476
NEG_INF = -1e9


# ------------------------- shared math helpers ---------------------------------
def _layernorm(x, g, b):
    mu = jnp.mean(x, axis=-1, keepdims=True)
    var = jnp.mean((x - mu) ** 2, axis=-1, keepdims=True)
    return (x - mu) * lax.rsqrt(var + LN_EPS) * g + b


def _gelu(x):  # exact (erf) GELU, matching torch.nn.GELU default
    return 0.5 * x * (1.0 + lax.erf(x * SQRT1_2))


def _full_spec(shape):
    nd = len(shape)
    return pl.BlockSpec(shape, lambda *_, n=nd: (0,) * n)


# ------------------------- the single fused kernel ------------------------------
def _vit_fused_kernel(
    patches_ref, pw_ref, base_ref, mask_ref, sel_ref,
    lvec_ref, wqkv_ref, wo_ref, w1_ref, bf1_ref, w2_ref,
    hg_ref, hb_ref, hw1_ref, hb1_ref, hw2_ref, hb2_ref,
    out_ref,
):
    # ---- patch embedding + cls token + pos embedding -------------------------
    # patches_ref already has a zero row in every cls slot; base_ref carries
    # cls_token + pos[0] on cls rows and patch_bias + pos[i] on patch rows.
    x = (
        jnp.dot(patches_ref[...], pw_ref[...], preferred_element_type=jnp.float32)
        + base_ref[...]
    )                                                         # [B*SEQ, D]
    mask = mask_ref[...]                                      # [B*SEQ, B*SEQ]

    # ---- transformer layers (static unroll, DEPTH = 2) ------------------------
    for l in range(DEPTH):
        # packed per-layer vectors: 0=g1 1=b1 2=bo 3=g2 4=b2 5=bf2 (each [1,D])
        g1 = lvec_ref[l, 0]
        b1 = lvec_ref[l, 1]
        bo = lvec_ref[l, 2]
        g2 = lvec_ref[l, 3]
        b2 = lvec_ref[l, 4]
        bf2 = lvec_ref[l, 5]

        # PreNorm + Attention (+ residual folded into accumulator init)
        xn = _layernorm(x, g1, b1)
        acc = x + bo                                           # residual + out-proj bias
        for h in range(HEADS):
            qh = jnp.dot(xn, wqkv_ref[l, 0 * HEADS + h],
                         preferred_element_type=jnp.float32)
            kh = jnp.dot(xn, wqkv_ref[l, 1 * HEADS + h],
                         preferred_element_type=jnp.float32)
            vh = jnp.dot(xn, wqkv_ref[l, 2 * HEADS + h],
                         preferred_element_type=jnp.float32)
            # q @ k^T without an explicit transpose (contract dim 1 of both)
            dots = lax.dot_general(
                qh, kh, (((1,), (1,)), ((), ())),
                preferred_element_type=jnp.float32,
            ) * SCALE + mask                                   # block-diag batch mask
            dots = dots - jnp.max(dots, axis=-1, keepdims=True)
            e = jnp.exp(dots)
            p = e * pl.reciprocal(jnp.sum(e, axis=-1, keepdims=True), approx=True)
            ctx = jnp.dot(p, vh, preferred_element_type=jnp.float32)       # [M, DH]
            acc = acc + jnp.dot(ctx, wo_ref[l, h],
                                preferred_element_type=jnp.float32)
        x = acc

        # PreNorm + FeedForward + residual
        xn2 = _layernorm(x, g2, b2)
        hmid = _gelu(
            jnp.dot(xn2, w1_ref[l], preferred_element_type=jnp.float32) + bf1_ref[l]
        )
        x = x + jnp.dot(hmid, w2_ref[l], preferred_element_type=jnp.float32) + bf2

    # ---- cls-token extraction (one-hot matmul) + MLP head ----------------------
    cls = jnp.dot(sel_ref[...], x, preferred_element_type=jnp.float32)      # [B, D]
    hn = _layernorm(cls, hg_ref[...], hb_ref[...])
    h1 = _gelu(
        jnp.dot(hn, hw1_ref[...], preferred_element_type=jnp.float32) + hb1_ref[...]
    )
    out_ref[...] = (
        jnp.dot(h1, hw2_ref[...], preferred_element_type=jnp.float32) + hb2_ref[...]
    )


# ------------------------- host-side parameter packing --------------------------
def pack_params(params, batch):
    """Re-layout torch-style params for the fused kernel (done once, on host)."""
    layers = params["layers"]

    # per-layer [1, D] vectors packed into one array [DEPTH, 6, 1, D]
    lvec = jnp.stack(
        [
            jnp.stack(
                [p["g1"], p["b1"], p["bo"], p["g2"], p["b2"], p["bf2"]], axis=0
            )
            for p in layers
        ],
        axis=0,
    )

    def split_heads(mat):  # [D, INNER] -> [HEADS, D, DH]
        return mat.reshape(DIM, HEADS, DIM_HEAD).transpose(1, 0, 2)

    wqkv_l, wo_l = [], []
    for p in layers:
        wqkv = p["wqkv"]
        per = [split_heads(wqkv[:, i * INNER:(i + 1) * INNER]) for i in range(3)]
        wqkv_l.append(jnp.concatenate(per, axis=0))          # [3*HEADS, D, DH]
        wo_l.append(p["wo"].reshape(HEADS, DIM_HEAD, DIM))   # [HEADS, DH, D]
    wqkv = jnp.stack(wqkv_l)                                  # [DEPTH, 3*HEADS, D, DH]
    wo = jnp.stack(wo_l)                                      # [DEPTH, HEADS, DH, D]

    pos = params["pos_embedding"][0]                 # [SEQ, D]
    cls = params["cls_token"][0]                     # [1, D]
    pb = params["patch_b"].reshape(1, DIM)           # [1, D]
    base_seq = jnp.concatenate([pos[0:1] + cls, pos[1:] + pb], axis=0)   # [SEQ, D]
    base = jnp.tile(base_seq, (batch, 1))            # [B*SEQ, D]

    m = batch * SEQ
    blk = jnp.arange(m) // SEQ
    mask = jnp.where(blk[:, None] == blk[None, :], 0.0, NEG_INF).astype(jnp.float32)
    sel = jax.nn.one_hot(jnp.arange(batch) * SEQ, m, dtype=jnp.float32)  # [B, B*SEQ]

    hd = params["head"]
    return {
        "patch_w": params["patch_w"], "base": base, "mask": mask, "sel": sel,
        "lvec": lvec, "wqkv": wqkv, "wo": wo,
        "w1": jnp.stack([p["w1"] for p in layers]),
        "bf1": jnp.stack([p["bf1"] for p in layers]),
        "w2": jnp.stack([p["w2"] for p in layers]),
        "hg": hd["g"], "hb": hd["b"], "hw1": hd["w1"], "hb1": hd["b1"],
        "hw2": hd["w2"], "hb2": hd["b2"],
    }


# ------------------------- full forward ------------------------------------------
def patchify(img):
    # rearrange 'b c (h p1) (w p2) (d p3) -> b (h w d) (p1 p2 p3 c)'
    # (pure layout glue; stays as cheap XLA reshape/transpose outside the kernel)
    bsz, c, hh, ww, dd = img.shape
    h, w, d = hh // PATCH, ww // PATCH, dd // PATCH
    x = img.reshape(bsz, c, h, PATCH, w, PATCH, d, PATCH)
    x = x.transpose(0, 2, 4, 6, 3, 5, 7, 1)          # b h w d p1 p2 p3 c
    return x.reshape(bsz, h * w * d, PATCH * PATCH * PATCH * c)


def vit_forward(img, packed):
    bsz = img.shape[0]
    m = bsz * SEQ
    patches = patchify(img)                           # [B, NP, PATCH_DIM]
    # insert a zero row per batch element at the cls position -> [B*SEQ, PATCH_DIM]
    patches_aug = jnp.concatenate(
        [jnp.zeros((bsz, 1, PATCH_DIM), jnp.float32), patches], axis=1
    ).reshape(m, PATCH_DIM)

    args = [
        patches_aug, packed["patch_w"], packed["base"], packed["mask"], packed["sel"],
        packed["lvec"], packed["wqkv"], packed["wo"],
        packed["w1"], packed["bf1"], packed["w2"],
        packed["hg"], packed["hb"], packed["hw1"], packed["hb1"],
        packed["hw2"], packed["hb2"],
    ]

    # advisory cost estimate for XLA's scheduler
    fl_embed = 2 * m * PATCH_DIM * DIM
    fl_qkv = 3 * HEADS * 2 * m * DIM * DIM_HEAD
    fl_attn = HEADS * (2 * m * m * DIM_HEAD + 2 * m * m * DIM_HEAD)
    fl_proj = HEADS * 2 * m * DIM_HEAD * DIM
    fl_ff = 2 * m * DIM * FF_HIDDEN + 2 * m * FF_HIDDEN * DIM
    fl_head = 2 * bsz * m * DIM + 2 * bsz * DIM * MLP_DIM + 2 * bsz * MLP_DIM * NUM_CLASSES
    flops = fl_embed + DEPTH * (fl_qkv + fl_attn + fl_proj + fl_ff) + fl_head
    trans = DEPTH * (HEADS * m * m + m * FF_HIDDEN) + bsz * MLP_DIM
    nbytes = 4 * (sum(int(a.size) for a in args) + bsz * NUM_CLASSES)

    return pl.pallas_call(
        _vit_fused_kernel,
        out_shape=jax.ShapeDtypeStruct((bsz, NUM_CLASSES), jnp.float32),
        grid_spec=pltpu.PrefetchScalarGridSpec(
            num_scalar_prefetch=0,
            grid=(1,),
            in_specs=[_full_spec(a.shape) for a in args],
            out_specs=_full_spec((bsz, NUM_CLASSES)),
        ),
        compiler_params=pltpu.CompilerParams(dimension_semantics=("arbitrary",)),
        cost_estimate=pl.CostEstimate(
            flops=flops, transcendentals=trans, bytes_accessed=nbytes
        ),
    )(*args)


# ------------------------- pure-JAX reference (torch-style weight layout) --------
def ref_forward(img, params):
    bsz = img.shape[0]
    x = patchify(img)
    emb = x @ params["patch_w"] + params["patch_b"]
    cls = jnp.broadcast_to(params["cls_token"], (bsz, 1, DIM))
    x = jnp.concatenate([cls, emb], axis=1) + params["pos_embedding"]
    for p in params["layers"]:
        xn = _layernorm(x, p["g1"], p["b1"])
        qkv = xn @ p["wqkv"]
        q, k, v = jnp.split(qkv, 3, axis=-1)

        def to_heads(t):
            return t.reshape(bsz, SEQ, HEADS, DIM_HEAD).transpose(0, 2, 1, 3)

        q, k, v = map(to_heads, (q, k, v))
        dots = jnp.einsum("bhnd,bhmd->bhnm", q, k) * SCALE
        attn = jax.nn.softmax(dots, axis=-1)
        out = jnp.einsum("bhnm,bhmd->bhnd", attn, v)
        out = out.transpose(0, 2, 1, 3).reshape(bsz, SEQ, INNER)
        x = x + (out @ p["wo"] + p["bo"])
        xn2 = _layernorm(x, p["g2"], p["b2"])
        h = _gelu(xn2 @ p["w1"] + p["bf1"])
        x = x + (h @ p["w2"] + p["bf2"])
    cls_out = x[:, 0]
    hp = params["head"]
    hn = _layernorm(cls_out, hp["g"], hp["b"])
    return _gelu(hn @ hp["w1"] + hp["b1"]) @ hp["w2"] + hp["b2"]


# ------------------------- deterministic parameter init --------------------------
def init_params(key):
    keys = iter(jax.random.split(key, 128))

    def nrm(shape, scale=0.02):
        return scale * jax.random.normal(next(keys), shape, jnp.float32)

    params = {
        "pos_embedding": nrm((1, SEQ, DIM), 0.5),
        "cls_token": nrm((1, 1, DIM), 0.5),
        "patch_w": nrm((PATCH_DIM, DIM)),
        "patch_b": nrm((DIM,)),
        "layers": [],
        "head": {
            "g": jnp.ones((1, DIM), jnp.float32),
            "b": jnp.zeros((1, DIM), jnp.float32),
            "w1": nrm((DIM, MLP_DIM)),
            "b1": nrm((1, MLP_DIM)),
            "w2": nrm((MLP_DIM, NUM_CLASSES)),
            "b2": nrm((1, NUM_CLASSES)),
        },
    }
    for _ in range(DEPTH):
        params["layers"].append(
            {
                "g1": jnp.ones((1, DIM), jnp.float32),
                "b1": jnp.zeros((1, DIM), jnp.float32),
                "wqkv": nrm((DIM, 3 * INNER)),
                "wo": nrm((INNER, DIM)),
                "bo": nrm((1, DIM)),
                "g2": jnp.ones((1, DIM), jnp.float32),
                "b2": jnp.zeros((1, DIM), jnp.float32),
                "w1": nrm((DIM, FF_HIDDEN)),
                "bf1": nrm((1, FF_HIDDEN)),
                "w2": nrm((FF_HIDDEN, DIM)),
                "bf2": nrm((1, DIM)),
            }
        )
    return params


if __name__ == "__main__":
    key = jax.random.PRNGKey(0)
    kp, kimg = jax.random.split(key)
    params = init_params(kp)

    # input: [B, C, H, W, D] with D = 2 * patch_size so num_patches matches
    batch = 2
    img = jax.random.normal(
        kimg, (batch, CHANNELS, IMAGE_SIZE, IMAGE_SIZE, 2 * PATCH), jnp.float32
    )

    packed = pack_params(params, batch)               # one-time host re-layout
    fwd = jax.jit(vit_forward)

    out = jax.block_until_ready(fwd(img, packed))
    assert out.shape == (batch, NUM_CLASSES)

    ref = jax.block_until_ready(ref_forward(img, params))
    assert jnp.allclose(out, ref, atol=2e-2, rtol=2e-2), (out, ref)

    print("KERNEL_OK")
</pallas_src>

<mosaic_0001>
module attributes {stable_mosaic.version = 11 : i64} {
  func.func @_vit_fused_kernel(%arg0: i32, %arg1: memref<18x192xf32, #tpu.memory_space<vmem>>, %arg2: memref<192x32xf32, #tpu.memory_space<vmem>>, %arg3: memref<18x32xf32, #tpu.memory_space<vmem>>, %arg4: memref<18x18xf32, #tpu.memory_space<vmem>>, %arg5: memref<2x18xf32, #tpu.memory_space<vmem>>, %arg6: memref<2x6x1x32xf32, #tpu.memory_space<vmem>>, %arg7: memref<2x6x32x16xf32, #tpu.memory_space<vmem>>, %arg8: memref<2x2x16x32xf32, #tpu.memory_space<vmem>>, %arg9: memref<2x32x2048xf32, #tpu.memory_space<vmem>>, %arg10: memref<2x1x2048xf32, #tpu.memory_space<vmem>>, %arg11: memref<2x2048x32xf32, #tpu.memory_space<vmem>>, %arg12: memref<1x32xf32, #tpu.memory_space<vmem>>, %arg13: memref<1x32xf32, #tpu.memory_space<vmem>>, %arg14: memref<32x16xf32, #tpu.memory_space<vmem>>, %arg15: memref<1x16xf32, #tpu.memory_space<vmem>>, %arg16: memref<16x10xf32, #tpu.memory_space<vmem>>, %arg17: memref<1x10xf32, #tpu.memory_space<vmem>>, %arg18: memref<2x10xf32, #tpu.memory_space<vmem>>) attributes {dimension_semantics = [#tpu.dimension_semantics<arbitrary>], iteration_bounds = array<i64: 1>, scalar_prefetch = 0 : i64, scratch_operands = 0 : i64, tpu.core_type = #tpu.core_type<tc>, window_params = [{pipeline_mode = #tpu.pipeline_mode<synchronous>, transform_indices = @transform_0, window_bounds = array<i64: 18, 192>}, {pipeline_mode = #tpu.pipeline_mode<synchronous>, transform_indices = @transform_1, window_bounds = array<i64: 192, 32>}, {pipeline_mode = #tpu.pipeline_mode<synchronous>, transform_indices = @transform_2, window_bounds = array<i64: 18, 32>}, {pipeline_mode = #tpu.pipeline_mode<synchronous>, transform_indices = @transform_3, window_bounds = array<i64: 18, 18>}, {pipeline_mode = #tpu.pipeline_mode<synchronous>, transform_indices = @transform_4, window_bounds = array<i64: 2, 18>}, {pipeline_mode = #tpu.pipeline_mode<synchronous>, transform_indices = @transform_5, window_bounds = array<i64: 2, 6, 1, 32>}, {pipeline_mode = #tpu.pipeline_mode<synchronous>, transform_indices = @transform_6, window_bounds = array<i64: 2, 6, 32, 16>}, {pipeline_mode = #tpu.pipeline_mode<synchronous>, transform_indices = @transform_7, window_bounds = array<i64: 2, 2, 16, 32>}, {pipeline_mode = #tpu.pipeline_mode<synchronous>, transform_indices = @transform_8, window_bounds = array<i64: 2, 32, 2048>}, {pipeline_mode = #tpu.pipeline_mode<synchronous>, transform_indices = @transform_9, window_bounds = array<i64: 2, 1, 2048>}, {pipeline_mode = #tpu.pipeline_mode<synchronous>, transform_indices = @transform_10, window_bounds = array<i64: 2, 2048, 32>}, {pipeline_mode = #tpu.pipeline_mode<synchronous>, transform_indices = @transform_11, window_bounds = array<i64: 1, 32>}, {pipeline_mode = #tpu.pipeline_mode<synchronous>, transform_indices = @transform_12, window_bounds = array<i64: 1, 32>}, {pipeline_mode = #tpu.pipeline_mode<synchronous>, transform_indices = @transform_13, window_bounds = array<i64: 32, 16>}, {pipeline_mode = #tpu.pipeline_mode<synchronous>, transform_indices = @transform_14, window_bounds = array<i64: 1, 16>}, {pipeline_mode = #tpu.pipeline_mode<synchronous>, transform_indices = @transform_15, window_bounds = array<i64: 16, 10>}, {pipeline_mode = #tpu.pipeline_mode<synchronous>, transform_indices = @transform_16, window_bounds = array<i64: 1, 10>}, {pipeline_mode = #tpu.pipeline_mode<synchronous>, transform_indices = @transform_17, window_bounds = array<i64: 2, 10>}]} {
    %c0 = arith.constant 0 : index
    %c0_0 = arith.constant 0 : index
    %0 = vector.load %arg1[%c0, %c0_0] : memref<18x192xf32, #tpu.memory_space<vmem>>, vector<18x192xf32>
    %c0_1 = arith.constant 0 : index
    %c0_2 = arith.constant 0 : index
    %1 = vector.load %arg2[%c0_1, %c0_2] : memref<192x32xf32, #tpu.memory_space<vmem>>, vector<192x32xf32>
    %cst = arith.constant dense<0.000000e+00> : vector<18x32xf32>
    %2 = tpu.matmul %0, %1, %cst {dimension_numbers = #tpu.dot_dimension_numbers<[1], [0], [0], [1], [0, 0, 1, 1], [], []>} : vector<18x192xf32>, vector<192x32xf32>, vector<18x32xf32> -> vector<18x32xf32>
    %c0_3 = arith.constant 0 : index
    %c0_4 = arith.constant 0 : index
    %3 = vector.load %arg3[%c0_3, %c0_4] : memref<18x32xf32, #tpu.memory_space<vmem>>, vector<18x32xf32>
    %4 = arith.addf %2, %3 : vector<18x32xf32>
    %c0_5 = arith.constant 0 : index
    %c0_6 = arith.constant 0 : index
    %5 = vector.load %arg4[%c0_5, %c0_6] : memref<18x18xf32, #tpu.memory_space<vmem>>, vector<18x18xf32>
    %c0_7 = arith.constant 0 : index
    %c0_8 = arith.constant 0 : index
    %c0_9 = arith.constant 0 : index
    %c0_10 = arith.constant 0 : index
    %6 = vector.load %arg6[%c0_7, %c0_8, %c0_9, %c0_10] : memref<2x6x1x32xf32, #tpu.memory_space<vmem>>, vector<1x1x1x32xf32>
    %7 = vector.shape_cast %6 : vector<1x1x1x32xf32> to vector<1x32xf32>
    %c0_11 = arith.constant 0 : index
    %c1 = arith.constant 1 : index
    %c0_12 = arith.constant 0 : index
    %c0_13 = arith.constant 0 : index
    %8 = vector.load %arg6[%c0_11, %c1, %c0_12, %c0_13] : memref<2x6x1x32xf32, #tpu.memory_space<vmem>>, vector<1x1x1x32xf32>
    %9 = vector.shape_cast %8 : vector<1x1x1x32xf32> to vector<1x32xf32>
    %c0_14 = arith.constant 0 : index
    %c2 = arith.constant 2 : index
    %c0_15 = arith.constant 0 : index
    %c0_16 = arith.constant 0 : index
    %10 = vector.load %arg6[%c0_14, %c2, %c0_15, %c0_16] : memref<2x6x1x32xf32, #tpu.memory_space<vmem>>, vector<1x1x1x32xf32>
    %11 = vector.shape_cast %10 : vector<1x1x1x32xf32> to vector<1x32xf32>
    %c0_17 = arith.constant 0 : index
    %c3 = arith.constant 3 : index
    %c0_18 = arith.constant 0 : index
    %c0_19 = arith.constant 0 : index
    %12 = vector.load %arg6[%c0_17, %c3, %c0_18, %c0_19] : memref<2x6x1x32xf32, #tpu.memory_space<vmem>>, vector<1x1x1x32xf32>
    %13 = vector.shape_cast %12 : vector<1x1x1x32xf32> to vector<1x32xf32>
    %c0_20 = arith.constant 0 : index
    %c4 = arith.constant 4 : index
    %c0_21 = arith.constant 0 : index
    %c0_22 = arith.constant 0 : index
    %14 = vector.load %arg6[%c0_20, %c4, %c0_21, %c0_22] : memref<2x6x1x32xf32, #tpu.memory_space<vmem>>, vector<1x1x1x32xf32>
    %15 = vector.shape_cast %14 : vector<1x1x1x32xf32> to vector<1x32xf32>
    %c0_23 = arith.constant 0 : index
    %c5 = arith.constant 5 : index
    %c0_24 = arith.constant 0 : index
    %c0_25 = arith.constant 0 : index
    %16 = vector.load %arg6[%c0_23, %c5, %c0_24, %c0_25] : memref<2x6x1x32xf32, #tpu.memory_space<vmem>>, vector<1x1x1x32xf32>
    %17 = vector.shape_cast %16 : vector<1x1x1x32xf32> to vector<1x32xf32>
    %cst_26 = arith.constant dense<0.000000e+00> : vector<18xf32>
    %18 = vector.multi_reduction <add>, %4, %cst_26 [1] : vector<18x32xf32> to vector<18xf32>
    %19 = vector.shape_cast %18 : vector<18xf32> to vector<18x1xf32>
    %cst_27 = arith.constant 3.200000e+01 : f32
    %20 = vector.broadcast %cst_27 : f32 to vector<18x1xf32>
    %21 = arith.divf %19, %20 : vector<18x1xf32>
    %22 = vector.broadcast %21 : vector<18x1xf32> to vector<18x32xf32>
    %23 = arith.subf %4, %22 : vector<18x32xf32>
    %24 = arith.mulf %23, %23 : vector<18x32xf32>
    %cst_28 = arith.constant dense<0.000000e+00> : vector<18xf32>
    %25 = vector.multi_reduction <add>, %24, %cst_28 [1] : vector<18x32xf32> to vector<18xf32>
    %26 = vector.shape_cast %25 : vector<18xf32> to vector<18x1xf32>
    %cst_29 = arith.constant 3.200000e+01 : f32
    %27 = vector.broadcast %cst_29 : f32 to vector<18x1xf32>
    %28 = arith.divf %26, %27 : vector<18x1xf32>
    %29 = vector.broadcast %21 : vector<18x1xf32> to vector<18x32xf32>
    %30 = arith.subf %4, %29 : vector<18x32xf32>
    %cst_30 = arith.constant 9.99999974E-6 : f32
    %31 = vector.broadcast %cst_30 : f32 to vector<18x1xf32>
    %32 = arith.addf %28, %31 : vector<18x1xf32>
    %33 = math.rsqrt %32 : vector<18x1xf32>
    %34 = vector.broadcast %33 : vector<18x1xf32> to vector<18x32xf32>
    %35 = arith.mulf %30, %34 : vector<18x32xf32>
    %36 = vector.broadcast %7 : vector<1x32xf32> to vector<18x32xf32>
    %37 = arith.mulf %35, %36 : vector<18x32xf32>
    %38 = vector.broadcast %9 : vector<1x32xf32> to vector<18x32xf32>
    %39 = arith.addf %37, %38 : vector<18x32xf32>
    %40 = vector.broadcast %11 : vector<1x32xf32> to vector<18x32xf32>
    %41 = arith.addf %4, %40 : vector<18x32xf32>
    %c0_31 = arith.constant 0 : index
    %c0_32 = arith.constant 0 : index
    %c0_33 = arith.constant 0 : index
    %c0_34 = arith.constant 0 : index
    %42 = vector.load %arg7[%c0_31, %c0_32, %c0_33, %c0_34] : memref<2x6x32x16xf32, #tpu.memory_space<vmem>>, vector<1x1x32x16xf32>
    %43 = vector.shape_cast %42 : vector<1x1x32x16xf32> to vector<32x16xf32>
    %cst_35 = arith.constant dense<0.000000e+00> : vector<18x16xf32>
    %44 = tpu.matmul %39, %43, %cst_35 {dimension_numbers = #tpu.dot_dimension_numbers<[1], [0], [0], [1], [0, 0, 1, 1], [], []>} : vector<18x32xf32>, vector<32x16xf32>, vector<18x16xf32> -> vector<18x16xf32>
    %c0_36 = arith.constant 0 : index
    %c2_37 = arith.constant 2 : index
    %c0_38 = arith.constant 0 : index
    %c0_39 = arith.constant 0 : index
    %45 = vector.load %arg7[%c0_36, %c2_37, %c0_38, %c0_39] : memref<2x6x32x16xf32, #tpu.memory_space<vmem>>, vector<1x1x32x16xf32>
    %46 = vector.shape_cast %45 : vector<1x1x32x16xf32> to vector<32x16xf32>
    %cst_40 = arith.constant dense<0.000000e+00> : vector<18x16xf32>
    %47 = tpu.matmul %39, %46, %cst_40 {dimension_numbers = #tpu.dot_dimension_numbers<[1], [0], [0], [1], [0, 0, 1, 1], [], []>} : vector<18x32xf32>, vector<32x16xf32>, vector<18x16xf32> -> vector<18x16xf32>
    %c0_41 = arith.constant 0 : index
    %c4_42 = arith.constant 4 : index
    %c0_43 = arith.constant 0 : index
    %c0_44 = arith.constant 0 : index
    %48 = vector.load %arg7[%c0_41, %c4_42, %c0_43, %c0_44] : memref<2x6x32x16xf32, #tpu.memory_space<vmem>>, vector<1x1x32x16xf32>
    %49 = vector.shape_cast %48 : vector<1x1x32x16xf32> to vector<32x16xf32>
    %cst_45 = arith.constant dense<0.000000e+00> : vector<18x16xf32>
    %50 = tpu.matmul %39, %49, %cst_45 {dimension_numbers = #tpu.dot_dimension_numbers<[1], [0], [0], [1], [0, 0, 1, 1], [], []>} : vector<18x32xf32>, vector<32x16xf32>, vector<18x16xf32> -> vector<18x16xf32>
    %cst_46 = arith.constant dense<0.000000e+00> : vector<18x18xf32>
    %51 = tpu.matmul %44, %47, %cst_46 {dimension_numbers = #tpu.dot_dimension_numbers<[1], [1], [0], [0], [0, 0, 1, 0], [], []>} : vector<18x16xf32>, vector<18x16xf32>, vector<18x18xf32> -> vector<18x18xf32>
    %cst_47 = arith.constant 2.500000e-01 : f32
    %52 = vector.broadcast %cst_47 : f32 to vector<18x18xf32>
    %53 = arith.mulf %51, %52 : vector<18x18xf32>
    %54 = arith.addf %53, %5 : vector<18x18xf32>
    %cst_48 = arith.constant dense<0xFF800000> : vector<18xf32>
    %55 = vector.multi_reduction <maximumf>, %54, %cst_48 [1] : vector<18x18xf32> to vector<18xf32>
    %56 = vector.shape_cast %55 : vector<18xf32> to vector<18x1xf32>
    %57 = vector.broadcast %56 : vector<18x1xf32> to vector<18x18xf32>
    %58 = arith.subf %54, %57 : vector<18x18xf32>
    %59 = math.exp %58 : vector<18x18xf32>
    %cst_49 = arith.constant dense<0.000000e+00> : vector<18xf32>
    %60 = vector.multi_reduction <add>, %59, %cst_49 [1] : vector<18x18xf32> to vector<18xf32>
    %61 = vector.shape_cast %60 : vector<18xf32> to vector<18x1xf32>
    %62 = tpu.reciprocal %61 {approx = true} : vector<18x1xf32> -> vector<18x1xf32>
    %63 = vector.broadcast %62 : vector<18x1xf32> to vector<18x18xf32>
    %64 = arith.mulf %59, %63 : vector<18x18xf32>
    %cst_50 = arith.constant dense<0.000000e+00> : vector<18x16xf32>
    %65 = tpu.matmul %64, %50, %cst_50 {dimension_numbers = #tpu.dot_dimension_numbers<[1], [0], [0], [1], [0, 0, 1, 1], [], []>} : vector<18x18xf32>, vector<18x16xf32>, vector<18x16xf32> -> vector<18x16xf32>
    %c0_51 = arith.constant 0 : index
    %c0_52 = arith.constant 0 : index
    %c0_53 = arith.constant 0 : index
    %c0_54 = arith.constant 0 : index
    %66 = vector.load %arg8[%c0_51, %c0_52, %c0_53, %c0_54] : memref<2x2x16x32xf32, #tpu.memory_space<vmem>>, vector<1x1x16x32xf32>
    %67 = vector.shape_cast %66 : vector<1x1x16x32xf32> to vector<16x32xf32>
    %cst_55 = arith.constant dense<0.000000e+00> : vector<18x32xf32>
    %68 = tpu.matmul %65, %67, %cst_55 {dimension_numbers = #tpu.dot_dimension_numbers<[1], [0], [0], [1], [0, 0, 1, 1], [], []>} : vector<18x16xf32>, vector<16x32xf32>, vector<18x32xf32> -> vector<18x32xf32>
    %69 = arith.addf %41, %68 : vector<18x32xf32>
    %c0_56 = arith.constant 0 : index
    %c1_57 = arith.constant 1 : index
    %c0_58 = arith.constant 0 : index
    %c0_59 = arith.constant 0 : index
    %70 = vector.load %arg7[%c0_56, %c1_57, %c0_58, %c0_59] : memref<2x6x32x16xf32, #tpu.memory_space<vmem>>, vector<1x1x32x16xf32>
    %71 = vector.shape_cast %70 : vector<1x1x32x16xf32> to vector<32x16xf32>
    %cst_60 = arith.constant dense<0.000000e+00> : vector<18x16xf32>
    %72 = tpu.matmul %39, %71, %cst_60 {dimension_numbers = #tpu.dot_dimension_numbers<[1], [0], [0], [1], [0, 0, 1, 1], [], []>} : vector<18x32xf32>, vector<32x16xf32>, vector<18x16xf32> -> vector<18x16xf32>
    %c0_61 = arith.constant 0 : index
    %c3_62 = arith.constant 3 : index
    %c0_63 = arith.constant 0 : index
    %c0_64 = arith.constant 0 : index
    %73 = vector.load %arg7[%c0_61, %c3_62, %c0_63, %c0_64] : memref<2x6x32x16xf32, #tpu.memory_space<vmem>>, vector<1x1x32x16xf32>
    %74 = vector.shape_cast %73 : vector<1x1x32x16xf32> to vector<32x16xf32>
    %cst_65 = arith.constant dense<0.000000e+00> : vector<18x16xf32>
    %75 = tpu.matmul %39, %74, %cst_65 {dimension_numbers = #tpu.dot_dimension_numbers<[1], [0], [0], [1], [0, 0, 1, 1], [], []>} : vector<18x32xf32>, vector<32x16xf32>, vector<18x16xf32> -> vector<18x16xf32>
    %c0_66 = arith.constant 0 : index
    %c5_67 = arith.constant 5 : index
    %c0_68 = arith.constant 0 : index
    %c0_69 = arith.constant 0 : index
    %76 = vector.load %arg7[%c0_66, %c5_67, %c0_68, %c0_69] : memref<2x6x32x16xf32, #tpu.memory_space<vmem>>, vector<1x1x32x16xf32>
    %77 = vector.shape_cast %76 : vector<1x1x32x16xf32> to vector<32x16xf32>
    %cst_70 = arith.constant dense<0.000000e+00> : vector<18x16xf32>
    %78 = tpu.matmul %39, %77, %cst_70 {dimension_numbers = #tpu.dot_dimension_numbers<[1], [0], [0], [1], [0, 0, 1, 1], [], []>} : vector<18x32xf32>, vector<32x16xf32>, vector<18x16xf32> -> vector<18x16xf32>
    %cst_71 = arith.constant dense<0.000000e+00> : vector<18x18xf32>
    %79 = tpu.matmul %72, %75, %cst_71 {dimension_numbers = #tpu.dot_dimension_numbers<[1], [1], [0], [0], [0, 0, 1, 0], [], []>} : vector<18x16xf32>, vector<18x16xf32>, vector<18x18xf32> -> vector<18x18xf32>
    %cst_72 = arith.constant 2.500000e-01 : f32
    %80 = vector.broadcast %cst_72 : f32 to vector<18x18xf32>
    %81 = arith.mulf %79, %80 : vector<18x18xf32>
    %82 = arith.addf %81, %5 : vector<18x18xf32>
    %cst_73 = arith.constant dense<0xFF800000> : vector<18xf32>
    %83 = vector.multi_reduction <maximumf>, %82, %cst_73 [1] : vector<18x18xf32> to vector<18xf32>
    %84 = vector.shape_cast %83 : vector<18xf32> to vector<18x1xf32>
    %85 = vector.broadcast %84 : vector<18x1xf32> to vector<18x18xf32>
    %86 = arith.subf %82, %85 : vector<18x18xf32>
    %87 = math.exp %86 : vector<18x18xf32>
    %cst_74 = arith.constant dense<0.000000e+00> : vector<18xf32>
    %88 = vector.multi_reduction <add>, %87, %cst_74 [1] : vector<18x18xf32> to vector<18xf32>
    %89 = vector.shape_cast %88 : vector<18xf32> to vector<18x1xf32>
    %90 = tpu.reciprocal %89 {approx = true} : vector<18x1xf32> -> vector<18x1xf32>
    %91 = vector.broadcast %90 : vector<18x1xf32> to vector<18x18xf32>
    %92 = arith.mulf %87, %91 : vector<18x18xf32>
    %cst_75 = arith.constant dense<0.000000e+00> : vector<18x16xf32>
    %93 = tpu.matmul %92, %78, %cst_75 {dimension_numbers = #tpu.dot_dimension_numbers<[1], [0], [0], [1], [0, 0, 1, 1], [], []>} : vector<18x18xf32>, vector<18x16xf32>, vector<18x16xf32> -> vector<18x16xf32>
    %c0_76 = arith.constant 0 : index
    %c1_77 = arith.constant 1 : index
    %c0_78 = arith.constant 0 : index
    %c0_79 = arith.constant 0 : index
    %94 = vector.load %arg8[%c0_76, %c1_77, %c0_78, %c0_79] : memref<2x2x16x32xf32, #tpu.memory_space<vmem>>, vector<1x1x16x32xf32>
    %95 = vector.shape_cast %94 : vector<1x1x16x32xf32> to vector<16x32xf32>
    %cst_80 = arith.constant dense<0.000000e+00> : vector<18x32xf32>
    %96 = tpu.matmul %93, %95, %cst_80 {dimension_numbers = #tpu.dot_dimension_numbers<[1], [0], [0], [1], [0, 0, 1, 1], [], []>} : vector<18x16xf32>, vector<16x32xf32>, vector<18x32xf32> -> vector<18x32xf32>
    %97 = arith.addf %69, %96 : vector<18x32xf32>
    %cst_81 = arith.constant dense<0.000000e+00> : vector<18xf32>
    %98 = vector.multi_reduction <add>, %97, %cst_81 [1] : vector<18x32xf32> to vector<18xf32>
    %99 = vector.shape_cast %98 : vector<18xf32> to vector<18x1xf32>
    %cst_82 = arith.constant 3.200000e+01 : f32
    %100 = vector.broadcast %cst_82 : f32 to vector<18x1xf32>
    %101 = arith.divf %99, %100 : vector<18x1xf32>
    %102 = vector.broadcast %101 : vector<18x1xf32> to vector<18x32xf32>
    %103 = arith.subf %97, %102 : vector<18x32xf32>
    %104 = arith.mulf %103, %103 : vector<18x32xf32>
    %cst_83 = arith.constant dense<0.000000e+00> : vector<18xf32>
    %105 = vector.multi_reduction <add>, %104, %cst_83 [1] : vector<18x32xf32> to vector<18xf32>
    %106 = vector.shape_cast %105 : vector<18xf32> to vector<18x1xf32>
    %cst_84 = arith.constant 3.200000e+01 : f32
    %107 = vector.broadcast %cst_84 : f32 to vector<18x1xf32>
    %108 = arith.divf %106, %107 : vector<18x1xf32>
    %109 = vector.broadcast %101 : vector<18x1xf32> to vector<18x32xf32>
    %110 = arith.subf %97, %109 : vector<18x32xf32>
    %cst_85 = arith.constant 9.99999974E-6 : f32
    %111 = vector.broadcast %cst_85 : f32 to vector<18x1xf32>
    %112 = arith.addf %108, %111 : vector<18x1xf32>
    %113 = math.rsqrt %112 : vector<18x1xf32>
    %114 = vector.broadcast %113 : vector<18x1xf32> to vector<18x32xf32>
    %115 = arith.mulf %110, %114 : vector<18x32xf32>
    %116 = vector.broadcast %13 : vector<1x32xf32> to vector<18x32xf32>
    %117 = arith.mulf %115, %116 : vector<18x32xf32>
    %118 = vector.broadcast %15 : vector<1x32xf32> to vector<18x32xf32>
    %119 = arith.addf %117, %118 : vector<18x32xf32>
    %c0_86 = arith.constant 0 : index
    %c0_87 = arith.constant 0 : index
    %c0_88 = arith.constant 0 : index
    %120 = vector.load %arg9[%c0_86, %c0_87, %c0_88] : memref<2x32x2048xf32, #tpu.memory_space<vmem>>, vector<1x32x2048xf32>
    %121 = vector.shape_cast %120 : vector<1x32x2048xf32> to vector<32x2048xf32>
    %cst_89 = arith.constant dense<0.000000e+00> : vector<18x2048xf32>
    %122 = tpu.matmul %119, %121, %cst_89 {dimension_numbers = #tpu.dot_dimension_numbers<[1], [0], [0], [1], [0, 0, 1, 1], [], []>} : vector<18x32xf32>, vector<32x2048xf32>, vector<18x2048xf32> -> vector<18x2048xf32>
    %c0_90 = arith.constant 0 : index
    %c0_91 = arith.constant 0 : index
    %c0_92 = arith.constant 0 : index
    %123 = vector.load %arg10[%c0_90, %c0_91, %c0_92] : memref<2x1x2048xf32, #tpu.memory_space<vmem>>, vector<1x1x2048xf32>
    %124 = vector.shape_cast %123 : vector<1x1x2048xf32> to vector<1x2048xf32>
    %125 = vector.broadcast %124 : vector<1x2048xf32> to vector<18x2048xf32>
    %126 = arith.addf %122, %125 : vector<18x2048xf32>
    %cst_93 = arith.constant 5.000000e-01 : f32
    %127 = vector.broadcast %cst_93 : f32 to vector<18x2048xf32>
    %128 = arith.mulf %127, %126 : vector<18x2048xf32>
    %cst_94 = arith.constant 0.707106769 : f32
    %129 = vector.broadcast %cst_94 : f32 to vector<18x2048xf32>
    %130 = arith.mulf %126, %129 : vector<18x2048xf32>
    %131 = math.erf %130 : vector<18x2048xf32>
    %cst_95 = arith.constant 1.000000e+00 : f32
    %132 = vector.broadcast %cst_95 : f32 to vector<18x2048xf32>
    %133 = arith.addf %132, %131 : vector<18x2048xf32>
    %134 = arith.mulf %128, %133 : vector<18x2048xf32>
    %c0_96 = arith.constant 0 : index
    %c0_97 = arith.constant 0 : index
    %c0_98 = arith.constant 0 : index
    %135 = vector.load %arg11[%c0_96, %c0_97, %c0_98] : memref<2x2048x32xf32, #tpu.memory_space<vmem>>, vector<1x2048x32xf32>
    %136 = vector.shape_cast %135 : vector<1x2048x32xf32> to vector<2048x32xf32>
    %cst_99 = arith.constant dense<0.000000e+00> : vector<18x32xf32>
    %137 = tpu.matmul %134, %136, %cst_99 {dimension_numbers = #tpu.dot_dimension_numbers<[1], [0], [0], [1], [0, 0, 1, 1], [], []>} : vector<18x2048xf32>, vector<2048x32xf32>, vector<18x32xf32> -> vector<18x32xf32>
    %138 = arith.addf %97, %137 : vector<18x32xf32>
    %139 = vector.broadcast %17 : vector<1x32xf32> to vector<18x32xf32>
    %140 = arith.addf %138, %139 : vector<18x32xf32>
    %c1_100 = arith.constant 1 : index
    %c0_101 = arith.constant 0 : index
    %c0_102 = arith.constant 0 : index
    %c0_103 = arith.constant 0 : index
    %141 = vector.load %arg6[%c1_100, %c0_101, %c0_102, %c0_103] : memref<2x6x1x32xf32, #tpu.memory_space<vmem>>, vector<1x1x1x32xf32>
    %142 = vector.shape_cast %141 : vector<1x1x1x32xf32> to vector<1x32xf32>
    %c1_104 = arith.constant 1 : index
    %c1_105 = arith.constant 1 : index
    %c0_106 = arith.constant 0 : index
    %c0_107 = arith.constant 0 : index
    %143 = vector.load %arg6[%c1_104, %c1_105, %c0_106, %c0_107] : memref<2x6x1x32xf32, #tpu.memory_space<vmem>>, vector<1x1x1x32xf32>
    %144 = vector.shape_cast %143 : vector<1x1x1x32xf32> to vector<1x32xf32>
    %c1_108 = arith.constant 1 : index
    %c2_109 = arith.constant 2 : index
    %c0_110 = arith.constant 0 : index
    %c0_111 = arith.constant 0 : index
    %145 = vector.load %arg6[%c1_108, %c2_109, %c0_110, %c0_111] : memref<2x6x1x32xf32, #tpu.memory_space<vmem>>, vector<1x1x1x32xf32>
    %146 = vector.shape_cast %145 : vector<1x1x1x32xf32> to vector<1x32xf32>
    %c1_112 = arith.constant 1 : index
    %c3_113 = arith.constant 3 : index
    %c0_114 = arith.constant 0 : index
    %c0_115 = arith.constant 0 : index
    %147 = vector.load %arg6[%c1_112, %c3_113, %c0_114, %c0_115] : memref<2x6x1x32xf32, #tpu.memory_space<vmem>>, vector<1x1x1x32xf32>
    %148 = vector.shape_cast %147 : vector<1x1x1x32xf32> to vector<1x32xf32>
    %c1_116 = arith.constant 1 : index
    %c4_117 = arith.constant 4 : index
    %c0_118 = arith.constant 0 : index
    %c0_119 = arith.constant 0 : index
    %149 = vector.load %arg6[%c1_116, %c4_117, %c0_118, %c0_119] : memref<2x6x1x32xf32, #tpu.memory_space<vmem>>, vector<1x1x1x32xf32>
    %150 = vector.shape_cast %149 : vector<1x1x1x32xf32> to vector<1x32xf32>
    %c1_120 = arith.constant 1 : index
    %c5_121 = arith.constant 5 : index
    %c0_122 = arith.constant 0 : index
    %c0_123 = arith.constant 0 : index
    %151 = vector.load %arg6[%c1_120, %c5_121, %c0_122, %c0_123] : memref<2x6x1x32xf32, #tpu.memory_space<vmem>>, vector<1x1x1x32xf32>
    %152 = vector.shape_cast %151 : vector<1x1x1x32xf32> to vector<1x32xf32>
    %cst_124 = arith.constant dense<0.000000e+00> : vector<18xf32>
    %153 = vector.multi_reduction <add>, %140, %cst_124 [1] : vector<18x32xf32> to vector<18xf32>
    %154 = vector.shape_cast %153 : vector<18xf32> to vector<18x1xf32>
    %cst_125 = arith.constant 3.200000e+01 : f32
    %155 = vector.broadcast %cst_125 : f32 to vector<18x1xf32>
    %156 = arith.divf %154, %155 : vector<18x1xf32>
    %157 = vector.broadcast %156 : vector<18x1xf32> to vector<18x32xf32>
    %158 = arith.subf %140, %157 : vector<18x32xf32>
    %159 = arith.mulf %158, %158 : vector<18x32xf32>
    %cst_126 = arith.constant dense<0.000000e+00> : vector<18xf32>
    %160 = vector.multi_reduction <add>, %159, %cst_126 [1] : vector<18x32xf32> to vector<18xf32>
    %161 = vector.shape_cast %160 : vector<18xf32> to vector<18x1xf32>
    %cst_127 = arith.constant 3.200000e+01 : f32
    %162 = vector.broadcast %cst_127 : f32 to vector<18x1xf32>
    %163 = arith.divf %161, %162 : vector<18x1xf32>
    %164 = vector.broadcast %156 : vector<18x1xf32> to vector<18x32xf32>
    %165 = arith.subf %140, %164 : vector<18x32xf32>
    %cst_128 = arith.constant 9.99999974E-6 : f32
    %166 = vector.broadcast %cst_128 : f32 to vector<18x1xf32>
    %167 = arith.addf %163, %166 : vector<18x1xf32>
    %168 = math.rsqrt %167 : vector<18x1xf32>
    %169 = vector.broadcast %168 : vector<18x1xf32> to vector<18x32xf32>
    %170 = arith.mulf %165, %169 : vector<18x32xf32>
    %171 = vector.broadcast %142 : vector<1x32xf32> to vector<18x32xf32>
    %172 = arith.mulf %170, %171 : vector<18x32xf32>
    %173 = vector.broadcast %144 : vector<1x32xf32> to vector<18x32xf32>
    %174 = arith.addf %172, %173 : vector<18x32xf32>
    %175 = vector.broadcast %146 : vector<1x32xf32> to vector<18x32xf32>
    %176 = arith.addf %140, %175 : vector<18x32xf32>
    %c1_129 = arith.constant 1 : index
    %c0_130 = arith.constant 0 : index
    %c0_131 = arith.constant 0 : index
    %c0_132 = arith.constant 0 : index
    %177 = vector.load %arg7[%c1_129, %c0_130, %c0_131, %c0_132] : memref<2x6x32x16xf32, #tpu.memory_space<vmem>>, vector<1x1x32x16xf32>
    %178 = vector.shape_cast %177 : vector<1x1x32x16xf32> to vector<32x16xf32>
    %cst_133 = arith.constant dense<0.000000e+00> : vector<18x16xf32>
    %179 = tpu.matmul %174, %178, %cst_133 {dimension_numbers = #tpu.dot_dimension_numbers<[1], [0], [0], [1], [0, 0, 1, 1], [], []>} : vector<18x32xf32>, vector<32x16xf32>, vector<18x16xf32> -> vector<18x16xf32>
    %c1_134 = arith.constant 1 : index
    %c2_135 = arith.constant 2 : index
    %c0_136 = arith.constant 0 : index
    %c0_137 = arith.constant 0 : index
    %180 = vector.load %arg7[%c1_134, %c2_135, %c0_136, %c0_137] : memref<2x6x32x16xf32, #tpu.memory_space<vmem>>, vector<1x1x32x16xf32>
    %181 = vector.shape_cast %180 : vector<1x1x32x16xf32> to vector<32x16xf32>
    %cst_138 = arith.constant dense<0.000000e+00> : vector<18x16xf32>
    %182 = tpu.matmul %174, %181, %cst_138 {dimension_numbers = #tpu.dot_dimension_numbers<[1], [0], [0], [1], [0, 0, 1, 1], [], []>} : vector<18x32xf32>, vector<32x16xf32>, vector<18x16xf32> -> vector<18x16xf32>
    %c1_139 = arith.constant 1 : index
    %c4_140 = arith.constant 4 : index
    %c0_141 = arith.constant 0 : index
    %c0_142 = arith.constant 0 : index
    %183 = vector.load %arg7[%c1_139, %c4_140, %c0_141, %c0_142] : memref<2x6x32x16xf32, #tpu.memory_space<vmem>>, vector<1x1x32x16xf32>
    %184 = vector.shape_cast %183 : vector<1x1x32x16xf32> to vector<32x16xf32>
    %cst_143 = arith.constant dense<0.000000e+00> : vector<18x16xf32>
    %185 = tpu.matmul %174, %184, %cst_143 {dimension_numbers = #tpu.dot_dimension_numbers<[1], [0], [0], [1], [0, 0, 1, 1], [], []>} : vector<18x32xf32>, vector<32x16xf32>, vector<18x16xf32> -> vector<18x16xf32>
    %cst_144 = arith.constant dense<0.000000e+00> : vector<18x18xf32>
    %186 = tpu.matmul %179, %182, %cst_144 {dimension_numbers = #tpu.dot_dimension_numbers<[1], [1], [0], [0], [0, 0, 1, 0], [], []>} : vector<18x16xf32>, vector<18x16xf32>, vector<18x18xf32> -> vector<18x18xf32>
    %cst_145 = arith.constant 2.500000e-01 : f32
    %187 = vector.broadcast %cst_145 : f32 to vector<18x18xf32>
    %188 = arith.mulf %186, %187 : vector<18x18xf32>
    %189 = arith.addf %188, %5 : vector<18x18xf32>
    %cst_146 = arith.constant dense<0xFF800000> : vector<18xf32>
    %190 = vector.multi_reduction <maximumf>, %189, %cst_146 [1] : vector<18x18xf32> to vector<18xf32>
    %191 = vector.shape_cast %190 : vector<18xf32> to vector<18x1xf32>
    %192 = vector.broadcast %191 : vector<18x1xf32> to vector<18x18xf32>
    %193 = arith.subf %189, %192 : vector<18x18xf32>
    %194 = math.exp %193 : vector<18x18xf32>
    %cst_147 = arith.constant dense<0.000000e+00> : vector<18xf32>
    %195 = vector.multi_reduction <add>, %194, %cst_147 [1] : vector<18x18xf32> to vector<18xf32>
    %196 = vector.shape_cast %195 : vector<18xf32> to vector<18x1xf32>
    %197 = tpu.reciprocal %196 {approx = true} : vector<18x1xf32> -> vector<18x1xf32>
    %198 = vector.broadcast %197 : vector<18x1xf32> to vector<18x18xf32>
    %199 = arith.mulf %194, %198 : vector<18x18xf32>
    %cst_148 = arith.constant dense<0.000000e+00> : vector<18x16xf32>
    %200 = tpu.matmul %199, %185, %cst_148 {dimension_numbers = #tpu.dot_dimension_numbers<[1], [0], [0], [1], [0, 0, 1, 1], [], []>} : vector<18x18xf32>, vector<18x16xf32>, vector<18x16xf32> -> vector<18x16xf32>
    %c1_149 = arith.constant 1 : index
    %c0_150 = arith.constant 0 : index
    %c0_151 = arith.constant 0 : index
    %c0_152 = arith.constant 0 : index
    %201 = vector.load %arg8[%c1_149, %c0_150, %c0_151, %c0_152] : memref<2x2x16x32xf32, #tpu.memory_space<vmem>>, vector<1x1x16x32xf32>
    %202 = vector.shape_cast %201 : vector<1x1x16x32xf32> to vector<16x32xf32>
    %cst_153 = arith.constant dense<0.000000e+00> : vector<18x32xf32>
    %203 = tpu.matmul %200, %202, %cst_153 {dimension_numbers = #tpu.dot_dimension_numbers<[1], [0], [0], [1], [0, 0, 1, 1], [], []>} : vector<18x16xf32>, vector<16x32xf32>, vector<18x32xf32> -> vector<18x32xf32>
    %204 = arith.addf %176, %203 : vector<18x32xf32>
    %c1_154 = arith.constant 1 : index
    %c1_155 = arith.constant 1 : index
    %c0_156 = arith.constant 0 : index
    %c0_157 = arith.constant 0 : index
    %205 = vector.load %arg7[%c1_154, %c1_155, %c0_156, %c0_157] : memref<2x6x32x16xf32, #tpu.memory_space<vmem>>, vector<1x1x32x16xf32>
    %206 = vector.shape_cast %205 : vector<1x1x32x16xf32> to vector<32x16xf32>
    %cst_158 = arith.constant dense<0.000000e+00> : vector<18x16xf32>
    %207 = tpu.matmul %174, %206, %cst_158 {dimension_numbers = #tpu.dot_dimension_numbers<[1], [0], [0], [1], [0, 0, 1, 1], [], []>} : vector<18x32xf32>, vector<32x16xf32>, vector<18x16xf32> -> vector<18x16xf32>
    %c1_159 = arith.constant 1 : index
    %c3_160 = arith.constant 3 : index
    %c0_161 = arith.constant 0 : index
    %c0_162 = arith.constant 0 : index
    %208 = vector.load %arg7[%c1_159, %c3_160, %c0_161, %c0_162] : memref<2x6x32x16xf32, #tpu.memory_space<vmem>>, vector<1x1x32x16xf32>
    %209 = vector.shape_cast %208 : vector<1x1x32x16xf32> to vector<32x16xf32>
    %cst_163 = arith.constant dense<0.000000e+00> : vector<18x16xf32>
    %210 = tpu.matmul %174, %209, %cst_163 {dimension_numbers = #tpu.dot_dimension_numbers<[1], [0], [0], [1], [0, 0, 1, 1], [], []>} : vector<18x32xf32>, vector<32x16xf32>, vector<18x16xf32> -> vector<18x16xf32>
    %c1_164 = arith.constant 1 : index
    %c5_165 = arith.constant 5 : index
    %c0_166 = arith.constant 0 : index
    %c0_167 = arith.constant 0 : index
    %211 = vector.load %arg7[%c1_164, %c5_165, %c0_166, %c0_167] : memref<2x6x32x16xf32, #tpu.memory_space<vmem>>, vector<1x1x32x16xf32>
    %212 = vector.shape_cast %211 : vector<1x1x32x16xf32> to vector<32x16xf32>
    %cst_168 = arith.constant dense<0.000000e+00> : vector<18x16xf32>
    %213 = tpu.matmul %174, %212, %cst_168 {dimension_numbers = #tpu.dot_dimension_numbers<[1], [0], [0], [1], [0, 0, 1, 1], [], []>} : vector<18x32xf32>, vector<32x16xf32>, vector<18x16xf32> -> vector<18x16xf32>
    %cst_169 = arith.constant dense<0.000000e+00> : vector<18x18xf32>
    %214 = tpu.matmul %207, %210, %cst_169 {dimension_numbers = #tpu.dot_dimension_numbers<[1], [1], [0], [0], [0, 0, 1, 0], [], []>} : vector<18x16xf32>, vector<18x16xf32>, vector<18x18xf32> -> vector<18x18xf32>
    %cst_170 = arith.constant 2.500000e-01 : f32
    %215 = vector.broadcast %cst_170 : f32 to vector<18x18xf32>
    %216 = arith.mulf %214, %215 : vector<18x18xf32>
    %217 = arith.addf %216, %5 : vector<18x18xf32>
    %cst_171 = arith.constant dense<0xFF800000> : vector<18xf32>
    %218 = vector.multi_reduction <maximumf>, %217, %cst_171 [1] : vector<18x18xf32> to vector<18xf32>
    %219 = vector.shape_cast %218 : vector<18xf32> to vector<18x1xf32>
    %220 = vector.broadcast %219 : vector<18x1xf32> to vector<18x18xf32>
    %221 = arith.subf %217, %220 : vector<18x18xf32>
    %222 = math.exp %221 : vector<18x18xf32>
    %cst_172 = arith.constant dense<0.000000e+00> : vector<18xf32>
    %223 = vector.multi_reduction <add>, %222, %cst_172 [1] : vector<18x18xf32> to vector<18xf32>
    %224 = vector.shape_cast %223 : vector<18xf32> to vector<18x1xf32>
    %225 = tpu.reciprocal %224 {approx = true} : vector<18x1xf32> -> vector<18x1xf32>
    %226 = vector.broadcast %225 : vector<18x1xf32> to vector<18x18xf32>
    %227 = arith.mulf %222, %226 : vector<18x18xf32>
    %cst_173 = arith.constant dense<0.000000e+00> : vector<18x16xf32>
    %228 = tpu.matmul %227, %213, %cst_173 {dimension_numbers = #tpu.dot_dimension_numbers<[1], [0], [0], [1], [0, 0, 1, 1], [], []>} : vector<18x18xf32>, vector<18x16xf32>, vector<18x16xf32> -> vector<18x16xf32>
    %c1_174 = arith.constant 1 : index
    %c1_175 = arith.constant 1 : index
    %c0_176 = arith.constant 0 : index
    %c0_177 = arith.constant 0 : index
    %229 = vector.load %arg8[%c1_174, %c1_175, %c0_176, %c0_177] : memref<2x2x16x32xf32, #tpu.memory_space<vmem>>, vector<1x1x16x32xf32>
    %230 = vector.shape_cast %229 : vector<1x1x16x32xf32> to vector<16x32xf32>
    %cst_178 = arith.constant dense<0.000000e+00> : vector<18x32xf32>
    %231 = tpu.matmul %228, %230, %cst_178 {dimension_numbers = #tpu.dot_dimension_numbers<[1], [0], [0], [1], [0, 0, 1, 1], [], []>} : vector<18x16xf32>, vector<16x32xf32>, vector<18x32xf32> -> vector<18x32xf32>
    %232 = arith.addf %204, %231 : vector<18x32xf32>
    %cst_179 = arith.constant dense<0.000000e+00> : vector<18xf32>
    %233 = vector.multi_reduction <add>, %232, %cst_179 [1] : vector<18x32xf32> to vector<18xf32>
    %234 = vector.shape_cast %233 : vector<18xf32> to vector<18x1xf32>
    %cst_180 = arith.constant 3.200000e+01 : f32
    %235 = vector.broadcast %cst_180 : f32 to vector<18x1xf32>
    %236 = arith.divf %234, %235 : vector<18x1xf32>
    %237 = vector.broadcast %236 : vector<18x1xf32> to vector<18x32xf32>
    %238 = arith.subf %232, %237 : vector<18x32xf32>
    %239 = arith.mulf %238, %238 : vector<18x32xf32>
    %cst_181 = arith.constant dense<0.000000e+00> : vector<18xf32>
    %240 = vector.multi_reduction <add>, %239, %cst_181 [1] : vector<18x32xf32> to vector<18xf32>
    %241 = vector.shape_cast %240 : vector<18xf32> to vector<18x1xf32>
    %cst_182 = arith.constant 3.200000e+01 : f32
    %242 = vector.broadcast %cst_182 : f32 to vector<18x1xf32>
    %243 = arith.divf %241, %242 : vector<18x1xf32>
    %244 = vector.broadcast %236 : vector<18x1xf32> to vector<18x32xf32>
    %245 = arith.subf %232, %244 : vector<18x32xf32>
    %cst_183 = arith.constant 9.99999974E-6 : f32
    %246 = vector.broadcast %cst_183 : f32 to vector<18x1xf32>
    %247 = arith.addf %243, %246 : vector<18x1xf32>
    %248 = math.rsqrt %247 : vector<18x1xf32>
    %249 = vector.broadcast %248 : vector<18x1xf32> to vector<18x32xf32>
    %250 = arith.mulf %245, %249 : vector<18x32xf32>
    %251 = vector.broadcast %148 : vector<1x32xf32> to vector<18x32xf32>
    %252 = arith.mulf %250, %251 : vector<18x32xf32>
    %253 = vector.broadcast %150 : vector<1x32xf32> to vector<18x32xf32>
    %254 = arith.addf %252, %253 : vector<18x32xf32>
    %c1_184 = arith.constant 1 : index
    %c0_185 = arith.constant 0 : index
    %c0_186 = arith.constant 0 : index
    %255 = vector.load %arg9[%c1_184, %c0_185, %c0_186] : memref<2x32x2048xf32, #tpu.memory_space<vmem>>, vector<1x32x2048xf32>
    %256 = vector.shape_cast %255 : vector<1x32x2048xf32> to vector<32x2048xf32>
    %cst_187 = arith.constant dense<0.000000e+00> : vector<18x2048xf32>
    %257 = tpu.matmul %254, %256, %cst_187 {dimension_numbers = #tpu.dot_dimension_numbers<[1], [0], [0], [1], [0, 0, 1, 1], [], []>} : vector<18x32xf32>, vector<32x2048xf32>, vector<18x2048xf32> -> vector<18x2048xf32>
    %c1_188 = arith.constant 1 : index
    %c0_189 = arith.constant 0 : index
    %c0_190 = arith.constant 0 : index
    %258 = vector.load %arg10[%c1_188, %c0_189, %c0_190] : memref<2x1x2048xf32, #tpu.memory_space<vmem>>, vector<1x1x2048xf32>
    %259 = vector.shape_cast %258 : vector<1x1x2048xf32> to vector<1x2048xf32>
    %260 = vector.broadcast %259 : vector<1x2048xf32> to vector<18x2048xf32>
    %261 = arith.addf %257, %260 : vector<18x2048xf32>
    %cst_191 = arith.constant 5.000000e-01 : f32
    %262 = vector.broadcast %cst_191 : f32 to vector<18x2048xf32>
    %263 = arith.mulf %262, %261 : vector<18x2048xf32>
    %cst_192 = arith.constant 0.707106769 : f32
    %264 = vector.broadcast %cst_192 : f32 to vector<18x2048xf32>
    %265 = arith.mulf %261, %264 : vector<18x2048xf32>
    %266 = math.erf %265 : vector<18x2048xf32>
    %cst_193 = arith.constant 1.000000e+00 : f32
    %267 = vector.broadcast %cst_193 : f32 to vector<18x2048xf32>
    %268 = arith.addf %267, %266 : vector<18x2048xf32>
    %269 = arith.mulf %263, %268 : vector<18x2048xf32>
    %c1_194 = arith.constant 1 : index
    %c0_195 = arith.constant 0 : index
    %c0_196 = arith.constant 0 : index
    %270 = vector.load %arg11[%c1_194, %c0_195, %c0_196] : memref<2x2048x32xf32, #tpu.memory_space<vmem>>, vector<1x2048x32xf32>
    %271 = vector.shape_cast %270 : vector<1x2048x32xf32> to vector<2048x32xf32>
    %cst_197 = arith.constant dense<0.000000e+00> : vector<18x32xf32>
    %272 = tpu.matmul %269, %271, %cst_197 {dimension_numbers = #tpu.dot_dimension_numbers<[1], [0], [0], [1], [0, 0, 1, 1], [], []>} : vector<18x2048xf32>, vector<2048x32xf32>, vector<18x32xf32> -> vector<18x32xf32>
    %273 = arith.addf %232, %272 : vector<18x32xf32>
    %274 = vector.broadcast %152 : vector<1x32xf32> to vector<18x32xf32>
    %275 = arith.addf %273, %274 : vector<18x32xf32>
    %c0_198 = arith.constant 0 : index
    %c0_199 = arith.constant 0 : index
    %276 = vector.load %arg5[%c0_198, %c0_199] : memref<2x18xf32, #tpu.memory_space<vmem>>, vector<2x18xf32>
    %cst_200 = arith.constant dense<0.000000e+00> : vector<2x32xf32>
    %277 = tpu.matmul %276, %275, %cst_200 {dimension_numbers = #tpu.dot_dimension_numbers<[1], [0], [0], [1], [0, 0, 1, 1], [], []>} : vector<2x18xf32>, vector<18x32xf32>, vector<2x32xf32> -> vector<2x32xf32>
    %c0_201 = arith.constant 0 : index
    %c0_202 = arith.constant 0 : index
    %278 = vector.load %arg12[%c0_201, %c0_202] : memref<1x32xf32, #tpu.memory_space<vmem>>, vector<1x32xf32>
    %c0_203 = arith.constant 0 : index
    %c0_204 = arith.constant 0 : index
    %279 = vector.load %arg13[%c0_203, %c0_204] : memref<1x32xf32, #tpu.memory_space<vmem>>, vector<1x32xf32>
    %cst_205 = arith.constant dense<0.000000e+00> : vector<2xf32>
    %280 = vector.multi_reduction <add>, %277, %cst_205 [1] : vector<2x32xf32> to vector<2xf32>
    %281 = vector.shape_cast %280 : vector<2xf32> to vector<2x1xf32>
    %cst_206 = arith.constant 3.200000e+01 : f32
    %282 = vector.broadcast %cst_206 : f32 to vector<2x1xf32>
    %283 = arith.divf %281, %282 : vector<2x1xf32>
    %284 = vector.broadcast %283 : vector<2x1xf32> to vector<2x32xf32>
    %285 = arith.subf %277, %284 : vector<2x32xf32>
    %286 = arith.mulf %285, %285 : vector<2x32xf32>
    %cst_207 = arith.constant dense<0.000000e+00> : vector<2xf32>
    %287 = vector.multi_reduction <add>, %286, %cst_207 [1] : vector<2x32xf32> to vector<2xf32>
    %288 = vector.shape_cast %287 : vector<2xf32> to vector<2x1xf32>
    %cst_208 = arith.constant 3.200000e+01 : f32
    %289 = vector.broadcast %cst_208 : f32 to vector<2x1xf32>
    %290 = arith.divf %288, %289 : vector<2x1xf32>
    %291 = vector.broadcast %283 : vector<2x1xf32> to vector<2x32xf32>
    %292 = arith.subf %277, %291 : vector<2x32xf32>
    %cst_209 = arith.constant 9.99999974E-6 : f32
    %293 = vector.broadcast %cst_209 : f32 to vector<2x1xf32>
    %294 = arith.addf %290, %293 : vector<2x1xf32>
    %295 = math.rsqrt %294 : vector<2x1xf32>
    %296 = vector.broadcast %295 : vector<2x1xf32> to vector<2x32xf32>
    %297 = arith.mulf %292, %296 : vector<2x32xf32>
    %298 = vector.broadcast %278 : vector<1x32xf32> to vector<2x32xf32>
    %299 = arith.mulf %297, %298 : vector<2x32xf32>
    %300 = vector.broadcast %279 : vector<1x32xf32> to vector<2x32xf32>
    %301 = arith.addf %299, %300 : vector<2x32xf32>
    %c0_210 = arith.constant 0 : index
    %c0_211 = arith.constant 0 : index
    %302 = vector.load %arg14[%c0_210, %c0_211] : memref<32x16xf32, #tpu.memory_space<vmem>>, vector<32x16xf32>
    %cst_212 = arith.constant dense<0.000000e+00> : vector<2x16xf32>
    %303 = tpu.matmul %301, %302, %cst_212 {dimension_numbers = #tpu.dot_dimension_numbers<[1], [0], [0], [1], [0, 0, 1, 1], [], []>} : vector<2x32xf32>, vector<32x16xf32>, vector<2x16xf32> -> vector<2x16xf32>
    %c0_213 = arith.constant 0 : index
    %c0_214 = arith.constant 0 : index
    %304 = vector.load %arg15[%c0_213, %c0_214] : memref<1x16xf32, #tpu.memory_space<vmem>>, vector<1x16xf32>
    %305 = vector.broadcast %304 : vector<1x16xf32> to vector<2x16xf32>
    %306 = arith.addf %303, %305 : vector<2x16xf32>
    %cst_215 = arith.constant 5.000000e-01 : f32
    %307 = vector.broadcast %cst_215 : f32 to vector<2x16xf32>
    %308 = arith.mulf %307, %306 : vector<2x16xf32>
    %cst_216 = arith.constant 0.707106769 : f32
    %309 = vector.broadcast %cst_216 : f32 to vector<2x16xf32>
    %310 = arith.mulf %306, %309 : vector<2x16xf32>
    %311 = math.erf %310 : vector<2x16xf32>
    %cst_217 = arith.constant 1.000000e+00 : f32
    %312 = vector.broadcast %cst_217 : f32 to vector<2x16xf32>
    %313 = arith.addf %312, %311 : vector<2x16xf32>
    %314 = arith.mulf %308, %313 : vector<2x16xf32>
    %c0_218 = arith.constant 0 : index
    %c0_219 = arith.constant 0 : index
    %315 = vector.load %arg16[%c0_218, %c0_219] : memref<16x10xf32, #tpu.memory_space<vmem>>, vector<16x10xf32>
    %cst_220 = arith.constant dense<0.000000e+00> : vector<2x10xf32>
    %316 = tpu.matmul %314, %315, %cst_220 {dimension_numbers = #tpu.dot_dimension_numbers<[1], [0], [0], [1], [0, 0, 1, 1], [], []>} : vector<2x16xf32>, vector<16x10xf32>, vector<2x10xf32> -> vector<2x10xf32>
    %c0_221 = arith.constant 0 : index
    %c0_222 = arith.constant 0 : index
    %317 = vector.load %arg17[%c0_221, %c0_222] : memref<1x10xf32, #tpu.memory_space<vmem>>, vector<1x10xf32>
    %318 = vector.broadcast %317 : vector<1x10xf32> to vector<2x10xf32>
    %319 = arith.addf %316, %318 : vector<2x10xf32>
    %c0_223 = arith.constant 0 : index
    %c0_224 = arith.constant 0 : index
    %320 = vector.load %arg18[%c0_223, %c0_224] : memref<2x10xf32, #tpu.memory_space<vmem>>, vector<2x10xf32>
    tpu.vector_store %arg18[%c0_223, %c0_224], %319 {strides = array<i32>} : memref<2x10xf32, #tpu.memory_space<vmem>>, vector<2x10xf32>,
    return
  }
  func.func @transform_0(%arg0: i32) -> (i32, i32) {
    %c0_i32 = arith.constant 0 : i32
    %c0_i32_0 = arith.constant 0 : i32
    %c0_i32_1 = arith.constant 0 : i32
    return %c0_i32, %c0_i32_0 : i32, i32
  }
  func.func @transform_1(%arg0: i32) -> (i32, i32) {
    %c0_i32 = arith.constant 0 : i32
    %c0_i32_0 = arith.constant 0 : i32
    %c0_i32_1 = arith.constant 0 : i32
    return %c0_i32, %c0_i32_0 : i32, i32
  }
  func.func @transform_2(%arg0: i32) -> (i32, i32) {
    %c0_i32 = arith.constant 0 : i32
    %c0_i32_0 = arith.constant 0 : i32
    %c0_i32_1 = arith.constant 0 : i32
    return %c0_i32, %c0_i32_0 : i32, i32
  }
  func.func @transform_3(%arg0: i32) -> (i32, i32) {
    %c0_i32 = arith.constant 0 : i32
    %c0_i32_0 = arith.constant 0 : i32
    %c0_i32_1 = arith.constant 0 : i32
    return %c0_i32, %c0_i32_0 : i32, i32
  }
  func.func @transform_4(%arg0: i32) -> (i32, i32) {
    %c0_i32 = arith.constant 0 : i32
    %c0_i32_0 = arith.constant 0 : i32
    %c0_i32_1 = arith.constant 0 : i32
    return %c0_i32, %c0_i32_0 : i32, i32
  }
  func.func @transform_5(%arg0: i32) -> (i32, i32, i32, i32) {
    %c0_i32 = arith.constant 0 : i32
    %c0_i32_0 = arith.constant 0 : i32
    %c0_i32_1 = arith.constant 0 : i32
    %c0_i32_2 = arith.constant 0 : i32
    %c0_i32_3 = arith.constant 0 : i32
    return %c0_i32, %c0_i32_0, %c0_i32_1, %c0_i32_2 : i32, i32, i32, i32
  }
  func.func @transform_6(%arg0: i32) -> (i32, i32, i32, i32) {
    %c0_i32 = arith.constant 0 : i32
    %c0_i32_0 = arith.constant 0 : i32
    %c0_i32_1 = arith.constant 0 : i32
    %c0_i32_2 = arith.constant 0 : i32
    %c0_i32_3 = arith.constant 0 : i32
    return %c0_i32, %c0_i32_0, %c0_i32_1, %c0_i32_2 : i32, i32, i32, i32
  }
  func.func @transform_7(%arg0: i32) -> (i32, i32, i32, i32) {
    %c0_i32 = arith.constant 0 : i32
    %c0_i32_0 = arith.constant 0 : i32
    %c0_i32_1 = arith.constant 0 : i32
    %c0_i32_2 = arith.constant 0 : i32
    %c0_i32_3 = arith.constant 0 : i32
    return %c0_i32, %c0_i32_0, %c0_i32_1, %c0_i32_2 : i32, i32, i32, i32
  }
  func.func @transform_8(%arg0: i32) -> (i32, i32, i32) {
    %c0_i32 = arith.constant 0 : i32
    %c0_i32_0 = arith.constant 0 : i32
    %c0_i32_1 = arith.constant 0 : i32
    %c0_i32_2 = arith.constant 0 : i32
    return %c0_i32, %c0_i32_0, %c0_i32_1 : i32, i32, i32
  }
  func.func @transform_9(%arg0: i32) -> (i32, i32, i32) {
    %c0_i32 = arith.constant 0 : i32
    %c0_i32_0 = arith.constant 0 : i32
    %c0_i32_1 = arith.constant 0 : i32
    %c0_i32_2 = arith.constant 0 : i32
    return %c0_i32, %c0_i32_0, %c0_i32_1 : i32, i32, i32
  }
  func.func @transform_10(%arg0: i32) -> (i32, i32, i32) {
    %c0_i32 = arith.constant 0 : i32
    %c0_i32_0 = arith.constant 0 : i32
    %c0_i32_1 = arith.constant 0 : i32
    %c0_i32_2 = arith.constant 0 : i32
    return %c0_i32, %c0_i32_0, %c0_i32_1 : i32, i32, i32
  }
  func.func @transform_11(%arg0: i32) -> (i32, i32) {
    %c0_i32 = arith.constant 0 : i32
    %c0_i32_0 = arith.constant 0 : i32
    %c0_i32_1 = arith.constant 0 : i32
    return %c0_i32, %c0_i32_0 : i32, i32
  }
  func.func @transform_12(%arg0: i32) -> (i32, i32) {
    %c0_i32 = arith.constant 0 : i32
    %c0_i32_0 = arith.constant 0 : i32
    %c0_i32_1 = arith.constant 0 : i32
    return %c0_i32, %c0_i32_0 : i32, i32
  }
  func.func @transform_13(%arg0: i32) -> (i32, i32) {
    %c0_i32 = arith.constant 0 : i32
    %c0_i32_0 = arith.constant 0 : i32
    %c0_i32_1 = arith.constant 0 : i32
    return %c0_i32, %c0_i32_0 : i32, i32
  }
  func.func @transform_14(%arg0: i32) -> (i32, i32) {
    %c0_i32 = arith.constant 0 : i32
    %c0_i32_0 = arith.constant 0 : i32
    %c0_i32_1 = arith.constant 0 : i32
    return %c0_i32, %c0_i32_0 : i32, i32
  }
  func.func @transform_15(%arg0: i32) -> (i32, i32) {
    %c0_i32 = arith.constant 0 : i32
    %c0_i32_0 = arith.constant 0 : i32
    %c0_i32_1 = arith.constant 0 : i32
    return %c0_i32, %c0_i32_0 : i32, i32
  }
  func.func @transform_16(%arg0: i32) -> (i32, i32) {
    %c0_i32 = arith.constant 0 : i32
    %c0_i32_0 = arith.constant 0 : i32
    %c0_i32_1 = arith.constant 0 : i32
    return %c0_i32, %c0_i32_0 : i32, i32
  }
  func.func @transform_17(%arg0: i32) -> (i32, i32) {
    %c0_i32 = arith.constant 0 : i32
    %c0_i32_0 = arith.constant 0 : i32
    %c0_i32_1 = arith.constant 0 : i32
    return %c0_i32, %c0_i32_0 : i32, i32
  }
}

</mosaic_0001>

<bundles_post_ra>
// kernel: vit_forward.1
= control target key start
LH: loop header
LB: loop body
LE: loop exit
PB: predicated region body
PF: predicated region fallthrough
CT: control target
= control target key end

     0   :  { %s13992_s0 = inlined_call_operand.vmem [shape: f32[18,192], index: 0, kind: input, shape index: {}]   ;;  %s13993_s1 = inlined_call_operand.vmem [shape: f32[192,32], index: 1, kind: input, shape index: {}]   ;;  %s13994_s2 = inlined_call_operand.vmem [shape: f32[18,32], index: 2, kind: input, shape index: {}]   ;;  %s13995_s3 = inlined_call_operand.vmem [shape: f32[18,18], index: 3, kind: input, shape index: {}]   ;;  %s13996_s4 = inlined_call_operand.vmem [shape: f32[2,18], index: 4, kind: input, shape index: {}]   ;;  %s13997_s5 = inlined_call_operand.vmem [shape: f32[2,6,1,32], index: 5, kind: input, shape index: {}]   ;;  %s13998_s6 = inlined_call_operand.vmem [shape: f32[2,6,32,16], index: 6, kind: input, shape index: {}]   ;;  %s13999_s7 = inlined_call_operand.vmem [shape: f32[2,2,16,32], index: 7, kind: input, shape index: {}]   ;;  %s14000_s8 = inlined_call_operand.vmem [shape: f32[2,32,2048], index: 8, kind: input, shape index: {}]   ;;  %s14001_s9 = inlined_call_operand.vmem [shape: f32[2,1,2048], index: 9, kind: input, shape index: {}]   ;;  %s14002_s10 = inlined_call_operand.vmem [shape: f32[2,2048,32], index: 10, kind: input, shape index: {}]   ;;  %s14003_s11 = inlined_call_operand.vmem [shape: f32[1,32], index: 11, kind: input, shape index: {}]   ;;  %s14004_s12 = inlined_call_operand.vmem [shape: f32[1,32], index: 12, kind: input, shape index: {}]   ;;  %s14005_s13 = inlined_call_operand.vmem [shape: f32[32,16], index: 13, kind: input, shape index: {}]   ;;  %s14006_s14 = inlined_call_operand.vmem [shape: f32[1,16], index: 14, kind: input, shape index: {}]   ;;  %s14007_s15 = inlined_call_operand.vmem [shape: f32[16,10], index: 15, kind: input, shape index: {}]   ;;  %s14008_s16 = inlined_call_operand.vmem [shape: f32[1,10], index: 16, kind: input, shape index: {}]   ;;  %s14009_s17 = inlined_call_operand.hbm [shape: f32[2,10], index: 17, kind: output, shape index: {}]  }
   0x1   :  { %14042 = sst [smem:[#allocation22_spill]] %s13992_s0 }
   0x2   :  { %14043 = sst [smem:[#allocation23_spill]] %s13993_s1 }
   0x3   :  { %s14044_s26 = sld [smem:[#allocation23_spill]]  ;;  %v14014_v3 = vmov 0.0|0.0   ;;  %vm90_vm0 = vcmask 523264   ;;  %s14045_s29 = sld [smem:[#allocation22_spill]] }
   0x4   :  { %8790 = vmatprep.subr.bf16.mxu0 %v14014_v3  ;;  %8826 = vmatprep.subr.bf16.mxu1 %v14014_v3 }
   0x9   :  { %v63_v0 = vld [vmem:[%s14044_s26] sm:$0xff]  ;;  %v64_v1 = vld [vmem:[%s14044_s26 + $0x8] sm:$0xff]  ;;  %v65_v2 = vld [vmem:[%s14044_s26 + $0x10] sm:$0xff] }
   0xa   :  { %v8791_v4 = vpack.c.bf16 %v64_v1, %v63_v0  ;;  %v66_v5 = vld [vmem:[%s14044_s26 + $0x18] sm:$0xff]  ;;  %v67_v7 = vld [vmem:[%s14044_s26 + $0x20] sm:$0xff]  ;;  %v68_v8 = vld [vmem:[%s14044_s26 + $0x28] sm:$0xff] }
   0xb   :  { %v8794_v6 = vpack.c.bf16 %v66_v5, %v65_v2  ;;  %v8797_v9 = vpack.c.bf16 %v68_v8, %v67_v7  ;;  %v69_v10 = vld [vmem:[%s14044_s26 + $0x30] sm:$0xff]  ;;  %v70_v11 = vld [vmem:[%s14044_s26 + $0x38] sm:$0xff]  ;;  %v58_v12 = vld [vmem:[%s14045_s29 + $0x8] sm:$0xff] }
   0xc   :  { %8792 = vmatpush1.bf16.msra.mxu0 %v8791_v4  ;;  %7025 = vmatprep.mubr.msk.f32.mxu0 %vm90_vm0, %v58_v12 }
   0xd   :  { %8793 = vmatprep.subr.bf16.mxu0 %v14014_v3 }
  0x10   :  { %8795 = vmatpush1.bf16.msra.mxu0 %v8794_v6 }
  0x11   :  { %8796 = vmatprep.subr.bf16.mxu0 %v14014_v3 }
  0x12   :  { %22 = vsyncpa [#allocation3], 0  ;;  %v8800_v13 = vpack.c.bf16 %v70_v11, %v69_v10  ;;  %v71_v14 = vld [vmem:[%s14044_s26 + $0x40] sm:$0xff]  ;;  %v72_v15 = vld [vmem:[%s14044_s26 + $0x48] sm:$0xff]  ;;  %vm194_vm1 = vcmask 261120   ;;  %vm201_vm2 = vcmask 254976  }
  0x13   :  { %v8803_v16 = vpack.c.bf16 %v72_v15, %v71_v14  ;;  %v73_v17 = vld [vmem:[%s14044_s26 + $0x50] sm:$0xff]  ;;  %v74_v18 = vld [vmem:[%s14044_s26 + $0x58] sm:$0xff]  ;;  %v75_v20 = vld [vmem:[%s14044_s26 + $0x60] sm:$0xff]  ;;  %vm9908_vm3 = vmmov 0   ;;  %vm526_vm4 = vcmask 130048   ;;  %vm675_vm6 = vcmask 1041408  }
  0x14   :  { %8798 = vmatpush1.bf16.msra.mxu0 %v8797_v9  ;;  %v8806_v19 = vpack.c.bf16 %v74_v18, %v73_v17  ;;  %v76_v21 = vld [vmem:[%s14044_s26 + $0x68] sm:$0xff]  ;;  %v77_v23 = vld [vmem:[%s14044_s26 + $0x70] sm:$0xff]  ;;  %v78_v24 = vld [vmem:[%s14044_s26 + $0x78] sm:$0xff]  ;;  %vm631_vm7 = vcmask 146432   ;;  %vm638_vm8 = vcmask 140288   ;;  %vm7009_vm9 = vcmask 74752  }
  0x15   :  { %8799 = vmatprep.subr.bf16.mxu0 %v14014_v3  ;;  %v8809_v22 = vpack.c.bf16 %v76_v21, %v75_v20  ;;  %v8812_v25 = vpack.c.bf16 %v78_v24, %v77_v23  ;;  %v79_v26 = vld [vmem:[%s14044_s26 + $0x80] sm:$0xff]  ;;  %v80_v27 = vld [vmem:[%s14044_s26 + $0x88] sm:$0xff]  ;;  %v81_v29 = vld [vmem:[%s14044_s26 + $0x90] sm:$0xff] }
  0x16   :  { %v8815_v28 = vpack.c.bf16 %v80_v27, %v79_v26  ;;  %v82_v30 = vld [vmem:[%s14044_s26 + $0x98] sm:$0xff]  ;;  %v83_v32 = vld [vmem:[%s14044_s26 + $0xa0] sm:$0xff]  ;;  %v84_v33 = vld [vmem:[%s14044_s26 + $0xa8] sm:$0xff] }
  0x17   :  { %v8818_v31 = vpack.c.bf16 %v82_v30, %v81_v29  ;;  %v8821_v34 = vpack.c.bf16 %v84_v33, %v83_v32  ;;  %v85_v35 = vld [vmem:[%s14044_s26 + $0xb0] sm:$0xff]  ;;  %v86_v36 = vld [vmem:[%s14044_s26 + $0xb8] sm:$0xff]  ;;  %v57_v38 = vld [vmem:[%s14045_s29] sm:$0xff] }
  0x18   :  { %8801 = vmatpush1.bf16.msra.mxu0 %v8800_v13  ;;  %v8824_v37 = vpack.c.bf16 %v86_v36, %v85_v35  ;;  %v60_v39 = vld [vmem:[%s14045_s29 + $0x18] sm:$0xff]  ;;  %v59_v40 = vld [vmem:[%s14045_s29 + $0x10] sm:$0xff]  ;;  %v62_v41 = vld [vmem:[%s14045_s29 + $0x28] sm:$0x3] }
  0x19   :  { %8802 = vmatprep.subr.bf16.mxu0 %v14014_v3  ;;  %v61_v42 = vld [vmem:[%s14045_s29 + $0x20] sm:$0x3]  ;;  %v88_v47 = vld [vmem:[%s13994_s2 + $0x8] sm:$0xff]  ;;  %v89_v52 = vld [vmem:[%s13994_s2 + $0x10] sm:$0x3] }
  0x1a   :  { %v87_v43 = vld [vmem:[%s13994_s2] sm:$0xff]  ;;  %v264_v11 = vld [vmem:[%s13998_s6 + $0x8] sm:$0xff]  ;;  %v265_v13 = vld [vmem:[%s13998_s6 + $0x10] sm:$0xff] }
  0x1b   :  { %v263_v10 = vld [vmem:[%s13998_s6] sm:$0xff]  ;;  %v266_v14 = vld [vmem:[%s13998_s6 + $0x18] sm:$0xff]  ;;  %v7040_v30 = vld [vmem:[%s13998_s6 + $0x48] sm:$0xff] }
  0x1c   :  { %8804 = vmatpush1.bf16.msra.mxu0 %v8803_v16  ;;  %v8827_v12 = vpack.c.bf16 %v264_v11, %v263_v10  ;;  %v8830_v15 = vpack.c.bf16 %v266_v14, %v265_v13  ;;  %v14012_v16 = vmov 0.0   ;;  %v7033_v27 = vld [vmem:[%s13997_s5] ss:$0 sm:$0xff]  ;;  %vm10231_vm5 = vmpackc.low %vm526_vm4, %vm526_vm4 }
  0x1d   :  { %8805 = vmatprep.subr.bf16.mxu0 %v14014_v3  ;;  %8395 = vmatprep.mubr.msk.f32.mxu1 %vm9908_vm3, %v14012_v16  ;;  %v7039_v29 = vld [vmem:[%s13998_s6 + $0x40] sm:$0xff] }
  0x1e   :  { %8828 = vmatpush3.bf16.msra.mxu1 %v8827_v12  ;;  %v10255_v14 = vld [vmem:[%s13995_s3] sm:$0xff] }
  0x1f   :  { %8829 = vmatprep.subr.bf16.mxu1 %v14014_v3 }
  0x20   :  { %8807 = vmatpush1.bf16.msra.mxu0 %v8806_v19 }
  0x21   :  { %8808 = vmatprep.subr.bf16.mxu0 %v14014_v3 }
  0x22   :  { %8831 = vmatpush3.bf16.msra.mxu1 %v8830_v15 }
  0x23   :  { %8832 = vmatprep.subr.bf16.mxu1 %v14014_v3 }
  0x24   :  { %8810 = vmatpush1.bf16.msra.mxu0 %v8809_v22 }
  0x25   :  { %8811 = vmatprep.subr.bf16.mxu0 %v14014_v3 }
  0x28   :  { %8813 = vmatpush1.bf16.msra.mxu0 %v8812_v25 }
  0x29   :  { %8814 = vmatprep.subr.bf16.mxu0 %v14014_v3 }
  0x2c   :  { %8816 = vmatpush1.bf16.msra.mxu0 %v8815_v28 }
  0x2d   :  { %8817 = vmatprep.subr.bf16.mxu0 %v14014_v3 }
  0x30   :  { %8819 = vmatpush1.bf16.msra.mxu0 %v8818_v31  ;;  %v7034_v31 = vld [vmem:[%s13997_s5 + $0x1] ss:$0 sm:$0xff] }
  0x31   :  { %8820 = vmatprep.subr.bf16.mxu0 %v14014_v3 }
  0x34   :  { %8822 = vmatpush1.bf16.msra.mxu0 %v8821_v34  ;;  %v8833_v34 = vpack.c.bf16 %v7040_v30, %v7039_v29 }
  0x35   :  { %8823 = vmatprep.subr.bf16.mxu0 %v14014_v3 }
  0x38   :  { %8825 = vmatpush1.bf16.msra.mxu0 %v8824_v37  ;;  %v7041_v37 = vld [vmem:[%s13998_s6 + $0x50] sm:$0xff] }
  0x39   :  { %8851 = vmatprep.subr.bf16.mxu0 %v14014_v3 }
  0x3b   :  { %165 = vmatmul.mubr.f32.vlgmr.msra.gmra.mrb[0].mxu0 %v57_v38  ;;  %v7042_v38 = vld [vmem:[%s13998_s6 + $0x58] sm:$0xff] }
  0x3c   :  { %7026 = vmatprep.mubr.msk.f32.mxu0 %vm90_vm0, %v60_v39 }
  0x3f   :  { %170 = vmatmul.mubr.f32.gmra.mrb[2].mxu0 %v59_v40 }
  0x40   :  { %7027 = vmatprep.mubr.msk.f32.mxu0 %vm90_vm0, %v62_v41  ;;  %v8836_v41 = vpack.c.bf16 %v7042_v38, %v7041_v37 }
  0x43   :  { %175 = vmatmul.mubr.f32.gmra.mrb[4].mxu0 %v61_v42 }
  0x44   :  { %8472 = vmatprep.mubr.msk.f32.mxu0 %vm9908_vm3, %v14012_v16 }
 0x10e   :  { %v166_v44 = vpop.f32.mrb[0].mxu0 }
 0x10f   :  { %v10111_v45 = vadd.f32 %v166_v44, %v87_v43  ;;  %v168_v46 = vpop.f32.mrb[1].mxu0 }
 0x111   :  { %v195_v48 = vsel %vm194_vm1, %v10111_v45, 0.0 }
 0x112   :  { %v171_v49 = vpop.f32.mrb[2].mxu0  ;;  %196 = vadd.xlane.f32.xlu0 %v195_v48  ;;  %v7047_v48 = vld [vmem:[%s13998_s6 + $0x88] sm:$0xff] }
 0x113   :  { %v10118_v50 = vadd.f32 %v171_v49, %v88_v47  ;;  %v173_v51 = vpop.f32.mrb[3].mxu0  ;;  %v7046_v47 = vld [vmem:[%s13998_s6 + $0x80] sm:$0xff] }
 0x114   :  { %v8839_v49 = vpack.c.bf16 %v7047_v48, %v7046_v47  ;;  %v7048_v51 = vld [vmem:[%s13998_s6 + $0x90] sm:$0xff] }
 0x115   :  { %v198_v53 = vsel %vm194_vm1, %v10118_v50, 0.0 }
 0x116   :  { %v176_v54 = vpop.f32.mrb[4].mxu0  ;;  %199 = vadd.xlane.f32.xlu0 %v198_v53 }
 0x117   :  { %v10125_v55 = vadd.f32 %v176_v54, %v89_v52  ;;  %v178_v56 = vpop.f32.mrb[5].mxu0  ;;  %v7049_v52 = vld [vmem:[%s13998_s6 + $0x98] sm:$0xff] }
 0x118   :  { %v8842_v53 = vpack.c.bf16 %v7049_v52, %v7048_v51  ;;  %v759_v52 = vld [vmem:[%s13999_s7] sm:$0xff] }
 0x119   :  { %v202_v57 = vsel %vm201_vm2, %v10125_v55, 0.0 }
 0x11a   :  { %203 = vadd.xlane.f32.xlu1 %v202_v57 }
 0x19f   :  { %v197_v58 = vpop.xlane.xlu0 %196 }
 0x1a0   :  { %v206_v59 = vmul.f32 0.03125, %v197_v58 }
 0x1a2   :  { %v209_v60 = vsub.f32 %v10111_v45, %v206_v59 }
 0x1a3   :  { %v200_v61 = vpop.xlane.xlu0 %199 }
 0x1a4   :  { %v207_v62 = vmul.f32 0.03125, %v200_v61  ;;  %v212_v63 = vmul.f32 %v209_v60, %v209_v60 }
 0x1a6   :  { %v210_v0 = vsub.f32 %v10118_v50, %v207_v62  ;;  %v215_v1 = vsel %vm194_vm1, %v212_v63, 0.0 }
 0x1a7   :  { %v204_v2 = vpop.xlane.xlu1 %203  ;;  %216 = vadd.xlane.f32.xlu1 %v215_v1 }
 0x1a8   :  { %v208_v4 = vmul.f32 0.03125, %v204_v2  ;;  %v213_v5 = vmul.f32 %v210_v0, %v210_v0 }
 0x1aa   :  { %v211_v6 = vsub.f32 %v10125_v55, %v208_v4  ;;  %v218_v7 = vsel %vm194_vm1, %v213_v5, 0.0 }
 0x1ab   :  { %219 = vadd.xlane.f32.xlu0 %v218_v7 }
 0x1ac   :  { %v214_v8 = vmul.f32 %v211_v6, %v211_v6 }
 0x1ae   :  { %v221_v9 = vsel %vm201_vm2, %v214_v8, 0.0 }
 0x1af   :  { %222 = vadd.xlane.f32.xlu1 %v221_v9 }
 0x234   :  { %v217_v17 = vpop.xlane.xlu1 %216 }
 0x235   :  { %v224_v18 = vmul.f32 0.03125, %v217_v17 }
 0x237   :  { %v227_v19 = vadd.f32 1e-05, %v224_v18 }
 0x238   :  { %v220_v20 = vpop.xlane.xlu0 %219 }
 0x239   :  { %9612 = vrsqrt.f32 %v227_v19  ;;  %v225_v21 = vmul.f32 0.03125, %v220_v20  ;;  %v10261_v20 = vld [vmem:[%s13995_s3 + $0x8] sm:$0xff] }
 0x23b   :  { %v228_v22 = vadd.f32 1e-05, %v225_v21 }
 0x23c   :  { %v223_v23 = vpop.xlane.xlu1 %222 }
 0x23d   :  { %9614 = vrsqrt.f32 %v228_v22  ;;  %v226_v24 = vmul.f32 0.03125, %v223_v23 }
 0x23f   :  { %v229_v25 = vadd.f32 1e-05, %v226_v24 }
 0x241   :  { %9616 = vrsqrt.f32 %v229_v25 }
 0x243   :  { %v9613_v26 = vpop.eup %9612 }
 0x244   :  { %v233_v28 = vmul.f32 %v9613_v26, %v209_v60  ;;  %v10268_v26 = vld [vmem:[%s13995_s3 + $0x10] sm:$0x3] }
 0x246   :  { %v242_v32 = vmul.f32 %v7033_v27, %v233_v28 }
 0x247   :  { %v9615_v33 = vpop.eup %9614 }
 0x248   :  { %v10165_v35 = vadd.f32 %v7034_v31, %v242_v32  ;;  %v234_v36 = vmul.f32 %v9615_v33, %v210_v0  ;;  %v14046_v0 = vmov 0 }
 0x249   :  { %v14047_v0 = vsel %vm10231_vm5, 4294967295, %v14046_v0 }
 0x24a   :  { %v243_v39 = vmul.f32 %v7033_v27, %v234_v36  ;;  %8396 = vmatmul.mubr.msk.f32.vlgmr.msra.gmra.mrb[0].mxu1 %vm194_vm1, %v10165_v35  ;;  %14048 = vst [vmem:[#allocation5_spill] sm:$0xff] %v14047_v0 }
 0x24b   :  { %v9617_v40 = vpop.eup %9616  ;;  %8398 = vmatprep.mubr.msk.f32.mxu1 %vm9908_vm3, %v14012_v16  ;;  %8834 = vmatpush3.bf16.msra.mxu1 %v8833_v34 }
 0x24c   :  { %v10177_v42 = vadd.f32 %v7034_v31, %v243_v39  ;;  %v235_v43 = vmul.f32 %v9617_v40, %v211_v6  ;;  %8835 = vmatprep.subr.bf16.mxu1 %v14014_v3 }
 0x24e   :  { %v244_v44 = vmul.f32 %v7033_v27, %v235_v43  ;;  %8399 = vmatmul.mubr.msk.f32.gmra.mrb[2].mxu1 %vm194_vm1, %v10177_v42 }
 0x24f   :  { %8401 = vmatprep.mubr.msk.f32.mxu1 %vm9908_vm3, %v14012_v16  ;;  %8837 = vmatpush3.bf16.msra.mxu1 %v8836_v41 }
 0x250   :  { %v10184_v46 = vadd.f32 %v7034_v31, %v244_v44  ;;  %8838 = vmatprep.subr.bf16.mxu1 %v14014_v3 }
 0x252   :  { %8402 = vmatmul.mubr.msk.f32.gmra.mrb[4].mxu1 %vm194_vm1, %v10184_v46 }
 0x253   :  { %8412 = vmatprep.mubr.msk.f32.mxu1 %vm9908_vm3, %v14012_v16 }
 0x256   :  { %8413 = vmatmul.mubr.msk.f32.vlgmr.msra.gmra.mrb[6].mxu1 %vm194_vm1, %v10165_v35 }
 0x257   :  { %8415 = vmatprep.mubr.msk.f32.mxu1 %vm9908_vm3, %v14012_v16  ;;  %8840 = vmatpush3.bf16.msra.mxu1 %v8839_v49 }
 0x258   :  { %8841 = vmatprep.subr.bf16.mxu1 %v14014_v3 }
 0x25a   :  { %8416 = vmatmul.mubr.msk.f32.gmra.mrb[8].mxu1 %vm194_vm1, %v10177_v42 }
 0x25b   :  { %8418 = vmatprep.mubr.msk.f32.mxu1 %vm9908_vm3, %v14012_v16  ;;  %8843 = vmatpush3.bf16.msra.mxu1 %v8842_v53  ;;  %v760_v53 = vld [vmem:[%s13999_s7 + $0x8] sm:$0xff] }
 0x25c   :  { %8844 = vmatprep.subr.bf16.mxu1 %v14014_v3 }
 0x25e   :  { %8419 = vmatmul.mubr.msk.f32.gmra.mrb[10].mxu1 %vm194_vm1, %v10184_v46 }
 0x25f   :  { %8429 = vmatprep.mubr.msk.f32.mxu1 %vm9908_vm3, %v14012_v16 }
 0x262   :  { %8430 = vmatmul.mubr.msk.f32.vlgmr.msra.gmra.mrb[12].mxu1 %vm194_vm1, %v10165_v35 }
 0x263   :  { %8432 = vmatprep.mubr.msk.f32.mxu1 %vm9908_vm3, %v14012_v16 }
 0x266   :  { %8433 = vmatmul.mubr.msk.f32.gmra.mrb[14].mxu1 %vm194_vm1, %v10177_v42 }
 0x267   :  { %8435 = vmatprep.mubr.msk.f32.mxu1 %vm9908_vm3, %v14012_v16 }
 0x26a   :  { %8436 = vmatmul.mubr.msk.f32.gmra.mrb[16].mxu1 %vm194_vm1, %v10184_v46 }
 0x26b   :  { %8444 = vmatprep.mubr.msk.f32.mxu1 %vm9908_vm3, %v14012_v16 }
 0x31d   :  { %v342_v54 = vpop.f32.mrb[0].mxu1 }
 0x31e   :  { %v8397_v56 = vpop.f32.mrb[1].mxu1 }
 0x321   :  { %v347_v57 = vpop.f32.mrb[2].mxu1 }
 0x322   :  { %v8400_v58 = vpop.f32.mrb[3].mxu1 }
 0x325   :  { %v352_v59 = vpop.f32.mrb[4].mxu1 }
 0x326   :  { %v8403_v60 = vpop.f32.mrb[5].mxu1 }
 0x327   :  { %v7067_v60 = vld [vmem:[%s13998_s6 + $0x28] sm:$0xff] }
 0x329   :  { %v427_v61 = vpop.f32.mrb[6].mxu1 }
 0x32a   :  { %v8414_v62 = vpop.f32.mrb[7].mxu1 }
 0x32d   :  { %v432_v63 = vpop.f32.mrb[8].mxu1 }
 0x32e   :  { %v8845_v1 = vpack.c.bf16 %v432_v63, %v427_v61  ;;  %v8417_v2 = vpop.f32.mrb[9].mxu1 }
 0x32f   :  { %v7069_v2 = vld [vmem:[%s13998_s6 + $0x38] sm:$0xff] }
 0x330   :  { %8847 = vmatpush3.bf16.xpose.msk.msra.mxu1 %vm10231_vm5, %v8845_v1  ;;  %v7068_v1 = vld [vmem:[%s13998_s6 + $0x30] sm:$0xff] }
 0x331   :  { %v437_v4 = vpop.f32.mrb[10].mxu1  ;;  %8442 = vmatprep.subr.mxu1 %v14012_v16 }
 0x332   :  { %v8420_v5 = vpop.f32.mrb[11].mxu1 }
 0x333   :  { %v8858_v5 = vpack.c.bf16 %v7069_v2, %v7068_v1 }
 0x335   :  { %v512_v6 = vpop.f32.mrb[12].mxu1 }
 0x336   :  { %v8431_v7 = vpop.f32.mrb[13].mxu1 }
 0x338   :  { %8443 = vmatpush3.xpose.msk.msra.mxu1 %vm526_vm4, %v437_v4 }
 0x339   :  { %v517_v8 = vpop.f32.mrb[14].mxu1  ;;  %8848 = vmatprep.subr.bf16.mxu1 %v14014_v3 }
 0x33a   :  { %v8849_v9 = vpack.c.bf16 %v517_v8, %v512_v6  ;;  %v8434_v10 = vpop.f32.mrb[15].mxu1 }
 0x33b   :  { %8445 = vmatmul.mubr.msk.f32.vlgmr.msra.gmra.mrb[18].mxu1 %vm526_vm4, %v342_v54  ;;  %v8852_v54 = vpack.c.bf16 %v760_v53, %v759_v52  ;;  %v7081_v10 = vld [vmem:[%s13998_s6 + $0xa8] sm:$0xff] }
 0x33c   :  { %8850 = vmatpush3.bf16.msra.mxu1 %v8849_v9  ;;  %8447 = vmatprep.mubr.msk.f32.mxu1 %vm9908_vm3, %v14012_v16  ;;  %v7080_v9 = vld [vmem:[%s13998_s6 + $0xa0] sm:$0xff] }
 0x33d   :  { %v522_v11 = vpop.f32.mrb[16].mxu1  ;;  %8457 = vmatprep.subr.mxu1 %v14012_v16  ;;  %8853 = vmatpush3.bf16.msra.mxu0 %v8852_v54 }
 0x33e   :  { %v8437_v12 = vpop.f32.mrb[17].mxu1  ;;  %8860 = vmatprep.subr.bf16.mxu0 %v14014_v3 }
 0x33f   :  { %8448 = vmatmul.mubr.msk.f32.gmra.mrb[20].mxu1 %vm526_vm4, %v347_v57  ;;  %v7082_v12 = vld [vmem:[%s13998_s6 + $0xb0] sm:$0xff] }
 0x340   :  { %8458 = vmatpush3.msk.msra.mxu1 %vm675_vm6, %v522_v11  ;;  %8450 = vmatprep.mubr.msk.f32.mxu1 %vm9908_vm3, %v14012_v16  ;;  %v8867_v11 = vpack.c.bf16 %v7081_v10, %v7080_v9 }
 0x341   :  { %8854 = vmatprep.subr.bf16.mxu1 %v14014_v3 }
 0x343   :  { %8451 = vmatmul.mubr.msk.f32.gmra.mrb[22].mxu1 %vm526_vm4, %v352_v59  ;;  %v7066_v59 = vld [vmem:[%s13998_s6 + $0x20] sm:$0xff] }
 0x344   :  { %8459 = vmatprep.mubr.msk.f32.mxu1 %vm9908_vm3, %v14012_v16  ;;  %v8855_v62 = vpack.c.bf16 %v7067_v60, %v7066_v59 }
 0x40e   :  { %v611_v13 = vpop.f32.mrb[18].mxu1 }
 0x40f   :  { %v625_v15 = vmul.f32 0.25, %v611_v13  ;;  %v8446_v17 = vpop.f32.mrb[19].mxu1  ;;  %v7083_v13 = vld [vmem:[%s13998_s6 + $0xb8] sm:$0xff] }
 0x410   :  { %v7073_v17 = vld [vmem:[%s13998_s6 + $0x60] sm:$0xff] }
 0x411   :  { %v628_v18 = vadd.f32 %v625_v15, %v10255_v14  ;;  %v8870_v15 = vpack.c.bf16 %v7083_v13, %v7082_v12 }
 0x412   :  { %v616_v19 = vpop.f32.mrb[20].mxu1 }
 0x413   :  { %v626_v21 = vmul.f32 0.25, %v616_v19  ;;  %v8449_v22 = vpop.f32.mrb[21].mxu1  ;;  %v632_v23 = vsel %vm631_vm7, %v628_v18, -inf }
 0x414   :  { %633 = vmax.xlane.f32.xlu0 %v632_v23  ;;  %v7076_v22 = vld [vmem:[%s13998_s6 + $0x78] sm:$0xff] }
 0x415   :  { %v629_v24 = vadd.f32 %v626_v21, %v10261_v20  ;;  %v7075_v21 = vld [vmem:[%s13998_s6 + $0x70] sm:$0xff] }
 0x416   :  { %v621_v25 = vpop.f32.mrb[22].mxu1 }
 0x417   :  { %v627_v27 = vmul.f32 0.25, %v621_v25  ;;  %v8452_v28 = vpop.f32.mrb[23].mxu1  ;;  %v635_v29 = vsel %vm631_vm7, %v629_v24, -inf  ;;  %v8864_v25 = vpack.c.bf16 %v7076_v22, %v7075_v21  ;;  %v7097_v22 = vld [vmem:[%s13999_s7 + $0x10] sm:$0xff] }
 0x418   :  { %636 = vmax.xlane.f32.xlu1 %v635_v29 }
 0x419   :  { %v630_v30 = vadd.f32 %v627_v27, %v10268_v26 }
 0x41b   :  { %v639_v31 = vsel %vm638_vm8, %v630_v30, -inf }
 0x41c   :  { %640 = vmax.xlane.f32.xlu0 %v639_v31 }
 0x4a1   :  { %v634_v32 = vpop.xlane.xlu0 %633 }
 0x4a2   :  { %v642_v33 = vsub.f32 %v628_v18, %v634_v32  ;;  %v7074_v18 = vld [vmem:[%s13998_s6 + $0x68] sm:$0xff] }
 0x4a3   :  { %v8861_v19 = vpack.c.bf16 %v7074_v18, %v7073_v17 }
 0x4a4   :  { %v645_v34 = vmul.f32 1.442695, %v642_v33 }
 0x4a5   :  { %v637_v36 = vpop.xlane.xlu1 %636 }
 0x4a6   :  { %9618 = vpow2.f32 %v645_v34  ;;  %v643_v37 = vsub.f32 %v629_v24, %v637_v36 }
 0x4a8   :  { %v647_v38 = vmul.f32 1.442695, %v643_v37 }
 0x4a9   :  { %v641_v39 = vpop.xlane.xlu0 %640 }
 0x4aa   :  { %9620 = vpow2.f32 %v647_v38  ;;  %v644_v40 = vsub.f32 %v630_v30, %v641_v39 }
 0x4ac   :  { %v649_v41 = vmul.f32 1.442695, %v644_v40 }
 0x4ae   :  { %9622 = vpow2.f32 %v649_v41 }
 0x4b0   :  { %v9619_v43 = vpop.eup %9618 }
 0x4b1   :  { %v651_v44 = vsel %vm631_vm7, %v9619_v43, 0.0 }
 0x4b2   :  { %652 = vadd.xlane.f32.xlu1 %v651_v44 }
 0x4b4   :  { %v9621_v47 = vpop.eup %9620 }
 0x4b5   :  { %v654_v48 = vsel %vm631_vm7, %v9621_v47, 0.0 }
 0x4b6   :  { %655 = vadd.xlane.f32.xlu0 %v654_v48 }
 0x4b8   :  { %v9623_v49 = vpop.eup %9622 }
 0x4b9   :  { %v657_v51 = vsel %vm638_vm8, %v9623_v49, 0.0 }
 0x4ba   :  { %658 = vadd.xlane.f32.xlu1 %v657_v51 }
 0x53f   :  { %v653_v56 = vpop.xlane.xlu1 %652 }
 0x540   :  { %9624 = vrcp.f32 %v653_v56 }
 0x543   :  { %v656_v57 = vpop.xlane.xlu0 %655 }
 0x544   :  { %9626 = vrcp.f32 %v656_v57 }
 0x547   :  { %v659_v58 = vpop.xlane.xlu1 %658 }
 0x548   :  { %9628 = vrcp.f32 %v659_v58 }
 0x54a   :  { %v9625_v61 = vpop.eup %9624 }
 0x54b   :  { %v663_v63 = vmul.f32 %v9625_v61, %v9619_v43 }
 0x54d   :  { %8460 = vmatmul.mubr.msk.f32.vlgmr.msra.gmra.mrb[24].mxu1 %vm631_vm7, %v663_v63 }
 0x54e   :  { %v9627_v4 = vpop.eup %9626  ;;  %8462 = vmatprep.mubr.msk.f32.mxu1 %vm9908_vm3, %v14012_v16  ;;  %8856 = vmatpush3.bf16.msra.mxu1 %v8855_v62 }
 0x54f   :  { %v664_v6 = vmul.f32 %v9627_v4, %v9621_v47  ;;  %8857 = vmatprep.subr.bf16.mxu1 %v14014_v3 }
 0x551   :  { %8463 = vmatmul.mubr.msk.f32.gmra.mrb[26].mxu1 %vm631_vm7, %v664_v6 }
 0x552   :  { %v9629_v7 = vpop.eup %9628  ;;  %8465 = vmatprep.mubr.msk.f32.mxu1 %vm9908_vm3, %v14012_v16  ;;  %8859 = vmatpush3.bf16.msra.mxu1 %v8858_v5 }
 0x553   :  { %v665_v8 = vmul.f32 %v9629_v7, %v9623_v49  ;;  %8866 = vmatprep.subr.bf16.mxu1 %v14014_v3 }
 0x555   :  { %8466 = vmatmul.mubr.msk.f32.gmra.mrb[28].mxu1 %vm631_vm7, %v665_v8 }
 0x556   :  { %8489 = vmatprep.mubr.msk.f32.mxu1 %vm9908_vm3, %v14012_v16 }
 0x559   :  { %8490 = vmatmul.mubr.msk.f32.vlgmr.msra.gmra.mrb[30].mxu1 %vm194_vm1, %v10165_v35 }
 0x55a   :  { %8492 = vmatprep.mubr.msk.f32.mxu1 %vm9908_vm3, %v14012_v16  ;;  %8868 = vmatpush3.bf16.msra.mxu1 %v8867_v11 }
 0x55b   :  { %8869 = vmatprep.subr.bf16.mxu1 %v14014_v3 }
 0x55d   :  { %8493 = vmatmul.mubr.msk.f32.gmra.mrb[32].mxu1 %vm194_vm1, %v10177_v42 }
 0x55e   :  { %8495 = vmatprep.mubr.msk.f32.mxu1 %vm9908_vm3, %v14012_v16  ;;  %8871 = vmatpush3.bf16.msra.mxu1 %v8870_v15 }
 0x55f   :  { %8876 = vmatprep.subr.bf16.mxu1 %v14014_v3 }
 0x561   :  { %8496 = vmatmul.mubr.msk.f32.gmra.mrb[34].mxu1 %vm194_vm1, %v10184_v46 }
 0x562   :  { %8523 = vmatprep.mubr.msk.f32.mxu1 %vm9908_vm3, %v14012_v16 }
 0x565   :  { %8524 = vmatmul.mubr.msk.f32.vlgmr.msra.gmra.mrb[36].mxu1 %vm194_vm1, %v10165_v35 }
 0x566   :  { %8526 = vmatprep.mubr.msk.f32.mxu1 %vm9908_vm3, %v14012_v16 }
 0x569   :  { %8527 = vmatmul.mubr.msk.f32.gmra.mrb[38].mxu1 %vm194_vm1, %v10177_v42 }
 0x56a   :  { %8529 = vmatprep.mubr.msk.f32.mxu1 %vm9908_vm3, %v14012_v16 }
 0x56d   :  { %8530 = vmatmul.mubr.msk.f32.gmra.mrb[40].mxu1 %vm194_vm1, %v10184_v46 }
 0x56e   :  { %8553 = vmatprep.mubr.msk.f32.mxu1 %vm9908_vm3, %v14012_v16 }
 0x620   :  { %v745_v23 = vpop.f32.mrb[24].mxu1 }
 0x621   :  { %v8461_v24 = vpop.f32.mrb[25].mxu1  ;;  %8473 = vmatmul.mubr.msk.f32.vlgmr.msra.gmra.mrb[6].mxu0 %vm526_vm4, %v745_v23  ;;  %v7098_v23 = vld [vmem:[%s13999_s7 + $0x18] sm:$0xff] }
 0x622   :  { %8475 = vmatprep.mubr.msk.f32.mxu0 %vm9908_vm3, %v14012_v16  ;;  %8862 = vmatpush3.bf16.msra.mxu0 %v8861_v19  ;;  %v8880_v24 = vpack.c.bf16 %v7098_v23, %v7097_v22  ;;  %v1522_v22 = vld [vmem:[%s14000_s8 + $0x108] sm:$0xff] }
 0x623   :  { %8863 = vmatprep.subr.bf16.mxu0 %v14014_v3  ;;  %v1538_v23 = vld [vmem:[%s14000_s8 + $0x188] sm:$0xff] }
 0x624   :  { %v750_v27 = vpop.f32.mrb[26].mxu1 }
 0x625   :  { %v8464_v28 = vpop.f32.mrb[27].mxu1  ;;  %8476 = vmatmul.mubr.msk.f32.gmra.mrb[8].mxu0 %vm526_vm4, %v750_v27 }
 0x626   :  { %8478 = vmatprep.mubr.msk.f32.mxu0 %vm9908_vm3, %v14012_v16  ;;  %8865 = vmatpush3.bf16.msra.mxu0 %v8864_v25 }
 0x627   :  { %8872 = vmatprep.subr.bf16.mxu0 %v14014_v3 }
 0x628   :  { %v755_v29 = vpop.f32.mrb[28].mxu1 }
 0x629   :  { %v8467_v30 = vpop.f32.mrb[29].mxu1  ;;  %8479 = vmatmul.mubr.msk.f32.gmra.mrb[10].mxu0 %vm526_vm4, %v755_v29 }
 0x62a   :  { %8506 = vmatprep.mubr.msk.f32.mxu0 %vm9908_vm3, %v14012_v16 }
 0x62c   :  { %v924_v31 = vpop.f32.mrb[30].mxu1 }
 0x62d   :  { %v8491_v32 = vpop.f32.mrb[31].mxu1  ;;  %8507 = vmatmul.mubr.msk.f32.vlgmr.msra.gmra.mrb[12].mxu0 %vm194_vm1, %v10165_v35 }
 0x62e   :  { %8509 = vmatprep.mubr.msk.f32.mxu0 %vm9908_vm3, %v14012_v16 }
 0x630   :  { %v929_v33 = vpop.f32.mrb[32].mxu1 }
 0x631   :  { %v8494_v34 = vpop.f32.mrb[33].mxu1  ;;  %8510 = vmatmul.mubr.msk.f32.gmra.mrb[14].mxu0 %vm194_vm1, %v10177_v42 }
 0x632   :  { %8512 = vmatprep.mubr.msk.f32.mxu0 %vm9908_vm3, %v14012_v16 }
 0x634   :  { %v934_v36 = vpop.f32.mrb[34].mxu1 }
 0x635   :  { %v8497_v37 = vpop.f32.mrb[35].mxu1  ;;  %8513 = vmatmul.mubr.msk.f32.gmra.mrb[16].mxu0 %vm194_vm1, %v10184_v46 }
 0x636   :  { %8538 = vmatprep.mubr.msk.f32.mxu0 %vm9908_vm3, %v14012_v16 }
 0x638   :  { %v1094_v35 = vpop.f32.mrb[36].mxu1 }
 0x639   :  { %v8525_v38 = vpop.f32.mrb[37].mxu1 }
 0x63c   :  { %v1099_v39 = vpop.f32.mrb[38].mxu1 }
 0x63d   :  { %v8877_v40 = vpack.c.bf16 %v1099_v39, %v1094_v35  ;;  %v8528_v41 = vpop.f32.mrb[39].mxu1 }
 0x63e   :  { %v7035_v41 = vld [vmem:[%s13997_s5 + $0x2] ss:$0 sm:$0xff] }
 0x63f   :  { %8878 = vmatpush3.bf16.msra.mxu1 %v8877_v40 }
 0x640   :  { %v1104_v43 = vpop.f32.mrb[40].mxu1  ;;  %8551 = vmatprep.subr.mxu1 %v14012_v16 }
 0x641   :  { %v8531_v42 = vpop.f32.mrb[41].mxu1 }
 0x643   :  { %8552 = vmatpush3.msk.msra.mxu1 %vm675_vm6, %v1104_v43  ;;  %v260_v43 = vadd.f32 %v7035_v41, %v10111_v45 }
 0x700   :  { %v1009_v44 = vpop.f32.mrb[12].mxu0 }
 0x701   :  { %v8508_v47 = vpop.f32.mrb[13].mxu0 }
 0x704   :  { %v1014_v48 = vpop.f32.mrb[14].mxu0 }
 0x705   :  { %v8873_v49 = vpack.c.bf16 %v1014_v48, %v1009_v44  ;;  %v8511_v46 = vpop.f32.mrb[15].mxu0 }
 0x707   :  { %8875 = vmatpush3.bf16.xpose.msk.msra.mxu0 %vm10231_vm5, %v8873_v49  ;;  %v261_v49 = vadd.f32 %v7035_v41, %v10118_v50 }
 0x708   :  { %v1019_v51 = vpop.f32.mrb[16].mxu0  ;;  %8536 = vmatprep.subr.mxu0 %v14012_v16 }
 0x709   :  { %v8514_v52 = vpop.f32.mrb[17].mxu0 }
 0x70f   :  { %8537 = vmatpush3.xpose.msk.msra.mxu0 %vm526_vm4, %v1019_v51 }
 0x710   :  { %8879 = vmatprep.subr.bf16.mxu0 %v14014_v3 }
 0x712   :  { %8539 = vmatmul.mubr.msk.f32.vlgmr.msra.gmra.mrb[18].mxu0 %vm526_vm4, %v924_v31 }
 0x713   :  { %8541 = vmatprep.mubr.msk.f32.mxu0 %vm9908_vm3, %v14012_v16  ;;  %8881 = vmatpush3.bf16.msra.mxu0 %v8880_v24  ;;  %v1524_v24 = vld [vmem:[%s14000_s8 + $0x118] sm:$0xff] }
 0x716   :  { %8542 = vmatmul.mubr.msk.f32.gmra.mrb[20].mxu0 %vm526_vm4, %v929_v33 }
 0x717   :  { %8544 = vmatprep.mubr.msk.f32.mxu0 %vm9908_vm3, %v14012_v16 }
 0x71a   :  { %8545 = vmatmul.mubr.msk.f32.gmra.mrb[22].mxu0 %vm526_vm4, %v934_v36 }
 0x71b   :  { %8566 = vmatprep.mubr.msk.f32.mxu0 %vm9908_vm3, %v14012_v16 }
 0x7e5   :  { %v1192_v53 = vpop.f32.mrb[18].mxu0 }
 0x7e6   :  { %v1206_v54 = vmul.f32 0.25, %v1192_v53  ;;  %v8540_v56 = vpop.f32.mrb[19].mxu0 }
 0x7e8   :  { %v1209_v57 = vadd.f32 %v1206_v54, %v10255_v14  ;;  %v262_v54 = vadd.f32 %v7035_v41, %v10125_v55 }
 0x7e9   :  { %v1197_v58 = vpop.f32.mrb[20].mxu0 }
 0x7ea   :  { %v1207_v59 = vmul.f32 0.25, %v1197_v58  ;;  %v8543_v60 = vpop.f32.mrb[21].mxu0  ;;  %v1212_v61 = vsel %vm631_vm7, %v1209_v57, -inf }
 0x7eb   :  { %1213 = vmax.xlane.f32.xlu0 %v1212_v61 }
 0x7ec   :  { %v1210_v62 = vadd.f32 %v1207_v59, %v10261_v20 }
 0x7ed   :  { %v1202_v63 = vpop.f32.mrb[22].mxu0 }
 0x7ee   :  { %v1208_v1 = vmul.f32 0.25, %v1202_v63  ;;  %v8546_v2 = vpop.f32.mrb[23].mxu0  ;;  %v1215_v4 = vsel %vm631_vm7, %v1210_v62, -inf }
 0x7ef   :  { %1216 = vmax.xlane.f32.xlu1 %v1215_v4 }
 0x7f0   :  { %v1211_v5 = vadd.f32 %v1208_v1, %v10268_v26 }
 0x7f2   :  { %v1218_v6 = vsel %vm638_vm8, %v1211_v5, -inf }
 0x7f3   :  { %1219 = vmax.xlane.f32.xlu0 %v1218_v6 }
 0x878   :  { %v1214_v14 = vpop.xlane.xlu0 %1213 }
 0x879   :  { %v1221_v7 = vsub.f32 %v1209_v57, %v1214_v14 }
 0x87b   :  { %v1224_v8 = vmul.f32 1.442695, %v1221_v7 }
 0x87c   :  { %v1217_v9 = vpop.xlane.xlu1 %1216 }
 0x87d   :  { %9630 = vpow2.f32 %v1224_v8  ;;  %v1222_v10 = vsub.f32 %v1210_v62, %v1217_v9  ;;  %v1490_v9 = vld [vmem:[%s14000_s8 + $0x8] sm:$0xff] }
 0x87f   :  { %v1226_v11 = vmul.f32 1.442695, %v1222_v10  ;;  %v1506_v10 = vld [vmem:[%s14000_s8 + $0x88] sm:$0xff] }
 0x880   :  { %v1220_v12 = vpop.xlane.xlu0 %1219 }
 0x881   :  { %9632 = vpow2.f32 %v1226_v11  ;;  %v1223_v20 = vsub.f32 %v1211_v5, %v1220_v12  ;;  %v1492_v11 = vld [vmem:[%s14000_s8 + $0x18] sm:$0xff]  ;;  %v8882_v12 = vpack.c.bf16 %v1506_v10, %v1490_v9  ;;  %v1525_v10 = vld [vmem:[%s14000_s8 + $0x120] sm:$0xff] }
 0x883   :  { %v1228_v13 = vmul.f32 1.442695, %v1223_v20  ;;  %v1508_v20 = vld [vmem:[%s14000_s8 + $0x98] sm:$0xff]  ;;  %8883 = vmatprep.subr.bf16.mxu1 %v8882_v12 }
 0x885   :  { %9634 = vpow2.f32 %v1228_v13  ;;  %v1489_v13 = vld [vmem:[%s14000_s8] sm:$0xff] }
 0x887   :  { %v9631_v15 = vpop.eup %9630 }
 0x888   :  { %v1230_v17 = vsel %vm631_vm7, %v9631_v15, 0.0 }
 0x889   :  { %1231 = vadd.xlane.f32.xlu1 %v1230_v17  ;;  %v8890_v17 = vpack.c.bf16 %v1508_v20, %v1492_v11  ;;  %v1541_v11 = vld [vmem:[%s14000_s8 + $0x1a0] sm:$0xff] }
 0x88b   :  { %v9633_v26 = vpop.eup %9632  ;;  %8891 = vmatprep.subr.bf16.mxu0 %v8890_v17 }
 0x88c   :  { %v1233_v18 = vsel %vm631_vm7, %v9633_v26, 0.0 }
 0x88d   :  { %1234 = vadd.xlane.f32.xlu0 %v1233_v18  ;;  %v1491_v18 = vld [vmem:[%s14000_s8 + $0x10] sm:$0xff] }
 0x88f   :  { %v9635_v19 = vpop.eup %9634 }
 0x890   :  { %v1236_v21 = vsel %vm638_vm8, %v9635_v19, 0.0 }
 0x891   :  { %1237 = vadd.xlane.f32.xlu1 %v1236_v21 }
 0x916   :  { %v1232_v25 = vpop.xlane.xlu1 %1231 }
 0x917   :  { %9636 = vrcp.f32 %v1232_v25  ;;  %v8886_v25 = vpack.c.bf16 %v1538_v23, %v1522_v22  ;;  %v8904_v22 = vpack.c.bf16 %v1541_v11, %v1525_v10  ;;  %v1535_v11 = vld [vmem:[%s14000_s8 + $0x170] sm:$0xff] }
 0x91a   :  { %v1235_v27 = vpop.xlane.xlu0 %1234 }
 0x91b   :  { %9638 = vrcp.f32 %v1235_v27  ;;  %v1540_v27 = vld [vmem:[%s14000_s8 + $0x198] sm:$0xff] }
 0x91e   :  { %v1238_v28 = vpop.xlane.xlu1 %1237 }
 0x91f   :  { %9640 = vrcp.f32 %v1238_v28  ;;  %v1521_v28 = vld [vmem:[%s14000_s8 + $0x100] sm:$0xff] }
 0x921   :  { %v9637_v29 = vpop.eup %9636 }
 0x922   :  { %v1242_v30 = vmul.f32 %v9637_v29, %v9631_v15  ;;  %v1505_v15 = vld [vmem:[%s14000_s8 + $0x80] sm:$0xff] }
 0x923   :  { %v1537_v29 = vld [vmem:[%s14000_s8 + $0x180] sm:$0xff] }
 0x924   :  { %8554 = vmatmul.mubr.msk.f32.vlgmr.msra.gmra.mrb[42].mxu1 %vm631_vm7, %v1242_v30  ;;  %v8894_v30 = vpack.c.bf16 %v1540_v27, %v1524_v24 }
 0x925   :  { %v9639_v31 = vpop.eup %9638  ;;  %8556 = vmatprep.mubr.msk.f32.mxu1 %vm9908_vm3, %v14012_v16 }
 0x926   :  { %v1243_v32 = vmul.f32 %v9639_v31, %v9633_v26  ;;  %v8884_v26 = vpack.c.bf16 %v1505_v15, %v1489_v13  ;;  %v8888_v31 = vpack.c.bf16 %v1537_v29, %v1521_v28  ;;  %v1527_v13 = vld [vmem:[%s14000_s8 + $0x130] sm:$0xff]  ;;  %v1498_v15 = vld [vmem:[%s14000_s8 + $0x48] sm:$0xff] }
 0x928   :  { %8557 = vmatmul.mubr.msk.f32.gmra.mrb[44].mxu1 %vm631_vm7, %v1243_v32  ;;  %v1523_v32 = vld [vmem:[%s14000_s8 + $0x110] sm:$0xff] }
 0x929   :  { %v9641_v33 = vpop.eup %9640  ;;  %8559 = vmatprep.mubr.msk.f32.mxu1 %vm9908_vm3, %v14012_v16  ;;  %8885 = vmatpush1.bf16.msra.mxu1 %v8884_v26  ;;  %v1514_v26 = vld [vmem:[%s14000_s8 + $0xc8] sm:$0xff] }
 0x92a   :  { %v1244_v34 = vmul.f32 %v9641_v33, %v9635_v19  ;;  %v1507_v19 = vld [vmem:[%s14000_s8 + $0x90] sm:$0xff]  ;;  %8887 = vmatprep.subr.bf16.mxu1 %v8886_v25  ;;  %v8914_v27 = vpack.c.bf16 %v1514_v26, %v1498_v15  ;;  %v2599_v15 = vld [vmem:[%s14002_s10 + $0x188] sm:$0xff] }
 0x92b   :  { %v8892_v21 = vpack.c.bf16 %v1507_v19, %v1491_v18  ;;  %v1539_v33 = vld [vmem:[%s14000_s8 + $0x190] sm:$0xff]  ;;  %v1500_v18 = vld [vmem:[%s14000_s8 + $0x58] sm:$0xff] }
 0x92c   :  { %8560 = vmatmul.mubr.msk.f32.gmra.mrb[46].mxu1 %vm631_vm7, %v1244_v34  ;;  %v8896_v34 = vpack.c.bf16 %v1539_v33, %v1523_v32  ;;  %v1516_v19 = vld [vmem:[%s14000_s8 + $0xd8] sm:$0xff]  ;;  %v1499_v32 = vld [vmem:[%s14000_s8 + $0x50] sm:$0xff] }
 0x92d   :  { %1710 = vmatprep.mubr.f32.mxu1 %v14012_v16  ;;  %8889 = vmatpush1.bf16.msra.mxu1 %v8888_v31  ;;  %v8922_v28 = vpack.c.bf16 %v1516_v19, %v1500_v18  ;;  %v1513_v31 = vld [vmem:[%s14000_s8 + $0xc0] sm:$0xff]  ;;  %v1515_v33 = vld [vmem:[%s14000_s8 + $0xd0] sm:$0xff] }
 0x9f7   :  { %v1323_v36 = vpop.f32.mrb[42].mxu1 }
 0x9f8   :  { %v8555_v37 = vpop.f32.mrb[43].mxu1  ;;  %8567 = vmatmul.mubr.msk.f32.vlgmr.msra.gmra.mrb[6].mxu0 %vm526_vm4, %v1323_v36  ;;  %v1494_v36 = vld [vmem:[%s14000_s8 + $0x28] sm:$0xff] }
 0x9f9   :  { %8569 = vmatprep.mubr.msk.f32.mxu0 %vm9908_vm3, %v14012_v16  ;;  %8893 = vmatpush1.bf16.msra.mxu0 %v8892_v21  ;;  %v1510_v37 = vld [vmem:[%s14000_s8 + $0xa8] sm:$0xff] }
 0x9fa   :  { %8895 = vmatprep.subr.bf16.mxu0 %v8894_v30 }
 0x9fb   :  { %v1328_v35 = vpop.f32.mrb[44].mxu1 }
 0x9fc   :  { %v8558_v38 = vpop.f32.mrb[45].mxu1  ;;  %8570 = vmatmul.mubr.msk.f32.gmra.mrb[8].mxu0 %vm526_vm4, %v1328_v35  ;;  %v1496_v35 = vld [vmem:[%s14000_s8 + $0x38] sm:$0xff] }
 0x9fd   :  { %8572 = vmatprep.mubr.msk.f32.mxu0 %vm9908_vm3, %v14012_v16  ;;  %8897 = vmatpush1.bf16.msra.mxu0 %v8896_v34  ;;  %v8898_v38 = vpack.c.bf16 %v1510_v37, %v1494_v36  ;;  %v1530_v34 = vld [vmem:[%s14000_s8 + $0x148] sm:$0xff]  ;;  %v1532_v37 = vld [vmem:[%s14000_s8 + $0x158] sm:$0xff] }
 0x9fe   :  { %v1546_v36 = vld [vmem:[%s14000_s8 + $0x1c8] sm:$0xff] }
 0x9ff   :  { %v1333_v39 = vpop.f32.mrb[46].mxu1  ;;  %8899 = vmatprep.subr.bf16.mxu1 %v8898_v38 }
 0xa00   :  { %v8561_v40 = vpop.f32.mrb[47].mxu1  ;;  %8573 = vmatmul.mubr.msk.f32.gmra.mrb[10].mxu0 %vm526_vm4, %v1333_v39  ;;  %v1512_v39 = vld [vmem:[%s14000_s8 + $0xb8] sm:$0xff] }
 0xa01   :  { %1793 = vmatprep.mubr.f32.mxu0 %v14012_v16  ;;  %v8906_v40 = vpack.c.bf16 %v1512_v39, %v1496_v35  ;;  %v1548_v35 = vld [vmem:[%s14000_s8 + $0x1d8] sm:$0xff]  ;;  %v8924_v39 = vpack.c.bf16 %v1515_v33, %v1499_v32  ;;  %v2552_v33 = vld [vmem:[%s14002_s10 + $0x10] sm:$0xff] }
 0xa03   :  { %8907 = vmatprep.subr.bf16.mxu0 %v8906_v40  ;;  %v1529_v40 = vld [vmem:[%s14000_s8 + $0x140] sm:$0xff] }
 0xacb   :  { %v1415_v42 = vpop.f32.mrb[6].mxu0 }
 0xacc   :  { %v10430_v44 = vadd.f32 %v1415_v42, %v260_v43  ;;  %v8568_v47 = vpop.f32.mrb[7].mxu0 }
 0xace   :  { %14049 = vst [vmem:[#allocation6_spill] sm:$0xff] %v10430_v44  ;;  %v1432_v48 = vsel %vm194_vm1, %v10430_v44, 0.0 }
 0xacf   :  { %1433 = vadd.xlane.f32.xlu0 %v1432_v48  ;;  %v1420_v46 = vpop.f32.mrb[8].mxu0 }
 0xad0   :  { %v10435_v51 = vadd.f32 %v1420_v46, %v261_v49  ;;  %v8571_v52 = vpop.f32.mrb[9].mxu0 }
 0xad2   :  { %14050 = vst [vmem:[#allocation7_spill] sm:$0xff] %v10435_v51  ;;  %v1435_v53 = vsel %vm194_vm1, %v10435_v51, 0.0 }
 0xad3   :  { %1436 = vadd.xlane.f32.xlu1 %v1435_v53  ;;  %v1425_v45 = vpop.f32.mrb[10].mxu0 }
 0xad4   :  { %v10440_v56 = vadd.f32 %v1425_v45, %v262_v54  ;;  %v8574_v57 = vpop.f32.mrb[11].mxu0  ;;  %v7102_v45 = vld [vmem:[%s13997_s5 + $0x3] ss:$0 sm:$0xff] }
 0xad5   :  { %v7103_v57 = vld [vmem:[%s13997_s5 + $0x4] ss:$0 sm:$0xff] }
 0xad6   :  { %14051 = vst [vmem:[#allocation8_spill] sm:$0xff] %v10440_v56  ;;  %v1438_v58 = vsel %vm201_vm2, %v10440_v56, 0.0 }
 0xad7   :  { %1439 = vadd.xlane.f32.xlu0 %v1438_v58 }
 0xb5c   :  { %v1434_v50 = vpop.xlane.xlu0 %1433 }
 0xb5d   :  { %v1441_v59 = vmul.f32 0.03125, %v1434_v50  ;;  %v1493_v50 = vld [vmem:[%s14000_s8 + $0x20] sm:$0xff] }
 0xb5f   :  { %v10445_v60 = vsub.f32 %v10430_v44, %v1441_v59  ;;  %v1509_v59 = vld [vmem:[%s14000_s8 + $0xa0] sm:$0xff] }
 0xb60   :  { %v1437_v61 = vpop.xlane.xlu1 %1436 }
 0xb61   :  { %v1442_v62 = vmul.f32 0.03125, %v1437_v61  ;;  %v1447_v63 = vmul.f32 %v10445_v60, %v10445_v60  ;;  %v1495_v61 = vld [vmem:[%s14000_s8 + $0x30] sm:$0xff] }
 0xb63   :  { %v10450_v55 = vsub.f32 %v10435_v51, %v1442_v62  ;;  %v1450_v1 = vsel %vm194_vm1, %v1447_v63, 0.0  ;;  %v1511_v62 = vld [vmem:[%s14000_s8 + $0xb0] sm:$0xff] }
 0xb64   :  { %1451 = vadd.xlane.f32.xlu1 %v1450_v1  ;;  %v1440_v2 = vpop.xlane.xlu0 %1439  ;;  %v1542_v1 = vld [vmem:[%s14000_s8 + $0x1a8] sm:$0xff]  ;;  %v8908_v9 = vpack.c.bf16 %v1511_v62, %v1495_v61  ;;  %v1503_v61 = vld [vmem:[%s14000_s8 + $0x70] sm:$0xff] }
 0xb65   :  { %v1443_v4 = vmul.f32 0.03125, %v1440_v2  ;;  %v1448_v5 = vmul.f32 %v10450_v55, %v10450_v55  ;;  %v1528_v2 = vld [vmem:[%s14000_s8 + $0x138] sm:$0xff]  ;;  %v1519_v62 = vld [vmem:[%s14000_s8 + $0xf0] sm:$0xff] }
 0xb67   :  { %v10456_v6 = vsub.f32 %v10440_v56, %v1443_v4  ;;  %v1453_v14 = vsel %vm194_vm1, %v1448_v5, 0.0  ;;  %v1544_v4 = vld [vmem:[%s14000_s8 + $0x1b8] sm:$0xff] }
 0xb68   :  { %1454 = vadd.xlane.f32.xlu0 %v1453_v14  ;;  %v8910_v20 = vpack.c.bf16 %v1544_v4, %v1528_v2  ;;  %v1552_v2 = vld [vmem:[%s14000_s8 + $0x1f8] sm:$0xff] }
 0xb69   :  { %v1449_v7 = vmul.f32 %v10456_v6, %v10456_v6 }
 0xb6b   :  { %v1456_v8 = vsel %vm201_vm2, %v1449_v7, 0.0 }
 0xb6c   :  { %1457 = vadd.xlane.f32.xlu1 %v1456_v8  ;;  %v8900_v8 = vpack.c.bf16 %v1509_v59, %v1493_v50  ;;  %v1501_v50 = vld [vmem:[%s14000_s8 + $0x60] sm:$0xff] }
 0xb6d   :  { %v1517_v59 = vld [vmem:[%s14000_s8 + $0xe0] sm:$0xff] }
 0xb6e   :  { %v8932_v4 = vpack.c.bf16 %v1517_v59, %v1501_v50  ;;  %v2605_v59 = vld [vmem:[%s14002_s10 + $0x1b8] sm:$0xff] }
 0xbf1   :  { %v1452_v41 = vpop.xlane.xlu1 %1451 }
 0xbf2   :  { %v1459_v43 = vmul.f32 0.03125, %v1452_v41  ;;  %v1545_v41 = vld [vmem:[%s14000_s8 + $0x1c0] sm:$0xff] }
 0xbf4   :  { %v1462_v42 = vadd.f32 1e-05, %v1459_v43  ;;  %v8918_v43 = vpack.c.bf16 %v1546_v36, %v1530_v34  ;;  %v2553_v34 = vld [vmem:[%s14002_s10 + $0x18] sm:$0xff] }
 0xbf5   :  { %v1455_v47 = vpop.xlane.xlu0 %1454 }
 0xbf6   :  { %9642 = vrsqrt.f32 %v1462_v42  ;;  %v1460_v48 = vmul.f32 0.03125, %v1455_v47  ;;  %v8926_v42 = vpack.c.bf16 %v1548_v35, %v1532_v37  ;;  %v1531_v47 = vld [vmem:[%s14000_s8 + $0x150] sm:$0xff] }
 0xbf7   :  { %v2584_v35 = vld [vmem:[%s14002_s10 + $0x110] sm:$0xff] }
 0xbf8   :  { %v1463_v49 = vadd.f32 1e-05, %v1460_v48  ;;  %v1547_v48 = vld [vmem:[%s14000_s8 + $0x1d0] sm:$0xff] }
 0xbf9   :  { %v1458_v46 = vpop.xlane.xlu1 %1457 }
 0xbfa   :  { %9644 = vrsqrt.f32 %v1463_v49  ;;  %v1461_v52 = vmul.f32 0.03125, %v1458_v46  ;;  %v1502_v49 = vld [vmem:[%s14000_s8 + $0x68] sm:$0xff] }
 0xbfb   :  { %v1518_v46 = vld [vmem:[%s14000_s8 + $0xe8] sm:$0xff] }
 0xbfc   :  { %v1464_v53 = vadd.f32 1e-05, %v1461_v52  ;;  %v1504_v52 = vld [vmem:[%s14000_s8 + $0x78] sm:$0xff] }
 0xbfe   :  { %9646 = vrsqrt.f32 %v1464_v53  ;;  %v1520_v53 = vld [vmem:[%s14000_s8 + $0xf8] sm:$0xff] }
 0xc00   :  { %v9643_v54 = vpop.eup %9642 }
 0xc01   :  { %v1468_v58 = vmul.f32 %v9643_v54, %v10445_v60  ;;  %v1526_v60 = vld [vmem:[%s14000_s8 + $0x128] sm:$0xff]  ;;  %v8920_v54 = vpack.c.bf16 %v1545_v41, %v1529_v40  ;;  %v2602_v41 = vld [vmem:[%s14002_s10 + $0x1a0] sm:$0xff] }
 0xc02   :  { %v8902_v12 = vpack.c.bf16 %v1542_v1, %v1526_v60  ;;  %v1534_v60 = vld [vmem:[%s14000_s8 + $0x168] sm:$0xff]  ;;  %v1536_v1 = vld [vmem:[%s14000_s8 + $0x178] sm:$0xff] }
 0xc03   :  { %v1477_v63 = vmul.f32 %v7102_v45, %v1468_v58  ;;  %v8938_v58 = vpack.c.bf16 %v1520_v53, %v1504_v52  ;;  %v8942_v10 = vpack.c.bf16 %v1552_v2, %v1536_v1  ;;  %v2571_v40 = vld [vmem:[%s14002_s10 + $0xa8] sm:$0xff]  ;;  %v2586_v52 = vld [vmem:[%s14002_s10 + $0x120] sm:$0xff]  ;;  %v2589_v1 = vld [vmem:[%s14002_s10 + $0x138] sm:$0xff] }
 0xc04   :  { %v9645_v5 = vpop.eup %9644  ;;  %v2587_v53 = vld [vmem:[%s14002_s10 + $0x128] sm:$0xff] }
 0xc05   :  { %v10553_v14 = vadd.f32 %v7103_v57, %v1477_v63  ;;  %v1469_v7 = vmul.f32 %v9645_v5, %v10450_v55  ;;  %v1543_v55 = vld [vmem:[%s14000_s8 + $0x1b0] sm:$0xff]  ;;  %v1550_v63 = vld [vmem:[%s14000_s8 + $0x1e8] sm:$0xff]  ;;  %v8940_v5 = vpack.c.bf16 %v1519_v62, %v1503_v61  ;;  %v2557_v61 = vld [vmem:[%s14002_s10 + $0x38] sm:$0xff] }
 0xc06   :  { %v8912_v25 = vpack.c.bf16 %v1543_v55, %v1527_v13  ;;  %v2567_v13 = vld [vmem:[%s14002_s10 + $0x88] sm:$0xff]  ;;  %v2598_v55 = vld [vmem:[%s14002_s10 + $0x180] sm:$0xff] }
 0xc07   :  { %v1478_v17 = vmul.f32 %v7102_v45, %v1469_v7  ;;  %7104 = vmatmul.mubr.msk.f32.vlgmr.msra.gmra.mrb[48].mxu1 %vm194_vm1, %v10553_v14  ;;  %7107 = vmatmul.mubr.msk.f32.vlgmr.msra.gmra.mrb[24].mxu0 %vm194_vm1, %v10553_v14  ;;  %v1533_v7 = vld [vmem:[%s14000_s8 + $0x160] sm:$0xff]  ;;  %v8978_v19 = vpack.c.bf16 %v2599_v15, %v2598_v55  ;;  %v2591_v55 = vld [vmem:[%s14002_s10 + $0x148] sm:$0xff] }
 0xc08   :  { %v9647_v21 = vpop.eup %9646  ;;  %1716 = vmatprep.mubr.f32.mxu1 %v14012_v16  ;;  %1799 = vmatprep.mubr.f32.mxu0 %v14012_v16 }
 0xc09   :  { %v10586_v23 = vadd.f32 %v7103_v57, %v1478_v17  ;;  %v1470_v24 = vmul.f32 %v9647_v21, %v10456_v6  ;;  %8901 = vmatpush1.bf16.msra.mxu1 %v8900_v8  ;;  %8909 = vmatpush1.bf16.msra.mxu0 %v8908_v9  ;;  %v1497_v6 = vld [vmem:[%s14000_s8 + $0x40] sm:$0xff]  ;;  %v8934_v9 = vpack.c.bf16 %v1550_v63, %v1534_v60  ;;  %v2588_v63 = vld [vmem:[%s14002_s10 + $0x130] sm:$0xff] }
 0xc0a   :  { %8903 = vmatprep.subr.bf16.mxu1 %v8902_v12  ;;  %8911 = vmatprep.subr.bf16.mxu0 %v8910_v20  ;;  %v8916_v38 = vpack.c.bf16 %v1513_v31, %v1497_v6  ;;  %v1549_v8 = vld [vmem:[%s14000_s8 + $0x1e0] sm:$0xff]  ;;  %v1551_v12 = vld [vmem:[%s14000_s8 + $0x1f0] sm:$0xff]  ;;  %v2601_v6 = vld [vmem:[%s14002_s10 + $0x198] sm:$0xff]  ;;  %v8992_v2 = vpack.c.bf16 %v2589_v1, %v2588_v63 }
 0xc0b   :  { %v1479_v29 = vmul.f32 %v7102_v45, %v1470_v24  ;;  %7105 = vmatmul.mubr.msk.f32.gmra.mrb[50].mxu1 %vm194_vm1, %v10586_v23  ;;  %7108 = vmatmul.mubr.msk.f32.gmra.mrb[26].mxu0 %vm194_vm1, %v10586_v23  ;;  %v8928_v45 = vpack.c.bf16 %v1547_v48, %v1531_v47  ;;  %v2566_v20 = vld [vmem:[%s14002_s10 + $0x80] sm:$0xff]  ;;  %v8936_v17 = vpack.c.bf16 %v1549_v8, %v1533_v7 }
 0xc0c   :  { %1722 = vmatprep.mubr.f32.mxu1 %v14012_v16  ;;  %1805 = vmatprep.mubr.f32.mxu0 %v14012_v16  ;;  %v8944_v26 = vpack.c.bf16 %v1551_v12, %v1535_v11  ;;  %v8946_v18 = vpack.c.bf16 %v2567_v13, %v2566_v20  ;;  %v2550_v21 = vld [vmem:[%s14002_s10] sm:$0xff]  ;;  %v2559_v11 = vld [vmem:[%s14002_s10 + $0x48] sm:$0xff] }
 0xc0d   :  { %v10595_v30 = vadd.f32 %v7103_v57, %v1479_v29  ;;  %8905 = vmatpush1.bf16.msra.mxu1 %v8904_v22  ;;  %8913 = vmatpush1.bf16.msra.mxu0 %v8912_v25  ;;  %v8930_v57 = vpack.c.bf16 %v1518_v46, %v1502_v49  ;;  %v2551_v22 = vld [vmem:[%s14002_s10 + $0x8] sm:$0xff]  ;;  %v2582_v24 = vld [vmem:[%s14002_s10 + $0x100] sm:$0xff]  ;;  %v2600_v29 = vld [vmem:[%s14002_s10 + $0x190] sm:$0xff] }
 0xc0e   :  { %8915 = vmatprep.subr.bf16.mxu1 %v8914_v27  ;;  %8923 = vmatprep.subr.bf16.mxu0 %v8922_v28  ;;  %v2583_v25 = vld [vmem:[%s14002_s10 + $0x108] sm:$0xff]  ;;  %v2568_v27 = vld [vmem:[%s14002_s10 + $0x90] sm:$0xff]  ;;  %v2569_v28 = vld [vmem:[%s14002_s10 + $0x98] sm:$0xff]  ;;  %v8948_v31 = vpack.c.bf16 %v2551_v22, %v2550_v21  ;;  %v8982_v37 = vpack.c.bf16 %v2601_v6, %v2600_v29 }
 0xc0f   :  { %7106 = vmatmul.mubr.msk.f32.gmra.mrb[52].mxu1 %vm194_vm1, %v10595_v30  ;;  %7109 = vmatmul.mubr.msk.f32.gmra.mrb[28].mxu0 %vm194_vm1, %v10595_v30  ;;  %v8980_v32 = vpack.c.bf16 %v2583_v25, %v2582_v24  ;;  %v8950_v36 = vpack.c.bf16 %v2569_v28, %v2568_v27  ;;  %v2554_v47 = vld [vmem:[%s14002_s10 + $0x20] sm:$0xff]  ;;  %v2555_v46 = vld [vmem:[%s14002_s10 + $0x28] sm:$0xff]  ;;  %v2609_v21 = vld [vmem:[%s14002_s10 + $0x1d8] sm:$0xff] }
 0xc10   :  { %1876 = vmatprep.mubr.f32.mxu1 %v14012_v16  ;;  %1959 = vmatprep.mubr.f32.mxu0 %v14012_v16  ;;  %v2606_v7 = vld [vmem:[%s14002_s10 + $0x1c0] sm:$0xff]  ;;  %v2560_v22 = vld [vmem:[%s14002_s10 + $0x50] sm:$0xff]  ;;  %v2561_v24 = vld [vmem:[%s14002_s10 + $0x58] sm:$0xff] }
 0xc11   :  { %v2590_v13 = vld [vmem:[%s14002_s10 + $0x140] sm:$0xff]  ;;  %v8968_v27 = vpack.c.bf16 %v2561_v24, %v2560_v22  ;;  %v2592_v28 = vld [vmem:[%s14002_s10 + $0x150] sm:$0xff]  ;;  %v2593_v29 = vld [vmem:[%s14002_s10 + $0x158] sm:$0xff] }
 0xc12   :  { %v8996_v15 = vpack.c.bf16 %v2591_v55, %v2590_v13  ;;  %v9000_v6 = vpack.c.bf16 %v2593_v29, %v2592_v28 }
 0xc13   :  { %7110 = vmatmul.mubr.msk.f32.vlgmr.msra.gmra.mrb[54].mxu1 %vm194_vm1, %v10553_v14  ;;  %7113 = vmatmul.mubr.msk.f32.vlgmr.msra.gmra.mrb[30].mxu0 %vm194_vm1, %v10553_v14 }
 0xc14   :  { %1882 = vmatprep.mubr.f32.mxu1 %v14012_v16  ;;  %1965 = vmatprep.mubr.f32.mxu0 %v14012_v16 }
 0xc15   :  { %8917 = vmatpush1.bf16.msra.mxu1 %v8916_v38  ;;  %8925 = vmatpush1.bf16.msra.mxu0 %v8924_v39  ;;  %v2585_v38 = vld [vmem:[%s14002_s10 + $0x118] sm:$0xff]  ;;  %v2570_v39 = vld [vmem:[%s14002_s10 + $0xa0] sm:$0xff] }
 0xc16   :  { %8919 = vmatprep.subr.bf16.mxu1 %v8918_v43  ;;  %8927 = vmatprep.subr.bf16.mxu0 %v8926_v42  ;;  %v2603_v43 = vld [vmem:[%s14002_s10 + $0x1a8] sm:$0xff]  ;;  %v8952_v42 = vpack.c.bf16 %v2553_v34, %v2552_v33  ;;  %v8954_v48 = vpack.c.bf16 %v2571_v40, %v2570_v39  ;;  %v2610_v33 = vld [vmem:[%s14002_s10 + $0x1e0] sm:$0xff] }
 0xc17   :  { %7111 = vmatmul.mubr.msk.f32.gmra.mrb[56].mxu1 %vm194_vm1, %v10586_v23  ;;  %7114 = vmatmul.mubr.msk.f32.gmra.mrb[32].mxu0 %vm194_vm1, %v10586_v23  ;;  %v8986_v49 = vpack.c.bf16 %v2603_v43, %v2602_v41  ;;  %v2594_v40 = vld [vmem:[%s14002_s10 + $0x160] sm:$0xff]  ;;  %v2595_v41 = vld [vmem:[%s14002_s10 + $0x168] sm:$0xff] }
 0xc18   :  { %1888 = vmatprep.mubr.f32.mxu1 %v14012_v16  ;;  %1971 = vmatprep.mubr.f32.mxu0 %v14012_v16  ;;  %v9004_v43 = vpack.c.bf16 %v2595_v41, %v2594_v40 }
 0xc19   :  { %8921 = vmatpush1.bf16.msra.mxu1 %v8920_v54  ;;  %8929 = vmatpush1.bf16.msra.mxu0 %v8928_v45  ;;  %v8956_v54 = vpack.c.bf16 %v2555_v46, %v2554_v47  ;;  %v8988_v45 = vpack.c.bf16 %v2587_v53, %v2586_v52  ;;  %v2612_v47 = vld [vmem:[%s14002_s10 + $0x1f0] sm:$0xff]  ;;  %v2565_v52 = vld [vmem:[%s14002_s10 + $0x78] sm:$0xff] }
 0xc1a   :  { %8931 = vmatprep.subr.bf16.mxu1 %v8930_v57  ;;  %8939 = vmatprep.subr.bf16.mxu0 %v8938_v58  ;;  %v2573_v57 = vld [vmem:[%s14002_s10 + $0xb8] sm:$0xff]  ;;  %v2604_v58 = vld [vmem:[%s14002_s10 + $0x1b0] sm:$0xff] }
 0xc1b   :  { %7112 = vmatmul.mubr.msk.f32.gmra.mrb[58].mxu1 %vm194_vm1, %v10595_v30  ;;  %7115 = vmatmul.mubr.msk.f32.gmra.mrb[34].mxu0 %vm194_vm1, %v10595_v30  ;;  %v8990_v62 = vpack.c.bf16 %v2605_v59, %v2604_v58  ;;  %v2564_v46 = vld [vmem:[%s14002_s10 + $0x70] sm:$0xff]  ;;  %v2630_v58 = vld [vmem:[%s14002_s10 + $0x280] sm:$0xff] }
 0xc1c   :  { %2042 = vmatprep.mubr.f32.mxu1 %v14012_v16  ;;  %2125 = vmatprep.mubr.f32.mxu0 %v14012_v16  ;;  %v2662_v59 = vld [vmem:[%s14002_s10 + $0x380] sm:$0xff] }
 0xc1f   :  { %7116 = vmatmul.mubr.msk.f32.vlgmr.msra.gmra.mrb[60].mxu1 %vm194_vm1, %v10553_v14  ;;  %7119 = vmatmul.mubr.msk.f32.vlgmr.msra.gmra.mrb[36].mxu0 %vm194_vm1, %v10553_v14 }
 0xc20   :  { %2048 = vmatprep.mubr.f32.mxu1 %v14012_v16  ;;  %2131 = vmatprep.mubr.f32.mxu0 %v14012_v16 }
 0xc21   :  { %8933 = vmatpush1.bf16.msra.mxu1 %v8932_v4  ;;  %8941 = vmatpush1.bf16.msra.mxu0 %v8940_v5  ;;  %v2574_v4 = vld [vmem:[%s14002_s10 + $0xc0] sm:$0xff]  ;;  %v2575_v5 = vld [vmem:[%s14002_s10 + $0xc8] sm:$0xff] }
 0xc22   :  { %8935 = vmatprep.subr.bf16.mxu1 %v8934_v9  ;;  %8943 = vmatprep.subr.bf16.mxu0 %v8942_v10  ;;  %v8962_v8 = vpack.c.bf16 %v2575_v5, %v2574_v4  ;;  %v2607_v9 = vld [vmem:[%s14002_s10 + $0x1c8] sm:$0xff]  ;;  %v2558_v10 = vld [vmem:[%s14002_s10 + $0x40] sm:$0xff] }
 0xc23   :  { %7117 = vmatmul.mubr.msk.f32.gmra.mrb[62].mxu1 %vm194_vm1, %v10586_v23  ;;  %7120 = vmatmul.mubr.msk.f32.gmra.mrb[38].mxu0 %vm194_vm1, %v10586_v23  ;;  %v8994_v12 = vpack.c.bf16 %v2607_v9, %v2606_v7  ;;  %v8964_v20 = vpack.c.bf16 %v2559_v11, %v2558_v10 }
 0xc24   :  { %2054 = vmatprep.mubr.f32.mxu1 %v14012_v16  ;;  %2137 = vmatprep.mubr.f32.mxu0 %v14012_v16 }
 0xc25   :  { %8937 = vmatpush1.bf16.msra.mxu1 %v8936_v17  ;;  %8945 = vmatpush1.bf16.msra.mxu0 %v8944_v26  ;;  %v2576_v17 = vld [vmem:[%s14002_s10 + $0xd0] sm:$0xff]  ;;  %v2577_v26 = vld [vmem:[%s14002_s10 + $0xd8] sm:$0xff] }
 0xc26   :  { %8947 = vmatprep.subr.bf16.mxu1 %v8946_v18  ;;  %8979 = vmatprep.subr.bf16.mxu0 %v8978_v19  ;;  %v2608_v18 = vld [vmem:[%s14002_s10 + $0x1d0] sm:$0xff]  ;;  %v8966_v19 = vpack.c.bf16 %v2577_v26, %v2576_v17 }
 0xc27   :  { %7118 = vmatmul.mubr.msk.f32.gmra.mrb[64].mxu1 %vm194_vm1, %v10595_v30  ;;  %7121 = vmatmul.mubr.msk.f32.gmra.mrb[40].mxu0 %vm194_vm1, %v10595_v30  ;;  %v8998_v25 = vpack.c.bf16 %v2609_v21, %v2608_v18 }
 0xc28   :  { %2208 = vmatprep.mubr.f32.mxu1 %v14012_v16  ;;  %2291 = vmatprep.mubr.f32.mxu0 %v14012_v16 }
 0xc2b   :  { %7122 = vmatmul.mubr.msk.f32.vlgmr.msra.gmra.mrb[66].mxu1 %vm194_vm1, %v10553_v14  ;;  %7125 = vmatmul.mubr.msk.f32.vlgmr.msra.gmra.mrb[42].mxu0 %vm194_vm1, %v10553_v14  ;;  %v8984_v14 = vpack.c.bf16 %v2585_v38, %v2584_v35  ;;  %v2563_v35 = vld [vmem:[%s14002_s10 + $0x68] sm:$0xff] }
 0xc2c   :  { %2214 = vmatprep.mubr.f32.mxu1 %v14012_v16  ;;  %2297 = vmatprep.mubr.f32.mxu0 %v14012_v16 }
 0xc2d   :  { %8949 = vmatpush3.bf16.msra.mxu1 %v8948_v31  ;;  %8981 = vmatpush3.bf16.msra.mxu0 %v8980_v32  ;;  %v2578_v31 = vld [vmem:[%s14002_s10 + $0xe0] sm:$0xff]  ;;  %v2579_v32 = vld [vmem:[%s14002_s10 + $0xe8] sm:$0xff] }
 0xc2e   :  { %8951 = vmatprep.subr.bf16.mxu1 %v8950_v36  ;;  %8983 = vmatprep.subr.bf16.mxu0 %v8982_v37  ;;  %v8970_v34 = vpack.c.bf16 %v2579_v32, %v2578_v31  ;;  %v2611_v36 = vld [vmem:[%s14002_s10 + $0x1e8] sm:$0xff]  ;;  %v2562_v37 = vld [vmem:[%s14002_s10 + $0x60] sm:$0xff] }
 0xc2f   :  { %7123 = vmatmul.mubr.msk.f32.gmra.mrb[68].mxu1 %vm194_vm1, %v10586_v23  ;;  %7126 = vmatmul.mubr.msk.f32.gmra.mrb[44].mxu0 %vm194_vm1, %v10586_v23  ;;  %v2572_v23 = vld [vmem:[%s14002_s10 + $0xb0] sm:$0xff]  ;;  %v9002_v38 = vpack.c.bf16 %v2611_v36, %v2610_v33  ;;  %v8972_v39 = vpack.c.bf16 %v2563_v35, %v2562_v37 }
 0xc30   :  { %2220 = vmatprep.mubr.f32.mxu1 %v14012_v16  ;;  %2303 = vmatprep.mubr.f32.mxu0 %v14012_v16  ;;  %v8958_v50 = vpack.c.bf16 %v2573_v57, %v2572_v23  ;;  %v2597_v23 = vld [vmem:[%s14002_s10 + $0x178] sm:$0xff] }
 0xc31   :  { %8953 = vmatpush3.bf16.msra.mxu1 %v8952_v42  ;;  %8985 = vmatpush3.bf16.msra.mxu0 %v8984_v14  ;;  %v2580_v42 = vld [vmem:[%s14002_s10 + $0xf0] sm:$0xff]  ;;  %v2581_v14 = vld [vmem:[%s14002_s10 + $0xf8] sm:$0xff] }
 0xc32   :  { %8955 = vmatprep.subr.bf16.mxu1 %v8954_v48  ;;  %8987 = vmatprep.subr.bf16.mxu0 %v8986_v49  ;;  %v8974_v48 = vpack.c.bf16 %v2581_v14, %v2580_v42  ;;  %v2613_v49 = vld [vmem:[%s14002_s10 + $0x1f8] sm:$0xff] }
 0xc33   :  { %7124 = vmatmul.mubr.msk.f32.gmra.mrb[70].mxu1 %vm194_vm1, %v10595_v30  ;;  %7127 = vmatmul.mubr.msk.f32.gmra.mrb[46].mxu0 %vm194_vm1, %v10595_v30  ;;  %v2556_v30 = vld [vmem:[%s14002_s10 + $0x30] sm:$0xff]  ;;  %v9006_v53 = vpack.c.bf16 %v2613_v49, %v2612_v47 }
 0xc34   :  { %v8960_v60 = vpack.c.bf16 %v2557_v61, %v2556_v30  ;;  %v2663_v61 = vld [vmem:[%s14002_s10 + $0x388] sm:$0xff] }
 0xc35   :  { %8957 = vmatpush3.bf16.msra.mxu1 %v8956_v54  ;;  %8989 = vmatpush3.bf16.msra.mxu0 %v8988_v45  ;;  %v8976_v54 = vpack.c.bf16 %v2565_v52, %v2564_v46  ;;  %v2596_v45 = vld [vmem:[%s14002_s10 + $0x170] sm:$0xff] }
 0xc36   :  { %8959 = vmatprep.subr.bf16.mxu1 %v8958_v50  ;;  %8991 = vmatprep.subr.bf16.mxu0 %v8990_v62  ;;  %v9008_v57 = vpack.c.bf16 %v2597_v23, %v2596_v45  ;;  %v2631_v50 = vld [vmem:[%s14002_s10 + $0x288] sm:$0xff]  ;;  %v9042_v62 = vpack.c.bf16 %v2663_v61, %v2662_v59 }
 0xc37   :  { %v9010_v30 = vpack.c.bf16 %v2631_v50, %v2630_v58 }
 0xc39   :  { %8961 = vmatpush3.bf16.msra.mxu1 %v8960_v60  ;;  %8993 = vmatpush3.bf16.msra.mxu0 %v8992_v2  ;;  %v1557_v60 = vlaneseq  ;;  %v10951_v2 = vld [vmem:[%s14001_s9] sm:$0xff] }
 0xc3a   :  { %8963 = vmatprep.subr.bf16.mxu1 %v8962_v8  ;;  %8995 = vmatprep.subr.bf16.mxu0 %v8994_v12 }
 0xc3b   :  { %v10943_v63 = vshrl.u32 %v1557_v60, 7 }
 0xc3d   :  { %8965 = vmatpush3.bf16.msra.mxu1 %v8964_v20  ;;  %8997 = vmatpush3.bf16.msra.mxu0 %v8996_v15  ;;  %v10946_v1 = vsub.s32 0, %v10943_v63  ;;  %v10954_v4 = vsub.s32 1, %v10943_v63  ;;  %v10957_v5 = vsub.s32 3, %v10943_v63  ;;  %v10960_v7 = vsub.s32 2, %v10943_v63 }
 0xc3e   :  { %8967 = vmatprep.subr.bf16.mxu1 %v8966_v19  ;;  %8999 = vmatprep.subr.bf16.mxu0 %v8998_v25 }
 0xc3f   :  { %14052 = vst [vmem:[#allocation9_spill] sm:$0xff] %v10954_v4  ;;  %14053 = vst [vmem:[#allocation10_spill] sm:$0xff] %v10957_v5  ;;  %v1560_v8 = vrot.slane %v10951_v2, %v10946_v1  ;;  %v1564_v11 = vrot.slane %v10951_v2, %v10954_v4  ;;  %v1572_v20 = vrot.slane %v10951_v2, %v10957_v5 }
 0xc40   :  { %v1568_v55 = vrot.slane %v10951_v2, %v10960_v7 }
 0xc41   :  { %8969 = vmatpush3.bf16.msra.mxu1 %v8968_v27  ;;  %9001 = vmatpush3.bf16.msra.mxu0 %v9000_v6 }
 0xc42   :  { %8971 = vmatprep.subr.bf16.mxu1 %v8970_v34  ;;  %9003 = vmatprep.subr.bf16.mxu0 %v9002_v38 }
 0xc45   :  { %8973 = vmatpush3.bf16.msra.mxu1 %v8972_v39  ;;  %9005 = vmatpush3.bf16.msra.mxu0 %v9004_v43  ;;  %v10993_v39 = vsub.s32 5, %v10943_v63  ;;  %v10998_v43 = vsub.s32 7, %v10943_v63 }
 0xc46   :  { %8975 = vmatprep.subr.bf16.mxu1 %v8974_v48  ;;  %9007 = vmatprep.subr.bf16.mxu0 %v9006_v53 }
 0xc47   :  { %14054 = vst [vmem:[#allocation11_spill] sm:$0xff] %v10993_v39  ;;  %14055 = vst [vmem:[#allocation12_spill] sm:$0xff] %v10998_v43  ;;  %v11007_v46 = vrot.slane %v10951_v2, %v10993_v39  ;;  %v11018_v23 = vrot.slane %v10951_v2, %v10998_v43  ;;  %v11101_v39 = vld [vmem:[%s14001_s9 + $0x8] sm:$0xff] }
 0xc49   :  { %8977 = vmatpush3.bf16.msra.mxu1 %v8976_v54  ;;  %9009 = vmatpush3.bf16.msra.mxu0 %v9008_v57 }
 0xc4a   :  { %9011 = vmatprep.subr.bf16.mxu1 %v9010_v30  ;;  %9043 = vmatprep.subr.bf16.mxu0 %v9042_v62 }
 0xcda   :  { %v1712_v9 = vpop.f32.mrb[48].mxu1  ;;  %v1795_v10 = vpop.f32.mrb[24].mxu0 }
 0xcdb   :  { %v1714_v12 = vpop.f32.mrb[49].mxu1  ;;  %v1797_v13 = vpop.f32.mrb[25].mxu0  ;;  %v10970_v15 = vadd.f32 %v1712_v9, %v1560_v8  ;;  %v10976_v21 = vadd.f32 %v1795_v10, %v1568_v55 }
 0xcdc   :  { %v10972_v17 = vadd.f32 %v1714_v12, %v1564_v11  ;;  %v10974_v26 = vadd.f32 %v1797_v13, %v1572_v20 }
 0xcdd   :  { %v2358_v25 = vmul.f32 0.70710677, %v10970_v15  ;;  %v2360_v31 = vmul.f32 0.70710677, %v10976_v21 }
 0xcde   :  { %v1718_v18 = vpop.f32.mrb[50].mxu1  ;;  %v1801_v19 = vpop.f32.mrb[26].mxu0  ;;  %v2359_v27 = vmul.f32 0.70710677, %v10972_v17  ;;  %v2361_v6 = vmul.f32 0.70710677, %v10974_v26 }
 0xcdf   :  { %v1720_v22 = vpop.f32.mrb[51].mxu1  ;;  %v1803_v24 = vpop.f32.mrb[27].mxu0  ;;  %v10982_v32 = vadd.f32 %v1718_v18, %v1560_v8  ;;  %9648 = verf.f32 %v2358_v25  ;;  %v10995_v40 = vadd.f32 %v1801_v19, %v1568_v55 }
 0xce0   :  { %v10984_v36 = vadd.f32 %v1720_v22, %v1564_v11  ;;  %9650 = verf.f32 %v2359_v27  ;;  %v10986_v37 = vadd.f32 %v1803_v24, %v1572_v20 }
 0xce1   :  { %9652 = verf.f32 %v2361_v6  ;;  %v2374_v42 = vmul.f32 0.70710677, %v10982_v32  ;;  %v2376_v54 = vmul.f32 0.70710677, %v10995_v40 }
 0xce2   :  { %v1724_v28 = vpop.f32.mrb[52].mxu1  ;;  %v1807_v29 = vpop.f32.mrb[28].mxu0  ;;  %9654 = verf.f32 %v2360_v31  ;;  %v2375_v47 = vmul.f32 0.70710677, %v10984_v36  ;;  %v2377_v49 = vmul.f32 0.70710677, %v10986_v37 }
 0xce3   :  { %v1726_v33 = vpop.f32.mrb[53].mxu1  ;;  %v1809_v34 = vpop.f32.mrb[29].mxu0  ;;  %v11014_v45 = vadd.f32 %v1724_v28, %v1560_v8  ;;  %9656 = verf.f32 %v2374_v42  ;;  %v11026_v59 = vadd.f32 %v1807_v29, %v1568_v55 }
 0xce4   :  { %v11002_v48 = vadd.f32 %v1726_v33, %v1564_v11  ;;  %v11024_v50 = vadd.f32 %v1809_v34, %v1572_v20  ;;  %9658 = verf.f32 %v2375_v47  ;;  %v2614_v33 = vld [vmem:[%s14002_s10 + $0x200] sm:$0xff]  ;;  %v2615_v34 = vld [vmem:[%s14002_s10 + $0x208] sm:$0xff] }
 0xce5   :  { %9660 = verf.f32 %v2377_v49  ;;  %v2390_v9 = vmul.f32 0.70710677, %v11014_v45  ;;  %v2392_v18 = vmul.f32 0.70710677, %v11026_v59  ;;  %v2646_v47 = vld [vmem:[%s14002_s10 + $0x300] sm:$0xff]  ;;  %v2647_v49 = vld [vmem:[%s14002_s10 + $0x308] sm:$0xff]  ;;  %v9012_v44 = vpack.c.bf16 %v2615_v34, %v2614_v33 }
 0xce6   :  { %v10988_v35 = vpop.f32.mrb[54].mxu1  ;;  %v10990_v38 = vpop.f32.mrb[30].mxu0  ;;  %v2391_v30 = vmul.f32 0.70710677, %v11002_v48  ;;  %9662 = verf.f32 %v2376_v54  ;;  %v2393_v13 = vmul.f32 0.70710677, %v11024_v50  ;;  %v9044_v43 = vpack.c.bf16 %v2647_v49, %v2646_v47 }
 0xce7   :  { %v1880_v41 = vpop.f32.mrb[55].mxu1  ;;  %v1963_v14 = vpop.f32.mrb[31].mxu0  ;;  %v11074_v54 = vld [vmem:[%s14002_s10 + $0x290] sm:$0xff]  ;;  %v11134_v47 = vld [vmem:[%s14002_s10 + $0x2a8] sm:$0xff] }
 0xce8   :  { %v11030_v61 = vadd.f32 %v1880_v41, %v11007_v46  ;;  %v11038_v10 = vadd.f32 %v1963_v14, %v11018_v23  ;;  %9664 = verf.f32 %v2391_v30  ;;  %v11063_v14 = vsub.s32 4, %v10943_v63  ;;  %v11119_v33 = vld [vmem:[%s14002_s10 + $0x310] sm:$0xff] }
 0xce9   :  { %v9649_v8 = vpop.eup %9648  ;;  %9666 = verf.f32 %v2390_v9  ;;  %v2313_v9 = vmul.f32 0.5, %v10974_v26  ;;  %v2312_v26 = vmul.f32 0.5, %v10976_v21 }
 0xcea   :  { %v11009_v52 = vpop.f32.mrb[56].mxu1  ;;  %v11011_v53 = vpop.f32.mrb[32].mxu0  ;;  %v2363_v22 = vmul.f32 0.70710677, %v11030_v61  ;;  %v2365_v27 = vmul.f32 0.70710677, %v11038_v10  ;;  %9668 = verf.f32 %v2393_v13 }
 0xceb   :  { %v11020_v57 = vpop.f32.mrb[57].mxu1  ;;  %v11022_v58 = vpop.f32.mrb[33].mxu0  ;;  %v2454_v41 = vadd.f32 1.0, %v9649_v8  ;;  %9670 = verf.f32 %v2392_v18  ;;  %14056 = vst [vmem:[#allocation13_spill] sm:$0xff] %v11063_v14  ;;  %v2311_v8 = vmul.f32 0.5, %v10972_v17  ;;  %v2664_v13 = vld [vmem:[%s14002_s10 + $0x390] sm:$0xff] }
 0xcec   :  { %v9651_v20 = vpop.eup %9650  ;;  %9672 = verf.f32 %v2363_v22  ;;  %v2310_v17 = vmul.f32 0.5, %v10970_v15  ;;  %v11092_v22 = vsub.s32 6, %v10943_v63 }
 0xced   :  { %v9653_v55 = vpop.eup %9652  ;;  %v2455_v6 = vadd.f32 1.0, %v9651_v20  ;;  %v2633_v20 = vld [vmem:[%s14002_s10 + $0x298] sm:$0xff]  ;;  %9674 = verf.f32 %v2365_v27 }
 0xcee   :  { %v11032_v62 = vpop.f32.mrb[58].mxu1  ;;  %v11034_v60 = vpop.f32.mrb[34].mxu0  ;;  %v2457_v31 = vadd.f32 1.0, %v9653_v55  ;;  %v2665_v55 = vld [vmem:[%s14002_s10 + $0x398] sm:$0xff]  ;;  %14058 = vst [vmem:[#allocation15_spill] sm:$0xff] %v11092_v22  ;;  %v2502_v63 = vmul.f32 %v2454_v41, %v2310_v17  ;;  %v9014_v27 = vpack.c.bf16 %v2633_v20, %v11074_v54  ;;  %v11146_v20 = vrot.slane %v10951_v2, %v11092_v22  ;;  %v11213_v22 = vld [vmem:[%s14002_s10 + $0x3b0] sm:$0xff] }
 0xcef   :  { %v11040_v11 = vpop.f32.mrb[59].mxu1  ;;  %v11042_v12 = vpop.f32.mrb[35].mxu0  ;;  %v2503_v56 = vmul.f32 %v2455_v6, %v2311_v8  ;;  %v11109_v6 = vld [vmem:[%s14002_s10 + $0x210] sm:$0xff]  ;;  %v11124_v41 = vld [vmem:[%s14002_s10 + $0x318] sm:$0xff] }
 0xcf0   :  { %v9655_v19 = vpop.eup %9654  ;;  %v2505_v51 = vmul.f32 %v2457_v31, %v2313_v9  ;;  %v11114_v31 = vld [vmem:[%s14002_s10 + $0x218] sm:$0xff]  ;;  %v11142_v9 = vrot.slane %v10951_v2, %v11063_v14  ;;  %v2327_v2 = vmul.f32 0.5, %v10984_v36 }
 0xcf1   :  { %v2456_v42 = vadd.f32 1.0, %v9655_v19  ;;  %v9657_v30 = vpop.eup %9656  ;;  %2870 = vmatprep.mubr.f32.mxu1 %v2503_v56  ;;  %v9016_v17 = vpack.c.bf16 %v11114_v31, %v11109_v6  ;;  %v11188_v6 = vrot.slane %v11101_v39, %v10957_v5  ;;  %v9048_v31 = vpack.c.bf16 %v11124_v41, %v11119_v33  ;;  %v11218_v14 = vld [vmem:[%s14002_s10 + $0x3b8] sm:$0xff] }
 0xcf2   :  { %v11047_v24 = vpop.f32.mrb[60].mxu1  ;;  %v11049_v25 = vpop.f32.mrb[36].mxu0  ;;  %2950 = vmatprep.mubr.f32.mxu0 %v2505_v51  ;;  %v2470_v56 = vadd.f32 1.0, %v9657_v30  ;;  %2871 = vmatmul.mubr.f32.vlgmr.msra.gmra.mrb[72].mxu1 %v2502_v63  ;;  %v11156_v30 = vld [vmem:[%s14002_s10 + $0x3a8] sm:$0xff]  ;;  %v2329_v63 = vmul.f32 0.5, %v10986_v37  ;;  %v11205_v37 = vld [vmem:[%s14002_s10 + $0x2b8] sm:$0xff] }
 0xcf3   :  { %v11052_v28 = vpop.f32.mrb[61].mxu1  ;;  %v11054_v29 = vpop.f32.mrb[37].mxu0  ;;  %9013 = vmatpush3.bf16.msra.mxu1 %v9012_v44  ;;  %v11182_v44 = vld [vmem:[%s14002_s10 + $0x320] sm:$0xff] }
 0xcf4   :  { %v9659_v19 = vpop.eup %9658  ;;  %9015 = vmatprep.subr.bf16.mxu1 %v9014_v27 }
 0xcf5   :  { %v9661_v0 = vpop.eup %9660  ;;  %v2471_v34 = vadd.f32 1.0, %v9659_v19 }
 0xcf6   :  { %v11087_v18 = vpop.f32.mrb[62].mxu1  ;;  %v11094_v16 = vpop.f32.mrb[38].mxu0  ;;  %v2473_v8 = vadd.f32 1.0, %v9661_v0 }
 0xcf7   :  { %14057 = vst [vmem:[#allocation14_spill] sm:$0xff] %v11087_v18  ;;  %14059 = vst [vmem:[#allocation16_spill] sm:$0xff] %v11094_v16  ;;  %v11096_v3 = vpop.f32.mrb[63].mxu1  ;;  %v11103_v15 = vpop.f32.mrb[39].mxu0  ;;  %v2504_v18 = vmul.f32 %v2456_v42, %v2312_v26  ;;  %v9046_v16 = vpack.c.bf16 %v2665_v55, %v2664_v13  ;;  %v11129_v42 = vld [vmem:[%s14002_s10 + $0x2a0] sm:$0xff]  ;;  %v2519_v33 = vmul.f32 %v2471_v34, %v2327_v2  ;;  %v11231_v2 = vld [vmem:[%s14002_s10 + $0x230] sm:$0xff]  ;;  %9017 = vmatpush3.bf16.msra.mxu1 %v9016_v17 }
 0xcf8   :  { %v9663_v21 = vpop.eup %9662  ;;  %v11151_v13 = vld [vmem:[%s14002_s10 + $0x3a0] sm:$0xff]  ;;  %v9018_v41 = vpack.c.bf16 %v11134_v47, %v11129_v42 }
 0xcf9   :  { %v9665_v51 = vpop.eup %9664  ;;  %2951 = vmatmul.mubr.f32.vlgmr.msra.gmra.mrb[48].mxu0 %v2504_v18  ;;  %v2472_v19 = vadd.f32 1.0, %v9663_v21  ;;  %v11165_v18 = vrot.slane %v11101_v39, %v10954_v4  ;;  %v11172_v26 = vld [vmem:[%s14002_s10 + $0x220] sm:$0xff]  ;;  %v11177_v21 = vld [vmem:[%s14002_s10 + $0x228] sm:$0xff]  ;;  %v9050_v42 = vpack.c.bf16 %v11156_v30, %v11151_v13  ;;  %v2343_v13 = vmul.f32 0.5, %v11002_v48  ;;  %2875 = vmatprep.mubr.f32.mxu1 %v2519_v33 }
 0xcfa   :  { %v11136_v49 = vpop.f32.mrb[64].mxu1  ;;  %v11138_v54 = vpop.f32.mrb[40].mxu0  ;;  %9045 = vmatpush3.bf16.msra.mxu0 %v9044_v43  ;;  %v2326_v43 = vmul.f32 0.5, %v10982_v32  ;;  %v11195_v4 = vld [vmem:[%s14002_s10 + $0x328] sm:$0xff]  ;;  %v11200_v32 = vld [vmem:[%s14002_s10 + $0x2b0] sm:$0xff]  ;;  %v2487_v5 = vadd.f32 1.0, %v9665_v51  ;;  %v2521_v51 = vmul.f32 %v2473_v8, %v2329_v63  ;;  %v9020_v47 = vpack.c.bf16 %v11177_v21, %v11172_v26  ;;  %9019 = vmatprep.subr.bf16.mxu1 %v9018_v41 }
 0xcfb   :  { %14060 = vst [vmem:[#allocation17_spill] sm:$0xff] %v11136_v49  ;;  %14061 = vst [vmem:[#allocation18_spill] sm:$0xff] %v11138_v54  ;;  %v11158_v0 = vpop.f32.mrb[65].mxu1  ;;  %v11160_v55 = vpop.f32.mrb[41].mxu0  ;;  %9047 = vmatprep.subr.bf16.mxu0 %v9046_v16  ;;  %v2328_v16 = vmul.f32 0.5, %v10995_v40  ;;  %v11245_v30 = vadd.f32 %v10988_v35, %v11142_v9  ;;  %v11257_v63 = vld [vmem:[%s14002_s10 + $0x338] sm:$0xff]  ;;  %v11265_v33 = vadd.f32 %v11020_v57, %v11007_v46 }
 0xcfc   :  { %v9667_v36 = vpop.eup %9666  ;;  %v2518_v34 = vmul.f32 %v2470_v56, %v2326_v43  ;;  %v11252_v43 = vld [vmem:[%s14002_s10 + $0x330] sm:$0xff]  ;;  %2955 = vmatprep.mubr.f32.mxu0 %v2521_v51  ;;  %v2535_v21 = vmul.f32 %v2487_v5, %v2343_v13  ;;  %v2344_v57 = vmul.f32 0.5, %v11026_v59  ;;  %v2345_v51 = vmul.f32 0.5, %v11024_v50  ;;  %v11289_v41 = vld [vmem:[%s14002_s10 + $0x3c0] sm:$0xff]  ;;  %9021 = vmatpush3.bf16.msra.mxu1 %v9020_v47 }
 0xcfd   :  { %v9669_v27 = vpop.eup %9668  ;;  %v2520_v26 = vmul.f32 %v2472_v19, %v2328_v16  ;;  %v9022_v19 = vpack.c.bf16 %v11205_v37, %v11200_v32  ;;  %v11296_v50 = vadd.f32 %v10990_v38, %v11146_v20  ;;  %v11308_v5 = vadd.f32 %v11009_v52, %v11142_v9  ;;  %v2623_v52 = vld [vmem:[%s14002_s10 + $0x248] sm:$0xff] }
 0xcfe   :  { %v11220_v54 = vpop.f32.mrb[66].mxu1  ;;  %v11222_v49 = vpop.f32.mrb[42].mxu0  ;;  %v2489_v35 = vadd.f32 1.0, %v9669_v27  ;;  %2876 = vmatmul.mubr.f32.gmra.mrb[74].mxu1 %v2518_v34  ;;  %v11272_v27 = vld [vmem:[%s14002_s10 + $0x2c0] sm:$0xff]  ;;  %9049 = vmatpush3.bf16.msra.mxu0 %v9048_v31 }
 0xcff   :  { %14062 = vst [vmem:[#allocation19_spill] sm:$0xff] %v11220_v54  ;;  %14063 = vst [vmem:[#allocation20_spill] sm:$0xff] %v11222_v49  ;;  %v9671_v40 = vpop.eup %9670  ;;  %v11236_v54 = vld [vmem:[%s14002_s10 + $0x238] sm:$0xff]  ;;  %v11238_v49 = vpop.f32.mrb[67].mxu1  ;;  %2956 = vmatmul.mubr.f32.gmra.mrb[50].mxu0 %v2520_v26  ;;  %2880 = vmatprep.mubr.f32.mxu1 %v2535_v21  ;;  %v2315_v26 = vmul.f32 0.5, %v11030_v61 }
 0xd00   :  { %v11240_v8 = vpop.f32.mrb[43].mxu0  ;;  %v9673_v56 = vpop.eup %9672  ;;  %v2488_v16 = vadd.f32 1.0, %v9671_v40  ;;  %v2342_v40 = vmul.f32 0.5, %v11014_v45  ;;  %v2362_v45 = vmul.f32 0.70710677, %v11245_v30  ;;  %9051 = vmatprep.subr.bf16.mxu0 %v9050_v42  ;;  %v2537_v17 = vmul.f32 %v2489_v35, %v2345_v51  ;;  %v2622_v42 = vld [vmem:[%s14002_s10 + $0x240] sm:$0xff]  ;;  %9023 = vmatprep.subr.bf16.mxu1 %v9022_v19 }
 0xd01   :  { %14064 = vst [vmem:[#allocation21_spill] sm:$0xff] %v11240_v8  ;;  %v9675_v48 = vpop.eup %9674  ;;  %v2486_v8 = vadd.f32 1.0, %v9667_v36  ;;  %v9024_v36 = vpack.c.bf16 %v11236_v54, %v11231_v2  ;;  %v2639_v54 = vld [vmem:[%s14002_s10 + $0x2c8] sm:$0xff]  ;;  %v2459_v59 = vadd.f32 1.0, %v9673_v56  ;;  %v2317_v56 = vmul.f32 0.5, %v11038_v10  ;;  %v2640_v19 = vld [vmem:[%s14002_s10 + $0x2d0] sm:$0xff] }
 0xd02   :  { %v11274_v32 = vpop.f32.mrb[68].mxu1  ;;  %v11276_v37 = vpop.f32.mrb[44].mxu0  ;;  %v2461_v31 = vadd.f32 1.0, %v9675_v48  ;;  %v11301_v2 = vld [vmem:[%s14002_s10 + $0x3c8] sm:$0xff]  ;;  %v2379_v21 = vmul.f32 0.70710677, %v11265_v33  ;;  %v11317_v48 = vadd.f32 %v11022_v58, %v11018_v23  ;;  %v2536_v61 = vmul.f32 %v2488_v16, %v2344_v57  ;;  %2960 = vmatprep.mubr.f32.mxu0 %v2537_v17 }
 0xd03   :  { %v11291_v34 = vpop.f32.mrb[69].mxu1  ;;  %v11303_v13 = vpop.f32.mrb[45].mxu0  ;;  %v2534_v38 = vmul.f32 %v2486_v8, %v2342_v40  ;;  %v11328_v35 = vadd.f32 %v11040_v11, %v11007_v46  ;;  %v9026_v10 = vpack.c.bf16 %v2639_v54, %v11272_v27  ;;  %v9058_v58 = vpack.c.bf16 %v11301_v2, %v11289_v41  ;;  %v2641_v16 = vld [vmem:[%s14002_s10 + $0x2d8] sm:$0xff]  ;;  %v2654_v51 = vld [vmem:[%s14002_s10 + $0x340] sm:$0xff]  ;;  %v2655_v54 = vld [vmem:[%s14002_s10 + $0x348] sm:$0xff]  ;;  %9025 = vmatpush3.bf16.msra.mxu1 %v9024_v36 }
 0xd04   :  { %v2364_v46 = vmul.f32 0.70710677, %v11296_v50  ;;  %v11346_v11 = vadd.f32 %v11011_v53, %v11146_v20  ;;  %2961 = vmatmul.mubr.f32.gmra.mrb[52].mxu0 %v2536_v61  ;;  %v2507_v17 = vmul.f32 %v2459_v59, %v2315_v26  ;;  %v2509_v27 = vmul.f32 %v2461_v31, %v2317_v56  ;;  %v2672_v31 = vld [vmem:[%s14002_s10 + $0x3d0] sm:$0xff]  ;;  %v2625_v36 = vld [vmem:[%s14002_s10 + $0x258] sm:$0xff] }
 0xd05   :  { %2881 = vmatmul.mubr.f32.gmra.mrb[76].mxu1 %v2534_v38  ;;  %9676 = verf.f32 %v2362_v45  ;;  %v2378_v41 = vmul.f32 0.70710677, %v11308_v5  ;;  %v11357_v2 = vadd.f32 %v11032_v62, %v11142_v9  ;;  %v14065_v53 = vpack.c.bf16 %v11195_v4, %v11182_v44  ;;  %v2673_v45 = vld [vmem:[%s14002_s10 + $0x3d8] sm:$0xff]  ;;  %v2624_v44 = vld [vmem:[%s14002_s10 + $0x250] sm:$0xff]  ;;  %9027 = vmatprep.subr.bf16.mxu1 %v9026_v10 }
 0xd06   :  { %v11322_v8 = vpop.f32.mrb[70].mxu1  ;;  %v11324_v47 = vpop.f32.mrb[46].mxu0  ;;  %v9028_v59 = vpack.c.bf16 %v2623_v52, %v2622_v42  ;;  %9678 = verf.f32 %v2379_v21  ;;  %v2381_v26 = vmul.f32 0.70710677, %v11317_v48  ;;  %v11371_v62 = vadd.f32 %v11042_v12, %v11018_v23  ;;  %3030 = vmatprep.mubr.f32.mxu1 %v2507_v17  ;;  %3110 = vmatprep.mubr.f32.mxu0 %v2509_v27  ;;  %v2642_v12 = vld [vmem:[%s14002_s10 + $0x2e0] sm:$0xff]  ;;  %v2645_v17 = vld [vmem:[%s14002_s10 + $0x2f8] sm:$0xff] }
 0xd07   :  { %v11339_v40 = vpop.f32.mrb[71].mxu1  ;;  %v11341_v57 = vpop.f32.mrb[47].mxu0  ;;  %9053 = vmatpush3.bf16.msra.mxu0 %v14065_v53  ;;  %v14066_v4 = vpack.c.bf16 %v11218_v14, %v11213_v22  ;;  %v9030_v9 = vpack.c.bf16 %v2641_v16, %v2640_v19  ;;  %v2395_v38 = vmul.f32 0.70710677, %v11328_v35  ;;  %v9060_v23 = vpack.c.bf16 %v2655_v54, %v2654_v51  ;;  %v2643_v14 = vld [vmem:[%s14002_s10 + $0x2e8] sm:$0xff]  ;;  %v2656_v19 = vld [vmem:[%s14002_s10 + $0x350] sm:$0xff] }
 0xd08   :  { %9680 = verf.f32 %v2364_v46  ;;  %v2380_v22 = vmul.f32 0.70710677, %v11346_v11  ;;  %v11392_v42 = vadd.f32 %v11052_v28, %v11165_v18  ;;  %v9062_v56 = vpack.c.bf16 %v2673_v45, %v2672_v31  ;;  %9029 = vmatpush3.bf16.msra.mxu1 %v9028_v59  ;;  %v2657_v28 = vld [vmem:[%s14002_s10 + $0x358] sm:$0xff]  ;;  %v2627_v46 = vld [vmem:[%s14002_s10 + $0x268] sm:$0xff]  ;;  %v2658_v53 = vld [vmem:[%s14002_s10 + $0x360] sm:$0xff] }
 0xd09   :  { %9055 = vmatprep.subr.bf16.mxu0 %v14066_v4  ;;  %9682 = verf.f32 %v2378_v41  ;;  %v2394_v21 = vmul.f32 0.70710677, %v11357_v2  ;;  %v11397_v61 = vadd.f32 %v11034_v60, %v11146_v20  ;;  %v14067_v52 = vpack.c.bf16 %v11257_v63, %v11252_v43  ;;  %9031 = vmatprep.subr.bf16.mxu1 %v9030_v9  ;;  %v2674_v43 = vld [vmem:[%s14002_s10 + $0x3e0] sm:$0xff]  ;;  %v2659_v59 = vld [vmem:[%s14002_s10 + $0x368] sm:$0xff]  ;;  %v2676_v4 = vld [vmem:[%s14002_s10 + $0x3f0] sm:$0xff] }
 0xd0a   :  { %v9032_v10 = vpack.c.bf16 %v2625_v36, %v2624_v44  ;;  %9684 = verf.f32 %v2381_v26  ;;  %v2397_v16 = vmul.f32 0.70710677, %v11371_v62  ;;  %v11411_v60 = vadd.f32 %v11054_v29, %v11188_v6  ;;  %v2626_v63 = vld [vmem:[%s14002_s10 + $0x260] sm:$0xff]  ;;  %v2675_v29 = vld [vmem:[%s14002_s10 + $0x3e8] sm:$0xff]  ;;  %v2628_v9 = vld [vmem:[%s14002_s10 + $0x270] sm:$0xff] }
 0xd0b   :  { %9057 = vmatpush3.bf16.msra.mxu0 %v14067_v52  ;;  %v9034_v20 = vpack.c.bf16 %v2643_v14, %v2642_v12  ;;  %9686 = verf.f32 %v2395_v38  ;;  %v2367_v27 = vmul.f32 0.70710677, %v11392_v42  ;;  %v2396_v51 = vmul.f32 0.70710677, %v11397_v61  ;;  %v2629_v44 = vld [vmem:[%s14002_s10 + $0x278] sm:$0xff]  ;;  %v2695_v12 = vld [vmem:[%s14002_s10 + $0x488] sm:$0xff] }
 0xd0c   :  { %9059 = vmatprep.subr.bf16.mxu0 %v9058_v58  ;;  %v2644_v58 = vld [vmem:[%s14002_s10 + $0x2f0] sm:$0xff]  ;;  %9688 = verf.f32 %v2380_v22  ;;  %9033 = vmatpush3.bf16.msra.mxu1 %v9032_v10  ;;  %v9064_v54 = vpack.c.bf16 %v2657_v28, %v2656_v19  ;;  %v9036_v41 = vpack.c.bf16 %v2627_v46, %v2626_v63  ;;  %v2369_v31 = vmul.f32 0.70710677, %v11411_v60  ;;  %v2677_v38 = vld [vmem:[%s14002_s10 + $0x3f8] sm:$0xff] }
 0xd0d   :  { %9690 = verf.f32 %v2394_v21  ;;  %9035 = vmatprep.subr.bf16.mxu1 %v9034_v20  ;;  %v9066_v45 = vpack.c.bf16 %v2675_v29, %v2674_v43  ;;  %v9038_v26 = vpack.c.bf16 %v2645_v17, %v2644_v58  ;;  %v9068_v22 = vpack.c.bf16 %v2659_v59, %v2658_v53  ;;  %v2660_v21 = vld [vmem:[%s14002_s10 + $0x370] sm:$0xff]  ;;  %v2661_v28 = vld [vmem:[%s14002_s10 + $0x378] sm:$0xff]  ;;  %v2726_v20 = vld [vmem:[%s14002_s10 + $0x580] sm:$0xff] }
 0xd0e   :  { %9692 = verf.f32 %v2397_v16  ;;  %v9070_v19 = vpack.c.bf16 %v2677_v38, %v2676_v4  ;;  %v2727_v43 = vld [vmem:[%s14002_s10 + $0x588] sm:$0xff]  ;;  %v2678_v29 = vld [vmem:[%s14002_s10 + $0x400] sm:$0xff]  ;;  %v2331_v53 = vmul.f32 0.5, %v11265_v33  ;;  %v9072_v59 = vpack.c.bf16 %v2661_v28, %v2660_v21  ;;  %v2728_v33 = vld [vmem:[%s14002_s10 + $0x590] sm:$0xff] }
 0xd0f   :  { %9061 = vmatpush3.bf16.msra.mxu0 %v9060_v23  ;;  %v9677_v36 = vpop.eup %9676  ;;  %v2694_v23 = vld [vmem:[%s14002_s10 + $0x480] sm:$0xff]  ;;  %9694 = verf.f32 %v2367_v27  ;;  %v2679_v58 = vld [vmem:[%s14002_s10 + $0x408] sm:$0xff]  ;;  %v2314_v27 = vmul.f32 0.5, %v11245_v30  ;;  %v2729_v38 = vld [vmem:[%s14002_s10 + $0x598] sm:$0xff]  ;;  %v2316_v21 = vmul.f32 0.5, %v11296_v50  ;;  %v2347_v50 = vmul.f32 0.5, %v11328_v35 }
 0xd10   :  { %9063 = vmatprep.subr.bf16.mxu0 %v9062_v56  ;;  %v9679_v14 = vpop.eup %9678  ;;  %9696 = verf.f32 %v2396_v51  ;;  %9037 = vmatpush3.bf16.msra.mxu1 %v9036_v41  ;;  %v9040_v56 = vpack.c.bf16 %v2629_v44, %v2628_v9  ;;  %v2458_v10 = vadd.f32 1.0, %v9677_v36  ;;  %v9074_v16 = vpack.c.bf16 %v2695_v12, %v2694_v23  ;;  %v2696_v51 = vld [vmem:[%s14002_s10 + $0x490] sm:$0xff]  ;;  %v2711_v36 = vld [vmem:[%s14002_s10 + $0x508] sm:$0xff] }
 0xd11   :  { %9698 = verf.f32 %v2369_v31  ;;  %9039 = vmatprep.subr.bf16.mxu1 %v9038_v26  ;;  %v2475_v46 = vadd.f32 1.0, %v9679_v14  ;;  %v9106_v31 = vpack.c.bf16 %v2727_v43, %v2726_v20  ;;  %v9076_v44 = vpack.c.bf16 %v2679_v58, %v2678_v29  ;;  %v2680_v28 = vld [vmem:[%s14002_s10 + $0x410] sm:$0xff]  ;;  %v11519_v29 = vld [vmem:[%s14002_s10 + $0x4a0] sm:$0xff] }
 0xd12   :  { %v9681_v52 = vpop.eup %9680  ;;  %v2506_v26 = vmul.f32 %v2458_v10, %v2314_v27  ;;  %v2333_v20 = vmul.f32 0.5, %v11317_v48  ;;  %v9110_v43 = vpack.c.bf16 %v2729_v38, %v2728_v33 }
 0xd13   :  { %9065 = vmatpush3.bf16.msra.mxu0 %v9064_v54  ;;  %v9683_v63 = vpop.eup %9682  ;;  %v2697_v54 = vld [vmem:[%s14002_s10 + $0x498] sm:$0xff]  ;;  %v2460_v4 = vadd.f32 1.0, %v9681_v52  ;;  %v2523_v14 = vmul.f32 %v2475_v46, %v2331_v53  ;;  %v2330_v52 = vmul.f32 0.5, %v11308_v5 }
 0xd14   :  { %9067 = vmatprep.subr.bf16.mxu0 %v9066_v45  ;;  %v9685_v17 = vpop.eup %9684  ;;  %9041 = vmatpush3.bf16.msra.mxu1 %v9040_v56  ;;  %v2710_v45 = vld [vmem:[%s14002_s10 + $0x500] sm:$0xff]  ;;  %v2474_v9 = vadd.f32 1.0, %v9683_v63  ;;  %v2712_v63 = vld [vmem:[%s14002_s10 + $0x510] sm:$0xff]  ;;  %v2713_v46 = vld [vmem:[%s14002_s10 + $0x518] sm:$0xff] }
 0xd15   :  { %v9687_v41 = vpop.eup %9686  ;;  %9075 = vmatprep.subr.bf16.mxu1 %v9074_v16  ;;  %v2477_v12 = vadd.f32 1.0, %v9685_v17  ;;  %v2681_v16 = vld [vmem:[%s14002_s10 + $0x418] sm:$0xff]  ;;  %v9108_v5 = vpack.c.bf16 %v2711_v36, %v2710_v45  ;;  %v2508_v58 = vmul.f32 %v2460_v4, %v2316_v21  ;;  %v11532_v45 = vrot.slane %v11101_v39, %v10960_v7  ;;  %v2683_v4 = vld [vmem:[%s14002_s10 + $0x428] sm:$0xff] }
 0xd16   :  { %v9689_v30 = vpop.eup %9688  ;;  %v2491_v10 = vadd.f32 1.0, %v9687_v41  ;;  %v2522_v27 = vmul.f32 %v2474_v9, %v2330_v52  ;;  %v2731_v41 = vld [vmem:[%s14002_s10 + $0x5a8] sm:$0xff]  ;;  %v2346_v36 = vmul.f32 0.5, %v11357_v2  ;;  %v9112_v38 = vpack.c.bf16 %v2713_v46, %v2712_v63  ;;  %v2733_v63 = vld [vmem:[%s14002_s10 + $0x5b8] sm:$0xff] }
 0xd17   :  { %9069 = vmatpush3.bf16.msra.mxu0 %v9068_v22  ;;  %v9691_v23 = vpop.eup %9690  ;;  %v9078_v22 = vpack.c.bf16 %v2697_v54, %v2696_v51  ;;  %3031 = vmatmul.mubr.f32.vlgmr.msra.gmra.mrb[78].mxu1 %v2506_v26  ;;  %v2476_v35 = vadd.f32 1.0, %v9689_v30  ;;  %v2699_v51 = vld [vmem:[%s14002_s10 + $0x4a8] sm:$0xff]  ;;  %v2730_v54 = vld [vmem:[%s14002_s10 + $0x5a0] sm:$0xff]  ;;  %v9080_v30 = vpack.c.bf16 %v2681_v16, %v2680_v28  ;;  %v2348_v46 = vmul.f32 0.5, %v11397_v61 }
 0xd18   :  { %9071 = vmatprep.subr.bf16.mxu0 %v9070_v19  ;;  %v9693_v56 = vpop.eup %9692  ;;  %v11500_v19 = vrot.slane %v11101_v39, %v10946_v1  ;;  %3035 = vmatprep.mubr.f32.mxu1 %v2523_v14  ;;  %v2490_v17 = vadd.f32 1.0, %v9691_v23  ;;  %v2682_v26 = vld [vmem:[%s14002_s10 + $0x420] sm:$0xff]  ;;  %v2539_v33 = vmul.f32 %v2491_v10, %v2347_v50  ;;  %v2349_v23 = vmul.f32 0.5, %v11371_v62  ;;  %v2715_v28 = vld [vmem:[%s14002_s10 + $0x528] sm:$0xff] }
 0xd19   :  { %v9695_v48 = vpop.eup %9694  ;;  %9077 = vmatpush3.bf16.msra.mxu1 %v9076_v44  ;;  %v2332_v44 = vmul.f32 0.5, %v11346_v11  ;;  %v9082_v14 = vpack.c.bf16 %v2699_v51, %v11519_v29  ;;  %v2701_v11 = vld [vmem:[%s14002_s10 + $0x4b8] sm:$0xff]  ;;  %v9084_v62 = vpack.c.bf16 %v2683_v4, %v2682_v26  ;;  %v2714_v10 = vld [vmem:[%s14002_s10 + $0x520] sm:$0xff]  ;;  %v11570_v29 = vadd.f32 %v11096_v3, %v11165_v18  ;;  %v2735_v4 = vld [vmem:[%s14002_s10 + $0x5c8] sm:$0xff] }
 0xd1a   :  { %v9697_v53 = vpop.eup %9696  ;;  %9079 = vmatprep.subr.bf16.mxu1 %v9078_v22  ;;  %v9114_v22 = vpack.c.bf16 %v2731_v41, %v2730_v54  ;;  %v2538_v52 = vmul.f32 %v2490_v17, %v2346_v36  ;;  %v11558_v16 = vadd.f32 %v11047_v24, %v11500_v19  ;;  %v2321_v61 = vmul.f32 0.5, %v11411_v60  ;;  %v2702_v17 = vld [vmem:[%s14002_s10 + $0x4c0] sm:$0xff]  ;;  %v2716_v54 = vld [vmem:[%s14002_s10 + $0x530] sm:$0xff]  ;;  %v2717_v41 = vld [vmem:[%s14002_s10 + $0x538] sm:$0xff] }
 0xd1b   :  { %9073 = vmatpush3.bf16.msra.mxu0 %v9072_v59  ;;  %v2493_v59 = vadd.f32 1.0, %v9693_v56  ;;  %v9699_v9 = vpop.eup %9698  ;;  %3036 = vmatmul.mubr.f32.gmra.mrb[80].mxu1 %v2522_v27  ;;  %v2700_v56 = vld [vmem:[%s14002_s10 + $0x4b0] sm:$0xff]  ;;  %v2492_v2 = vadd.f32 1.0, %v9697_v53  ;;  %v2524_v21 = vmul.f32 %v2476_v35, %v2332_v44  ;;  %v9116_v35 = vpack.c.bf16 %v2715_v28, %v2714_v10  ;;  %v2703_v27 = vld [vmem:[%s14002_s10 + $0x4c8] sm:$0xff]  ;;  %v2734_v26 = vld [vmem:[%s14002_s10 + $0x5c0] sm:$0xff] }
 0xd1c   :  { %9107 = vmatprep.subr.bf16.mxu0 %v9106_v31  ;;  %v2525_v31 = vmul.f32 %v2477_v12, %v2333_v20  ;;  %v2463_v12 = vadd.f32 1.0, %v9695_v48  ;;  %3040 = vmatprep.mubr.f32.mxu1 %v2539_v33  ;;  %v2319_v20 = vmul.f32 0.5, %v11392_v42  ;;  %v2465_v50 = vadd.f32 1.0, %v9699_v9  ;;  %v2684_v42 = vld [vmem:[%s14002_s10 + $0x430] sm:$0xff]  ;;  %v2685_v48 = vld [vmem:[%s14002_s10 + $0x438] sm:$0xff]  ;;  %v2718_v28 = vld [vmem:[%s14002_s10 + $0x540] sm:$0xff] }
 0xd1d   :  { %9081 = vmatpush3.bf16.msra.mxu1 %v9080_v30  ;;  %v9086_v24 = vpack.c.bf16 %v2701_v11, %v2700_v56  ;;  %v11591_v51 = vadd.f32 %v11103_v15, %v11188_v6  ;;  %v2366_v53 = vmul.f32 0.70710677, %v11558_v16  ;;  %v9088_v30 = vpack.c.bf16 %v2685_v48, %v2684_v42  ;;  %v14069_v36 = vld [vmem:[#allocation11_spill] sm:$0xff] }
 0xd1e   :  { %3111 = vmatmul.mubr.f32.vlgmr.msra.gmra.mrb[54].mxu0 %v2508_v58  ;;  %v11580_v58 = vadd.f32 %v11049_v25, %v11532_v45  ;;  %v2511_v3 = vmul.f32 %v2463_v12, %v2319_v20  ;;  %v2540_v25 = vmul.f32 %v2492_v2, %v2348_v46  ;;  %9083 = vmatprep.subr.bf16.mxu1 %v9082_v14  ;;  %v2383_v9 = vmul.f32 0.70710677, %v11570_v29  ;;  %v2687_v12 = vld [vmem:[%s14002_s10 + $0x448] sm:$0xff]  ;;  %v2704_v56 = vld [vmem:[%s14002_s10 + $0x4d0] sm:$0xff]  ;;  %v2705_v11 = vld [vmem:[%s14002_s10 + $0x4d8] sm:$0xff] }
 0xd1f   :  { %3115 = vmatprep.mubr.f32.mxu0 %v2525_v31  ;;  %9109 = vmatpush3.bf16.msra.mxu0 %v9108_v5  ;;  %v2541_v5 = vmul.f32 %v2493_v59, %v2349_v23  ;;  %v14068_v59 = vld [vmem:[#allocation14_spill] sm:$0xff]  ;;  %v2513_v15 = vmul.f32 %v2465_v50, %v2321_v61  ;;  %v11613_v44 = vadd.f32 %v11158_v0, %v11165_v18  ;;  %v2686_v23 = vld [vmem:[%s14002_s10 + $0x440] sm:$0xff]  ;;  %v2385_v2 = vmul.f32 0.70710677, %v11591_v51  ;;  %v2689_v48 = vld [vmem:[%s14002_s10 + $0x458] sm:$0xff] }
 0xd20   :  { %9111 = vmatprep.subr.bf16.mxu0 %v9110_v43  ;;  %v2732_v43 = vld [vmem:[%s14002_s10 + $0x5b0] sm:$0xff]  ;;  %3041 = vmatmul.mubr.f32.gmra.mrb[82].mxu1 %v2538_v52  ;;  %v11602_v31 = vadd.f32 %v14068_v59, %v11500_v19  ;;  %v11617_v33 = vrot.slane %v11101_v39, %v14069_v36  ;;  %v2368_v14 = vmul.f32 0.70710677, %v11580_v58  ;;  %v14070_v0 = vld [vmem:[#allocation16_spill] sm:$0xff]  ;;  %v9122_v10 = vpack.c.bf16 %v2735_v4, %v2734_v26  ;;  %v2719_v20 = vld [vmem:[%s14002_s10 + $0x548] sm:$0xff] }
 0xd21   :  { %v9118_v60 = vpack.c.bf16 %v2733_v63, %v2732_v43  ;;  %9085 = vmatpush3.bf16.msra.mxu1 %v9084_v62  ;;  %3190 = vmatprep.mubr.f32.mxu1 %v2511_v3  ;;  %v11628_v18 = vadd.f32 %v14070_v0, %v11532_v45  ;;  %v14071_v52 = vld [vmem:[#allocation12_spill] sm:$0xff]  ;;  %9700 = verf.f32 %v2366_v53  ;;  %v2736_v43 = vld [vmem:[%s14002_s10 + $0x5d0] sm:$0xff]  ;;  %v2399_v46 = vmul.f32 0.70710677, %v11613_v44  ;;  %v2739_v26 = vld [vmem:[%s14002_s10 + $0x5e8] sm:$0xff] }
 0xd22   :  { %3116 = vmatmul.mubr.f32.gmra.mrb[56].mxu0 %v2524_v21  ;;  %9087 = vmatprep.subr.bf16.mxu1 %v9086_v24  ;;  %v11639_v21 = vadd.f32 %v11160_v55, %v11188_v6  ;;  %v11643_v62 = vrot.slane %v11101_v39, %v14071_v52  ;;  %v2382_v50 = vmul.f32 0.70710677, %v11602_v31  ;;  %v14072_v55 = vld [vmem:[#allocation17_spill] sm:$0xff]  ;;  %v2737_v63 = vld [vmem:[%s14002_s10 + $0x5d8] sm:$0xff]  ;;  %9702 = verf.f32 %v2383_v9  ;;  %v2688_v42 = vld [vmem:[%s14002_s10 + $0x450] sm:$0xff] }
 0xd23   :  { %3120 = vmatprep.mubr.f32.mxu0 %v2541_v5  ;;  %9113 = vmatpush3.bf16.msra.mxu0 %v9112_v38  ;;  %v9090_v38 = vpack.c.bf16 %v2703_v27, %v2702_v17  ;;  %v11654_v6 = vadd.f32 %v14072_v55, %v11500_v19  ;;  %v9092_v5 = vpack.c.bf16 %v2687_v12, %v2686_v23  ;;  %9704 = verf.f32 %v2368_v14  ;;  %v14073_v3 = vld [vmem:[#allocation18_spill] sm:$0xff]  ;;  %v2706_v17 = vld [vmem:[%s14002_s10 + $0x4e0] sm:$0xff]  ;;  %v2721_v53 = vld [vmem:[%s14002_s10 + $0x558] sm:$0xff] }
 0xd24   :  { %9115 = vmatprep.subr.bf16.mxu0 %v9114_v22  ;;  %v9120_v22 = vpack.c.bf16 %v2717_v41, %v2716_v54  ;;  %v11665_v24 = vadd.f32 %v11238_v49, %v11617_v33  ;;  %v9094_v19 = vpack.c.bf16 %v2705_v11, %v2704_v56  ;;  %v2384_v61 = vmul.f32 0.70710677, %v11628_v18  ;;  %v2707_v27 = vld [vmem:[%s14002_s10 + $0x4e8] sm:$0xff]  ;;  %v2720_v41 = vld [vmem:[%s14002_s10 + $0x550] sm:$0xff] }
 0xd25   :  { %9089 = vmatpush3.bf16.msra.mxu1 %v9088_v30  ;;  %v9124_v49 = vpack.c.bf16 %v2719_v20, %v2718_v28  ;;  %9706 = verf.f32 %v2385_v2  ;;  %v2398_v59 = vmul.f32 0.70710677, %v11654_v6  ;;  %v2738_v30 = vld [vmem:[%s14002_s10 + $0x5e0] sm:$0xff]  ;;  %v9098_v9 = vpack.c.bf16 %v2707_v27, %v2706_v17  ;;  %v2691_v23 = vld [vmem:[%s14002_s10 + $0x468] sm:$0xff]  ;;  %v2708_v0 = vld [vmem:[%s14002_s10 + $0x4f0] sm:$0xff] }
 0xd26   :  { %3121 = vmatmul.mubr.f32.gmra.mrb[58].mxu0 %v2540_v25  ;;  %9091 = vmatprep.subr.bf16.mxu1 %v9090_v38  ;;  %v2401_v25 = vmul.f32 0.70710677, %v11639_v21  ;;  %9708 = verf.f32 %v2382_v50  ;;  %v2371_v4 = vmul.f32 0.70710677, %v11665_v24  ;;  %v2690_v38 = vld [vmem:[%s14002_s10 + $0x460] sm:$0xff]  ;;  %v9128_v14 = vpack.c.bf16 %v2721_v53, %v2720_v41  ;;  %v2740_v20 = vld [vmem:[%s14002_s10 + $0x5f0] sm:$0xff] }
 0xd27   :  { %9117 = vmatpush3.bf16.msra.mxu0 %v9116_v35  ;;  %3270 = vmatprep.mubr.f32.mxu0 %v2513_v15  ;;  %v11676_v35 = vadd.f32 %v14073_v3, %v11532_v45  ;;  %v9126_v45 = vpack.c.bf16 %v2737_v63, %v2736_v43  ;;  %v9096_v15 = vpack.c.bf16 %v2689_v48, %v2688_v42  ;;  %9710 = verf.f32 %v2399_v46  ;;  %v2722_v2 = vld [vmem:[%s14002_s10 + $0x560] sm:$0xff]  ;;  %v2741_v50 = vld [vmem:[%s14002_s10 + $0x5f8] sm:$0xff]  ;;  %v2759_v42 = vld [vmem:[%s14002_s10 + $0x688] sm:$0xff] }
 0xd28   :  { %9119 = vmatprep.subr.bf16.mxu0 %v9118_v60  ;;  %v14074_v60 = vld [vmem:[#allocation21_spill] sm:$0xff]  ;;  %9712 = verf.f32 %v2384_v61  ;;  %v9130_v11 = vpack.c.bf16 %v2739_v26, %v2738_v30  ;;  %v9100_v28 = vpack.c.bf16 %v2691_v23, %v2690_v38  ;;  %v2693_v43 = vld [vmem:[%s14002_s10 + $0x478] sm:$0xff]  ;;  %v9134_v61 = vpack.c.bf16 %v2741_v50, %v2740_v20  ;;  %v2724_v3 = vld [vmem:[%s14002_s10 + $0x570] sm:$0xff] }
 0xd29   :  { %v11687_v54 = vadd.f32 %v14074_v60, %v11643_v62  ;;  %9093 = vmatpush3.bf16.msra.mxu1 %v9092_v5  ;;  %v2400_v12 = vmul.f32 0.70710677, %v11676_v35  ;;  %9714 = verf.f32 %v2401_v25  ;;  %v2692_v5 = vld [vmem:[%s14002_s10 + $0x470] sm:$0xff]  ;;  %v2790_v25 = vld [vmem:[%s14002_s10 + $0x780] sm:$0xff]  ;;  %v2791_v60 = vld [vmem:[%s14002_s10 + $0x788] sm:$0xff] }
 0xd2a   :  { %9095 = vmatprep.subr.bf16.mxu1 %v9094_v19  ;;  %9716 = verf.f32 %v2398_v59  ;;  %v2758_v19 = vld [vmem:[%s14002_s10 + $0x680] sm:$0xff]  ;;  %v9104_v27 = vpack.c.bf16 %v2693_v43, %v2692_v5  ;;  %v11767_v26 = vld [vmem:[%s14002_s10 + $0x708] sm:$0xff]  ;;  %v11787_v20 = vld [vmem:[%s14002_s10 + $0x790] sm:$0xff]  ;;  %v2335_v5 = vmul.f32 0.5, %v11570_v29  ;;  %v2320_v29 = vmul.f32 0.5, %v11580_v58 }
 0xd2b   :  { %9121 = vmatpush3.bf16.msra.mxu0 %v9120_v22  ;;  %v2709_v22 = vld [vmem:[%s14002_s10 + $0x4f8] sm:$0xff]  ;;  %v2373_v56 = vmul.f32 0.70710677, %v11687_v54  ;;  %9718 = verf.f32 %v2371_v4  ;;  %v9701_v63 = vpop.eup %9700  ;;  %v9138_v59 = vpack.c.bf16 %v2759_v42, %v2758_v19  ;;  %v11762_v30 = vld [vmem:[%s14002_s10 + $0x700] sm:$0xff] }
 0xd2c   :  { %9123 = vmatprep.subr.bf16.mxu0 %v9122_v10  ;;  %v2723_v10 = vld [vmem:[%s14002_s10 + $0x568] sm:$0xff]  ;;  %v9102_v55 = vpack.c.bf16 %v2709_v22, %v2708_v0  ;;  %9720 = verf.f32 %v2400_v12  ;;  %v9703_v48 = vpop.eup %9702  ;;  %v2462_v53 = vadd.f32 1.0, %v9701_v63  ;;  %v2761_v0 = vld [vmem:[%s14002_s10 + $0x698] sm:$0xff]  ;;  %v11798_v63 = vld [vmem:[%s14002_s10 + $0x610] sm:$0xff] }
 0xd2d   :  { %9097 = vmatpush3.bf16.msra.mxu1 %v9096_v15  ;;  %v9132_v46 = vpack.c.bf16 %v2723_v10, %v2722_v2  ;;  %9722 = verf.f32 %v2373_v56  ;;  %v9705_v17 = vpop.eup %9704  ;;  %v2743_v15 = vld [vmem:[%s14002_s10 + $0x608] sm:$0xff]  ;;  %v2318_v56 = vmul.f32 0.5, %v11558_v16  ;;  %v14076_v2 = vld [vmem:[#allocation15_spill] sm:$0xff] }
 0xd2e   :  { %9099 = vmatprep.subr.bf16.mxu1 %v9098_v9  ;;  %v2479_v9 = vadd.f32 1.0, %v9703_v48  ;;  %v14075_v38 = vld [vmem:[#allocation13_spill] sm:$0xff]  ;;  %v11782_v10 = vrot.slane %v11101_v39, %v14076_v2  ;;  %v2793_v50 = vld [vmem:[%s14002_s10 + $0x798] sm:$0xff] }
 0xd2f   :  { %9125 = vmatpush3.bf16.msra.mxu0 %v9124_v49  ;;  %v2725_v49 = vld [vmem:[%s14002_s10 + $0x578] sm:$0xff]  ;;  %v9707_v41 = vpop.eup %9706  ;;  %v11771_v23 = vrot.slane %v11101_v39, %v14075_v38  ;;  %v9172_v39 = vpack.c.bf16 %v11767_v26, %v11762_v30  ;;  %v2510_v42 = vmul.f32 %v2462_v53, %v2318_v56  ;;  %v9174_v58 = vpack.c.bf16 %v2793_v50, %v11787_v20  ;;  %v2794_v26 = vld [vmem:[%s14002_s10 + $0x7a0] sm:$0xff]  ;;  %v2747_v56 = vld [vmem:[%s14002_s10 + $0x628] sm:$0xff] }
 0xd30   :  { %9127 = vmatprep.subr.bf16.mxu0 %v9126_v45  ;;  %v2742_v45 = vld [vmem:[%s14002_s10 + $0x600] sm:$0xff]  ;;  %v9709_v4 = vpop.eup %9708  ;;  %v9136_v12 = vpack.c.bf16 %v2725_v49, %v2724_v3  ;;  %v2481_v16 = vadd.f32 1.0, %v9707_v41  ;;  %v11809_v3 = vld [vmem:[%s14002_s10 + $0x710] sm:$0xff]  ;;  %v11814_v49 = vld [vmem:[%s14002_s10 + $0x718] sm:$0xff] }
 0xd31   :  { %9101 = vmatpush3.bf16.msra.mxu1 %v9100_v28  ;;  %v9711_v22 = vpop.eup %9710  ;;  %v9170_v28 = vpack.c.bf16 %v2791_v60, %v2790_v25  ;;  %v9140_v43 = vpack.c.bf16 %v2743_v15, %v2742_v45  ;;  %v2478_v48 = vadd.f32 1.0, %v9709_v4  ;;  %v2527_v60 = vmul.f32 %v2479_v9, %v2335_v5  ;;  %v2762_v45 = vld [vmem:[%s14002_s10 + $0x6a0] sm:$0xff]  ;;  %v2763_v41 = vld [vmem:[%s14002_s10 + $0x6a8] sm:$0xff] }
 0xd32   :  { %9103 = vmatprep.subr.bf16.mxu1 %v9102_v55  ;;  %v9713_v55 = vpop.eup %9712  ;;  %v2495_v25 = vadd.f32 1.0, %v9711_v22  ;;  %v2334_v15 = vmul.f32 0.5, %v11602_v31  ;;  %v2795_v4 = vld [vmem:[%s14002_s10 + $0x7a8] sm:$0xff]  ;;  %v2746_v22 = vld [vmem:[%s14002_s10 + $0x620] sm:$0xff]  ;;  %v9146_v50 = vpack.c.bf16 %v2763_v41, %v2762_v45  ;;  %v2748_v45 = vld [vmem:[%s14002_s10 + $0x630] sm:$0xff] }
 0xd33   :  { %9129 = vmatpush3.bf16.msra.mxu0 %v9128_v14  ;;  %v2760_v14 = vld [vmem:[%s14002_s10 + $0x690] sm:$0xff]  ;;  %v9715_v19 = vpop.eup %9714  ;;  %v2480_v30 = vadd.f32 1.0, %v9713_v55  ;;  %v2353_v55 = vmul.f32 0.5, %v11639_v21  ;;  %v9148_v21 = vpack.c.bf16 %v2747_v56, %v2746_v22  ;;  %v2749_v41 = vld [vmem:[%s14002_s10 + $0x638] sm:$0xff]  ;;  %v2798_v22 = vld [vmem:[%s14002_s10 + $0x7c0] sm:$0xff] }
 0xd34   :  { %9131 = vmatprep.subr.bf16.mxu0 %v9130_v11  ;;  %v2464_v11 = vadd.f32 1.0, %v9705_v17  ;;  %v9717_v17 = vpop.eup %9716  ;;  %v2799_v56 = vld [vmem:[%s14002_s10 + $0x7c8] sm:$0xff] }
 0xd35   :  { %9105 = vmatpush3.bf16.msra.mxu1 %v9104_v27  ;;  %v2337_v27 = vmul.f32 0.5, %v11591_v51  ;;  %v9719_v53 = vpop.eup %9718  ;;  %v2494_v20 = vadd.f32 1.0, %v9717_v17  ;;  %v2796_v17 = vld [vmem:[%s14002_s10 + $0x7b0] sm:$0xff] }
 0xd36   :  { %9139 = vmatprep.subr.bf16.mxu1 %v9138_v59  ;;  %v2512_v59 = vmul.f32 %v2464_v11, %v2320_v29  ;;  %v9721_v9 = vpop.eup %9720  ;;  %v2467_v5 = vadd.f32 1.0, %v9719_v53  ;;  %v2779_v29 = vld [vmem:[%s14002_s10 + $0x728] sm:$0xff]  ;;  %v14078_v53 = vld [vmem:[#allocation20_spill] sm:$0xff] }
 0xd37   :  { %9133 = vmatpush3.bf16.msra.mxu0 %v9132_v46  ;;  %v11803_v46 = vld [vmem:[%s14002_s10 + $0x618] sm:$0xff]  ;;  %v2529_v31 = vmul.f32 %v2481_v16, %v2337_v27  ;;  %v9723_v11 = vpop.eup %9722 }
 0xd38   :  { %9135 = vmatprep.subr.bf16.mxu0 %v9134_v61  ;;  %v9142_v61 = vpack.c.bf16 %v2761_v0, %v2760_v14  ;;  %3191 = vmatmul.mubr.f32.vlgmr.msra.gmra.mrb[84].mxu1 %v2510_v42  ;;  %v9144_v51 = vpack.c.bf16 %v11803_v46, %v11798_v63  ;;  %v2497_v14 = vadd.f32 1.0, %v9715_v19  ;;  %v9176_v0 = vpack.c.bf16 %v11814_v49, %v11809_v3  ;;  %v2764_v63 = vld [vmem:[%s14002_s10 + $0x6b0] sm:$0xff]  ;;  %v2797_v27 = vld [vmem:[%s14002_s10 + $0x7b8] sm:$0xff] }
 0xd39   :  { %3195 = vmatprep.mubr.f32.mxu1 %v2527_v60  ;;  %9141 = vmatpush3.bf16.msra.mxu1 %v9140_v43  ;;  %v9178_v43 = vpack.c.bf16 %v2795_v4, %v2794_v26  ;;  %v2350_v46 = vmul.f32 0.5, %v11654_v6  ;;  %v2496_v19 = vadd.f32 1.0, %v9721_v9  ;;  %v2323_v3 = vmul.f32 0.5, %v11665_v24  ;;  %v2780_v9 = vld [vmem:[%s14002_s10 + $0x730] sm:$0xff] }
 0xd3a   :  { %9143 = vmatprep.subr.bf16.mxu1 %v9142_v61  ;;  %v2469_v6 = vadd.f32 1.0, %v9723_v11  ;;  %v2545_v49 = vmul.f32 %v2497_v14, %v2353_v55  ;;  %v11871_v60 = vadd.f32 %v11291_v34, %v11617_v33  ;;  %v11892_v26 = vadd.f32 %v11303_v13, %v11643_v62 }
 0xd3b   :  { %9137 = vmatpush3.bf16.msra.mxu0 %v9136_v12  ;;  %v2351_v12 = vmul.f32 0.5, %v11613_v44  ;;  %v2526_v44 = vmul.f32 %v2478_v48, %v2334_v15  ;;  %v14077_v48 = vld [vmem:[#allocation19_spill] sm:$0xff]  ;;  %v2542_v24 = vmul.f32 %v2494_v20, %v2350_v46  ;;  %v2515_v34 = vmul.f32 %v2467_v5, %v2323_v3  ;;  %v2750_v20 = vld [vmem:[%s14002_s10 + $0x640] sm:$0xff] }
 0xd3c   :  { %9171 = vmatprep.subr.bf16.mxu0 %v9170_v28  ;;  %v2336_v28 = vmul.f32 0.5, %v11628_v18  ;;  %v2765_v18 = vld [vmem:[%s14002_s10 + $0x6b8] sm:$0xff]  ;;  %v11859_v61 = vadd.f32 %v14077_v48, %v11771_v23  ;;  %v2387_v11 = vmul.f32 0.70710677, %v11871_v60  ;;  %v11925_v55 = vadd.f32 %v11276_v37, %v11782_v10 }
 0xd3d   :  { %v2543_v16 = vmul.f32 %v2495_v25, %v2351_v12  ;;  %3196 = vmatmul.mubr.f32.gmra.mrb[86].mxu1 %v2526_v44  ;;  %v2352_v25 = vmul.f32 0.5, %v11676_v35  ;;  %v2325_v35 = vmul.f32 0.5, %v11687_v54  ;;  %v9182_v54 = vpack.c.bf16 %v2797_v27, %v2796_v17  ;;  %v2781_v12 = vld [vmem:[%s14002_s10 + $0x738] sm:$0xff]  ;;  %v2751_v44 = vld [vmem:[%s14002_s10 + $0x648] sm:$0xff] }
 0xd3e   :  { %3271 = vmatmul.mubr.f32.vlgmr.msra.gmra.mrb[60].mxu0 %v2512_v59  ;;  %v2528_v42 = vmul.f32 %v2480_v30, %v2336_v28  ;;  %9145 = vmatpush3.bf16.msra.mxu1 %v9144_v51  ;;  %v11881_v59 = vadd.f32 %v14078_v53, %v11782_v10  ;;  %v2766_v30 = vld [vmem:[%s14002_s10 + $0x6c0] sm:$0xff]  ;;  %v2767_v51 = vld [vmem:[%s14002_s10 + $0x6c8] sm:$0xff]  ;;  %v2370_v14 = vmul.f32 0.70710677, %v11859_v61  ;;  %v11914_v28 = vadd.f32 %v11339_v40, %v11617_v33  ;;  %v2768_v33 = vld [vmem:[%s14002_s10 + $0x6d0] sm:$0xff] }
 0xd3f   :  { %3275 = vmatprep.mubr.f32.mxu0 %v2529_v31  ;;  %9173 = vmatpush3.bf16.msra.mxu0 %v9172_v39  ;;  %v2778_v39 = vld [vmem:[%s14002_s10 + $0x720] sm:$0xff]  ;;  %v2544_v4 = vmul.f32 %v2496_v19, %v2352_v25  ;;  %v11903_v31 = vadd.f32 %v11274_v32, %v11771_v23  ;;  %v2517_v13 = vmul.f32 %v2469_v6, %v2325_v35  ;;  %v2769_v5 = vld [vmem:[%s14002_s10 + $0x6d8] sm:$0xff]  ;;  %v2755_v35 = vld [vmem:[%s14002_s10 + $0x668] sm:$0xff] }
 0xd40   :  { %9175 = vmatprep.subr.bf16.mxu0 %v9174_v58  ;;  %3200 = vmatprep.mubr.f32.mxu1 %v2543_v16  ;;  %v9150_v58 = vpack.c.bf16 %v2765_v18, %v2764_v63  ;;  %v9180_v15 = vpack.c.bf16 %v2779_v29, %v2778_v39  ;;  %v9154_v32 = vpack.c.bf16 %v2767_v51, %v2766_v30  ;;  %v2389_v16 = vmul.f32 0.70710677, %v11892_v26  ;;  %v2782_v63 = vld [vmem:[%s14002_s10 + $0x740] sm:$0xff]  ;;  %v2783_v18 = vld [vmem:[%s14002_s10 + $0x748] sm:$0xff]  ;;  %v2772_v30 = vld [vmem:[%s14002_s10 + $0x6f0] sm:$0xff] }
 0xd41   :  { %9147 = vmatprep.subr.bf16.mxu1 %v9146_v50  ;;  %3201 = vmatmul.mubr.f32.gmra.mrb[88].mxu1 %v2542_v24  ;;  %v2372_v50 = vmul.f32 0.70710677, %v11881_v59  ;;  %v9184_v40 = vpack.c.bf16 %v2781_v12, %v2780_v9  ;;  %v9186_v37 = vpack.c.bf16 %v2799_v56, %v2798_v22  ;;  %9724 = verf.f32 %v2370_v14  ;;  %v2770_v6 = vld [vmem:[%s14002_s10 + $0x6e0] sm:$0xff]  ;;  %v2773_v51 = vld [vmem:[%s14002_s10 + $0x6f8] sm:$0xff]  ;;  %v2787_v9 = vld [vmem:[%s14002_s10 + $0x768] sm:$0xff] }
 0xd42   :  { %3276 = vmatmul.mubr.f32.gmra.mrb[62].mxu0 %v2528_v42  ;;  %9149 = vmatpush3.bf16.msra.mxu1 %v9148_v21  ;;  %v2386_v46 = vmul.f32 0.70710677, %v11903_v31  ;;  %v11947_v19 = vadd.f32 %v11322_v8, %v11771_v23  ;;  %v2801_v42 = vld [vmem:[%s14002_s10 + $0x7d8] sm:$0xff]  ;;  %9726 = verf.f32 %v2387_v11  ;;  %v2403_v21 = vmul.f32 0.70710677, %v11914_v28  ;;  %v2752_v8 = vld [vmem:[%s14002_s10 + $0x650] sm:$0xff] }
 0xd43   :  { %3280 = vmatprep.mubr.f32.mxu0 %v2545_v49  ;;  %9177 = vmatpush3.bf16.msra.mxu0 %v9176_v0  ;;  %v9152_v0 = vpack.c.bf16 %v2749_v41, %v2748_v45  ;;  %v9158_v39 = vpack.c.bf16 %v2769_v5, %v2768_v33  ;;  %v2753_v23 = vld [vmem:[%s14002_s10 + $0x658] sm:$0xff]  ;;  %9728 = verf.f32 %v2372_v50  ;;  %v2388_v29 = vmul.f32 0.70710677, %v11925_v55  ;;  %v2771_v49 = vld [vmem:[%s14002_s10 + $0x6e8] sm:$0xff]  ;;  %v2754_v53 = vld [vmem:[%s14002_s10 + $0x660] sm:$0xff] }
 0xd44   :  { %9179 = vmatprep.subr.bf16.mxu0 %v9178_v43  ;;  %3350 = vmatprep.mubr.f32.mxu1 %v2515_v34  ;;  %v11936_v43 = vadd.f32 %v11341_v57, %v11643_v62  ;;  %v9156_v57 = vpack.c.bf16 %v2751_v44, %v2750_v20  ;;  %v2800_v62 = vld [vmem:[%s14002_s10 + $0x7d0] sm:$0xff]  ;;  %v11965_v48 = vadd.f32 %v11324_v47, %v11782_v10  ;;  %9730 = verf.f32 %v2389_v16  ;;  %v2785_v10 = vld [vmem:[%s14002_s10 + $0x758] sm:$0xff]  ;;  %v2803_v45 = vld [vmem:[%s14002_s10 + $0x7e8] sm:$0xff] }
 0xd45   :  { %9151 = vmatprep.subr.bf16.mxu1 %v9150_v58  ;;  %v9188_v3 = vpack.c.bf16 %v2783_v18, %v2782_v63  ;;  %v9190_v27 = vpack.c.bf16 %v2801_v42, %v2800_v62  ;;  %v2784_v47 = vld [vmem:[%s14002_s10 + $0x750] sm:$0xff]  ;;  %9732 = verf.f32 %v2386_v46  ;;  %v2402_v25 = vmul.f32 0.70710677, %v11947_v19  ;;  %v2802_v58 = vld [vmem:[%s14002_s10 + $0x7e0] sm:$0xff]  ;;  %v2757_v56 = vld [vmem:[%s14002_s10 + $0x678] sm:$0xff] }
 0xd46   :  { %3281 = vmatmul.mubr.f32.gmra.mrb[64].mxu0 %v2544_v4  ;;  %9153 = vmatpush3.bf16.msra.mxu1 %v9152_v0  ;;  %v2405_v17 = vmul.f32 0.70710677, %v11936_v43  ;;  %v9160_v24 = vpack.c.bf16 %v2753_v23, %v2752_v8  ;;  %9734 = verf.f32 %v2403_v21  ;;  %v9162_v41 = vpack.c.bf16 %v2771_v49, %v2770_v6  ;;  %v2804_v14 = vld [vmem:[%s14002_s10 + $0x7f0] sm:$0xff] }
 0xd47   :  { %9181 = vmatpush3.bf16.msra.mxu0 %v9180_v15  ;;  %3430 = vmatprep.mubr.f32.mxu0 %v2517_v13  ;;  %9736 = verf.f32 %v2388_v29  ;;  %v2404_v34 = vmul.f32 0.70710677, %v11965_v48  ;;  %v9192_v15 = vpack.c.bf16 %v2785_v10, %v2784_v47  ;;  %v9194_v4 = vpack.c.bf16 %v2803_v45, %v2802_v58  ;;  %v2805_v13 = vld [vmem:[%s14002_s10 + $0x7f8] sm:$0xff]  ;;  %v2756_v22 = vld [vmem:[%s14002_s10 + $0x670] sm:$0xff] }
 0xd48   :  { %9183 = vmatprep.subr.bf16.mxu0 %v9182_v54  ;;  %9155 = vmatprep.subr.bf16.mxu1 %v9154_v32  ;;  %9738 = verf.f32 %v2405_v17  ;;  %v2786_v54 = vld [vmem:[%s14002_s10 + $0x760] sm:$0xff]  ;;  %v9164_v12 = vpack.c.bf16 %v2755_v35, %v2754_v53  ;;  %v9166_v0 = vpack.c.bf16 %v2773_v51, %v2772_v30  ;;  %v9198_v44 = vpack.c.bf16 %v2805_v13, %v2804_v14  ;;  %v2788_v50 = vld [vmem:[%s14002_s10 + $0x770] sm:$0xff] }
 0xd49   :  { %9740 = verf.f32 %v2402_v25  ;;  %v9196_v32 = vpack.c.bf16 %v2787_v9, %v2786_v54  ;;  %v9168_v5 = vpack.c.bf16 %v2757_v56, %v2756_v22  ;;  %v2322_v62 = vmul.f32 0.5, %v11859_v61 }
 0xd4a   :  { %9157 = vmatpush3.bf16.msra.mxu1 %v9156_v57  ;;  %9742 = verf.f32 %v2404_v34  ;;  %v14079_v49 = vmov 0.0|0.0   ;;  %v2338_v25 = vmul.f32 0.5, %v11903_v31  ;;  %v2355_v58 = vmul.f32 0.5, %v11914_v28 }
 0xd4b   :  { %9185 = vmatpush3.bf16.msra.mxu0 %v9184_v40  ;;  %9159 = vmatprep.subr.bf16.mxu1 %v9158_v39  ;;  %v9725_v11 = vpop.eup %9724  ;;  %v2789_v40 = vld [vmem:[%s14002_s10 + $0x778] sm:$0xff]  ;;  %v2339_v39 = vmul.f32 0.5, %v11871_v60  ;;  %v2357_v35 = vmul.f32 0.5, %v11936_v43  ;;  %v2354_v31 = vmul.f32 0.5, %v11947_v19  ;;  %v2356_v28 = vmul.f32 0.5, %v11965_v48 }
 0xd4c   :  { %9187 = vmatprep.subr.bf16.mxu0 %v9186_v37  ;;  %v9727_v20 = vpop.eup %9726  ;;  %v2466_v37 = vadd.f32 1.0, %v9725_v11  ;;  %v9200_v46 = vpack.c.bf16 %v2789_v40, %v2788_v50  ;;  %v14080_v54 = vmov 0.0  }
 0xd4d   :  { %v9729_v33 = vpop.eup %9728  ;;  %v2483_v18 = vadd.f32 1.0, %v9727_v20 }
 0xd4e   :  { %9161 = vmatpush3.bf16.msra.mxu1 %v9160_v24  ;;  %v9731_v16 = vpop.eup %9730  ;;  %v2468_v42 = vadd.f32 1.0, %v9729_v33  ;;  %v2514_v29 = vmul.f32 %v2466_v37, %v2322_v62 }
 0xd4f   :  { %9189 = vmatpush3.bf16.msra.mxu0 %v9188_v3  ;;  %9163 = vmatprep.subr.bf16.mxu1 %v9162_v41  ;;  %v9733_v63 = vpop.eup %9732  ;;  %v2485_v8 = vadd.f32 1.0, %v9731_v16  ;;  %v2324_v3 = vmul.f32 0.5, %v11881_v59  ;;  %v2531_v61 = vmul.f32 %v2483_v18, %v2339_v39  ;;  %v2340_v41 = vmul.f32 0.5, %v11925_v55 }
 0xd50   :  { %9191 = vmatprep.subr.bf16.mxu0 %v9190_v27  ;;  %v9735_v57 = vpop.eup %9734  ;;  %v2482_v6 = vadd.f32 1.0, %v9733_v63  ;;  %v2341_v27 = vmul.f32 0.5, %v11892_v26 }
 0xd51   :  { %v9737_v21 = vpop.eup %9736  ;;  %v2499_v47 = vadd.f32 1.0, %v9735_v57  ;;  %v2516_v10 = vmul.f32 %v2468_v42, %v2324_v3 }
 0xd52   :  { %9165 = vmatpush3.bf16.msra.mxu1 %v9164_v12  ;;  %v9739_v23 = vpop.eup %9738  ;;  %v2484_v24 = vadd.f32 1.0, %v9737_v21  ;;  %v2533_v45 = vmul.f32 %v2485_v8, %v2341_v27  ;;  %v2530_v26 = vmul.f32 %v2482_v6, %v2338_v25 }
 0xd53   :  { %9193 = vmatpush3.bf16.msra.mxu0 %v9192_v15  ;;  %9167 = vmatprep.subr.bf16.mxu1 %v9166_v0  ;;  %v9741_v17 = vpop.eup %9740  ;;  %v2501_v59 = vadd.f32 1.0, %v9739_v23  ;;  %v2547_v34 = vmul.f32 %v2499_v47, %v2355_v58 }
 0xd54   :  { %9195 = vmatprep.subr.bf16.mxu0 %v9194_v4  ;;  %v9743_v60 = vpop.eup %9742  ;;  %v2498_v53 = vadd.f32 1.0, %v9741_v17  ;;  %v2532_v30 = vmul.f32 %v2484_v24, %v2340_v41 }
 0xd55   :  { %v2500_v15 = vadd.f32 1.0, %v9743_v60  ;;  %v2549_v51 = vmul.f32 %v2501_v59, %v2357_v35 }
 0xd56   :  { %9169 = vmatpush3.bf16.msra.mxu1 %v9168_v5  ;;  %v2546_v4 = vmul.f32 %v2498_v53, %v2354_v31 }
 0xd57   :  { %9197 = vmatpush3.bf16.msra.mxu0 %v9196_v32  ;;  %9202 = vmatprep.subr.bf16.mxu1 %v14079_v49  ;;  %v2548_v55 = vmul.f32 %v2500_v15, %v2356_v28 }
 0xd58   :  { %9199 = vmatprep.subr.bf16.mxu0 %v9198_v44 }
 0xd59   :  { %3351 = vmatmul.mubr.f32.vlgmr.msra.gmra.mrb[90].mxu1 %v2514_v29 }
 0xd5a   :  { %3355 = vmatprep.mubr.f32.mxu1 %v2531_v61 }
 0xd5b   :  { %9201 = vmatpush3.bf16.msra.mxu0 %v9200_v46 }
 0xd5c   :  { %9208 = vmatprep.subr.bf16.mxu0 %v14079_v49 }
 0xd5d   :  { %3356 = vmatmul.mubr.f32.gmra.mrb[92].mxu1 %v2530_v26 }
 0xd5e   :  { %3431 = vmatmul.mubr.f32.vlgmr.msra.gmra.mrb[66].mxu0 %v2516_v10  ;;  %3360 = vmatprep.mubr.f32.mxu1 %v2547_v34 }
 0xd5f   :  { %3435 = vmatprep.mubr.f32.mxu0 %v2533_v45 }
 0xd61   :  { %3361 = vmatmul.mubr.f32.gmra.mrb[94].mxu1 %v2546_v4 }
 0xd62   :  { %3436 = vmatmul.mubr.f32.gmra.mrb[68].mxu0 %v2532_v30  ;;  %8583 = vmatprep.mubr.msk.f32.mxu1 %vm9908_vm3, %v14080_v54 }
 0xd63   :  { %3440 = vmatprep.mubr.f32.mxu0 %v2549_v51 }
 0xd66   :  { %3441 = vmatmul.mubr.f32.gmra.mrb[70].mxu0 %v2548_v55 }
 0xd67   :  { %8600 = vmatprep.mubr.msk.f32.mxu0 %vm9908_vm3, %v14080_v54 }
 0xdc5   :  { %v7675_v43 = vpop.f32.mrb[72].mxu1 }
 0xdc6   :  { %v7676_v9 = vpop.f32.mrb[73].mxu1 }
 0xdc7   :  { %v7677_v14 = vadd.f32 %v7676_v9, %v7675_v43 }
 0xdcc   :  { %v7716_v19 = vpop.f32.mrb[48].mxu0 }
 0xdcd   :  { %v7717_v12 = vpop.f32.mrb[49].mxu0 }
 0xdce   :  { %v7718_v13 = vadd.f32 %v7717_v12, %v7716_v19 }
 0xdd0   :  { %v2953_v0 = vadd.f32 %v7718_v13, %v7677_v14 }
 0xdd1   :  { %v7678_v48 = vpop.f32.mrb[74].mxu1 }
 0xdd2   :  { %v7719_v22 = vpop.f32.mrb[50].mxu0  ;;  %v7679_v56 = vpop.f32.mrb[75].mxu1 }
 0xdd3   :  { %v7680_v11 = vadd.f32 %v7679_v56, %v7678_v48  ;;  %v7720_v32 = vpop.f32.mrb[51].mxu0 }
 0xdd4   :  { %v7721_v20 = vadd.f32 %v7720_v32, %v7719_v22 }
 0xdd6   :  { %v2958_v44 = vadd.f32 %v7721_v20, %v7680_v11 }
 0xdd7   :  { %v7722_v40 = vpop.f32.mrb[52].mxu0 }
 0xdd8   :  { %v7681_v50 = vpop.f32.mrb[76].mxu1  ;;  %v7723_v16 = vpop.f32.mrb[53].mxu0 }
 0xdd9   :  { %v7682_v33 = vpop.f32.mrb[77].mxu1  ;;  %v7724_v37 = vadd.f32 %v7723_v16, %v7722_v40 }
 0xdda   :  { %v7683_v5 = vadd.f32 %v7682_v33, %v7681_v50 }
 0xddc   :  { %v2963_v63 = vadd.f32 %v7724_v37, %v7683_v5 }
 0xdea   :  { %v7757_v18 = vpop.f32.mrb[78].mxu1 }
 0xdeb   :  { %v7758_v46 = vpop.f32.mrb[79].mxu1 }
 0xdec   :  { %v7759_v57 = vadd.f32 %v7758_v46, %v7757_v18 }
 0xdee   :  { %v3033_v42 = vadd.f32 %v7759_v57, %v2953_v0  ;;  %v7760_v21 = vpop.f32.mrb[80].mxu1 }
 0xdef   :  { %v7761_v8 = vpop.f32.mrb[81].mxu1 }
 0xdf0   :  { %v7762_v29 = vadd.f32 %v7761_v8, %v7760_v21  ;;  %v7128_v21 = vld [vmem:[%s13997_s5 + $0x5] ss:$0 sm:$0xff] }
 0xdf1   :  { %v7798_v62 = vpop.f32.mrb[54].mxu0 }
 0xdf2   :  { %v7799_v39 = vpop.f32.mrb[55].mxu0  ;;  %v3038_v17 = vadd.f32 %v7762_v29, %v2958_v44 }
 0xdf3   :  { %v7800_v23 = vadd.f32 %v7799_v39, %v7798_v62  ;;  %v7763_v27 = vpop.f32.mrb[82].mxu1  ;;  %v14081_v39 = vld [vmem:[#allocation6_spill] sm:$0xff] }
 0xdf4   :  { %v7764_v61 = vpop.f32.mrb[83].mxu1 }
 0xdf5   :  { %v3113_v3 = vadd.f32 %v7800_v23, %v3033_v42  ;;  %v7801_v6 = vpop.f32.mrb[56].mxu0  ;;  %v7765_v25 = vadd.f32 %v7764_v61, %v7763_v27 }
 0xdf6   :  { %v7802_v47 = vpop.f32.mrb[57].mxu0 }
 0xdf7   :  { %v7803_v10 = vadd.f32 %v7802_v47, %v7801_v6  ;;  %v3043_v58 = vadd.f32 %v7765_v25, %v2963_v63  ;;  %v14082_v25 = vld [vmem:[#allocation7_spill] sm:$0xff] }
 0xdf9   :  { %v3118_v24 = vadd.f32 %v7803_v10, %v3038_v17  ;;  %v7804_v60 = vpop.f32.mrb[58].mxu0 }
 0xdfa   :  { %v7805_v59 = vpop.f32.mrb[59].mxu0 }
 0xdfb   :  { %v7806_v45 = vadd.f32 %v7805_v59, %v7804_v60 }
 0xdfd   :  { %v3123_v41 = vadd.f32 %v7806_v45, %v3043_v58 }
 0xe0b   :  { %v7839_v53 = vpop.f32.mrb[84].mxu1 }
 0xe0c   :  { %v7840_v26 = vpop.f32.mrb[85].mxu1 }
 0xe0d   :  { %v7841_v34 = vadd.f32 %v7840_v26, %v7839_v53  ;;  %v14083_v53 = vld [vmem:[#allocation8_spill] sm:$0xff] }
 0xe0f   :  { %v3193_v15 = vadd.f32 %v7841_v34, %v3113_v3 }
 0xe10   :  { %v7842_v51 = vpop.f32.mrb[86].mxu1 }
 0xe11   :  { %v7880_v35 = vpop.f32.mrb[60].mxu0  ;;  %v7843_v28 = vpop.f32.mrb[87].mxu1 }
 0xe12   :  { %v7881_v31 = vpop.f32.mrb[61].mxu0  ;;  %v7844_v43 = vadd.f32 %v7843_v28, %v7842_v51 }
 0xe13   :  { %v7882_v30 = vadd.f32 %v7881_v31, %v7880_v35 }
 0xe14   :  { %v3198_v9 = vadd.f32 %v7844_v43, %v3118_v24  ;;  %v7845_v14 = vpop.f32.mrb[88].mxu1 }
 0xe15   :  { %v3273_v4 = vadd.f32 %v7882_v30, %v3193_v15  ;;  %v7883_v55 = vpop.f32.mrb[62].mxu0  ;;  %v7846_v13 = vpop.f32.mrb[89].mxu1 }
 0xe16   :  { %v7884_v19 = vpop.f32.mrb[63].mxu0  ;;  %v7847_v22 = vadd.f32 %v7846_v13, %v7845_v14 }
 0xe17   :  { %v7885_v12 = vadd.f32 %v7884_v19, %v7883_v55 }
 0xe18   :  { %v3203_v11 = vadd.f32 %v7847_v22, %v3123_v41 }
 0xe19   :  { %v3278_v0 = vadd.f32 %v7885_v12, %v3198_v9  ;;  %v7886_v48 = vpop.f32.mrb[64].mxu0 }
 0xe1a   :  { %v7887_v56 = vpop.f32.mrb[65].mxu0 }
 0xe1b   :  { %v7888_v32 = vadd.f32 %v7887_v56, %v7886_v48  ;;  %v7138_v56 = vld [vmem:[%s13998_s6 + $0xc0] sm:$0xff] }
 0xe1d   :  { %v3283_v20 = vadd.f32 %v7888_v32, %v3203_v11  ;;  %v7139_v11 = vld [vmem:[%s13998_s6 + $0xc8] sm:$0xff]  ;;  %v7145_v32 = vld [vmem:[%s13998_s6 + $0x100] sm:$0xff] }
 0xe2c   :  { %v7921_v44 = vpop.f32.mrb[90].mxu1 }
 0xe2d   :  { %v7922_v50 = vpop.f32.mrb[91].mxu1 }
 0xe2e   :  { %v7923_v33 = vadd.f32 %v7922_v50, %v7921_v44  ;;  %v7146_v44 = vld [vmem:[%s13998_s6 + $0x108] sm:$0xff]  ;;  %v7140_v50 = vld [vmem:[%s13998_s6 + $0xd0] sm:$0xff] }
 0xe30   :  { %v3353_v16 = vadd.f32 %v7923_v33, %v3273_v4  ;;  %v7924_v63 = vpop.f32.mrb[92].mxu1  ;;  %v9209_v33 = vpack.c.bf16 %v7146_v44, %v7145_v32 }
 0xe31   :  { %v7962_v40 = vpop.f32.mrb[66].mxu0  ;;  %v7925_v18 = vpop.f32.mrb[93].mxu1 }
 0xe32   :  { %v7963_v5 = vpop.f32.mrb[67].mxu0  ;;  %v7926_v62 = vadd.f32 %v7925_v18, %v7924_v63  ;;  %9210 = vmatpush3.bf16.msra.mxu0 %v9209_v33 }
 0xe33   :  { %v7964_v37 = vadd.f32 %v7963_v5, %v7962_v40  ;;  %v7141_v40 = vld [vmem:[%s13998_s6 + $0xd8] sm:$0xff]  ;;  %v7147_v5 = vld [vmem:[%s13998_s6 + $0x110] sm:$0xff]  ;;  %9211 = vmatprep.subr.bf16.mxu0 %v14079_v49 }
 0xe34   :  { %v3358_v23 = vadd.f32 %v7926_v62, %v3278_v0  ;;  %v7927_v3 = vpop.f32.mrb[94].mxu1 }
 0xe35   :  { %v3433_v46 = vadd.f32 %v7964_v37, %v3353_v16  ;;  %v7965_v57 = vpop.f32.mrb[68].mxu0  ;;  %v7928_v6 = vpop.f32.mrb[95].mxu1  ;;  %v7148_v16 = vld [vmem:[%s13998_s6 + $0x118] sm:$0xff]  ;;  %v9206_v37 = vpack.c.bf16 %v7141_v40, %v7140_v50 }
 0xe36   :  { %v7966_v42 = vpop.f32.mrb[69].mxu0  ;;  %v7929_v47 = vadd.f32 %v7928_v6, %v7927_v3  ;;  %v9212_v63 = vpack.c.bf16 %v7148_v16, %v7147_v5  ;;  %v7135_v3 = vld [vmem:[%s13997_s5 + $0x6] ss:$0 sm:$0xff] }
 0xe37   :  { %v3446_v8 = vadd.f32 %v14081_v39, %v3433_v46  ;;  %v7967_v29 = vadd.f32 %v7966_v42, %v7965_v57 }
 0xe38   :  { %v3363_v60 = vadd.f32 %v7929_v47, %v3283_v20  ;;  %v9203_v20 = vpack.c.bf16 %v7139_v11, %v7138_v56  ;;  %9213 = vmatpush3.bf16.msra.mxu0 %v9212_v63  ;;  %v7153_v47 = vld [vmem:[%s13998_s6 + $0x148] sm:$0xff] }
 0xe39   :  { %v3438_v17 = vadd.f32 %v7967_v29, %v3358_v23  ;;  %v7968_v27 = vpop.f32.mrb[70].mxu0  ;;  %v12044_v61 = vadd.f32 %v7128_v21, %v3446_v8  ;;  %9220 = vmatprep.subr.bf16.mxu0 %v14079_v49 }
 0xe3a   :  { %v7969_v10 = vpop.f32.mrb[71].mxu0  ;;  %9204 = vmatpush3.bf16.msra.mxu1 %v9203_v20 }
 0xe3b   :  { %v3447_v24 = vadd.f32 %v14082_v25, %v3438_v17  ;;  %v7970_v58 = vadd.f32 %v7969_v10, %v7968_v27  ;;  %v3470_v59 = vsel %vm194_vm1, %v12044_v61, 0.0  ;;  %9205 = vmatprep.subr.bf16.mxu1 %v14079_v49  ;;  %v7136_v17 = vld [vmem:[%s13997_s5 + $0x7] ss:$0 sm:$0xff] }
 0xe3c   :  { %3471 = vadd.xlane.f32.xlu0 %v3470_v59  ;;  %v7152_v27 = vld [vmem:[%s13998_s6 + $0x140] sm:$0xff]  ;;  %v7154_v59 = vld [vmem:[%s13998_s6 + $0x150] sm:$0xff] }
 0xe3d   :  { %v3443_v45 = vadd.f32 %v7970_v58, %v3363_v60  ;;  %v12049_v41 = vadd.f32 %v7128_v21, %v3447_v24  ;;  %v9215_v58 = vpack.c.bf16 %v7153_v47, %v7152_v27 }
 0xe3e   :  { %9207 = vmatpush3.bf16.msra.mxu1 %v9206_v37 }
 0xe3f   :  { %v3448_v26 = vadd.f32 %v14083_v53, %v3443_v45  ;;  %v3473_v35 = vsel %vm194_vm1, %v12049_v41, 0.0  ;;  %9214 = vmatprep.subr.bf16.mxu1 %v14079_v49  ;;  %v7155_v45 = vld [vmem:[%s13998_s6 + $0x158] sm:$0xff] }
 0xe40   :  { %3474 = vadd.xlane.f32.xlu1 %v3473_v35 }
 0xe41   :  { %v12054_v34 = vadd.f32 %v7128_v21, %v3448_v26 }
 0xe43   :  { %v3476_v31 = vsel %vm201_vm2, %v12054_v34, 0.0 }
 0xe44   :  { %3477 = vadd.xlane.f32.xlu0 %v3476_v31 }
 0xec9   :  { %v3472_v15 = vpop.xlane.xlu0 %3471 }
 0xeca   :  { %v3479_v30 = vmul.f32 0.03125, %v3472_v15  ;;  %v9218_v15 = vpack.c.bf16 %v7155_v45, %v7154_v59 }
 0xecc   :  { %v3482_v51 = vsub.f32 %v12044_v61, %v3479_v30 }
 0xecd   :  { %v3475_v28 = vpop.xlane.xlu1 %3474 }
 0xece   :  { %v3480_v4 = vmul.f32 0.03125, %v3475_v28  ;;  %v3485_v55 = vmul.f32 %v3482_v51, %v3482_v51 }
 0xed0   :  { %v3483_v43 = vsub.f32 %v12049_v41, %v3480_v4  ;;  %v3488_v19 = vsel %vm194_vm1, %v3485_v55, 0.0 }
 0xed1   :  { %3489 = vadd.xlane.f32.xlu1 %v3488_v19  ;;  %v3478_v9 = vpop.xlane.xlu0 %3477 }
 0xed2   :  { %v3481_v12 = vmul.f32 0.03125, %v3478_v9  ;;  %v3486_v14 = vmul.f32 %v3483_v43, %v3483_v43 }
 0xed4   :  { %v3484_v13 = vsub.f32 %v12054_v34, %v3481_v12  ;;  %v3491_v0 = vsel %vm194_vm1, %v3486_v14, 0.0 }
 0xed5   :  { %3492 = vadd.xlane.f32.xlu0 %v3491_v0 }
 0xed6   :  { %v3487_v48 = vmul.f32 %v3484_v13, %v3484_v13 }
 0xed8   :  { %v3494_v22 = vsel %vm201_vm2, %v3487_v48, 0.0 }
 0xed9   :  { %3495 = vadd.xlane.f32.xlu1 %v3494_v22 }
 0xf5e   :  { %v3490_v18 = vpop.xlane.xlu1 %3489 }
 0xf5f   :  { %v3497_v46 = vmul.f32 0.03125, %v3490_v18  ;;  %v12174_v18 = vld [vmem:[%s13995_s3] sm:$0xff] }
 0xf61   :  { %v3500_v57 = vadd.f32 1e-05, %v3497_v46 }
 0xf62   :  { %v3493_v62 = vpop.xlane.xlu0 %3492 }
 0xf63   :  { %9744 = vrsqrt.f32 %v3500_v57  ;;  %v3498_v42 = vmul.f32 0.03125, %v3493_v62 }
 0xf65   :  { %v3501_v21 = vadd.f32 1e-05, %v3498_v42 }
 0xf66   :  { %v3496_v39 = vpop.xlane.xlu1 %3495 }
 0xf67   :  { %9746 = vrsqrt.f32 %v3501_v21  ;;  %v3499_v8 = vmul.f32 0.03125, %v3496_v39  ;;  %v12181_v39 = vld [vmem:[%s13995_s3 + $0x8] sm:$0xff] }
 0xf69   :  { %v3502_v23 = vadd.f32 1e-05, %v3499_v8 }
 0xf6b   :  { %9748 = vrsqrt.f32 %v3502_v23 }
 0xf6d   :  { %v9745_v29 = vpop.eup %9744 }
 0xf6e   :  { %v3506_v6 = vmul.f32 %v9745_v29, %v3482_v51 }
 0xf70   :  { %v3515_v10 = vmul.f32 %v7135_v3, %v3506_v6 }
 0xf71   :  { %v9747_v25 = vpop.eup %9746 }
 0xf72   :  { %v12104_v24 = vadd.f32 %v7136_v17, %v3515_v10  ;;  %v3507_v60 = vmul.f32 %v9747_v25, %v3483_v43 }
 0xf74   :  { %v3516_v53 = vmul.f32 %v7135_v3, %v3507_v60  ;;  %8584 = vmatmul.mubr.msk.f32.vlgmr.msra.gmra.mrb[96].mxu1 %vm194_vm1, %v12104_v24  ;;  %8601 = vmatmul.mubr.msk.f32.vlgmr.msra.gmra.mrb[72].mxu0 %vm194_vm1, %v12104_v24 }
 0xf75   :  { %v9749_v26 = vpop.eup %9748  ;;  %8586 = vmatprep.mubr.msk.f32.mxu1 %vm9908_vm3, %v14080_v54  ;;  %8603 = vmatprep.mubr.msk.f32.mxu0 %vm9908_vm3, %v14080_v54 }
 0xf76   :  { %v12120_v35 = vadd.f32 %v7136_v17, %v3516_v53  ;;  %v3508_v31 = vmul.f32 %v9749_v26, %v3484_v13  ;;  %9216 = vmatpush3.bf16.msra.mxu1 %v9215_v58 }
 0xf77   :  { %9217 = vmatprep.subr.bf16.mxu1 %v14079_v49 }
 0xf78   :  { %v3517_v30 = vmul.f32 %v7135_v3, %v3508_v31  ;;  %8587 = vmatmul.mubr.msk.f32.gmra.mrb[98].mxu1 %vm194_vm1, %v12120_v35  ;;  %8604 = vmatmul.mubr.msk.f32.gmra.mrb[74].mxu0 %vm194_vm1, %v12120_v35 }
 0xf79   :  { %8589 = vmatprep.mubr.msk.f32.mxu1 %vm9908_vm3, %v14080_v54  ;;  %8606 = vmatprep.mubr.msk.f32.mxu0 %vm9908_vm3, %v14080_v54 }
 0xf7a   :  { %v12131_v51 = vadd.f32 %v7136_v17, %v3517_v30  ;;  %9219 = vmatpush3.bf16.msra.mxu1 %v9218_v15  ;;  %v12188_v17 = vld [vmem:[%s13995_s3 + $0x10] sm:$0x3] }
 0xf7b   :  { %9224 = vmatprep.subr.bf16.mxu1 %v14079_v49 }
 0xf7c   :  { %8590 = vmatmul.mubr.msk.f32.gmra.mrb[100].mxu1 %vm194_vm1, %v12131_v51  ;;  %8607 = vmatmul.mubr.msk.f32.gmra.mrb[76].mxu0 %vm194_vm1, %v12131_v51 }
 0xf7d   :  { %8617 = vmatprep.mubr.msk.f32.mxu1 %vm9908_vm3, %v14080_v54  ;;  %8632 = vmatprep.mubr.msk.f32.mxu0 %vm9908_vm3, %v14080_v54 }
 0xf80   :  { %8618 = vmatmul.mubr.msk.f32.vlgmr.msra.gmra.mrb[102].mxu1 %vm194_vm1, %v12104_v24 }
 0xf81   :  { %8620 = vmatprep.mubr.msk.f32.mxu1 %vm9908_vm3, %v14080_v54 }
 0xf84   :  { %8621 = vmatmul.mubr.msk.f32.gmra.mrb[104].mxu1 %vm194_vm1, %v12120_v35 }
 0xf85   :  { %8623 = vmatprep.mubr.msk.f32.mxu1 %vm9908_vm3, %v14080_v54 }
 0xf88   :  { %8624 = vmatmul.mubr.msk.f32.gmra.mrb[106].mxu1 %vm194_vm1, %v12131_v51 }
 0xf89   :  { %8647 = vmatprep.mubr.msk.f32.mxu1 %vm9908_vm3, %v14080_v54 }
0x1047   :  { %v3616_v28 = vpop.f32.mrb[96].mxu1  ;;  %v3701_v4 = vpop.f32.mrb[72].mxu0 }
0x1048   :  { %v8585_v55 = vpop.f32.mrb[97].mxu1  ;;  %v8602_v43 = vpop.f32.mrb[73].mxu0 }
0x104b   :  { %v3621_v19 = vpop.f32.mrb[98].mxu1  ;;  %v3706_v9 = vpop.f32.mrb[74].mxu0 }
0x104c   :  { %v9221_v12 = vpack.c.bf16 %v3706_v9, %v3701_v4  ;;  %v8588_v14 = vpop.f32.mrb[99].mxu1  ;;  %v8605_v13 = vpop.f32.mrb[75].mxu0  ;;  %v7170_v9 = vld [vmem:[%s13999_s7 + $0x28] sm:$0xff] }
0x104e   :  { %9223 = vmatpush3.bf16.xpose.msk.msra.mxu0 %vm10231_vm5, %v9221_v12 }
0x104f   :  { %v3626_v48 = vpop.f32.mrb[100].mxu1  ;;  %v3711_v22 = vpop.f32.mrb[76].mxu0  ;;  %8630 = vmatprep.subr.mxu0 %v14080_v54 }
0x1050   :  { %v8591_v56 = vpop.f32.mrb[101].mxu1  ;;  %v8608_v11 = vpop.f32.mrb[77].mxu0 }
0x1051   :  { %v7175_v56 = vld [vmem:[%s13998_s6 + $0xe8] sm:$0xff] }
0x1053   :  { %v3786_v32 = vpop.f32.mrb[102].mxu1 }
0x1054   :  { %v8619_v20 = vpop.f32.mrb[103].mxu1 }
0x1056   :  { %8631 = vmatpush3.xpose.msk.msra.mxu0 %vm526_vm4, %v3711_v22  ;;  %v7174_v22 = vld [vmem:[%s13998_s6 + $0xe0] sm:$0xff] }
0x1057   :  { %v3791_v44 = vpop.f32.mrb[104].mxu1  ;;  %9227 = vmatprep.subr.bf16.mxu0 %v14079_v49 }
0x1058   :  { %v9225_v50 = vpack.c.bf16 %v3791_v44, %v3786_v32  ;;  %v8622_v40 = vpop.f32.mrb[105].mxu1  ;;  %v9231_v32 = vpack.c.bf16 %v7175_v56, %v7174_v22  ;;  %v7176_v44 = vld [vmem:[%s13998_s6 + $0xf0] sm:$0xff] }
0x1059   :  { %8633 = vmatmul.mubr.msk.f32.vlgmr.msra.gmra.mrb[78].mxu0 %vm526_vm4, %v3616_v28 }
0x105a   :  { %9226 = vmatpush3.bf16.msra.mxu1 %v9225_v50  ;;  %8635 = vmatprep.mubr.msk.f32.mxu0 %vm9908_vm3, %v14080_v54  ;;  %v7177_v50 = vld [vmem:[%s13998_s6 + $0xf8] sm:$0xff] }
0x105b   :  { %v3796_v33 = vpop.f32.mrb[106].mxu1  ;;  %8645 = vmatprep.subr.mxu1 %v14080_v54 }
0x105c   :  { %v8625_v5 = vpop.f32.mrb[107].mxu1 }
0x105d   :  { %8636 = vmatmul.mubr.msk.f32.gmra.mrb[80].mxu0 %vm526_vm4, %v3621_v19  ;;  %v7169_v19 = vld [vmem:[%s13999_s7 + $0x20] sm:$0xff] }
0x105e   :  { %8646 = vmatpush3.msk.msra.mxu1 %vm675_vm6, %v3796_v33  ;;  %8638 = vmatprep.mubr.msk.f32.mxu0 %vm9908_vm3, %v14080_v54  ;;  %v9228_v12 = vpack.c.bf16 %v7170_v9, %v7169_v19  ;;  %v9234_v33 = vpack.c.bf16 %v7177_v50, %v7176_v44 }
0x105f   :  { %9230 = vmatprep.subr.bf16.mxu1 %v14079_v49 }
0x1060   :  { %9229 = vmatpush3.bf16.msra.mxu0 %v9228_v12 }
0x1061   :  { %8639 = vmatmul.mubr.msk.f32.gmra.mrb[82].mxu0 %vm526_vm4, %v3626_v48  ;;  %9236 = vmatprep.subr.bf16.mxu0 %v14079_v49 }
0x1062   :  { %8660 = vmatprep.mubr.msk.f32.mxu0 %vm9908_vm3, %v14080_v54 }
0x112c   :  { %v3884_v16 = vpop.f32.mrb[78].mxu0 }
0x112d   :  { %v3898_v37 = vmul.f32 0.25, %v3884_v16  ;;  %v8634_v63 = vpop.f32.mrb[79].mxu0 }
0x112e   :  { %v7188_v63 = vld [vmem:[%s13998_s6 + $0x160] sm:$0xff] }
0x112f   :  { %v3901_v46 = vadd.f32 %v12174_v18, %v3898_v37 }
0x1130   :  { %v3889_v57 = vpop.f32.mrb[80].mxu0 }
0x1131   :  { %v3899_v62 = vmul.f32 0.25, %v3889_v57  ;;  %v8637_v42 = vpop.f32.mrb[81].mxu0  ;;  %v3904_v21 = vsel %vm631_vm7, %v3901_v46, -inf }
0x1132   :  { %3905 = vmax.xlane.f32.xlu0 %v3904_v21  ;;  %v7191_v42 = vld [vmem:[%s13998_s6 + $0x178] sm:$0xff] }
0x1133   :  { %v3902_v8 = vadd.f32 %v12181_v39, %v3899_v62  ;;  %v7190_v62 = vld [vmem:[%s13998_s6 + $0x170] sm:$0xff] }
0x1134   :  { %v3894_v23 = vpop.f32.mrb[82].mxu0  ;;  %v9246_v21 = vpack.c.bf16 %v7191_v42, %v7190_v62 }
0x1135   :  { %v3900_v29 = vmul.f32 0.25, %v3894_v23  ;;  %v8640_v3 = vpop.f32.mrb[83].mxu0  ;;  %v3907_v6 = vsel %vm631_vm7, %v3902_v8, -inf  ;;  %v7182_v23 = vld [vmem:[%s13998_s6 + $0x128] sm:$0xff] }
0x1136   :  { %3908 = vmax.xlane.f32.xlu1 %v3907_v6  ;;  %v7183_v3 = vld [vmem:[%s13998_s6 + $0x130] sm:$0xff]  ;;  %v7184_v6 = vld [vmem:[%s13998_s6 + $0x138] sm:$0xff] }
0x1137   :  { %v3903_v27 = vadd.f32 %v12188_v17, %v3900_v29 }
0x1139   :  { %v3910_v47 = vsel %vm638_vm8, %v3903_v27, -inf }
0x113a   :  { %3911 = vmax.xlane.f32.xlu0 %v3910_v47 }
0x11bf   :  { %v3906_v10 = vpop.xlane.xlu0 %3905 }
0x11c0   :  { %v3913_v25 = vsub.f32 %v3901_v46, %v3906_v10  ;;  %v7189_v46 = vld [vmem:[%s13998_s6 + $0x168] sm:$0xff]  ;;  %v9240_v10 = vpack.c.bf16 %v7184_v6, %v7183_v3 }
0x11c1   :  { %v9243_v57 = vpack.c.bf16 %v7189_v46, %v7188_v63 }
0x11c2   :  { %v3916_v60 = vmul.f32 1.442695, %v3913_v25 }
0x11c3   :  { %v3909_v58 = vpop.xlane.xlu1 %3908 }
0x11c4   :  { %9750 = vpow2.f32 %v3916_v60  ;;  %v3914_v59 = vsub.f32 %v3902_v8, %v3909_v58  ;;  %v7181_v8 = vld [vmem:[%s13998_s6 + $0x120] sm:$0xff] }
0x11c5   :  { %v9237_v29 = vpack.c.bf16 %v7182_v23, %v7181_v8 }
0x11c6   :  { %v3918_v45 = vmul.f32 1.442695, %v3914_v59 }
0x11c7   :  { %v3912_v53 = vpop.xlane.xlu0 %3911 }
0x11c8   :  { %9752 = vpow2.f32 %v3918_v45  ;;  %v3915_v26 = vsub.f32 %v3903_v27, %v3912_v53 }
0x11ca   :  { %v3920_v31 = vmul.f32 1.442695, %v3915_v26 }
0x11cc   :  { %9754 = vpow2.f32 %v3920_v31 }
0x11ce   :  { %v9751_v15 = vpop.eup %9750 }
0x11cf   :  { %v3922_v30 = vsel %vm631_vm7, %v9751_v15, 0.0 }
0x11d0   :  { %3923 = vadd.xlane.f32.xlu1 %v3922_v30 }
0x11d2   :  { %v9753_v28 = vpop.eup %9752 }
0x11d3   :  { %v3925_v4 = vsel %vm631_vm7, %v9753_v28, 0.0 }
0x11d4   :  { %3926 = vadd.xlane.f32.xlu0 %v3925_v4 }
0x11d6   :  { %v9755_v55 = vpop.eup %9754 }
0x11d7   :  { %v3928_v43 = vsel %vm638_vm8, %v9755_v55, 0.0 }
0x11d8   :  { %3929 = vadd.xlane.f32.xlu1 %v3928_v43 }
0x125d   :  { %v3924_v14 = vpop.xlane.xlu1 %3923 }
0x125e   :  { %9756 = vrcp.f32 %v3924_v14 }
0x1261   :  { %v3927_v13 = vpop.xlane.xlu0 %3926 }
0x1262   :  { %9758 = vrcp.f32 %v3927_v13 }
0x1265   :  { %v3930_v48 = vpop.xlane.xlu1 %3929 }
0x1266   :  { %9760 = vrcp.f32 %v3930_v48 }
0x1268   :  { %v9757_v11 = vpop.eup %9756 }
0x1269   :  { %v3934_v20 = vmul.f32 %v9757_v11, %v9751_v15 }
0x126b   :  { %8648 = vmatmul.mubr.msk.f32.vlgmr.msra.gmra.mrb[108].mxu1 %vm631_vm7, %v3934_v20 }
0x126c   :  { %v9759_v40 = vpop.eup %9758  ;;  %8650 = vmatprep.mubr.msk.f32.mxu1 %vm9908_vm3, %v14080_v54  ;;  %9232 = vmatpush3.bf16.msra.mxu1 %v9231_v32 }
0x126d   :  { %v3935_v5 = vmul.f32 %v9759_v40, %v9753_v28  ;;  %9233 = vmatprep.subr.bf16.mxu1 %v14079_v49 }
0x126f   :  { %8651 = vmatmul.mubr.msk.f32.gmra.mrb[110].mxu1 %vm631_vm7, %v3935_v5 }
0x1270   :  { %v9761_v16 = vpop.eup %9760  ;;  %8653 = vmatprep.mubr.msk.f32.mxu1 %vm9908_vm3, %v14080_v54  ;;  %9235 = vmatpush3.bf16.msra.mxu1 %v9234_v33 }
0x1271   :  { %v3936_v37 = vmul.f32 %v9761_v16, %v9755_v55  ;;  %9242 = vmatprep.subr.bf16.mxu1 %v14079_v49 }
0x1273   :  { %8654 = vmatmul.mubr.msk.f32.gmra.mrb[112].mxu1 %vm631_vm7, %v3936_v37 }
0x1274   :  { %8677 = vmatprep.mubr.msk.f32.mxu1 %vm9908_vm3, %v14080_v54 }
0x1277   :  { %8678 = vmatmul.mubr.msk.f32.vlgmr.msra.gmra.mrb[114].mxu1 %vm194_vm1, %v12104_v24 }
0x1278   :  { %8680 = vmatprep.mubr.msk.f32.mxu1 %vm9908_vm3, %v14080_v54  ;;  %9244 = vmatpush3.bf16.msra.mxu1 %v9243_v57 }
0x1279   :  { %9245 = vmatprep.subr.bf16.mxu1 %v14079_v49 }
0x127b   :  { %8681 = vmatmul.mubr.msk.f32.gmra.mrb[116].mxu1 %vm194_vm1, %v12120_v35 }
0x127c   :  { %8683 = vmatprep.mubr.msk.f32.mxu1 %vm9908_vm3, %v14080_v54  ;;  %9247 = vmatpush3.bf16.msra.mxu1 %v9246_v21 }
0x127d   :  { %9252 = vmatprep.subr.bf16.mxu1 %v14079_v49 }
0x127f   :  { %8684 = vmatmul.mubr.msk.f32.gmra.mrb[118].mxu1 %vm194_vm1, %v12131_v51 }
0x1280   :  { %8711 = vmatprep.mubr.msk.f32.mxu1 %vm9908_vm3, %v14080_v54 }
0x1283   :  { %8712 = vmatmul.mubr.msk.f32.vlgmr.msra.gmra.mrb[120].mxu1 %vm194_vm1, %v12104_v24 }
0x1284   :  { %8714 = vmatprep.mubr.msk.f32.mxu1 %vm9908_vm3, %v14080_v54 }
0x1287   :  { %8715 = vmatmul.mubr.msk.f32.gmra.mrb[122].mxu1 %vm194_vm1, %v12120_v35 }
0x1288   :  { %8717 = vmatprep.mubr.msk.f32.mxu1 %vm9908_vm3, %v14080_v54 }
0x128b   :  { %8718 = vmatmul.mubr.msk.f32.gmra.mrb[124].mxu1 %vm194_vm1, %v12131_v51 }
0x128c   :  { %8741 = vmatprep.mubr.msk.f32.mxu1 %vm9908_vm3, %v14080_v54 }
0x133e   :  { %v4015_v27 = vpop.f32.mrb[108].mxu1 }
0x133f   :  { %v8649_v47 = vpop.f32.mrb[109].mxu1  ;;  %8661 = vmatmul.mubr.msk.f32.vlgmr.msra.gmra.mrb[84].mxu0 %vm526_vm4, %v4015_v27 }
0x1340   :  { %8663 = vmatprep.mubr.msk.f32.mxu0 %vm9908_vm3, %v14080_v54  ;;  %9238 = vmatpush3.bf16.msra.mxu0 %v9237_v29 }
0x1341   :  { %9239 = vmatprep.subr.bf16.mxu0 %v14079_v49 }
0x1342   :  { %v4020_v25 = vpop.f32.mrb[110].mxu1 }
0x1343   :  { %v8652_v60 = vpop.f32.mrb[111].mxu1  ;;  %8664 = vmatmul.mubr.msk.f32.gmra.mrb[86].mxu0 %vm526_vm4, %v4020_v25 }
0x1344   :  { %8666 = vmatprep.mubr.msk.f32.mxu0 %vm9908_vm3, %v14080_v54  ;;  %9241 = vmatpush3.bf16.msra.mxu0 %v9240_v10  ;;  %v7205_v60 = vld [vmem:[%s13999_s7 + $0x30] sm:$0xff] }
0x1345   :  { %9248 = vmatprep.subr.bf16.mxu0 %v14079_v49 }
0x1346   :  { %v4025_v58 = vpop.f32.mrb[112].mxu1 }
0x1347   :  { %v8655_v59 = vpop.f32.mrb[113].mxu1  ;;  %8667 = vmatmul.mubr.msk.f32.gmra.mrb[88].mxu0 %vm526_vm4, %v4025_v58  ;;  %v7206_v58 = vld [vmem:[%s13999_s7 + $0x38] sm:$0xff] }
0x1348   :  { %8694 = vmatprep.mubr.msk.f32.mxu0 %vm9908_vm3, %v14080_v54  ;;  %v9256_v59 = vpack.c.bf16 %v7206_v58, %v7205_v60 }
0x134a   :  { %v4195_v45 = vpop.f32.mrb[114].mxu1 }
0x134b   :  { %v8679_v53 = vpop.f32.mrb[115].mxu1  ;;  %8695 = vmatmul.mubr.msk.f32.vlgmr.msra.gmra.mrb[90].mxu0 %vm194_vm1, %v12104_v24 }
0x134c   :  { %8697 = vmatprep.mubr.msk.f32.mxu0 %vm9908_vm3, %v14080_v54 }
0x134e   :  { %v4200_v26 = vpop.f32.mrb[116].mxu1 }
0x134f   :  { %v8682_v31 = vpop.f32.mrb[117].mxu1  ;;  %8698 = vmatmul.mubr.msk.f32.gmra.mrb[92].mxu0 %vm194_vm1, %v12120_v35 }
0x1350   :  { %8700 = vmatprep.mubr.msk.f32.mxu0 %vm9908_vm3, %v14080_v54 }
0x1352   :  { %v4205_v15 = vpop.f32.mrb[118].mxu1 }
0x1353   :  { %v8685_v30 = vpop.f32.mrb[119].mxu1  ;;  %8701 = vmatmul.mubr.msk.f32.gmra.mrb[94].mxu0 %vm194_vm1, %v12131_v51 }
0x1354   :  { %8726 = vmatprep.mubr.msk.f32.mxu0 %vm9908_vm3, %v14080_v54 }
0x1356   :  { %v4365_v24 = vpop.f32.mrb[120].mxu1 }
0x1357   :  { %v8713_v28 = vpop.f32.mrb[121].mxu1 }
0x135a   :  { %v4370_v4 = vpop.f32.mrb[122].mxu1 }
0x135b   :  { %v9253_v55 = vpack.c.bf16 %v4370_v4, %v4365_v24  ;;  %v8716_v43 = vpop.f32.mrb[123].mxu1 }
0x135d   :  { %9254 = vmatpush3.bf16.msra.mxu1 %v9253_v55 }
0x135e   :  { %v4375_v19 = vpop.f32.mrb[124].mxu1  ;;  %8739 = vmatprep.subr.mxu1 %v14080_v54 }
0x135f   :  { %v8719_v35 = vpop.f32.mrb[125].mxu1 }
0x1361   :  { %8740 = vmatpush3.msk.msra.mxu1 %vm675_vm6, %v4375_v19 }
0x141e   :  { %v4280_v9 = vpop.f32.mrb[90].mxu0 }
0x141f   :  { %v8696_v12 = vpop.f32.mrb[91].mxu0 }
0x1422   :  { %v4285_v14 = vpop.f32.mrb[92].mxu0 }
0x1423   :  { %v9249_v13 = vpack.c.bf16 %v4285_v14, %v4280_v9  ;;  %v8699_v51 = vpop.f32.mrb[93].mxu0  ;;  %v7137_v14 = vld [vmem:[%s13997_s5 + $0x8] ss:$0 sm:$0xff] }
0x1425   :  { %9251 = vmatpush3.bf16.xpose.msk.msra.mxu0 %vm10231_vm5, %v9249_v13  ;;  %v3533_v13 = vadd.f32 %v7137_v14, %v12044_v61 }
0x1426   :  { %v4290_v48 = vpop.f32.mrb[94].mxu0  ;;  %8724 = vmatprep.subr.mxu0 %v14080_v54 }
0x1427   :  { %v8702_v22 = vpop.f32.mrb[95].mxu0 }
0x142d   :  { %8725 = vmatpush3.xpose.msk.msra.mxu0 %vm526_vm4, %v4290_v48 }
0x142e   :  { %9255 = vmatprep.subr.bf16.mxu0 %v14079_v49 }
0x1430   :  { %8727 = vmatmul.mubr.msk.f32.vlgmr.msra.gmra.mrb[96].mxu0 %vm526_vm4, %v4195_v45 }
0x1431   :  { %8729 = vmatprep.mubr.msk.f32.mxu0 %vm9908_vm3, %v14080_v54  ;;  %9257 = vmatpush3.bf16.msra.mxu0 %v9256_v59  ;;  %v7214_v59 = vld [vmem:[%s14000_s8 + $0x210] sm:$0xff] }
0x1434   :  { %8730 = vmatmul.mubr.msk.f32.gmra.mrb[98].mxu0 %vm526_vm4, %v4200_v26 }
0x1435   :  { %8732 = vmatprep.mubr.msk.f32.mxu0 %vm9908_vm3, %v14080_v54 }
0x1438   :  { %8733 = vmatmul.mubr.msk.f32.gmra.mrb[100].mxu0 %vm526_vm4, %v4205_v15 }
0x1439   :  { %8754 = vmatprep.mubr.msk.f32.mxu0 %vm9908_vm3, %v14080_v54 }
0x1503   :  { %v4463_v0 = vpop.f32.mrb[96].mxu0 }
0x1504   :  { %v4477_v56 = vmul.f32 0.25, %v4463_v0  ;;  %v8728_v11 = vpop.f32.mrb[97].mxu0 }
0x1506   :  { %v4480_v32 = vadd.f32 %v12174_v18, %v4477_v56  ;;  %v3534_v56 = vadd.f32 %v7137_v14, %v12049_v41 }
0x1507   :  { %v4468_v20 = vpop.f32.mrb[98].mxu0 }
0x1508   :  { %v4478_v44 = vmul.f32 0.25, %v4468_v20  ;;  %v8731_v50 = vpop.f32.mrb[99].mxu0  ;;  %v4483_v40 = vsel %vm631_vm7, %v4480_v32, -inf }
0x1509   :  { %4484 = vmax.xlane.f32.xlu0 %v4483_v40  ;;  %v3535_v50 = vadd.f32 %v7137_v14, %v12054_v34 }
0x150a   :  { %v4481_v33 = vadd.f32 %v12181_v39, %v4478_v44 }
0x150b   :  { %v4473_v5 = vpop.f32.mrb[100].mxu0 }
0x150c   :  { %v4479_v16 = vmul.f32 0.25, %v4473_v5  ;;  %v8734_v37 = vpop.f32.mrb[101].mxu0  ;;  %v4486_v63 = vsel %vm631_vm7, %v4481_v33, -inf }
0x150d   :  { %4487 = vmax.xlane.f32.xlu1 %v4486_v63 }
0x150e   :  { %v4482_v46 = vadd.f32 %v12188_v17, %v4479_v16 }
0x1510   :  { %v4489_v57 = vsel %vm638_vm8, %v4482_v46, -inf }
0x1511   :  { %4490 = vmax.xlane.f32.xlu0 %v4489_v57 }
0x1596   :  { %v4485_v18 = vpop.xlane.xlu0 %4484 }
0x1597   :  { %v4492_v62 = vsub.f32 %v4480_v32, %v4485_v18 }
0x1599   :  { %v4495_v42 = vmul.f32 1.442695, %v4492_v62 }
0x159a   :  { %v4488_v21 = vpop.xlane.xlu1 %4487 }
0x159b   :  { %9762 = vpow2.f32 %v4495_v42  ;;  %v4493_v8 = vsub.f32 %v4481_v33, %v4488_v21 }
0x159d   :  { %v4497_v23 = vmul.f32 1.442695, %v4493_v8 }
0x159e   :  { %v4491_v29 = vpop.xlane.xlu0 %4490 }
0x159f   :  { %9764 = vpow2.f32 %v4497_v23  ;;  %v4494_v39 = vsub.f32 %v4482_v46, %v4491_v29 }
0x15a1   :  { %v4499_v3 = vmul.f32 1.442695, %v4494_v39 }
0x15a3   :  { %9766 = vpow2.f32 %v4499_v3  ;;  %v7213_v3 = vld [vmem:[%s14000_s8 + $0x208] sm:$0xff] }
0x15a5   :  { %v9763_v6 = vpop.eup %9762 }
0x15a6   :  { %v4501_v27 = vsel %vm631_vm7, %v9763_v6, 0.0 }
0x15a7   :  { %4502 = vadd.xlane.f32.xlu1 %v4501_v27  ;;  %v7215_v27 = vld [vmem:[%s14000_s8 + $0x218] sm:$0xff] }
0x15a9   :  { %v9765_v17 = vpop.eup %9764 }
0x15aa   :  { %v4504_v47 = vsel %vm631_vm7, %v9765_v17, 0.0 }
0x15ab   :  { %4505 = vadd.xlane.f32.xlu0 %v4504_v47  ;;  %v7231_v47 = vld [vmem:[%s14000_s8 + $0x298] sm:$0xff] }
0x15ac   :  { %v9266_v60 = vpack.c.bf16 %v7231_v47, %v7215_v27 }
0x15ad   :  { %v9767_v10 = vpop.eup %9766 }
0x15ae   :  { %v4507_v25 = vsel %vm638_vm8, %v9767_v10, 0.0  ;;  %9267 = vmatprep.subr.bf16.mxu0 %v9266_v60  ;;  %v7264_v60 = vld [vmem:[%s14000_s8 + $0x3a0] sm:$0xff] }
0x15af   :  { %4508 = vadd.xlane.f32.xlu1 %v4507_v25  ;;  %v7228_v25 = vld [vmem:[%s14000_s8 + $0x280] sm:$0xff] }
0x1634   :  { %v4503_v45 = vpop.xlane.xlu1 %4502 }
0x1635   :  { %9768 = vrcp.f32 %v4503_v45  ;;  %v7230_v45 = vld [vmem:[%s14000_s8 + $0x290] sm:$0xff] }
0x1638   :  { %v4506_v53 = vpop.xlane.xlu0 %4505 }
0x1639   :  { %9770 = vrcp.f32 %v4506_v53  ;;  %v7245_v53 = vld [vmem:[%s14000_s8 + $0x308] sm:$0xff] }
0x163c   :  { %v4509_v26 = vpop.xlane.xlu1 %4508 }
0x163d   :  { %9772 = vrcp.f32 %v4509_v26  ;;  %v9268_v26 = vpack.c.bf16 %v7230_v45, %v7214_v59  ;;  %v7250_v45 = vld [vmem:[%s14000_s8 + $0x330] sm:$0xff] }
0x163f   :  { %v9769_v31 = vpop.eup %9768 }
0x1640   :  { %v4513_v15 = vmul.f32 %v9769_v31, %v9763_v6  ;;  %v7229_v6 = vld [vmem:[%s14000_s8 + $0x288] sm:$0xff] }
0x1641   :  { %v7261_v31 = vld [vmem:[%s14000_s8 + $0x388] sm:$0xff] }
0x1642   :  { %8742 = vmatmul.mubr.msk.f32.vlgmr.msra.gmra.mrb[126].mxu1 %vm631_vm7, %v4513_v15  ;;  %v7247_v15 = vld [vmem:[%s14000_s8 + $0x318] sm:$0xff] }
0x1643   :  { %v9771_v30 = vpop.eup %9770  ;;  %8744 = vmatprep.mubr.msk.f32.mxu1 %vm9908_vm3, %v14080_v54 }
0x1644   :  { %v4514_v24 = vmul.f32 %v9771_v30, %v9765_v17  ;;  %v9258_v17 = vpack.c.bf16 %v7229_v6, %v7213_v3  ;;  %v7263_v30 = vld [vmem:[%s14000_s8 + $0x398] sm:$0xff] }
0x1645   :  { %v7267_v3 = vld [vmem:[%s14000_s8 + $0x3b8] sm:$0xff] }
0x1646   :  { %8745 = vmatmul.mubr.msk.f32.gmra.mrb[128].mxu1 %vm631_vm7, %v4514_v24  ;;  %9259 = vmatprep.subr.bf16.mxu1 %v9258_v17  ;;  %v9262_v24 = vpack.c.bf16 %v7261_v31, %v7245_v53  ;;  %v7221_v53 = vld [vmem:[%s14000_s8 + $0x248] sm:$0xff] }
0x1647   :  { %v9773_v28 = vpop.eup %9772  ;;  %8747 = vmatprep.mubr.msk.f32.mxu1 %vm9908_vm3, %v14080_v54  ;;  %v7237_v31 = vld [vmem:[%s14000_s8 + $0x2c8] sm:$0xff] }
0x1648   :  { %v4515_v4 = vmul.f32 %v9773_v28, %v9767_v10  ;;  %v7212_v10 = vld [vmem:[%s14000_s8 + $0x200] sm:$0xff]  ;;  %v9270_v28 = vpack.c.bf16 %v7263_v30, %v7247_v15  ;;  %v7223_v15 = vld [vmem:[%s14000_s8 + $0x258] sm:$0xff] }
0x1649   :  { %v9260_v58 = vpack.c.bf16 %v7228_v25, %v7212_v10  ;;  %v7248_v25 = vld [vmem:[%s14000_s8 + $0x320] sm:$0xff]  ;;  %v7239_v30 = vld [vmem:[%s14000_s8 + $0x2d8] sm:$0xff] }
0x164a   :  { %8748 = vmatmul.mubr.msk.f32.gmra.mrb[130].mxu1 %vm631_vm7, %v4515_v4  ;;  %v7244_v4 = vld [vmem:[%s14000_s8 + $0x300] sm:$0xff] }
0x164b   :  { %4983 = vmatprep.mubr.f32.mxu1 %v14080_v54  ;;  %9261 = vmatpush1.bf16.msra.mxu1 %v9260_v58 }
0x164c   :  { %9263 = vmatprep.subr.bf16.mxu1 %v9262_v24 }
0x1715   :  { %v4594_v55 = vpop.f32.mrb[126].mxu1 }
0x1716   :  { %v8743_v43 = vpop.f32.mrb[127].mxu1  ;;  %8755 = vmatmul.mubr.msk.f32.vlgmr.msra.gmra.mrb[84].mxu0 %vm526_vm4, %v4594_v55  ;;  %v7260_v55 = vld [vmem:[%s14000_s8 + $0x380] sm:$0xff] }
0x1717   :  { %8757 = vmatprep.mubr.msk.f32.mxu0 %vm9908_vm3, %v14080_v54  ;;  %v7246_v43 = vld [vmem:[%s14000_s8 + $0x310] sm:$0xff]  ;;  %9269 = vmatpush1.bf16.msra.mxu0 %v9268_v26 }
0x1718   :  { %9271 = vmatprep.subr.bf16.mxu0 %v9270_v28  ;;  %v9280_v28 = vpack.c.bf16 %v7264_v60, %v7248_v25 }
0x1719   :  { %v4599_v19 = vpop.f32.mrb[128].mxu1 }
0x171a   :  { %v8746_v35 = vpop.f32.mrb[129].mxu1  ;;  %8758 = vmatmul.mubr.msk.f32.gmra.mrb[86].mxu0 %vm526_vm4, %v4599_v19  ;;  %v9264_v19 = vpack.c.bf16 %v7260_v55, %v7244_v4 }
0x171b   :  { %8760 = vmatprep.mubr.msk.f32.mxu0 %vm9908_vm3, %v14080_v54  ;;  %v7262_v35 = vld [vmem:[%s14000_s8 + $0x390] sm:$0xff] }
0x171c   :  { %v9272_v14 = vpack.c.bf16 %v7262_v35, %v7246_v43  ;;  %9265 = vmatpush1.bf16.msra.mxu1 %v9264_v19  ;;  %v9290_v19 = vpack.c.bf16 %v7237_v31, %v7221_v53  ;;  %v9298_v35 = vpack.c.bf16 %v7239_v30, %v7223_v15  ;;  %v7258_v53 = vld [vmem:[%s14000_s8 + $0x370] sm:$0xff]  ;;  %v7318_v31 = vld [vmem:[%s14002_s10 + $0x880] sm:$0xff]  ;;  %v7319_v15 = vld [vmem:[%s14002_s10 + $0x888] sm:$0xff] }
0x171d   :  { %v4604_v9 = vpop.f32.mrb[130].mxu1  ;;  %v7350_v30 = vld [vmem:[%s14002_s10 + $0x980] sm:$0xff] }
0x171e   :  { %v8749_v12 = vpop.f32.mrb[131].mxu1  ;;  %8761 = vmatmul.mubr.msk.f32.gmra.mrb[88].mxu0 %vm526_vm4, %v4604_v9  ;;  %v7217_v9 = vld [vmem:[%s14000_s8 + $0x228] sm:$0xff] }
0x171f   :  { %5066 = vmatprep.mubr.f32.mxu0 %v14080_v54  ;;  %v7233_v12 = vld [vmem:[%s14000_s8 + $0x2a8] sm:$0xff]  ;;  %9273 = vmatpush1.bf16.msra.mxu0 %v9272_v14  ;;  %v7236_v14 = vld [vmem:[%s14000_s8 + $0x2c0] sm:$0xff] }
0x17e9   :  { %v4686_v51 = vpop.f32.mrb[84].mxu0 }
0x17ea   :  { %v12349_v48 = vadd.f32 %v4686_v51, %v3533_v13  ;;  %v8756_v22 = vpop.f32.mrb[85].mxu0  ;;  %v9274_v13 = vpack.c.bf16 %v7233_v12, %v7217_v9  ;;  %v7219_v51 = vld [vmem:[%s14000_s8 + $0x238] sm:$0xff] }
0x17eb   :  { %v7235_v22 = vld [vmem:[%s14000_s8 + $0x2b8] sm:$0xff] }
0x17ec   :  { %14085 = vst [vmem:[#allocation14_spill] sm:$0xff] %v12349_v48  ;;  %v4703_v0 = vsel %vm194_vm1, %v12349_v48, 0.0  ;;  %9275 = vmatprep.subr.bf16.mxu1 %v9274_v13  ;;  %v7222_v13 = vld [vmem:[%s14000_s8 + $0x250] sm:$0xff] }
0x17ed   :  { %4704 = vadd.xlane.f32.xlu0 %v4703_v0  ;;  %v4691_v11 = vpop.f32.mrb[86].mxu0  ;;  %v9282_v0 = vpack.c.bf16 %v7235_v22, %v7219_v51  ;;  %v7238_v51 = vld [vmem:[%s14000_s8 + $0x2d0] sm:$0xff]  ;;  %v7253_v22 = vld [vmem:[%s14000_s8 + $0x348] sm:$0xff] }
0x17ee   :  { %v12354_v32 = vadd.f32 %v4691_v11, %v3534_v56  ;;  %v8759_v20 = vpop.f32.mrb[87].mxu0 }
0x17ef   :  { %9283 = vmatprep.subr.bf16.mxu0 %v9282_v0  ;;  %v7269_v0 = vld [vmem:[%s14000_s8 + $0x3c8] sm:$0xff] }
0x17f0   :  { %14086 = vst [vmem:[#allocation16_spill] sm:$0xff] %v12354_v32  ;;  %v4706_v44 = vsel %vm194_vm1, %v12354_v32, 0.0 }
0x17f1   :  { %4707 = vadd.xlane.f32.xlu1 %v4706_v44  ;;  %v4696_v61 = vpop.f32.mrb[88].mxu0 }
0x17f2   :  { %v12359_v40 = vadd.f32 %v4696_v61, %v3535_v50  ;;  %v8762_v33 = vpop.f32.mrb[89].mxu0 }
0x17f4   :  { %14087 = vst [vmem:[#allocation17_spill] sm:$0xff] %v12359_v40  ;;  %v4709_v5 = vsel %vm201_vm2, %v12359_v40, 0.0 }
0x17f5   :  { %4710 = vadd.xlane.f32.xlu0 %v4709_v5 }
0x187a   :  { %v4705_v41 = vpop.xlane.xlu0 %4704 }
0x187b   :  { %v4712_v16 = vmul.f32 0.03125, %v4705_v41 }
0x187d   :  { %v12364_v37 = vsub.f32 %v12349_v48, %v4712_v16 }
0x187e   :  { %v4708_v63 = vpop.xlane.xlu1 %4707 }
0x187f   :  { %v4713_v46 = vmul.f32 0.03125, %v4708_v63  ;;  %v4718_v57 = vmul.f32 %v12364_v37, %v12364_v37  ;;  %v7210_v63 = vld [vmem:[%s13997_s5 + $0x9] ss:$0 sm:$0xff] }
0x1881   :  { %v12369_v34 = vsub.f32 %v12354_v32, %v4713_v46  ;;  %v4721_v18 = vsel %vm194_vm1, %v4718_v57, 0.0  ;;  %v7211_v46 = vld [vmem:[%s13997_s5 + $0xa] ss:$0 sm:$0xff] }
0x1882   :  { %4722 = vadd.xlane.f32.xlu1 %v4721_v18  ;;  %v4711_v62 = vpop.xlane.xlu0 %4710  ;;  %v7216_v18 = vld [vmem:[%s14000_s8 + $0x220] sm:$0xff] }
0x1883   :  { %v4714_v42 = vmul.f32 0.03125, %v4711_v62  ;;  %v4719_v21 = vmul.f32 %v12369_v34, %v12369_v34  ;;  %v7232_v62 = vld [vmem:[%s14000_s8 + $0x2a0] sm:$0xff] }
0x1884   :  { %v9276_v47 = vpack.c.bf16 %v7232_v62, %v7216_v18  ;;  %v7243_v18 = vld [vmem:[%s14000_s8 + $0x2f8] sm:$0xff] }
0x1885   :  { %v12375_v8 = vsub.f32 %v12359_v40, %v4714_v42  ;;  %v4724_v23 = vsel %vm194_vm1, %v4719_v21, 0.0  ;;  %v7218_v42 = vld [vmem:[%s14000_s8 + $0x230] sm:$0xff] }
0x1886   :  { %4725 = vadd.xlane.f32.xlu0 %v4724_v23  ;;  %v7234_v21 = vld [vmem:[%s14000_s8 + $0x2b0] sm:$0xff] }
0x1887   :  { %v4720_v29 = vmul.f32 %v12375_v8, %v12375_v8  ;;  %v9284_v10 = vpack.c.bf16 %v7234_v21, %v7218_v42 }
0x1889   :  { %v4727_v39 = vsel %vm201_vm2, %v4720_v29, 0.0  ;;  %v7265_v29 = vld [vmem:[%s14000_s8 + $0x3a8] sm:$0xff] }
0x188a   :  { %4728 = vadd.xlane.f32.xlu1 %v4727_v39  ;;  %v7251_v39 = vld [vmem:[%s14000_s8 + $0x338] sm:$0xff] }
0x188b   :  { %v9286_v59 = vpack.c.bf16 %v7267_v3, %v7251_v39  ;;  %v7226_v39 = vld [vmem:[%s14000_s8 + $0x270] sm:$0xff] }
0x188c   :  { %v7242_v3 = vld [vmem:[%s14000_s8 + $0x2f0] sm:$0xff] }
0x188d   :  { %v9316_v60 = vpack.c.bf16 %v7242_v3, %v7226_v39  ;;  %v7325_v3 = vld [vmem:[%s14002_s10 + $0x8b8] sm:$0xff] }
0x190f   :  { %v4723_v56 = vpop.xlane.xlu1 %4722 }
0x1910   :  { %v4730_v11 = vmul.f32 0.03125, %v4723_v56  ;;  %v7255_v56 = vld [vmem:[%s14000_s8 + $0x358] sm:$0xff] }
0x1912   :  { %v4733_v20 = vadd.f32 1e-05, %v4730_v11  ;;  %v7271_v11 = vld [vmem:[%s14000_s8 + $0x3d8] sm:$0xff] }
0x1913   :  { %v4726_v44 = vpop.xlane.xlu0 %4725 }
0x1914   :  { %9774 = vrsqrt.f32 %v4733_v20  ;;  %v4731_v50 = vmul.f32 0.03125, %v4726_v44  ;;  %v9300_v44 = vpack.c.bf16 %v7238_v51, %v7222_v13  ;;  %v7320_v13 = vld [vmem:[%s14002_s10 + $0x890] sm:$0xff]  ;;  %v7321_v51 = vld [vmem:[%s14002_s10 + $0x898] sm:$0xff] }
0x1916   :  { %v4734_v61 = vadd.f32 1e-05, %v4731_v50  ;;  %v7252_v50 = vld [vmem:[%s14000_s8 + $0x340] sm:$0xff] }
0x1917   :  { %v4729_v33 = vpop.xlane.xlu1 %4728 }
0x1918   :  { %9776 = vrsqrt.f32 %v4734_v61  ;;  %v4732_v5 = vmul.f32 0.03125, %v4729_v33  ;;  %v7268_v61 = vld [vmem:[%s14000_s8 + $0x3c0] sm:$0xff]  ;;  %v9294_v33 = vpack.c.bf16 %v7269_v0, %v7253_v22  ;;  %v7352_v22 = vld [vmem:[%s14002_s10 + $0x990] sm:$0xff]  ;;  %v7353_v0 = vld [vmem:[%s14002_s10 + $0x998] sm:$0xff] }
0x1919   :  { %v9296_v62 = vpack.c.bf16 %v7268_v61, %v7252_v50  ;;  %v9326_v50 = vpack.c.bf16 %v7321_v51, %v7320_v13  ;;  %v9358_v61 = vpack.c.bf16 %v7353_v0, %v7352_v22  ;;  %v7361_v51 = vld [vmem:[%s14002_s10 + $0x9d8] sm:$0xff]  ;;  %v7312_v22 = vld [vmem:[%s14002_s10 + $0x850] sm:$0xff] }
0x191a   :  { %v4735_v41 = vadd.f32 1e-05, %v4732_v5  ;;  %v9302_v5 = vpack.c.bf16 %v7271_v11, %v7255_v56  ;;  %v7313_v0 = vld [vmem:[%s14002_s10 + $0x858] sm:$0xff] }
0x191c   :  { %9778 = vrsqrt.f32 %v4735_v41  ;;  %v7254_v41 = vld [vmem:[%s14000_s8 + $0x350] sm:$0xff] }
0x191e   :  { %v9775_v16 = vpop.eup %9774 }
0x191f   :  { %v4739_v57 = vmul.f32 %v9775_v16, %v12364_v37  ;;  %v7249_v37 = vld [vmem:[%s14000_s8 + $0x328] sm:$0xff]  ;;  %v7270_v16 = vld [vmem:[%s14000_s8 + $0x3d0] sm:$0xff] }
0x1920   :  { %v9278_v58 = vpack.c.bf16 %v7265_v29, %v7249_v37  ;;  %v9304_v42 = vpack.c.bf16 %v7270_v16, %v7254_v41  ;;  %v7240_v29 = vld [vmem:[%s14000_s8 + $0x2e0] sm:$0xff]  ;;  %v7323_v16 = vld [vmem:[%s14002_s10 + $0x8a8] sm:$0xff] }
0x1921   :  { %v4748_v23 = vmul.f32 %v7210_v63, %v4739_v57  ;;  %v7227_v57 = vld [vmem:[%s14000_s8 + $0x278] sm:$0xff]  ;;  %v7322_v41 = vld [vmem:[%s14002_s10 + $0x8a0] sm:$0xff] }
0x1922   :  { %v9777_v6 = vpop.eup %9776  ;;  %v9314_v37 = vpack.c.bf16 %v7243_v18, %v7227_v57  ;;  %v7306_v18 = vld [vmem:[%s14002_s10 + $0x820] sm:$0xff] }
0x1923   :  { %v12472_v27 = vadd.f32 %v7211_v46, %v4748_v23  ;;  %v4740_v17 = vmul.f32 %v9777_v6, %v12369_v34  ;;  %v7266_v34 = vld [vmem:[%s14000_s8 + $0x3b0] sm:$0xff]  ;;  %v7224_v23 = vld [vmem:[%s14000_s8 + $0x260] sm:$0xff]  ;;  %v7257_v6 = vld [vmem:[%s14000_s8 + $0x368] sm:$0xff] }
0x1924   :  { %v9288_v43 = vpack.c.bf16 %v7266_v34, %v7250_v45  ;;  %v9308_v25 = vpack.c.bf16 %v7240_v29, %v7224_v23  ;;  %v7339_v23 = vld [vmem:[%s14002_s10 + $0x928] sm:$0xff] }
0x1925   :  { %v4749_v26 = vmul.f32 %v7210_v63, %v4740_v17  ;;  %7278 = vmatmul.mubr.msk.f32.vlgmr.msra.gmra.mrb[132].mxu1 %vm194_vm1, %v12472_v27  ;;  %7281 = vmatmul.mubr.msk.f32.vlgmr.msra.gmra.mrb[102].mxu0 %vm194_vm1, %v12472_v27  ;;  %v7273_v17 = vld [vmem:[%s14000_s8 + $0x3e8] sm:$0xff] }
0x1926   :  { %v9779_v24 = vpop.eup %9778  ;;  %4989 = vmatprep.mubr.f32.mxu1 %v14080_v54  ;;  %5072 = vmatprep.mubr.f32.mxu0 %v14080_v54  ;;  %v9310_v45 = vpack.c.bf16 %v7273_v17, %v7257_v6  ;;  %v7356_v6 = vld [vmem:[%s14002_s10 + $0x9b0] sm:$0xff] }
0x1927   :  { %v12505_v4 = vadd.f32 %v7211_v46, %v4749_v26  ;;  %v4741_v55 = vmul.f32 %v9779_v24, %v12375_v8  ;;  %9277 = vmatpush1.bf16.msra.mxu1 %v9276_v47  ;;  %9285 = vmatpush1.bf16.msra.mxu0 %v9284_v10  ;;  %v7220_v8 = vld [vmem:[%s14000_s8 + $0x240] sm:$0xff]  ;;  %v7259_v47 = vld [vmem:[%s14000_s8 + $0x378] sm:$0xff]  ;;  %v7274_v26 = vld [vmem:[%s14000_s8 + $0x3f0] sm:$0xff] }
0x1928   :  { %9279 = vmatprep.subr.bf16.mxu1 %v9278_v58  ;;  %9287 = vmatprep.subr.bf16.mxu0 %v9286_v59  ;;  %v9292_v20 = vpack.c.bf16 %v7236_v14, %v7220_v8  ;;  %v7275_v10 = vld [vmem:[%s14000_s8 + $0x3f8] sm:$0xff]  ;;  %v7256_v58 = vld [vmem:[%s14000_s8 + $0x360] sm:$0xff]  ;;  %v7351_v24 = vld [vmem:[%s14002_s10 + $0x988] sm:$0xff] }
0x1929   :  { %v4750_v9 = vmul.f32 %v7210_v63, %v4741_v55  ;;  %7279 = vmatmul.mubr.msk.f32.gmra.mrb[134].mxu1 %vm194_vm1, %v12505_v4  ;;  %7282 = vmatmul.mubr.msk.f32.gmra.mrb[104].mxu0 %vm194_vm1, %v12505_v4  ;;  %v7225_v63 = vld [vmem:[%s14000_s8 + $0x268] sm:$0xff]  ;;  %v7272_v59 = vld [vmem:[%s14000_s8 + $0x3e0] sm:$0xff]  ;;  %v9318_v34 = vpack.c.bf16 %v7275_v10, %v7259_v47  ;;  %v9320_v55 = vpack.c.bf16 %v7274_v26, %v7258_v53  ;;  %v7357_v47 = vld [vmem:[%s14002_s10 + $0x9b8] sm:$0xff] }
0x192a   :  { %4995 = vmatprep.mubr.f32.mxu1 %v14080_v54  ;;  %5078 = vmatprep.mubr.f32.mxu0 %v14080_v54  ;;  %v7334_v8 = vld [vmem:[%s14002_s10 + $0x900] sm:$0xff]  ;;  %v7335_v14 = vld [vmem:[%s14002_s10 + $0x908] sm:$0xff]  ;;  %v7309_v10 = vld [vmem:[%s14002_s10 + $0x838] sm:$0xff] }
0x192b   :  { %v12514_v12 = vadd.f32 %v7211_v46, %v4750_v9  ;;  %9281 = vmatpush1.bf16.msra.mxu1 %v9280_v28  ;;  %9289 = vmatpush1.bf16.msra.mxu0 %v9288_v43  ;;  %v7241_v46 = vld [vmem:[%s14000_s8 + $0x2e8] sm:$0xff]  ;;  %v9312_v28 = vpack.c.bf16 %v7272_v59, %v7256_v58  ;;  %v9322_v43 = vpack.c.bf16 %v7319_v15, %v7318_v31  ;;  %v7340_v58 = vld [vmem:[%s14002_s10 + $0x930] sm:$0xff]  ;;  %v7341_v59 = vld [vmem:[%s14002_s10 + $0x938] sm:$0xff] }
0x192c   :  { %9291 = vmatprep.subr.bf16.mxu1 %v9290_v19  ;;  %9299 = vmatprep.subr.bf16.mxu0 %v9298_v35  ;;  %v9306_v21 = vpack.c.bf16 %v7241_v46, %v7225_v63  ;;  %v9354_v19 = vpack.c.bf16 %v7351_v24, %v7350_v30  ;;  %v7302_v35 = vld [vmem:[%s14002_s10 + $0x800] sm:$0xff]  ;;  %v7303_v9 = vld [vmem:[%s14002_s10 + $0x808] sm:$0xff]  ;;  %v9356_v11 = vpack.c.bf16 %v7335_v14, %v7334_v8  ;;  %v7329_v8 = vld [vmem:[%s14002_s10 + $0x8d8] sm:$0xff] }
0x192d   :  { %7280 = vmatmul.mubr.msk.f32.gmra.mrb[136].mxu1 %vm194_vm1, %v12514_v12  ;;  %7283 = vmatmul.mubr.msk.f32.gmra.mrb[106].mxu0 %vm194_vm1, %v12514_v12  ;;  %v9324_v56 = vpack.c.bf16 %v7303_v9, %v7302_v35  ;;  %v7354_v63 = vld [vmem:[%s14002_s10 + $0x9a0] sm:$0xff]  ;;  %v7355_v46 = vld [vmem:[%s14002_s10 + $0x9a8] sm:$0xff]  ;;  %v7328_v9 = vld [vmem:[%s14002_s10 + $0x8d0] sm:$0xff] }
0x192e   :  { %5149 = vmatprep.mubr.f32.mxu1 %v14080_v54  ;;  %5232 = vmatprep.mubr.f32.mxu0 %v14080_v54  ;;  %v7327_v53 = vld [vmem:[%s14002_s10 + $0x8c8] sm:$0xff]  ;;  %v7358_v26 = vld [vmem:[%s14002_s10 + $0x9c0] sm:$0xff]  ;;  %v7360_v14 = vld [vmem:[%s14002_s10 + $0x9d0] sm:$0xff]  ;;  %v9342_v13 = vpack.c.bf16 %v7329_v8, %v7328_v9 }
0x192f   :  { %v7359_v15 = vld [vmem:[%s14002_s10 + $0x9c8] sm:$0xff]  ;;  %v7310_v30 = vld [vmem:[%s14002_s10 + $0x840] sm:$0xff] }
0x1930   :  { %v7311_v24 = vld [vmem:[%s14002_s10 + $0x848] sm:$0xff] }
0x1931   :  { %7284 = vmatmul.mubr.msk.f32.vlgmr.msra.gmra.mrb[138].mxu1 %vm194_vm1, %v12472_v27  ;;  %7287 = vmatmul.mubr.msk.f32.vlgmr.msra.gmra.mrb[108].mxu0 %vm194_vm1, %v12472_v27 }
0x1932   :  { %5155 = vmatprep.mubr.f32.mxu1 %v14080_v54  ;;  %5238 = vmatprep.mubr.f32.mxu0 %v14080_v54 }
0x1933   :  { %9293 = vmatpush1.bf16.msra.mxu1 %v9292_v20  ;;  %9301 = vmatpush1.bf16.msra.mxu0 %v9300_v44  ;;  %v7304_v20 = vld [vmem:[%s14002_s10 + $0x810] sm:$0xff]  ;;  %v7305_v44 = vld [vmem:[%s14002_s10 + $0x818] sm:$0xff] }
0x1934   :  { %9295 = vmatprep.subr.bf16.mxu1 %v9294_v33  ;;  %9303 = vmatprep.subr.bf16.mxu0 %v9302_v5  ;;  %v7336_v33 = vld [vmem:[%s14002_s10 + $0x910] sm:$0xff]  ;;  %v7337_v5 = vld [vmem:[%s14002_s10 + $0x918] sm:$0xff]  ;;  %v9328_v57 = vpack.c.bf16 %v7305_v44, %v7304_v20 }
0x1935   :  { %7285 = vmatmul.mubr.msk.f32.gmra.mrb[140].mxu1 %vm194_vm1, %v12505_v4  ;;  %7288 = vmatmul.mubr.msk.f32.gmra.mrb[110].mxu0 %vm194_vm1, %v12505_v4  ;;  %v7344_v20 = vld [vmem:[%s14002_s10 + $0x950] sm:$0xff]  ;;  %v7345_v44 = vld [vmem:[%s14002_s10 + $0x958] sm:$0xff] }
0x1936   :  { %5161 = vmatprep.mubr.f32.mxu1 %v14080_v54  ;;  %5244 = vmatprep.mubr.f32.mxu0 %v14080_v54 }
0x1937   :  { %9297 = vmatpush1.bf16.msra.mxu1 %v9296_v62  ;;  %9305 = vmatpush1.bf16.msra.mxu0 %v9304_v42  ;;  %v9330_v62 = vpack.c.bf16 %v7323_v16, %v7322_v41  ;;  %v9362_v42 = vpack.c.bf16 %v7355_v46, %v7354_v63  ;;  %v7363_v16 = vld [vmem:[%s14002_s10 + $0x9e8] sm:$0xff]  ;;  %v7314_v63 = vld [vmem:[%s14002_s10 + $0x860] sm:$0xff] }
0x1938   :  { %9307 = vmatprep.subr.bf16.mxu1 %v9306_v21  ;;  %9315 = vmatprep.subr.bf16.mxu0 %v9314_v37  ;;  %v7307_v21 = vld [vmem:[%s14002_s10 + $0x828] sm:$0xff]  ;;  %v7338_v37 = vld [vmem:[%s14002_s10 + $0x920] sm:$0xff] }
0x1939   :  { %7286 = vmatmul.mubr.msk.f32.gmra.mrb[142].mxu1 %vm194_vm1, %v12514_v12  ;;  %7289 = vmatmul.mubr.msk.f32.gmra.mrb[112].mxu0 %vm194_vm1, %v12514_v12  ;;  %v9332_v29 = vpack.c.bf16 %v7307_v21, %v7306_v18  ;;  %v9364_v39 = vpack.c.bf16 %v7339_v23, %v7338_v37  ;;  %v7315_v46 = vld [vmem:[%s14002_s10 + $0x868] sm:$0xff]  ;;  %v7346_v18 = vld [vmem:[%s14002_s10 + $0x960] sm:$0xff]  ;;  %v7332_v21 = vld [vmem:[%s14002_s10 + $0x8f0] sm:$0xff] }
0x193a   :  { %5315 = vmatprep.mubr.f32.mxu1 %v14080_v54  ;;  %5398 = vmatprep.mubr.f32.mxu0 %v14080_v54  ;;  %v7333_v37 = vld [vmem:[%s14002_s10 + $0x8f8] sm:$0xff]  ;;  %v7364_v23 = vld [vmem:[%s14002_s10 + $0x9f0] sm:$0xff] }
0x193d   :  { %7290 = vmatmul.mubr.msk.f32.vlgmr.msra.gmra.mrb[144].mxu1 %vm194_vm1, %v12472_v27  ;;  %7293 = vmatmul.mubr.msk.f32.vlgmr.msra.gmra.mrb[114].mxu0 %vm194_vm1, %v12472_v27 }
0x193e   :  { %5321 = vmatprep.mubr.f32.mxu1 %v14080_v54  ;;  %5404 = vmatprep.mubr.f32.mxu0 %v14080_v54 }
0x193f   :  { %9309 = vmatpush1.bf16.msra.mxu1 %v9308_v25  ;;  %9317 = vmatpush1.bf16.msra.mxu0 %v9316_v60  ;;  %v9366_v25 = vpack.c.bf16 %v7357_v47, %v7356_v6  ;;  %v7348_v47 = vld [vmem:[%s14002_s10 + $0x970] sm:$0xff] }
0x1940   :  { %9311 = vmatprep.subr.bf16.mxu1 %v9310_v45  ;;  %9319 = vmatprep.subr.bf16.mxu0 %v9318_v34  ;;  %v9368_v45 = vpack.c.bf16 %v7341_v59, %v7340_v58  ;;  %v7326_v34 = vld [vmem:[%s14002_s10 + $0x8c0] sm:$0xff] }
0x1941   :  { %7291 = vmatmul.mubr.msk.f32.gmra.mrb[146].mxu1 %vm194_vm1, %v12505_v4  ;;  %7294 = vmatmul.mubr.msk.f32.gmra.mrb[116].mxu0 %vm194_vm1, %v12505_v4  ;;  %v9338_v31 = vpack.c.bf16 %v7327_v53, %v7326_v34  ;;  %v7414_v58 = vld [vmem:[%s14002_s10 + $0xb80] sm:$0xff]  ;;  %v12865_v53 = vld [vmem:[%s14001_s9 + $0x10] sm:$0xff] }
0x1942   :  { %5327 = vmatprep.mubr.f32.mxu1 %v14080_v54  ;;  %5410 = vmatprep.mubr.f32.mxu0 %v14080_v54 }
0x1943   :  { %9313 = vmatpush1.bf16.msra.mxu1 %v9312_v28  ;;  %9321 = vmatpush1.bf16.msra.mxu0 %v9320_v55  ;;  %v9370_v28 = vpack.c.bf16 %v7359_v15, %v7358_v26  ;;  %v9340_v55 = vpack.c.bf16 %v7311_v24, %v7310_v30  ;;  %v4833_v26 = vrot.slane %v12865_v53, %v10946_v1  ;;  %v14088_v30 = vld [vmem:[#allocation9_spill] sm:$0xff] }
0x1944   :  { %9323 = vmatprep.subr.bf16.mxu1 %v9322_v43  ;;  %9355 = vmatprep.subr.bf16.mxu0 %v9354_v19  ;;  %v7342_v43 = vld [vmem:[%s14002_s10 + $0x940] sm:$0xff]  ;;  %v7343_v19 = vld [vmem:[%s14002_s10 + $0x948] sm:$0xff]  ;;  %v4837_v24 = vrot.slane %v12865_v53, %v14088_v30 }
0x1945   :  { %7292 = vmatmul.mubr.msk.f32.gmra.mrb[148].mxu1 %vm194_vm1, %v12514_v12  ;;  %7295 = vmatmul.mubr.msk.f32.gmra.mrb[118].mxu0 %vm194_vm1, %v12514_v12  ;;  %v9372_v35 = vpack.c.bf16 %v7343_v19, %v7342_v43 }
0x1946   :  { %5481 = vmatprep.mubr.f32.mxu1 %v14080_v54  ;;  %5564 = vmatprep.mubr.f32.mxu0 %v14080_v54 }
0x1949   :  { %7296 = vmatmul.mubr.msk.f32.vlgmr.msra.gmra.mrb[150].mxu1 %vm194_vm1, %v12472_v27  ;;  %7299 = vmatmul.mubr.msk.f32.vlgmr.msra.gmra.mrb[120].mxu0 %vm194_vm1, %v12472_v27  ;;  %v9360_v27 = vpack.c.bf16 %v7337_v5, %v7336_v33  ;;  %v7331_v33 = vld [vmem:[%s14002_s10 + $0x8e8] sm:$0xff]  ;;  %v7362_v5 = vld [vmem:[%s14002_s10 + $0x9e0] sm:$0xff] }
0x194a   :  { %5487 = vmatprep.mubr.f32.mxu1 %v14080_v54  ;;  %5570 = vmatprep.mubr.f32.mxu0 %v14080_v54 }
0x194b   :  { %9325 = vmatpush3.bf16.msra.mxu1 %v9324_v56  ;;  %9357 = vmatpush3.bf16.msra.mxu0 %v9356_v11  ;;  %v9374_v56 = vpack.c.bf16 %v7361_v51, %v7360_v14  ;;  %v9344_v11 = vpack.c.bf16 %v7313_v0, %v7312_v22 }
0x194c   :  { %9327 = vmatprep.subr.bf16.mxu1 %v9326_v50  ;;  %9359 = vmatprep.subr.bf16.mxu0 %v9358_v61  ;;  %v9376_v50 = vpack.c.bf16 %v7345_v44, %v7344_v20  ;;  %v7330_v61 = vld [vmem:[%s14002_s10 + $0x8e0] sm:$0xff] }
0x194d   :  { %7297 = vmatmul.mubr.msk.f32.gmra.mrb[152].mxu1 %vm194_vm1, %v12505_v4  ;;  %7300 = vmatmul.mubr.msk.f32.gmra.mrb[122].mxu0 %vm194_vm1, %v12505_v4  ;;  %v7324_v4 = vld [vmem:[%s14002_s10 + $0x8b0] sm:$0xff]  ;;  %v9346_v41 = vpack.c.bf16 %v7331_v33, %v7330_v61 }
0x194e   :  { %5493 = vmatprep.mubr.f32.mxu1 %v14080_v54  ;;  %5576 = vmatprep.mubr.f32.mxu0 %v14080_v54  ;;  %v9334_v17 = vpack.c.bf16 %v7325_v3, %v7324_v4  ;;  %v7316_v4 = vld [vmem:[%s14002_s10 + $0x870] sm:$0xff]  ;;  %v7317_v3 = vld [vmem:[%s14002_s10 + $0x878] sm:$0xff] }
0x194f   :  { %9329 = vmatpush3.bf16.msra.mxu1 %v9328_v57  ;;  %9361 = vmatpush3.bf16.msra.mxu0 %v9360_v27  ;;  %v9378_v57 = vpack.c.bf16 %v7363_v16, %v7362_v5  ;;  %v9348_v27 = vpack.c.bf16 %v7315_v46, %v7314_v63 }
0x1950   :  { %9331 = vmatprep.subr.bf16.mxu1 %v9330_v62  ;;  %9363 = vmatprep.subr.bf16.mxu0 %v9362_v42  ;;  %v7347_v62 = vld [vmem:[%s14002_s10 + $0x968] sm:$0xff] }
0x1951   :  { %7298 = vmatmul.mubr.msk.f32.gmra.mrb[154].mxu1 %vm194_vm1, %v12514_v12  ;;  %7301 = vmatmul.mubr.msk.f32.gmra.mrb[124].mxu0 %vm194_vm1, %v12514_v12  ;;  %v7308_v12 = vld [vmem:[%s14002_s10 + $0x830] sm:$0xff]  ;;  %v9380_v42 = vpack.c.bf16 %v7347_v62, %v7346_v18 }
0x1952   :  { %v9336_v60 = vpack.c.bf16 %v7309_v10, %v7308_v12  ;;  %v7349_v12 = vld [vmem:[%s14002_s10 + $0x978] sm:$0xff] }
0x1953   :  { %9333 = vmatpush3.bf16.msra.mxu1 %v9332_v29  ;;  %9365 = vmatpush3.bf16.msra.mxu0 %v9364_v39  ;;  %v9350_v29 = vpack.c.bf16 %v7333_v37, %v7332_v21  ;;  %v7365_v39 = vld [vmem:[%s14002_s10 + $0x9f8] sm:$0xff]  ;;  %v9384_v10 = vpack.c.bf16 %v7349_v12, %v7348_v47  ;;  %v12917_v47 = vrot.slane %v12865_v53, %v14071_v52 }
0x1954   :  { %9335 = vmatprep.subr.bf16.mxu1 %v9334_v17  ;;  %9367 = vmatprep.subr.bf16.mxu0 %v9366_v25  ;;  %v9382_v6 = vpack.c.bf16 %v7365_v39, %v7364_v23  ;;  %v9352_v17 = vpack.c.bf16 %v7317_v3, %v7316_v4  ;;  %v7382_v25 = vld [vmem:[%s14002_s10 + $0xa80] sm:$0xff]  ;;  %v12906_v39 = vrot.slane %v12865_v53, %v14069_v36  ;;  %v12992_v52 = vld [vmem:[%s14001_s9 + $0x18] sm:$0xff] }
0x1957   :  { %9337 = vmatpush3.bf16.msra.mxu1 %v9336_v60  ;;  %9369 = vmatpush3.bf16.msra.mxu0 %v9368_v45  ;;  %v7383_v60 = vld [vmem:[%s14002_s10 + $0xa88] sm:$0xff] }
0x1958   :  { %9339 = vmatprep.subr.bf16.mxu1 %v9338_v31  ;;  %9371 = vmatprep.subr.bf16.mxu0 %v9370_v28  ;;  %v9386_v59 = vpack.c.bf16 %v7383_v60, %v7382_v25  ;;  %v7415_v45 = vld [vmem:[%s14002_s10 + $0xb88] sm:$0xff] }
0x1959   :  { %v9418_v34 = vpack.c.bf16 %v7415_v45, %v7414_v58 }
0x195b   :  { %9341 = vmatpush3.bf16.msra.mxu1 %v9340_v55  ;;  %9373 = vmatpush3.bf16.msra.mxu0 %v9372_v35  ;;  %v14089_v55 = vld [vmem:[#allocation10_spill] sm:$0xff]  ;;  %v4841_v35 = vrot.slane %v12865_v53, %v10960_v7 }
0x195c   :  { %9343 = vmatprep.subr.bf16.mxu1 %v9342_v13  ;;  %9375 = vmatprep.subr.bf16.mxu0 %v9374_v56  ;;  %v4845_v43 = vrot.slane %v12865_v53, %v14089_v55 }
0x195f   :  { %9345 = vmatpush3.bf16.msra.mxu1 %v9344_v11  ;;  %9377 = vmatpush3.bf16.msra.mxu0 %v9376_v50 }
0x1960   :  { %9347 = vmatprep.subr.bf16.mxu1 %v9346_v41  ;;  %9379 = vmatprep.subr.bf16.mxu0 %v9378_v57 }
0x1963   :  { %9349 = vmatpush3.bf16.msra.mxu1 %v9348_v27  ;;  %9381 = vmatpush3.bf16.msra.mxu0 %v9380_v42 }
0x1964   :  { %9351 = vmatprep.subr.bf16.mxu1 %v9350_v29  ;;  %9383 = vmatprep.subr.bf16.mxu0 %v9382_v6 }
0x1967   :  { %9353 = vmatpush3.bf16.msra.mxu1 %v9352_v17  ;;  %9385 = vmatpush3.bf16.msra.mxu0 %v9384_v10 }
0x1968   :  { %9387 = vmatprep.subr.bf16.mxu1 %v9386_v59  ;;  %9419 = vmatprep.subr.bf16.mxu0 %v9418_v34 }
0x19f8   :  { %v4985_v31 = vpop.f32.mrb[132].mxu1  ;;  %v5068_v15 = vpop.f32.mrb[102].mxu0 }
0x19f9   :  { %v4987_v28 = vpop.f32.mrb[133].mxu1  ;;  %v5070_v19 = vpop.f32.mrb[103].mxu0  ;;  %v12875_v9 = vadd.f32 %v4985_v31, %v4833_v26  ;;  %v12881_v22 = vadd.f32 %v5068_v15, %v4841_v35 }
0x19fa   :  { %v12877_v8 = vadd.f32 %v4987_v28, %v4837_v24  ;;  %v12879_v14 = vadd.f32 %v5070_v19, %v4845_v43 }
0x19fb   :  { %v5631_v11 = vmul.f32 0.70710677, %v12875_v9  ;;  %v5633_v33 = vmul.f32 0.70710677, %v12881_v22 }
0x19fc   :  { %v4991_v13 = vpop.f32.mrb[134].mxu1  ;;  %v5074_v51 = vpop.f32.mrb[104].mxu0  ;;  %v5632_v20 = vmul.f32 0.70710677, %v12877_v8  ;;  %v5634_v61 = vmul.f32 0.70710677, %v12879_v14 }
0x19fd   :  { %v4993_v0 = vpop.f32.mrb[135].mxu1  ;;  %v5076_v56 = vpop.f32.mrb[105].mxu0  ;;  %v12887_v5 = vadd.f32 %v4991_v13, %v4833_v26  ;;  %9780 = verf.f32 %v5631_v11  ;;  %v12897_v18 = vadd.f32 %v5074_v51, %v4841_v35 }
0x19fe   :  { %v12889_v63 = vadd.f32 %v4993_v0, %v4837_v24  ;;  %9782 = verf.f32 %v5632_v20  ;;  %v12891_v46 = vadd.f32 %v5076_v56, %v4845_v43 }
0x19ff   :  { %9784 = verf.f32 %v5634_v61  ;;  %v5647_v42 = vmul.f32 0.70710677, %v12887_v5  ;;  %v5649_v6 = vmul.f32 0.70710677, %v12897_v18 }
0x1a00   :  { %v4997_v44 = vpop.f32.mrb[136].mxu1  ;;  %v5080_v50 = vpop.f32.mrb[106].mxu0  ;;  %9786 = verf.f32 %v5633_v33  ;;  %v5648_v37 = vmul.f32 0.70710677, %v12889_v63  ;;  %v5650_v29 = vmul.f32 0.70710677, %v12891_v46 }
0x1a01   :  { %v4999_v41 = vpop.f32.mrb[137].mxu1  ;;  %v5082_v16 = vpop.f32.mrb[107].mxu0  ;;  %v12913_v17 = vadd.f32 %v4997_v44, %v4833_v26  ;;  %9788 = verf.f32 %v5647_v42  ;;  %v12925_v60 = vadd.f32 %v5080_v50, %v4841_v35 }
0x1a02   :  { %v12901_v23 = vadd.f32 %v4999_v41, %v4837_v24  ;;  %v12923_v25 = vadd.f32 %v5082_v16, %v4845_v43  ;;  %9790 = verf.f32 %v5648_v37  ;;  %v7366_v41 = vld [vmem:[%s14002_s10 + $0xa00] sm:$0xff]  ;;  %v7367_v16 = vld [vmem:[%s14002_s10 + $0xa08] sm:$0xff] }
0x1a03   :  { %9792 = verf.f32 %v5650_v29  ;;  %v5663_v31 = vmul.f32 0.70710677, %v12913_v17  ;;  %v5665_v13 = vmul.f32 0.70710677, %v12925_v60  ;;  %v7399_v37 = vld [vmem:[%s14002_s10 + $0xb08] sm:$0xff]  ;;  %v7384_v29 = vld [vmem:[%s14002_s10 + $0xa90] sm:$0xff]  ;;  %v9388_v54 = vpack.c.bf16 %v7367_v16, %v7366_v41 }
0x1a04   :  { %v12893_v57 = vpop.f32.mrb[138].mxu1  ;;  %v12895_v27 = vpop.f32.mrb[108].mxu0  ;;  %v5664_v58 = vmul.f32 0.70710677, %v12901_v23  ;;  %9794 = verf.f32 %v5649_v6  ;;  %v5666_v19 = vmul.f32 0.70710677, %v12923_v25 }
0x1a05   :  { %v5153_v62 = vpop.f32.mrb[139].mxu1  ;;  %v5236_v21 = vpop.f32.mrb[109].mxu0  ;;  %v13014_v16 = vld [vmem:[%s14002_s10 + $0xb18] sm:$0xff] }
0x1a06   :  { %v12929_v59 = vadd.f32 %v5153_v62, %v12906_v39  ;;  %v12937_v15 = vadd.f32 %v5236_v21, %v12917_v47  ;;  %9796 = verf.f32 %v5664_v58  ;;  %v7398_v21 = vld [vmem:[%s14002_s10 + $0xb00] sm:$0xff]  ;;  %v5584_v58 = vmul.f32 0.5, %v12877_v8 }
0x1a07   :  { %v9781_v26 = vpop.eup %9780  ;;  %9798 = verf.f32 %v5663_v31  ;;  %v5586_v31 = vmul.f32 0.5, %v12879_v14  ;;  %v5583_v8 = vmul.f32 0.5, %v12875_v9  ;;  %v5585_v14 = vmul.f32 0.5, %v12881_v22 }
0x1a08   :  { %v12908_v4 = vpop.f32.mrb[140].mxu1  ;;  %v12910_v3 = vpop.f32.mrb[110].mxu0  ;;  %v5636_v0 = vmul.f32 0.70710677, %v12929_v59  ;;  %v5638_v20 = vmul.f32 0.70710677, %v12937_v15  ;;  %9800 = verf.f32 %v5666_v19  ;;  %v9420_v49 = vpack.c.bf16 %v7399_v37, %v7398_v21 }
0x1a09   :  { %v12919_v12 = vpop.f32.mrb[141].mxu1  ;;  %v12921_v10 = vpop.f32.mrb[111].mxu0  ;;  %v5727_v62 = vadd.f32 1.0, %v9781_v26  ;;  %9802 = verf.f32 %v5665_v13  ;;  %v7385_v26 = vld [vmem:[%s14002_s10 + $0xa98] sm:$0xff] }
0x1a0a   :  { %v9783_v43 = vpop.eup %9782  ;;  %9804 = verf.f32 %v5636_v0  ;;  %v7417_v19 = vld [vmem:[%s14002_s10 + $0xb98] sm:$0xff] }
0x1a0b   :  { %v9785_v35 = vpop.eup %9784  ;;  %v5728_v61 = vadd.f32 1.0, %v9783_v43  ;;  %v7416_v43 = vld [vmem:[%s14002_s10 + $0xb90] sm:$0xff]  ;;  %9806 = verf.f32 %v5638_v20  ;;  %v9390_v20 = vpack.c.bf16 %v7385_v26, %v7384_v29  ;;  %v13041_v26 = vld [vmem:[%s14002_s10 + $0xba0] sm:$0xff] }
0x1a0c   :  { %v12931_v45 = vpop.f32.mrb[142].mxu1  ;;  %v12933_v34 = vpop.f32.mrb[112].mxu0  ;;  %v5730_v33 = vadd.f32 1.0, %v9785_v35 }
0x1a0d   :  { %v12939_v24 = vpop.f32.mrb[143].mxu1  ;;  %v12941_v28 = vpop.f32.mrb[113].mxu0  ;;  %v5776_v32 = vmul.f32 %v5728_v61, %v5584_v58  ;;  %v13004_v61 = vld [vmem:[%s14002_s10 + $0xa18] sm:$0xff]  ;;  %v13032_v58 = vrot.slane %v12865_v53, %v14075_v38 }
0x1a0e   :  { %v9787_v51 = vpop.eup %9786  ;;  %v5778_v48 = vmul.f32 %v5730_v33, %v5586_v31  ;;  %v13009_v33 = vld [vmem:[%s14002_s10 + $0xb10] sm:$0xff]  ;;  %v13036_v31 = vrot.slane %v12865_v53, %v14076_v2  ;;  %v5600_v53 = vmul.f32 0.5, %v12889_v63  ;;  %v5602_v63 = vmul.f32 0.5, %v12891_v46  ;;  %v13108_v2 = vld [vmem:[%s14002_s10 + $0xbb8] sm:$0xff] }
0x1a0f   :  { %v5729_v42 = vadd.f32 1.0, %v9787_v51  ;;  %v9789_v6 = vpop.eup %9788  ;;  %6144 = vmatprep.mubr.f32.mxu1 %v5776_v32 }
0x1a10   :  { %v12946_v56 = vpop.f32.mrb[144].mxu1  ;;  %v12948_v11 = vpop.f32.mrb[114].mxu0  ;;  %6224 = vmatprep.mubr.f32.mxu0 %v5778_v48  ;;  %v5743_v32 = vadd.f32 1.0, %v9789_v6  ;;  %v13046_v6 = vld [vmem:[%s14002_s10 + $0xba8] sm:$0xff] }
0x1a11   :  { %14090 = vst [vmem:[#allocation18_spill] sm:$0xff] %v12948_v11  ;;  %v12951_v44 = vpop.f32.mrb[145].mxu1  ;;  %v12953_v50 = vpop.f32.mrb[115].mxu0  ;;  %v5777_v22 = vmul.f32 %v5729_v42, %v5585_v14  ;;  %v9422_v11 = vpack.c.bf16 %v7417_v19, %v7416_v43  ;;  %v13024_v42 = vld [vmem:[%s14002_s10 + $0xaa8] sm:$0xff] }
0x1a12   :  { %v9791_v13 = vpop.eup %9790  ;;  %v13067_v14 = vld [vmem:[%s14002_s10 + $0xa28] sm:$0xff] }
0x1a13   :  { %v9793_v40 = vpop.eup %9792  ;;  %v5744_v41 = vadd.f32 1.0, %v9791_v13  ;;  %6225 = vmatmul.mubr.f32.vlgmr.msra.gmra.mrb[126].mxu0 %v5777_v22  ;;  %v13085_v22 = vld [vmem:[%s14002_s10 + $0xb28] sm:$0xff] }
0x1a14   :  { %v12981_v35 = vpop.f32.mrb[146].mxu1  ;;  %v12985_v51 = vpop.f32.mrb[116].mxu0  ;;  %v5746_v29 = vadd.f32 1.0, %v9793_v40  ;;  %9421 = vmatpush3.bf16.msra.mxu0 %v9420_v49  ;;  %v13072_v49 = vld [vmem:[%s14002_s10 + $0xb20] sm:$0xff] }
0x1a15   :  { %14091 = vst [vmem:[#allocation21_spill] sm:$0xff] %v12981_v35  ;;  %14092 = vst [vmem:[#allocation19_spill] sm:$0xff] %v12985_v51  ;;  %v12987_v0 = vpop.f32.mrb[147].mxu1  ;;  %v12994_v36 = vpop.f32.mrb[117].mxu0  ;;  %v5775_v35 = vmul.f32 %v5727_v62, %v5583_v8  ;;  %v12999_v51 = vld [vmem:[%s14002_s10 + $0xa10] sm:$0xff]  ;;  %v13019_v62 = vld [vmem:[%s14002_s10 + $0xaa0] sm:$0xff]  ;;  %9423 = vmatprep.subr.bf16.mxu0 %v9422_v11 }
0x1a16   :  { %v9795_v9 = vpop.eup %9794  ;;  %v9392_v13 = vpack.c.bf16 %v13004_v61, %v12999_v51  ;;  %v13062_v8 = vld [vmem:[%s14002_s10 + $0xa20] sm:$0xff]  ;;  %v13078_v51 = vrot.slane %v12992_v52, %v14089_v55  ;;  %v13095_v55 = vld [vmem:[%s14002_s10 + $0xab8] sm:$0xff]  ;;  %v5601_v11 = vmul.f32 0.5, %v12897_v18  ;;  %v5792_v61 = vmul.f32 %v5744_v41, %v5600_v53  ;;  %v13121_v53 = vld [vmem:[%s14002_s10 + $0xa30] sm:$0xff] }
0x1a17   :  { %v9797_v48 = vpop.eup %9796  ;;  %6145 = vmatmul.mubr.f32.vlgmr.msra.gmra.mrb[156].mxu1 %v5775_v35  ;;  %v5745_v19 = vadd.f32 1.0, %v9795_v9  ;;  %v13055_v35 = vrot.slane %v12992_v52, %v14088_v30  ;;  %v5599_v30 = vmul.f32 0.5, %v12887_v5  ;;  %v9424_v9 = vpack.c.bf16 %v13014_v16, %v13009_v33  ;;  %v13090_v5 = vld [vmem:[%s14002_s10 + $0xab0] sm:$0xff] }
0x1a18   :  { %v13026_v21 = vpop.f32.mrb[148].mxu1  ;;  %v13028_v37 = vpop.f32.mrb[118].mxu0  ;;  %9389 = vmatpush3.bf16.msra.mxu1 %v9388_v54  ;;  %v9394_v33 = vpack.c.bf16 %v13024_v42, %v13019_v62  ;;  %v13103_v16 = vld [vmem:[%s14002_s10 + $0xbb0] sm:$0xff]  ;;  %v9426_v62 = vpack.c.bf16 %v13046_v6, %v13041_v26  ;;  %v9396_v42 = vpack.c.bf16 %v13067_v14, %v13062_v8  ;;  %v5616_v26 = vmul.f32 0.5, %v12901_v23  ;;  %6149 = vmatprep.mubr.f32.mxu1 %v5792_v61 }
0x1a19   :  { %14093 = vst [vmem:[#allocation20_spill] sm:$0xff] %v13028_v37  ;;  %v13048_v40 = vpop.f32.mrb[149].mxu1  ;;  %v13050_v43 = vpop.f32.mrb[119].mxu0  ;;  %9391 = vmatprep.subr.bf16.mxu1 %v9390_v20  ;;  %v5760_v20 = vadd.f32 1.0, %v9797_v48  ;;  %v5794_v48 = vmul.f32 %v5746_v29, %v5602_v63  ;;  %v5791_v41 = vmul.f32 %v5743_v32, %v5599_v30  ;;  %v13135_v6 = vadd.f32 %v12893_v57, %v13032_v58  ;;  %v13142_v30 = vld [vmem:[%s14002_s10 + $0xb30] sm:$0xff]  ;;  %v13147_v63 = vld [vmem:[%s14002_s10 + $0xb38] sm:$0xff] }
0x1a1a   :  { %v9799_v54 = vpop.eup %9798  ;;  %v5793_v8 = vmul.f32 %v5745_v19, %v5601_v11  ;;  %v9398_v19 = vpack.c.bf16 %v13095_v55, %v13090_v5  ;;  %v13155_v61 = vadd.f32 %v12919_v12, %v12906_v39  ;;  %v5617_v12 = vmul.f32 0.5, %v12925_v60  ;;  %9425 = vmatpush3.bf16.msra.mxu0 %v9424_v9 }
0x1a1b   :  { %v9801_v46 = vpop.eup %9800  ;;  %6229 = vmatprep.mubr.f32.mxu0 %v5794_v48  ;;  %6150 = vmatmul.mubr.f32.gmra.mrb[158].mxu1 %v5791_v41  ;;  %v5808_v14 = vmul.f32 %v5760_v20, %v5616_v26  ;;  %v5618_v48 = vmul.f32 0.5, %v12923_v25  ;;  %v13186_v25 = vadd.f32 %v12895_v27, %v13036_v31  ;;  %v13198_v20 = vadd.f32 %v12908_v4, %v13032_v58  ;;  %v7375_v4 = vld [vmem:[%s14002_s10 + $0xa48] sm:$0xff] }
0x1a1c   :  { %v13110_v38 = vpop.f32.mrb[150].mxu1  ;;  %v13112_v37 = vpop.f32.mrb[120].mxu0  ;;  %9393 = vmatpush3.bf16.msra.mxu1 %v9392_v13  ;;  %v5762_v57 = vadd.f32 1.0, %v9801_v46  ;;  %6230 = vmatmul.mubr.f32.gmra.mrb[128].mxu0 %v5793_v8  ;;  %v13162_v46 = vld [vmem:[%s14002_s10 + $0xac0] sm:$0xff]  ;;  %v5588_v8 = vmul.f32 0.5, %v12929_v59 }
0x1a1d   :  { %14094 = vst [vmem:[#allocation6_spill] sm:$0xff] %v13110_v38  ;;  %14095 = vst [vmem:[#allocation7_spill] sm:$0xff] %v13112_v37  ;;  %v9803_v18 = vpop.eup %9802  ;;  %v13126_v38 = vld [vmem:[%s14002_s10 + $0xa38] sm:$0xff]  ;;  %v13128_v37 = vpop.f32.mrb[151].mxu1  ;;  %9395 = vmatprep.subr.bf16.mxu1 %v9394_v33  ;;  %v13179_v33 = vld [vmem:[%s14002_s10 + $0xbc0] sm:$0xff]  ;;  %6154 = vmatprep.mubr.f32.mxu1 %v5808_v14 }
0x1a1e   :  { %v13130_v29 = vpop.f32.mrb[121].mxu0  ;;  %v9805_v32 = vpop.eup %9804  ;;  %v5761_v11 = vadd.f32 1.0, %v9803_v18  ;;  %v5615_v18 = vmul.f32 0.5, %v12913_v17  ;;  %v5635_v17 = vmul.f32 0.70710677, %v13135_v6  ;;  %9427 = vmatprep.subr.bf16.mxu0 %v9426_v62  ;;  %v5810_v13 = vmul.f32 %v5762_v57, %v5618_v48  ;;  %v7374_v62 = vld [vmem:[%s14002_s10 + $0xa40] sm:$0xff] }
0x1a1f   :  { %14096 = vst [vmem:[#allocation8_spill] sm:$0xff] %v13130_v29  ;;  %v9807_v23 = vpop.eup %9806  ;;  %v5759_v29 = vadd.f32 1.0, %v9799_v54  ;;  %v9400_v54 = vpack.c.bf16 %v13126_v38, %v13121_v53  ;;  %v7391_v38 = vld [vmem:[%s14002_s10 + $0xac8] sm:$0xff]  ;;  %v5732_v60 = vadd.f32 1.0, %v9805_v32  ;;  %v5590_v32 = vmul.f32 0.5, %v12937_v15  ;;  %v7406_v48 = vld [vmem:[%s14002_s10 + $0xb40] sm:$0xff] }
0x1a20   :  { %v13164_v5 = vpop.f32.mrb[152].mxu1  ;;  %v13166_v55 = vpop.f32.mrb[122].mxu0  ;;  %v5734_v9 = vadd.f32 1.0, %v9807_v23  ;;  %v13191_v53 = vld [vmem:[%s14002_s10 + $0xbc8] sm:$0xff]  ;;  %9397 = vmatpush3.bf16.msra.mxu1 %v9396_v42  ;;  %v5652_v14 = vmul.f32 0.70710677, %v13155_v61  ;;  %v13207_v23 = vadd.f32 %v12921_v10, %v12917_v47  ;;  %v5809_v59 = vmul.f32 %v5761_v11, %v5617_v12  ;;  %6234 = vmatprep.mubr.f32.mxu0 %v5810_v13 }
0x1a21   :  { %v13181_v41 = vpop.f32.mrb[153].mxu1  ;;  %v13193_v26 = vpop.f32.mrb[123].mxu0  ;;  %v5807_v27 = vmul.f32 %v5759_v29, %v5615_v18  ;;  %9399 = vmatprep.subr.bf16.mxu1 %v9398_v19  ;;  %v13218_v57 = vadd.f32 %v12939_v24, %v12906_v39  ;;  %v9402_v15 = vpack.c.bf16 %v7391_v38, %v13162_v46  ;;  %v9434_v10 = vpack.c.bf16 %v13191_v53, %v13179_v33  ;;  %v7392_v19 = vld [vmem:[%s14002_s10 + $0xad0] sm:$0xff]  ;;  %v7393_v11 = vld [vmem:[%s14002_s10 + $0xad8] sm:$0xff]  ;;  %v7407_v38 = vld [vmem:[%s14002_s10 + $0xb48] sm:$0xff] }
0x1a22   :  { %v5637_v39 = vmul.f32 0.70710677, %v13186_v25  ;;  %v13236_v24 = vadd.f32 %v12910_v3, %v13036_v31  ;;  %6235 = vmatmul.mubr.f32.gmra.mrb[130].mxu0 %v5809_v59  ;;  %v5780_v13 = vmul.f32 %v5732_v60, %v5588_v8  ;;  %v5782_v46 = vmul.f32 %v5734_v9, %v5590_v32  ;;  %v7424_v9 = vld [vmem:[%s14002_s10 + $0xbd0] sm:$0xff] }
0x1a23   :  { %6155 = vmatmul.mubr.f32.gmra.mrb[160].mxu1 %v5807_v27  ;;  %9808 = verf.f32 %v5635_v17  ;;  %v5651_v33 = vmul.f32 0.70710677, %v13198_v20  ;;  %v13247_v53 = vadd.f32 %v12931_v45, %v13032_v58  ;;  %v14097_v3 = vpack.c.bf16 %v13085_v22, %v13072_v49  ;;  %v7425_v17 = vld [vmem:[%s14002_s10 + $0xbd8] sm:$0xff]  ;;  %v7376_v22 = vld [vmem:[%s14002_s10 + $0xa50] sm:$0xff] }
0x1a24   :  { %v13212_v29 = vpop.f32.mrb[154].mxu1  ;;  %v13214_v42 = vpop.f32.mrb[124].mxu0  ;;  %9401 = vmatpush3.bf16.msra.mxu1 %v9400_v54  ;;  %v9404_v60 = vpack.c.bf16 %v7375_v4, %v7374_v62  ;;  %9810 = verf.f32 %v5652_v14  ;;  %v5654_v8 = vmul.f32 0.70710677, %v13207_v23  ;;  %v13261_v45 = vadd.f32 %v12941_v28, %v12917_v47  ;;  %6304 = vmatprep.mubr.f32.mxu1 %v5780_v13  ;;  %v7377_v54 = vld [vmem:[%s14002_s10 + $0xa58] sm:$0xff]  ;;  %v7394_v28 = vld [vmem:[%s14002_s10 + $0xae0] sm:$0xff] }
0x1a25   :  { %v13229_v18 = vpop.f32.mrb[155].mxu1  ;;  %v13231_v12 = vpop.f32.mrb[125].mxu0  ;;  %9429 = vmatpush3.bf16.msra.mxu0 %v14097_v3  ;;  %v14098_v58 = vpack.c.bf16 %v13108_v2, %v13103_v16  ;;  %v9406_v49 = vpack.c.bf16 %v7393_v11, %v7392_v19  ;;  %v5668_v27 = vmul.f32 0.70710677, %v13218_v57  ;;  %6384 = vmatprep.mubr.f32.mxu0 %v5782_v46  ;;  %v9436_v47 = vpack.c.bf16 %v7407_v38, %v7406_v48  ;;  %v7395_v2 = vld [vmem:[%s14002_s10 + $0xae8] sm:$0xff]  ;;  %v7408_v19 = vld [vmem:[%s14002_s10 + $0xb50] sm:$0xff] }
0x1a26   :  { %9403 = vmatprep.subr.bf16.mxu1 %v9402_v15  ;;  %9812 = verf.f32 %v5637_v39  ;;  %v5653_v16 = vmul.f32 0.70710677, %v13236_v24  ;;  %v13282_v62 = vadd.f32 %v12951_v44, %v13055_v35  ;;  %v9438_v32 = vpack.c.bf16 %v7425_v17, %v7424_v9  ;;  %v7409_v44 = vld [vmem:[%s14002_s10 + $0xb58] sm:$0xff]  ;;  %v7379_v39 = vld [vmem:[%s14002_s10 + $0xa68] sm:$0xff]  ;;  %v7410_v3 = vld [vmem:[%s14002_s10 + $0xb60] sm:$0xff] }
0x1a27   :  { %9431 = vmatprep.subr.bf16.mxu0 %v14098_v58  ;;  %9814 = verf.f32 %v5651_v33  ;;  %v5667_v14 = vmul.f32 0.70710677, %v13247_v53  ;;  %v13287_v59 = vadd.f32 %v12933_v34, %v13036_v31  ;;  %v14099_v4 = vpack.c.bf16 %v13147_v63, %v13142_v30  ;;  %v7426_v30 = vld [vmem:[%s14002_s10 + $0xbe0] sm:$0xff]  ;;  %v7397_v13 = vld [vmem:[%s14002_s10 + $0xaf8] sm:$0xff]  ;;  %v7428_v58 = vld [vmem:[%s14002_s10 + $0xbf0] sm:$0xff] }
0x1a28   :  { %9405 = vmatpush3.bf16.msra.mxu1 %v9404_v60  ;;  %v9408_v15 = vpack.c.bf16 %v7377_v54, %v7376_v22  ;;  %9816 = verf.f32 %v5654_v8  ;;  %v5670_v11 = vmul.f32 0.70710677, %v13261_v45  ;;  %v13301_v34 = vadd.f32 %v12953_v50, %v13078_v51  ;;  %v7378_v63 = vld [vmem:[%s14002_s10 + $0xa60] sm:$0xff]  ;;  %v7427_v50 = vld [vmem:[%s14002_s10 + $0xbe8] sm:$0xff]  ;;  %v7381_v22 = vld [vmem:[%s14002_s10 + $0xa78] sm:$0xff] }
0x1a29   :  { %9433 = vmatpush3.bf16.msra.mxu0 %v14099_v4  ;;  %9407 = vmatprep.subr.bf16.mxu1 %v9406_v49  ;;  %v9410_v31 = vpack.c.bf16 %v7395_v2, %v7394_v28  ;;  %9818 = verf.f32 %v5668_v27  ;;  %v5640_v46 = vmul.f32 0.70710677, %v13282_v62  ;;  %v5669_v48 = vmul.f32 0.70710677, %v13287_v59  ;;  %v7411_v60 = vld [vmem:[%s14002_s10 + $0xb68] sm:$0xff]  ;;  %v7380_v49 = vld [vmem:[%s14002_s10 + $0xa70] sm:$0xff] }
0x1a2a   :  { %9435 = vmatprep.subr.bf16.mxu0 %v9434_v10  ;;  %v7396_v10 = vld [vmem:[%s14002_s10 + $0xaf0] sm:$0xff]  ;;  %9820 = verf.f32 %v5653_v16  ;;  %v9440_v38 = vpack.c.bf16 %v7409_v44, %v7408_v19  ;;  %v9412_v33 = vpack.c.bf16 %v7379_v39, %v7378_v63  ;;  %v5642_v9 = vmul.f32 0.70710677, %v13301_v34  ;;  %v7429_v27 = vld [vmem:[%s14002_s10 + $0xbf8] sm:$0xff]  ;;  %v7447_v28 = vld [vmem:[%s14002_s10 + $0xc88] sm:$0xff] }
0x1a2b   :  { %9822 = verf.f32 %v5667_v14  ;;  %v9442_v17 = vpack.c.bf16 %v7427_v50, %v7426_v30  ;;  %v9414_v8 = vpack.c.bf16 %v7397_v13, %v7396_v10  ;;  %v9444_v16 = vpack.c.bf16 %v7411_v60, %v7410_v3  ;;  %v7412_v14 = vld [vmem:[%s14002_s10 + $0xb70] sm:$0xff]  ;;  %v7413_v44 = vld [vmem:[%s14002_s10 + $0xb78] sm:$0xff]  ;;  %v7479_v30 = vld [vmem:[%s14002_s10 + $0xd88] sm:$0xff] }
0x1a2c   :  { %9409 = vmatpush3.bf16.msra.mxu1 %v9408_v15  ;;  %9824 = verf.f32 %v5670_v11  ;;  %v9446_v19 = vpack.c.bf16 %v7429_v27, %v7428_v58  ;;  %v7430_v50 = vld [vmem:[%s14002_s10 + $0xc00] sm:$0xff]  ;;  %v7431_v10 = vld [vmem:[%s14002_s10 + $0xc08] sm:$0xff]  ;;  %v5604_v3 = vmul.f32 0.5, %v13155_v61  ;;  %v9448_v60 = vpack.c.bf16 %v7413_v44, %v7412_v14  ;;  %v7480_v61 = vld [vmem:[%s14002_s10 + $0xd90] sm:$0xff] }
0x1a2d   :  { %9437 = vmatpush3.bf16.msra.mxu0 %v9436_v47  ;;  %9411 = vmatprep.subr.bf16.mxu1 %v9410_v31  ;;  %v9809_v54 = vpop.eup %9808  ;;  %v7446_v47 = vld [vmem:[%s14002_s10 + $0xc80] sm:$0xff]  ;;  %9826 = verf.f32 %v5640_v46  ;;  %v5587_v46 = vmul.f32 0.5, %v13135_v6  ;;  %v7481_v27 = vld [vmem:[%s14002_s10 + $0xd98] sm:$0xff]  ;;  %v5589_v14 = vmul.f32 0.5, %v13186_v25  ;;  %v7432_v44 = vld [vmem:[%s14002_s10 + $0xc10] sm:$0xff]  ;;  %v5620_v25 = vmul.f32 0.5, %v13218_v57 }
0x1a2e   :  { %9439 = vmatprep.subr.bf16.mxu0 %v9438_v32  ;;  %v9811_v2 = vpop.eup %9810  ;;  %9828 = verf.f32 %v5669_v48  ;;  %v9416_v32 = vpack.c.bf16 %v7381_v22, %v7380_v49  ;;  %v5731_v15 = vadd.f32 1.0, %v9809_v54  ;;  %v9450_v11 = vpack.c.bf16 %v7447_v28, %v7446_v47  ;;  %v7478_v31 = vld [vmem:[%s14002_s10 + $0xd80] sm:$0xff]  ;;  %v7448_v48 = vld [vmem:[%s14002_s10 + $0xc90] sm:$0xff]  ;;  %v7463_v54 = vld [vmem:[%s14002_s10 + $0xd08] sm:$0xff] }
0x1a2f   :  { %9830 = verf.f32 %v5642_v9  ;;  %v5748_v39 = vadd.f32 1.0, %v9811_v2  ;;  %v9482_v9 = vpack.c.bf16 %v7479_v30, %v7478_v31  ;;  %v9452_v22 = vpack.c.bf16 %v7431_v10, %v7430_v50 }
0x1a30   :  { %9413 = vmatpush3.bf16.msra.mxu1 %v9412_v33  ;;  %v9813_v4 = vpop.eup %9812  ;;  %v5606_v31 = vmul.f32 0.5, %v13207_v23  ;;  %v9486_v30 = vpack.c.bf16 %v7481_v27, %v7480_v61  ;;  %v5622_v61 = vmul.f32 0.5, %v13261_v45 }
0x1a31   :  { %9441 = vmatpush3.bf16.msra.mxu0 %v9440_v38  ;;  %9415 = vmatprep.subr.bf16.mxu1 %v9414_v8  ;;  %v9815_v63 = vpop.eup %9814  ;;  %v7449_v38 = vld [vmem:[%s14002_s10 + $0xc98] sm:$0xff]  ;;  %v5779_v8 = vmul.f32 %v5731_v15, %v5587_v46  ;;  %v5733_v58 = vadd.f32 1.0, %v9813_v4  ;;  %v5796_v2 = vmul.f32 %v5748_v39, %v5604_v3  ;;  %v5603_v4 = vmul.f32 0.5, %v13198_v20  ;;  %v13409_v39 = vld [vmem:[%s14002_s10 + $0xca0] sm:$0xff]  ;;  %v7451_v46 = vld [vmem:[%s14002_s10 + $0xca8] sm:$0xff] }
0x1a32   :  { %9443 = vmatprep.subr.bf16.mxu0 %v9442_v17  ;;  %v9817_v13 = vpop.eup %9816  ;;  %v7462_v17 = vld [vmem:[%s14002_s10 + $0xd00] sm:$0xff]  ;;  %v5747_v49 = vadd.f32 1.0, %v9815_v63  ;;  %v7465_v63 = vld [vmem:[%s14002_s10 + $0xd18] sm:$0xff] }
0x1a33   :  { %v9819_v33 = vpop.eup %9818  ;;  %v5750_v28 = vadd.f32 1.0, %v9817_v13  ;;  %v9484_v20 = vpack.c.bf16 %v7463_v54, %v7462_v17  ;;  %v5781_v50 = vmul.f32 %v5733_v58, %v5589_v14  ;;  %v7466_v14 = vld [vmem:[%s14002_s10 + $0xd20] sm:$0xff] }
0x1a34   :  { %9417 = vmatpush3.bf16.msra.mxu1 %v9416_v32  ;;  %v9821_v6 = vpop.eup %9820  ;;  %v5764_v15 = vadd.f32 1.0, %v9819_v33  ;;  %v5795_v13 = vmul.f32 %v5747_v49, %v5603_v4  ;;  %v5605_v49 = vmul.f32 0.5, %v13236_v24  ;;  %v7453_v24 = vld [vmem:[%s14002_s10 + $0xcb8] sm:$0xff]  ;;  %v7467_v4 = vld [vmem:[%s14002_s10 + $0xd28] sm:$0xff] }
0x1a35   :  { %9445 = vmatpush3.bf16.msra.mxu0 %v9444_v16  ;;  %9451 = vmatprep.subr.bf16.mxu1 %v9450_v11  ;;  %v9823_v47 = vpop.eup %9822  ;;  %v9454_v16 = vpack.c.bf16 %v7449_v38, %v7448_v48  ;;  %v7433_v11 = vld [vmem:[%s14002_s10 + $0xc18] sm:$0xff]  ;;  %v5749_v57 = vadd.f32 1.0, %v9821_v6  ;;  %v7482_v48 = vld [vmem:[%s14002_s10 + $0xda0] sm:$0xff]  ;;  %v7483_v38 = vld [vmem:[%s14002_s10 + $0xda8] sm:$0xff] }
0x1a36   :  { %9447 = vmatprep.subr.bf16.mxu0 %v9446_v19  ;;  %v9825_v32 = vpop.eup %9824  ;;  %v13390_v19 = vrot.slane %v12992_v52, %v10946_v1  ;;  %v7464_v1 = vld [vmem:[%s14002_s10 + $0xd10] sm:$0xff]  ;;  %v5763_v10 = vadd.f32 1.0, %v9823_v47  ;;  %v9456_v17 = vpack.c.bf16 %v7433_v11, %v7432_v44  ;;  %v7434_v6 = vld [vmem:[%s14002_s10 + $0xc20] sm:$0xff]  ;;  %v9458_v47 = vpack.c.bf16 %v7451_v46, %v13409_v39 }
0x1a37   :  { %6305 = vmatmul.mubr.f32.vlgmr.msra.gmra.mrb[162].mxu1 %v5779_v8  ;;  %v9827_v23 = vpop.eup %9826  ;;  %v5766_v3 = vadd.f32 1.0, %v9825_v32  ;;  %v7435_v8 = vld [vmem:[%s14002_s10 + $0xc28] sm:$0xff]  ;;  %v9488_v54 = vpack.c.bf16 %v7465_v63, %v7464_v1  ;;  %v5592_v44 = vmul.f32 0.5, %v13282_v62  ;;  %v13460_v1 = vadd.f32 %v12987_v0, %v13055_v35  ;;  %v7436_v62 = vld [vmem:[%s14002_s10 + $0xc30] sm:$0xff]  ;;  %v7437_v63 = vld [vmem:[%s14002_s10 + $0xc38] sm:$0xff] }
0x1a38   :  { %6309 = vmatprep.mubr.f32.mxu1 %v5796_v2  ;;  %9453 = vmatpush3.bf16.msra.mxu1 %v9452_v22  ;;  %v9829_v33 = vpop.eup %9828  ;;  %v5619_v22 = vmul.f32 0.5, %v13247_v53  ;;  %v5736_v27 = vadd.f32 1.0, %v9827_v23  ;;  %v7452_v2 = vld [vmem:[%s14002_s10 + $0xcb0] sm:$0xff]  ;;  %v9460_v45 = vpack.c.bf16 %v7435_v8, %v7434_v6  ;;  %v7486_v6 = vld [vmem:[%s14002_s10 + $0xdc0] sm:$0xff]  ;;  %v7487_v8 = vld [vmem:[%s14002_s10 + $0xdc8] sm:$0xff] }
0x1a39   :  { %9449 = vmatpush3.bf16.msra.mxu0 %v9448_v60  ;;  %v13422_v60 = vrot.slane %v12992_v52, %v10960_v7  ;;  %9455 = vmatprep.subr.bf16.mxu1 %v9454_v16  ;;  %v9831_v58 = vpop.eup %9830  ;;  %v5812_v7 = vmul.f32 %v5764_v15, %v5620_v25  ;;  %v5765_v53 = vadd.f32 1.0, %v9829_v33  ;;  %v5797_v16 = vmul.f32 %v5749_v57, %v5605_v49  ;;  %v7484_v25 = vld [vmem:[%s14002_s10 + $0xdb0] sm:$0xff]  ;;  %v7454_v57 = vld [vmem:[%s14002_s10 + $0xcc0] sm:$0xff] }
0x1a3a   :  { %9483 = vmatprep.subr.bf16.mxu0 %v9482_v9  ;;  %v5798_v9 = vmul.f32 %v5750_v28, %v5606_v31  ;;  %v9490_v28 = vpack.c.bf16 %v7483_v38, %v7482_v48  ;;  %v5811_v32 = vmul.f32 %v5763_v10, %v5619_v22  ;;  %v13448_v15 = vadd.f32 %v12946_v56, %v13390_v19  ;;  %v14100_v39 = vld [vmem:[#allocation18_spill] sm:$0xff]  ;;  %v7469_v38 = vld [vmem:[%s14002_s10 + $0xd38] sm:$0xff] }
0x1a3b   :  { %6310 = vmatmul.mubr.f32.gmra.mrb[164].mxu1 %v5795_v13  ;;  %v5738_v11 = vadd.f32 1.0, %v9831_v58  ;;  %v5814_v31 = vmul.f32 %v5766_v3, %v5622_v61  ;;  %v9462_v56 = vpack.c.bf16 %v7453_v24, %v7452_v2  ;;  %v13470_v23 = vadd.f32 %v14100_v39, %v13422_v60  ;;  %v7455_v10 = vld [vmem:[%s14002_s10 + $0xcc8] sm:$0xff]  ;;  %v7468_v48 = vld [vmem:[%s14002_s10 + $0xd30] sm:$0xff]  ;;  %v7438_v61 = vld [vmem:[%s14002_s10 + $0xc40] sm:$0xff] }
0x1a3c   :  { %6385 = vmatmul.mubr.f32.vlgmr.msra.gmra.mrb[132].mxu0 %v5781_v50  ;;  %6314 = vmatprep.mubr.f32.mxu1 %v5812_v7  ;;  %v5784_v0 = vmul.f32 %v5736_v27, %v5592_v44  ;;  %v9492_v50 = vpack.c.bf16 %v7467_v4, %v7466_v14  ;;  %v13481_v13 = vadd.f32 %v12994_v36, %v13078_v51  ;;  %v5639_v33 = vmul.f32 0.70710677, %v13448_v15  ;;  %v14101_v3 = vld [vmem:[#allocation21_spill] sm:$0xff]  ;;  %v14102_v22 = vld [vmem:[#allocation11_spill] sm:$0xff] }
0x1a3d   :  { %6389 = vmatprep.mubr.f32.mxu0 %v5798_v9  ;;  %9485 = vmatpush3.bf16.msra.mxu0 %v9484_v20  ;;  %v7485_v20 = vld [vmem:[%s14002_s10 + $0xdb8] sm:$0xff]  ;;  %v13492_v9 = vadd.f32 %v14101_v3, %v13390_v19  ;;  %v5656_v58 = vmul.f32 0.70710677, %v13460_v1  ;;  %v13503_v49 = vadd.f32 %v13048_v40, %v13055_v35  ;;  %v13507_v7 = vrot.slane %v12992_v52, %v14102_v22  ;;  %v7439_v27 = vld [vmem:[%s14002_s10 + $0xc48] sm:$0xff]  ;;  %v7456_v2 = vld [vmem:[%s14002_s10 + $0xcd0] sm:$0xff] }
0x1a3e   :  { %9487 = vmatprep.subr.bf16.mxu0 %v9486_v30  ;;  %9457 = vmatpush3.bf16.msra.mxu1 %v9456_v17  ;;  %v5621_v30 = vmul.f32 0.5, %v13287_v59  ;;  %v5594_v59 = vmul.f32 0.5, %v13301_v34  ;;  %v9494_v34 = vpack.c.bf16 %v7485_v20, %v7484_v25  ;;  %v9464_v17 = vpack.c.bf16 %v7437_v63, %v7436_v62  ;;  %v14103_v40 = vld [vmem:[#allocation19_spill] sm:$0xff]  ;;  %v7470_v4 = vld [vmem:[%s14002_s10 + $0xd40] sm:$0xff]  ;;  %v7471_v44 = vld [vmem:[%s14002_s10 + $0xd48] sm:$0xff] }
0x1a3f   :  { %6315 = vmatmul.mubr.f32.gmra.mrb[166].mxu1 %v5811_v32  ;;  %9459 = vmatprep.subr.bf16.mxu1 %v9458_v47  ;;  %v5641_v47 = vmul.f32 0.70710677, %v13470_v23  ;;  %v13518_v35 = vadd.f32 %v14103_v40, %v13422_v60  ;;  %v7457_v24 = vld [vmem:[%s14002_s10 + $0xcd8] sm:$0xff]  ;;  %v9498_v14 = vpack.c.bf16 %v7487_v8, %v7486_v6  ;;  %9832 = verf.f32 %v5639_v33  ;;  %v7490_v33 = vld [vmem:[%s14002_s10 + $0xde0] sm:$0xff]  ;;  %v7491_v3 = vld [vmem:[%s14002_s10 + $0xde8] sm:$0xff] }
0x1a40   :  { %6390 = vmatmul.mubr.f32.gmra.mrb[134].mxu0 %v5797_v16  ;;  %v5813_v46 = vmul.f32 %v5765_v53, %v5621_v30  ;;  %6464 = vmatprep.mubr.f32.mxu1 %v5784_v0  ;;  %v5786_v36 = vmul.f32 %v5738_v11, %v5594_v59  ;;  %v5658_v53 = vmul.f32 0.70710677, %v13481_v13  ;;  %v13529_v16 = vadd.f32 %v13050_v43, %v13078_v51  ;;  %v14104_v32 = vld [vmem:[#allocation12_spill] sm:$0xff]  ;;  %v7459_v0 = vld [vmem:[%s14002_s10 + $0xce8] sm:$0xff] }
0x1a41   :  { %6394 = vmatprep.mubr.f32.mxu0 %v5814_v31  ;;  %9489 = vmatpush3.bf16.msra.mxu0 %v9488_v54  ;;  %v9466_v54 = vpack.c.bf16 %v7455_v10, %v7454_v57  ;;  %v5655_v11 = vmul.f32 0.70710677, %v13492_v9  ;;  %v13544_v43 = vadd.f32 %v13026_v21, %v13390_v19  ;;  %v9468_v51 = vpack.c.bf16 %v7439_v27, %v7438_v61  ;;  %v7488_v31 = vld [vmem:[%s14002_s10 + $0xdd0] sm:$0xff]  ;;  %v7489_v25 = vld [vmem:[%s14002_s10 + $0xdd8] sm:$0xff]  ;;  %v7458_v59 = vld [vmem:[%s14002_s10 + $0xce0] sm:$0xff] }
0x1a42   :  { %9491 = vmatprep.subr.bf16.mxu0 %v9490_v28  ;;  %9461 = vmatpush3.bf16.msra.mxu1 %v9460_v45  ;;  %v9496_v28 = vpack.c.bf16 %v7469_v38, %v7468_v48  ;;  %v13533_v45 = vrot.slane %v12992_v52, %v14104_v32  ;;  %9834 = verf.f32 %v5656_v58  ;;  %v5672_v20 = vmul.f32 0.70710677, %v13503_v49  ;;  %v7440_v19 = vld [vmem:[%s14002_s10 + $0xc50] sm:$0xff]  ;;  %v14105_v63 = vld [vmem:[#allocation20_spill] sm:$0xff]  ;;  %v7443_v8 = vld [vmem:[%s14002_s10 + $0xc68] sm:$0xff] }
0x1a43   :  { %9463 = vmatprep.subr.bf16.mxu1 %v9462_v56  ;;  %v13555_v30 = vadd.f32 %v13128_v37, %v13507_v7  ;;  %v9470_v21 = vpack.c.bf16 %v7457_v24, %v7456_v2  ;;  %v7441_v56 = vld [vmem:[%s14002_s10 + $0xc58] sm:$0xff]  ;;  %9836 = verf.f32 %v5641_v47  ;;  %v5657_v62 = vmul.f32 0.70710677, %v13518_v35  ;;  %v7442_v6 = vld [vmem:[%s14002_s10 + $0xc60] sm:$0xff]  ;;  %v7492_v24 = vld [vmem:[%s14002_s10 + $0xdf0] sm:$0xff] }
0x1a44   :  { %6395 = vmatmul.mubr.f32.gmra.mrb[136].mxu0 %v5813_v46  ;;  %v13566_v39 = vadd.f32 %v14105_v63, %v13422_v60  ;;  %v9500_v37 = vpack.c.bf16 %v7471_v44, %v7470_v4  ;;  %9838 = verf.f32 %v5658_v53  ;;  %v14106_v57 = vld [vmem:[#allocation8_spill] sm:$0xff]  ;;  %v9502_v60 = vpack.c.bf16 %v7489_v25, %v7488_v31  ;;  %v7472_v46 = vld [vmem:[%s14002_s10 + $0xd50] sm:$0xff]  ;;  %v7511_v31 = vld [vmem:[%s14002_s10 + $0xe88] sm:$0xff] }
0x1a45   :  { %9493 = vmatpush3.bf16.msra.mxu0 %v9492_v50  ;;  %6544 = vmatprep.mubr.f32.mxu0 %v5786_v36  ;;  %v5674_v50 = vmul.f32 0.70710677, %v13529_v16  ;;  %v13577_v10 = vadd.f32 %v14106_v57, %v13533_v45  ;;  %9840 = verf.f32 %v5655_v11  ;;  %v5671_v48 = vmul.f32 0.70710677, %v13544_v43  ;;  %v7461_v61 = vld [vmem:[%s14002_s10 + $0xcf8] sm:$0xff]  ;;  %v7474_v40 = vld [vmem:[%s14002_s10 + $0xd60] sm:$0xff] }
0x1a46   :  { %9495 = vmatprep.subr.bf16.mxu0 %v9494_v34  ;;  %9465 = vmatpush3.bf16.msra.mxu1 %v9464_v17  ;;  %v7473_v34 = vld [vmem:[%s14002_s10 + $0xd58] sm:$0xff]  ;;  %v9472_v38 = vpack.c.bf16 %v7441_v56, %v7440_v19  ;;  %9842 = verf.f32 %v5672_v20  ;;  %v5644_v36 = vmul.f32 0.70710677, %v13555_v30  ;;  %v9474_v17 = vpack.c.bf16 %v7459_v0, %v7458_v59  ;;  %v7542_v63 = vld [vmem:[%s14002_s10 + $0xf80] sm:$0xff] }
0x1a47   :  { %9467 = vmatprep.subr.bf16.mxu1 %v9466_v54  ;;  %9844 = verf.f32 %v5657_v62  ;;  %v5673_v58 = vmul.f32 0.70710677, %v13566_v39  ;;  %v9504_v22 = vpack.c.bf16 %v7473_v34, %v7472_v46  ;;  %v7460_v54 = vld [vmem:[%s14002_s10 + $0xcf0] sm:$0xff]  ;;  %v5646_v27 = vmul.f32 0.70710677, %v13577_v10  ;;  %v7493_v53 = vld [vmem:[%s14002_s10 + $0xdf8] sm:$0xff] }
0x1a48   :  { %9846 = verf.f32 %v5674_v50  ;;  %v9506_v47 = vpack.c.bf16 %v7491_v3, %v7490_v33  ;;  %v9476_v2 = vpack.c.bf16 %v7443_v8, %v7442_v6  ;;  %v9478_v32 = vpack.c.bf16 %v7461_v61, %v7460_v54  ;;  %v7445_v4 = vld [vmem:[%s14002_s10 + $0xc78] sm:$0xff]  ;;  %v7494_v59 = vld [vmem:[%s14002_s10 + $0xe00] sm:$0xff]  ;;  %v13657_v34 = vld [vmem:[%s14002_s10 + $0xf08] sm:$0xff] }
0x1a49   :  { %9497 = vmatpush3.bf16.msra.mxu0 %v9496_v28  ;;  %v7475_v28 = vld [vmem:[%s14002_s10 + $0xd68] sm:$0xff]  ;;  %9848 = verf.f32 %v5671_v48  ;;  %v9833_v44 = vpop.eup %9832  ;;  %v9510_v20 = vpack.c.bf16 %v7493_v53, %v7492_v24  ;;  %v7477_v19 = vld [vmem:[%s14002_s10 + $0xd78] sm:$0xff]  ;;  %v13652_v46 = vld [vmem:[%s14002_s10 + $0xf00] sm:$0xff] }
0x1a4a   :  { %9499 = vmatprep.subr.bf16.mxu0 %v9498_v14  ;;  %9469 = vmatpush3.bf16.msra.mxu1 %v9468_v51  ;;  %9850 = verf.f32 %v5644_v36  ;;  %v7444_v14 = vld [vmem:[%s14002_s10 + $0xc70] sm:$0xff]  ;;  %v9508_v11 = vpack.c.bf16 %v7475_v28, %v7474_v40  ;;  %v7510_v51 = vld [vmem:[%s14002_s10 + $0xe80] sm:$0xff]  ;;  %v5735_v50 = vadd.f32 1.0, %v9833_v44  ;;  %v7513_v6 = vld [vmem:[%s14002_s10 + $0xe98] sm:$0xff] }
0x1a4b   :  { %9471 = vmatprep.subr.bf16.mxu1 %v9470_v21  ;;  %9852 = verf.f32 %v5673_v58  ;;  %v7476_v21 = vld [vmem:[%s14002_s10 + $0xd70] sm:$0xff]  ;;  %v9480_v62 = vpack.c.bf16 %v7445_v4, %v7444_v14  ;;  %v9514_v57 = vpack.c.bf16 %v7511_v31, %v7510_v51  ;;  %v14107_v33 = vld [vmem:[#allocation13_spill] sm:$0xff]  ;;  %v5591_v58 = vmul.f32 0.5, %v13448_v15  ;;  %v7545_v40 = vld [vmem:[%s14002_s10 + $0xf98] sm:$0xff] }
0x1a4c   :  { %v9835_v25 = vpop.eup %9834  ;;  %9854 = verf.f32 %v5646_v27  ;;  %v13661_v3 = vrot.slane %v12992_v52, %v14107_v33  ;;  %v9512_v36 = vpack.c.bf16 %v7477_v19, %v7476_v21  ;;  %v14108_v54 = vld [vmem:[#allocation15_spill] sm:$0xff]  ;;  %v7499_v33 = vld [vmem:[%s14002_s10 + $0xe28] sm:$0xff] }
0x1a4d   :  { %9501 = vmatpush3.bf16.msra.mxu0 %v9500_v37  ;;  %v9837_v56 = vpop.eup %9836  ;;  %v7543_v37 = vld [vmem:[%s14002_s10 + $0xf88] sm:$0xff]  ;;  %v13672_v61 = vrot.slane %v12992_v52, %v14108_v54  ;;  %v9548_v52 = vpack.c.bf16 %v13657_v34, %v13652_v46  ;;  %v13688_v53 = vld [vmem:[%s14002_s10 + $0xe10] sm:$0xff]  ;;  %v5783_v4 = vmul.f32 %v5735_v50, %v5591_v58  ;;  %v13704_v31 = vld [vmem:[%s14002_s10 + $0xf18] sm:$0xff]  ;;  %v5624_v46 = vmul.f32 0.5, %v13503_v49 }
0x1a4e   :  { %9503 = vmatprep.subr.bf16.mxu0 %v9502_v60  ;;  %9473 = vmatpush3.bf16.msra.mxu1 %v9472_v38  ;;  %v9839_v0 = vpop.eup %9838  ;;  %v7495_v60 = vld [vmem:[%s14002_s10 + $0xe08] sm:$0xff]  ;;  %v5752_v38 = vadd.f32 1.0, %v9835_v25  ;;  %v9546_v27 = vpack.c.bf16 %v7543_v37, %v7542_v63  ;;  %v13699_v51 = vld [vmem:[%s14002_s10 + $0xf10] sm:$0xff]  ;;  %v7546_v50 = vld [vmem:[%s14002_s10 + $0xfa0] sm:$0xff]  ;;  %v5626_v58 = vmul.f32 0.5, %v13529_v16 }
0x1a4f   :  { %9475 = vmatprep.subr.bf16.mxu1 %v9474_v17  ;;  %v9841_v48 = vpop.eup %9840  ;;  %v7512_v17 = vld [vmem:[%s14002_s10 + $0xe90] sm:$0xff]  ;;  %v5754_v15 = vadd.f32 1.0, %v9839_v0  ;;  %v9516_v24 = vpack.c.bf16 %v7495_v60, %v7494_v59  ;;  %v5607_v59 = vmul.f32 0.5, %v13492_v9 }
0x1a50   :  { %v9843_v8 = vpop.eup %9842  ;;  %v5751_v44 = vadd.f32 1.0, %v9841_v48  ;;  %v9552_v48 = vpack.c.bf16 %v13704_v31, %v13699_v51  ;;  %v7500_v31 = vld [vmem:[%s14002_s10 + $0xe30] sm:$0xff] }
0x1a51   :  { %9505 = vmatpush3.bf16.msra.mxu0 %v9504_v22  ;;  %v5737_v22 = vadd.f32 1.0, %v9837_v56  ;;  %v9845_v28 = vpop.eup %9844  ;;  %v5768_v21 = vadd.f32 1.0, %v9843_v8  ;;  %v7514_v56 = vld [vmem:[%s14002_s10 + $0xea0] sm:$0xff] }
0x1a52   :  { %9507 = vmatprep.subr.bf16.mxu0 %v9506_v47  ;;  %9477 = vmatpush3.bf16.msra.mxu1 %v9476_v2  ;;  %v13677_v47 = vld [vmem:[%s14002_s10 + $0xf90] sm:$0xff]  ;;  %v5608_v2 = vmul.f32 0.5, %v13460_v1  ;;  %v9847_v14 = vpop.eup %9846  ;;  %v5593_v1 = vmul.f32 0.5, %v13470_v23  ;;  %v5753_v0 = vadd.f32 1.0, %v9845_v28  ;;  %v5799_v49 = vmul.f32 %v5751_v44, %v5607_v59  ;;  %v7533_v59 = vld [vmem:[%s14002_s10 + $0xf38] sm:$0xff] }
0x1a53   :  { %9479 = vmatprep.subr.bf16.mxu1 %v9478_v32  ;;  %v13693_v32 = vld [vmem:[%s14002_s10 + $0xe18] sm:$0xff]  ;;  %v9849_v25 = vpop.eup %9848  ;;  %v9550_v23 = vpack.c.bf16 %v7545_v40, %v13677_v47  ;;  %v5770_v34 = vadd.f32 1.0, %v9847_v14  ;;  %v5816_v54 = vmul.f32 %v5768_v21, %v5624_v46  ;;  %v7516_v47 = vld [vmem:[%s14002_s10 + $0xeb0] sm:$0xff]  ;;  %v5623_v40 = vmul.f32 0.5, %v13544_v43 }
0x1a54   :  { %v5800_v19 = vmul.f32 %v5752_v38, %v5608_v2  ;;  %v9851_v63 = vpop.eup %9850  ;;  %v5785_v37 = vmul.f32 %v5737_v22, %v5593_v1  ;;  %v7498_v38 = vld [vmem:[%s14002_s10 + $0xe20] sm:$0xff]  ;;  %v7549_v1 = vld [vmem:[%s14002_s10 + $0xfb8] sm:$0xff]  ;;  %v5625_v44 = vmul.f32 0.5, %v13566_v39  ;;  %v5598_v39 = vmul.f32 0.5, %v13577_v10 }
0x1a55   :  { %9509 = vmatpush3.bf16.msra.mxu0 %v9508_v11  ;;  %v9518_v11 = vpack.c.bf16 %v7513_v6, %v7512_v17  ;;  %v9853_v60 = vpop.eup %9852  ;;  %v5609_v17 = vmul.f32 0.5, %v13518_v35  ;;  %v5767_v6 = vadd.f32 1.0, %v9849_v25  ;;  %v5740_v22 = vadd.f32 1.0, %v9851_v63  ;;  %v7517_v35 = vld [vmem:[%s14002_s10 + $0xeb8] sm:$0xff] }
0x1a56   :  { %9511 = vmatprep.subr.bf16.mxu0 %v9510_v20  ;;  %9481 = vmatpush3.bf16.msra.mxu1 %v9480_v62  ;;  %v5610_v20 = vmul.f32 0.5, %v13481_v13  ;;  %v7515_v62 = vld [vmem:[%s14002_s10 + $0xea8] sm:$0xff]  ;;  %v9520_v13 = vpack.c.bf16 %v13693_v32, %v13688_v53  ;;  %v5769_v28 = vadd.f32 1.0, %v9853_v60  ;;  %v9524_v16 = vpack.c.bf16 %v7499_v33, %v7498_v38  ;;  %v7501_v25 = vld [vmem:[%s14002_s10 + $0xe38] sm:$0xff] }
0x1a57   :  { %9515 = vmatprep.subr.bf16.mxu1 %v9514_v57  ;;  %v7547_v57 = vld [vmem:[%s14002_s10 + $0xfa8] sm:$0xff]  ;;  %v9522_v8 = vpack.c.bf16 %v7515_v62, %v7514_v56  ;;  %v5801_v2 = vmul.f32 %v5753_v0, %v5609_v17  ;;  %v5596_v32 = vmul.f32 0.5, %v13555_v30  ;;  %v5818_v14 = vmul.f32 %v5770_v34, %v5626_v58 }
0x1a58   :  { %v5802_v9 = vmul.f32 %v5754_v15, %v5610_v20  ;;  %v7530_v15 = vld [vmem:[%s14002_s10 + $0xf20] sm:$0xff]  ;;  %v5815_v30 = vmul.f32 %v5767_v6, %v5623_v40  ;;  %v9526_v51 = vpack.c.bf16 %v7517_v35, %v7516_v47  ;;  %v14110_v20 = vld [vmem:[#allocation7_spill] sm:$0xff]  ;;  %v7519_v56 = vld [vmem:[%s14002_s10 + $0xec8] sm:$0xff]  ;;  %v13782_v62 = vadd.f32 %v13193_v26, %v13533_v45 }
0x1a59   :  { %9513 = vmatpush3.bf16.msra.mxu0 %v9512_v36  ;;  %6465 = vmatmul.mubr.f32.vlgmr.msra.gmra.mrb[168].mxu1 %v5783_v4  ;;  %v9855_v36 = vpop.eup %9854  ;;  %v7548_v4 = vld [vmem:[%s14002_s10 + $0xfb0] sm:$0xff]  ;;  %v13771_v21 = vadd.f32 %v14110_v20, %v13672_v61  ;;  %v5817_v63 = vmul.f32 %v5769_v28, %v5625_v44  ;;  %v7551_v60 = vld [vmem:[%s14002_s10 + $0xfc8] sm:$0xff]  ;;  %v13804_v34 = vadd.f32 %v13229_v18, %v13507_v7 }
0x1a5a   :  { %9547 = vmatprep.subr.bf16.mxu0 %v9546_v27  ;;  %6469 = vmatprep.mubr.f32.mxu1 %v5800_v19  ;;  %v9554_v27 = vpack.c.bf16 %v7547_v57, %v7546_v50  ;;  %v5742_v43 = vadd.f32 1.0, %v9855_v36  ;;  %v9558_v10 = vpack.c.bf16 %v7549_v1, %v7548_v4  ;;  %v9528_v50 = vpack.c.bf16 %v7501_v25, %v7500_v31  ;;  %v7550_v57 = vld [vmem:[%s14002_s10 + $0xfc0] sm:$0xff]  ;;  %v7521_v36 = vld [vmem:[%s14002_s10 + $0xed8] sm:$0xff]  ;;  %v7507_v44 = vld [vmem:[%s14002_s10 + $0xe68] sm:$0xff] }
0x1a5b   :  { %9517 = vmatpush3.bf16.msra.mxu1 %v9516_v24  ;;  %v7531_v24 = vld [vmem:[%s14002_s10 + $0xf28] sm:$0xff]  ;;  %v5645_v38 = vmul.f32 0.70710677, %v13771_v21  ;;  %v13815_v33 = vadd.f32 %v13166_v55, %v13672_v61  ;;  %v5662_v17 = vmul.f32 0.70710677, %v13782_v62  ;;  %v13826_v6 = vadd.f32 %v13231_v12, %v13533_v45  ;;  %v7552_v45 = vld [vmem:[%s14002_s10 + $0xfd0] sm:$0xff] }
0x1a5c   :  { %6545 = vmatmul.mubr.f32.vlgmr.msra.gmra.mrb[138].mxu0 %v5785_v37  ;;  %9519 = vmatprep.subr.bf16.mxu1 %v9518_v11  ;;  %v13761_v11 = vadd.f32 %v13181_v41, %v13507_v7  ;;  %v5788_v41 = vmul.f32 %v5740_v22, %v5596_v32  ;;  %v9556_v19 = vpack.c.bf16 %v7531_v24, %v7530_v15  ;;  %v7532_v37 = vld [vmem:[%s14002_s10 + $0xf30] sm:$0xff]  ;;  %v7506_v1 = vld [vmem:[%s14002_s10 + $0xe60] sm:$0xff]  ;;  %v7525_v25 = vld [vmem:[%s14002_s10 + $0xef8] sm:$0xff] }
0x1a5d   :  { %6549 = vmatprep.mubr.f32.mxu0 %v5802_v9  ;;  %9549 = vmatpush3.bf16.msra.mxu0 %v9548_v52  ;;  %v14109_v52 = vld [vmem:[#allocation6_spill] sm:$0xff]  ;;  %v5790_v26 = vmul.f32 %v5742_v43, %v5598_v39  ;;  %v7502_v9 = vld [vmem:[%s14002_s10 + $0xe40] sm:$0xff]  ;;  %v9560_v18 = vpack.c.bf16 %v7533_v59, %v7532_v37  ;;  %v9562_v55 = vpack.c.bf16 %v7551_v60, %v7550_v57  ;;  %v5661_v35 = vmul.f32 0.70710677, %v13815_v33  ;;  %v7509_v37 = vld [vmem:[%s14002_s10 + $0xe78] sm:$0xff] }
0x1a5e   :  { %6470 = vmatmul.mubr.f32.gmra.mrb[170].mxu1 %v5799_v49  ;;  %9551 = vmatprep.subr.bf16.mxu0 %v9550_v23  ;;  %v13749_v53 = vadd.f32 %v14109_v52, %v13661_v3  ;;  %v7518_v23 = vld [vmem:[%s14002_s10 + $0xec0] sm:$0xff]  ;;  %v5660_v46 = vmul.f32 0.70710677, %v13761_v11  ;;  %v7520_v7 = vld [vmem:[%s14002_s10 + $0xed0] sm:$0xff]  ;;  %v13837_v22 = vadd.f32 %v13212_v29, %v13661_v3  ;;  %v13855_v40 = vadd.f32 %v13214_v42, %v13672_v61  ;;  %v7537_v61 = vld [vmem:[%s14002_s10 + $0xf58] sm:$0xff] }
0x1a5f   :  { %6474 = vmatprep.mubr.f32.mxu1 %v5816_v54  ;;  %9521 = vmatpush3.bf16.msra.mxu1 %v9520_v13  ;;  %v13793_v13 = vadd.f32 %v13164_v5, %v13661_v3  ;;  %v9530_v5 = vpack.c.bf16 %v7519_v56, %v7518_v23  ;;  %v7534_v49 = vld [vmem:[%s14002_s10 + $0xf40] sm:$0xff]  ;;  %v7553_v54 = vld [vmem:[%s14002_s10 + $0xfd8] sm:$0xff]  ;;  %v9534_v47 = vpack.c.bf16 %v7521_v36, %v7520_v7  ;;  %v7504_v29 = vld [vmem:[%s14002_s10 + $0xe50] sm:$0xff]  ;;  %v5678_v15 = vmul.f32 0.70710677, %v13826_v6 }
0x1a60   :  { %6550 = vmatmul.mubr.f32.gmra.mrb[140].mxu0 %v5801_v2  ;;  %9523 = vmatprep.subr.bf16.mxu1 %v9522_v8  ;;  %v5643_v0 = vmul.f32 0.70710677, %v13749_v53  ;;  %v7535_v8 = vld [vmem:[%s14002_s10 + $0xf48] sm:$0xff]  ;;  %v7505_v3 = vld [vmem:[%s14002_s10 + $0xe58] sm:$0xff]  ;;  %v7522_v2 = vld [vmem:[%s14002_s10 + $0xee0] sm:$0xff]  ;;  %v9566_v24 = vpack.c.bf16 %v7553_v54, %v7552_v45  ;;  %v5597_v54 = vmul.f32 0.5, %v13771_v21 }
0x1a61   :  { %6554 = vmatprep.mubr.f32.mxu0 %v5818_v14  ;;  %9553 = vmatpush3.bf16.msra.mxu0 %v9552_v48  ;;  %v7503_v48 = vld [vmem:[%s14002_s10 + $0xe48] sm:$0xff]  ;;  %v5659_v58 = vmul.f32 0.70710677, %v13793_v13  ;;  %v9564_v28 = vpack.c.bf16 %v7535_v8, %v7534_v49  ;;  %v7536_v42 = vld [vmem:[%s14002_s10 + $0xf50] sm:$0xff]  ;;  %v5675_v52 = vmul.f32 0.70710677, %v13837_v22  ;;  %v9536_v32 = vpack.c.bf16 %v7505_v3, %v7504_v29 }
0x1a62   :  { %6475 = vmatmul.mubr.f32.gmra.mrb[172].mxu1 %v5815_v30  ;;  %9555 = vmatprep.subr.bf16.mxu0 %v9554_v27  ;;  %9856 = verf.f32 %v5643_v0  ;;  %v9532_v12 = vpack.c.bf16 %v7503_v48, %v7502_v9  ;;  %v5676_v27 = vmul.f32 0.70710677, %v13804_v34  ;;  %v7554_v43 = vld [vmem:[%s14002_s10 + $0xfe0] sm:$0xff]  ;;  %v7555_v14 = vld [vmem:[%s14002_s10 + $0xfe8] sm:$0xff]  ;;  %v5677_v30 = vmul.f32 0.70710677, %v13855_v40 }
0x1a63   :  { %9525 = vmatpush3.bf16.msra.mxu1 %v9524_v16  ;;  %6624 = vmatprep.mubr.f32.mxu1 %v5788_v41  ;;  %9858 = verf.f32 %v5660_v46  ;;  %v7523_v16 = vld [vmem:[%s14002_s10 + $0xee8] sm:$0xff]  ;;  %v7524_v31 = vld [vmem:[%s14002_s10 + $0xef0] sm:$0xff]  ;;  %v9570_v20 = vpack.c.bf16 %v7555_v14, %v7554_v43  ;;  %v7538_v39 = vld [vmem:[%s14002_s10 + $0xf60] sm:$0xff]  ;;  %v5612_v8 = vmul.f32 0.5, %v13761_v11  ;;  %v5614_v3 = vmul.f32 0.5, %v13782_v62 }
0x1a64   :  { %6555 = vmatmul.mubr.f32.gmra.mrb[142].mxu0 %v5817_v63  ;;  %9527 = vmatprep.subr.bf16.mxu1 %v9526_v51  ;;  %9860 = verf.f32 %v5645_v38  ;;  %v9538_v4 = vpack.c.bf16 %v7523_v16, %v7522_v2  ;;  %v9568_v51 = vpack.c.bf16 %v7537_v61, %v7536_v42  ;;  %v7539_v41 = vld [vmem:[%s14002_s10 + $0xf68] sm:$0xff]  ;;  %v7556_v23 = vld [vmem:[%s14002_s10 + $0xff0] sm:$0xff]  ;;  %v7557_v56 = vld [vmem:[%s14002_s10 + $0xff8] sm:$0xff]  ;;  %v9542_v63 = vpack.c.bf16 %v7525_v25, %v7524_v31 }
0x1a65   :  { %9557 = vmatpush3.bf16.msra.mxu0 %v9556_v19  ;;  %6704 = vmatprep.mubr.f32.mxu0 %v5790_v26  ;;  %9862 = verf.f32 %v5662_v17  ;;  %v9540_v19 = vpack.c.bf16 %v7507_v44, %v7506_v1  ;;  %v9572_v0 = vpack.c.bf16 %v7539_v41, %v7538_v39  ;;  %v7540_v57 = vld [vmem:[%s14002_s10 + $0xf70] sm:$0xff]  ;;  %v7541_v60 = vld [vmem:[%s14002_s10 + $0xf78] sm:$0xff]  ;;  %v5595_v17 = vmul.f32 0.5, %v13749_v53 }
0x1a66   :  { %9559 = vmatprep.subr.bf16.mxu0 %v9558_v10  ;;  %9864 = verf.f32 %v5659_v58  ;;  %v7508_v10 = vld [vmem:[%s14002_s10 + $0xe70] sm:$0xff]  ;;  %v9576_v7 = vpack.c.bf16 %v7541_v60, %v7540_v57  ;;  %v5611_v2 = vmul.f32 0.5, %v13793_v13  ;;  %v5613_v42 = vmul.f32 0.5, %v13815_v33 }
0x1a67   :  { %9529 = vmatpush3.bf16.msra.mxu1 %v9528_v50  ;;  %9866 = verf.f32 %v5676_v27  ;;  %v9574_v50 = vpack.c.bf16 %v7557_v56, %v7556_v23  ;;  %v5627_v13 = vmul.f32 0.5, %v13837_v22  ;;  %v14112_v44 = vmov 0.0  }
0x1a68   :  { %9531 = vmatprep.subr.bf16.mxu1 %v9530_v5  ;;  %9868 = verf.f32 %v5661_v35  ;;  %v9544_v5 = vpack.c.bf16 %v7509_v37, %v7508_v10 }
0x1a69   :  { %9561 = vmatpush3.bf16.msra.mxu0 %v9560_v18  ;;  %9870 = verf.f32 %v5678_v15  ;;  %v5628_v15 = vmul.f32 0.5, %v13804_v34  ;;  %v5629_v34 = vmul.f32 0.5, %v13855_v40 }
0x1a6a   :  { %9563 = vmatprep.subr.bf16.mxu0 %v9562_v55  ;;  %9872 = verf.f32 %v5675_v52  ;;  %v5630_v52 = vmul.f32 0.5, %v13826_v6 }
0x1a6b   :  { %9533 = vmatpush3.bf16.msra.mxu1 %v9532_v12  ;;  %9874 = verf.f32 %v5677_v30 }
0x1a6c   :  { %9535 = vmatprep.subr.bf16.mxu1 %v9534_v47  ;;  %v9857_v59 = vpop.eup %9856  ;;  %v14111_v47 = vmov 0.0|0.0  }
0x1a6d   :  { %9565 = vmatpush3.bf16.msra.mxu0 %v9564_v28  ;;  %v9859_v26 = vpop.eup %9858  ;;  %v5739_v48 = vadd.f32 1.0, %v9857_v59 }
0x1a6e   :  { %9567 = vmatprep.subr.bf16.mxu0 %v9566_v24  ;;  %v9861_v46 = vpop.eup %9860  ;;  %v5756_v18 = vadd.f32 1.0, %v9859_v26 }
0x1a6f   :  { %9537 = vmatpush3.bf16.msra.mxu1 %v9536_v32  ;;  %v9863_v9 = vpop.eup %9862  ;;  %v5741_v55 = vadd.f32 1.0, %v9861_v46  ;;  %v5787_v45 = vmul.f32 %v5739_v48, %v5595_v17 }
0x1a70   :  { %9539 = vmatprep.subr.bf16.mxu1 %v9538_v4  ;;  %v9865_v38 = vpop.eup %9864  ;;  %v5758_v58 = vadd.f32 1.0, %v9863_v9  ;;  %v5804_v53 = vmul.f32 %v5756_v18, %v5612_v8 }
0x1a71   :  { %9569 = vmatpush3.bf16.msra.mxu0 %v9568_v51  ;;  %v9867_v36 = vpop.eup %9866  ;;  %v5755_v27 = vadd.f32 1.0, %v9865_v38  ;;  %v5789_v28 = vmul.f32 %v5741_v55, %v5597_v54 }
0x1a72   :  { %9571 = vmatprep.subr.bf16.mxu0 %v9570_v20  ;;  %v9869_v49 = vpop.eup %9868  ;;  %v5772_v35 = vadd.f32 1.0, %v9867_v36  ;;  %v5806_v24 = vmul.f32 %v5758_v58, %v5614_v3 }
0x1a73   :  { %9541 = vmatpush3.bf16.msra.mxu1 %v9540_v19  ;;  %v9871_v12 = vpop.eup %9870  ;;  %v5757_v16 = vadd.f32 1.0, %v9869_v49  ;;  %v5803_v62 = vmul.f32 %v5755_v27, %v5611_v2 }
0x1a74   :  { %9543 = vmatprep.subr.bf16.mxu1 %v9542_v63  ;;  %v9873_v29 = vpop.eup %9872  ;;  %v5774_v21 = vadd.f32 1.0, %v9871_v12  ;;  %v5820_v32 = vmul.f32 %v5772_v35, %v5628_v15 }
0x1a75   :  { %9573 = vmatpush3.bf16.msra.mxu0 %v9572_v0  ;;  %v9875_v11 = vpop.eup %9874  ;;  %v5771_v61 = vadd.f32 1.0, %v9873_v29  ;;  %v5805_v14 = vmul.f32 %v5757_v16, %v5613_v42 }
0x1a76   :  { %9575 = vmatprep.subr.bf16.mxu0 %v9574_v50  ;;  %v5773_v43 = vadd.f32 1.0, %v9875_v11  ;;  %v5822_v4 = vmul.f32 %v5774_v21, %v5630_v52 }
0x1a77   :  { %9545 = vmatpush3.bf16.msra.mxu1 %v9544_v5  ;;  %v5819_v1 = vmul.f32 %v5771_v61, %v5627_v13 }
0x1a78   :  { %9578 = vmatprep.subr.bf16.mxu1 %v14111_v47  ;;  %v5821_v33 = vmul.f32 %v5773_v43, %v5629_v34 }
0x1a79   :  { %9577 = vmatpush3.bf16.msra.mxu0 %v9576_v7 }
0x1a7a   :  { %6625 = vmatmul.mubr.f32.vlgmr.msra.gmra.mrb[174].mxu1 %v5787_v45  ;;  %9581 = vmatprep.subr.bf16.mxu0 %v14111_v47 }
0x1a7b   :  { %6629 = vmatprep.mubr.f32.mxu1 %v5804_v53 }
0x1a7c   :  { %6705 = vmatmul.mubr.f32.vlgmr.msra.gmra.mrb[144].mxu0 %v5789_v28 }
0x1a7d   :  { %6709 = vmatprep.mubr.f32.mxu0 %v5806_v24 }
0x1a7e   :  { %6630 = vmatmul.mubr.f32.gmra.mrb[176].mxu1 %v5803_v62 }
0x1a7f   :  { %6634 = vmatprep.mubr.f32.mxu1 %v5820_v32 }
0x1a80   :  { %6710 = vmatmul.mubr.f32.gmra.mrb[146].mxu0 %v5805_v14 }
0x1a81   :  { %6714 = vmatprep.mubr.f32.mxu0 %v5822_v4 }
0x1a82   :  { %6635 = vmatmul.mubr.f32.gmra.mrb[178].mxu1 %v5819_v1 }
0x1a83   :  { %8769 = vmatprep.mubr.msk.f32.mxu1 %vm9908_vm3, %v14112_v44 }
0x1a84   :  { %6715 = vmatmul.mubr.f32.gmra.mrb[148].mxu0 %v5821_v33 }
0x1a85   :  { %8780 = vmatprep.mubr.msk.f32.mxu0 %vm9908_vm3, %v14112_v44 }
0x1ae6   :  { %v8120_v22 = vpop.f32.mrb[126].mxu0 }
0x1ae7   :  { %v8121_v51 = vpop.f32.mrb[127].mxu0 }
0x1ae8   :  { %v8122_v25 = vadd.f32 %v8121_v51, %v8120_v22 }
0x1aea   :  { %v8079_v6 = vpop.f32.mrb[156].mxu1 }
0x1aeb   :  { %v8080_v30 = vpop.f32.mrb[157].mxu1 }
0x1aec   :  { %v8081_v31 = vadd.f32 %v8080_v30, %v8079_v6 }
0x1aee   :  { %v6227_v20 = vadd.f32 %v8122_v25, %v8081_v31  ;;  %v8082_v40 = vpop.f32.mrb[158].mxu1 }
0x1aef   :  { %v8123_v39 = vpop.f32.mrb[128].mxu0  ;;  %v8083_v41 = vpop.f32.mrb[159].mxu1 }
0x1af0   :  { %v8084_v19 = vadd.f32 %v8083_v41, %v8082_v40  ;;  %v8124_v23 = vpop.f32.mrb[129].mxu0 }
0x1af1   :  { %v8125_v56 = vadd.f32 %v8124_v23, %v8123_v39 }
0x1af3   :  { %v6232_v63 = vadd.f32 %v8125_v56, %v8084_v19 }
0x1af5   :  { %v8126_v37 = vpop.f32.mrb[130].mxu0 }
0x1af6   :  { %v8085_v10 = vpop.f32.mrb[160].mxu1  ;;  %v8127_v26 = vpop.f32.mrb[131].mxu0 }
0x1af7   :  { %v8086_v59 = vpop.f32.mrb[161].mxu1  ;;  %v8128_v50 = vadd.f32 %v8127_v26, %v8126_v37 }
0x1af8   :  { %v8087_v0 = vadd.f32 %v8086_v59, %v8085_v10 }
0x1afa   :  { %v6237_v57 = vadd.f32 %v8128_v50, %v8087_v0 }
0x1b0a   :  { %v8161_v60 = vpop.f32.mrb[162].mxu1 }
0x1b0b   :  { %v8162_v46 = vpop.f32.mrb[163].mxu1 }
0x1b0c   :  { %v8163_v5 = vadd.f32 %v8162_v46, %v8161_v60 }
0x1b0e   :  { %v6307_v48 = vadd.f32 %v8163_v5, %v6227_v20  ;;  %v8164_v38 = vpop.f32.mrb[164].mxu1 }
0x1b0f   :  { %v8202_v9 = vpop.f32.mrb[132].mxu0  ;;  %v8165_v7 = vpop.f32.mrb[165].mxu1 }
0x1b10   :  { %v8203_v18 = vpop.f32.mrb[133].mxu0  ;;  %v8166_v17 = vadd.f32 %v8165_v7, %v8164_v38 }
0x1b11   :  { %v8204_v36 = vadd.f32 %v8203_v18, %v8202_v9  ;;  %v14113_v9 = vld [vmem:[#allocation14_spill] sm:$0xff] }
0x1b12   :  { %v6312_v8 = vadd.f32 %v8166_v17, %v6232_v63  ;;  %v8167_v58 = vpop.f32.mrb[166].mxu1 }
0x1b13   :  { %v6387_v55 = vadd.f32 %v8204_v36, %v6307_v48  ;;  %v8205_v49 = vpop.f32.mrb[134].mxu0  ;;  %v8168_v45 = vpop.f32.mrb[167].mxu1  ;;  %v7558_v36 = vld [vmem:[%s13997_s5 + $0xb] ss:$0 sm:$0xff] }
0x1b14   :  { %v8206_v12 = vpop.f32.mrb[135].mxu0  ;;  %v8169_v27 = vadd.f32 %v8168_v45, %v8167_v58 }
0x1b15   :  { %v8207_v54 = vadd.f32 %v8206_v12, %v8205_v49 }
0x1b16   :  { %v6317_v35 = vadd.f32 %v8169_v27, %v6237_v57  ;;  %v14115_v27 = vld [vmem:[#allocation17_spill] sm:$0xff] }
0x1b17   :  { %v6392_v29 = vadd.f32 %v8207_v54, %v6312_v8  ;;  %v8208_v3 = vpop.f32.mrb[136].mxu0 }
0x1b18   :  { %v8209_v53 = vpop.f32.mrb[137].mxu0 }
0x1b19   :  { %v8210_v28 = vadd.f32 %v8209_v53, %v8208_v3  ;;  %v6732_v53 = vld [vmem:[%s13996_s4] sm:$0x3] }
0x1b1b   :  { %v6397_v2 = vadd.f32 %v8210_v28, %v6317_v35 }
0x1b2c   :  { %v8243_v16 = vpop.f32.mrb[168].mxu1 }
0x1b2d   :  { %v8244_v11 = vpop.f32.mrb[169].mxu1 }
0x1b2e   :  { %v8245_v21 = vadd.f32 %v8244_v11, %v8243_v16 }
0x1b2f   :  { %v8284_v15 = vpop.f32.mrb[138].mxu0 }
0x1b30   :  { %v8285_v24 = vpop.f32.mrb[139].mxu0  ;;  %v6467_v42 = vadd.f32 %v8245_v21, %v6387_v55  ;;  %v14114_v55 = vld [vmem:[#allocation16_spill] sm:$0xff] }
0x1b31   :  { %v8286_v61 = vadd.f32 %v8285_v24, %v8284_v15  ;;  %v8246_v62 = vpop.f32.mrb[170].mxu1 }
0x1b32   :  { %v8247_v52 = vpop.f32.mrb[171].mxu1 }
0x1b33   :  { %v6547_v32 = vadd.f32 %v8286_v61, %v6467_v42  ;;  %v8287_v13 = vpop.f32.mrb[140].mxu0  ;;  %v8248_v43 = vadd.f32 %v8247_v52, %v8246_v62  ;;  %v6838_v61 = vld [vmem:[%s14005_s13] sm:$0xff]  ;;  %v6840_v62 = vld [vmem:[%s14005_s13 + $0x10] sm:$0xff] }
0x1b34   :  { %v8288_v14 = vpop.f32.mrb[141].mxu0 }
0x1b35   :  { %v6472_v4 = vadd.f32 %v8248_v43, %v6392_v29  ;;  %v8289_v34 = vadd.f32 %v8288_v14, %v8287_v13  ;;  %v8249_v1 = vpop.f32.mrb[172].mxu1 }
0x1b36   :  { %v8250_v33 = vpop.f32.mrb[173].mxu1 }
0x1b37   :  { %v6552_v6 = vadd.f32 %v8289_v34, %v6472_v4  ;;  %v8290_v22 = vpop.f32.mrb[142].mxu0  ;;  %v8251_v30 = vadd.f32 %v8250_v33, %v8249_v1  ;;  %v7561_v1 = vld [vmem:[%s14003_s11] ss:$0 sm:$0xff] }
0x1b38   :  { %v8291_v51 = vpop.f32.mrb[143].mxu0 }
0x1b39   :  { %v6477_v31 = vadd.f32 %v8251_v30, %v6397_v2  ;;  %v8292_v25 = vadd.f32 %v8291_v51, %v8290_v22  ;;  %v6928_v51 = vld [vmem:[%s14007_s15 + $0x8] sm:$0xff] }
0x1b3b   :  { %v6557_v20 = vadd.f32 %v8292_v25, %v6477_v31  ;;  %v7563_v25 = vld [vmem:[%s14006_s14] ss:$0 sm:$0xff] }
0x1b4d   :  { %v8325_v40 = vpop.f32.mrb[174].mxu1 }
0x1b4e   :  { %v8326_v39 = vpop.f32.mrb[175].mxu1 }
0x1b4f   :  { %v8366_v41 = vpop.f32.mrb[144].mxu0  ;;  %v8327_v19 = vadd.f32 %v8326_v39, %v8325_v40 }
0x1b50   :  { %v8367_v23 = vpop.f32.mrb[145].mxu0 }
0x1b51   :  { %v6627_v56 = vadd.f32 %v8327_v19, %v6547_v32  ;;  %v8368_v63 = vadd.f32 %v8367_v23, %v8366_v41  ;;  %v8328_v10 = vpop.f32.mrb[176].mxu1  ;;  %v6841_v32 = vld [vmem:[%s14005_s13 + $0x18] sm:$0xff] }
0x1b52   :  { %v8329_v37 = vpop.f32.mrb[177].mxu1  ;;  %v9585_v13 = vpack.c.bf16 %v6841_v32, %v6840_v62 }
0x1b53   :  { %v6707_v59 = vadd.f32 %v8368_v63, %v6627_v56  ;;  %v8369_v0 = vpop.f32.mrb[146].mxu0  ;;  %v8330_v26 = vadd.f32 %v8329_v37, %v8328_v10  ;;  %v7565_v10 = vld [vmem:[%s14008_s16] ss:$0 sm:$0xff] }
0x1b54   :  { %v8370_v50 = vpop.f32.mrb[147].mxu0 }
0x1b55   :  { %v6632_v57 = vadd.f32 %v8330_v26, %v6552_v6  ;;  %v8371_v60 = vadd.f32 %v8370_v50, %v8369_v0  ;;  %v8331_v46 = vpop.f32.mrb[178].mxu1  ;;  %v6720_v48 = vadd.f32 %v14113_v9, %v6707_v59  ;;  %v7562_v6 = vld [vmem:[%s14004_s12] ss:$0 sm:$0xff] }
0x1b56   :  { %v8332_v5 = vpop.f32.mrb[179].mxu1 }
0x1b57   :  { %v6712_v38 = vadd.f32 %v8371_v60, %v6632_v57  ;;  %v8372_v18 = vpop.f32.mrb[148].mxu0  ;;  %v8333_v7 = vadd.f32 %v8332_v5, %v8331_v46  ;;  %v6729_v12 = vadd.f32 %v7558_v36, %v6720_v48 }
0x1b58   :  { %v8373_v17 = vpop.f32.mrb[149].mxu0 }
0x1b59   :  { %v6721_v49 = vadd.f32 %v14114_v55, %v6712_v38  ;;  %v6637_v8 = vadd.f32 %v8333_v7, %v6557_v20  ;;  %v8374_v58 = vadd.f32 %v8373_v17, %v8372_v18 }
0x1b5b   :  { %v6730_v45 = vadd.f32 %v7558_v36, %v6721_v49  ;;  %v6717_v54 = vadd.f32 %v8374_v58, %v6637_v8 }
0x1b5d   :  { %v6722_v29 = vadd.f32 %v14115_v27, %v6717_v54  ;;  %v9579_v3 = vpack.c.bf16 %v6730_v45, %v6729_v12 }
0x1b5f   :  { %9580 = vmatpush3.bf16.msra.mxu1 %v9579_v3  ;;  %v6731_v35 = vadd.f32 %v7558_v36, %v6722_v29 }
0x1b60   :  { %8767 = vmatprep.subr.mxu1 %v14112_v44 }
0x1b63   :  { %8768 = vmatpush3.msk.msra.mxu1 %vm675_vm6, %v6731_v35 }
0x1b64   :  { %8770 = vmatmul.mubr.msk.f32.vlgmr.msra.gmra.mrb[180].mxu1 %vm631_vm7, %v6732_v53  ;;  %9587 = vmatprep.subr.bf16.mxu1 %v14111_v47 }
0x1b65   :  { %8787 = vmatprep.mubr.msk.f32.mxu1 %vm9908_vm3, %v14112_v44  ;;  %v6839_v44 = vld [vmem:[%s14005_s13 + $0x8] sm:$0xff] }
0x1b66   :  { %v9582_v52 = vpack.c.bf16 %v6839_v44, %v6838_v61 }
0x1b68   :  { %9583 = vmatpush3.bf16.msra.mxu0 %v9582_v52 }
0x1b69   :  { %9584 = vmatprep.subr.bf16.mxu0 %v14111_v47  ;;  %v6927_v47 = vld [vmem:[%s14007_s15] sm:$0xff]  ;;  %s9910_s15 = smov [#allocation2]  }
0x1b6a   :  { %v9588_v31 = vpack.c.bf16 %v6928_v51, %v6927_v47  ;;  %s7017_s18 = sshll.u32 %s9910_s15, 4  ;;  %s7018_s18 = int_to_ptr.vmem [resolvable:$true] %s7017_s18 }
0x1b6b   :  { %s9883_s14 = scalar_lea.vmem %s7018_s18, 32  ;;  %p9888_p1 = scmp.lt.s32.totalorder %s7018_s18, %s7018_s18 }
0x1b6c   :  { %9586 = vmatpush3.bf16.msra.mxu0 %v9585_v13  ;;  %9589 = vmatpush3.bf16.msra.mxu1 %v9588_v31  ;;  %p9884_p0 = scmp.ne.s32.totalorder %s7018_s18, %s9883_s14  ;;  %p9889_p2 = scmp.lt.s32.totalorder %s9883_s14, %s9883_s14 }
0x1b6e   :  { %p9890_p3 = por %p9889_p2, %p9888_p1 }
0x1b70   :  { %p9891_p4 = pnand %p9890_p3, %p9884_p0 }
0x1c37   :  { %v6805_v28 = vpop.f32.mrb[180].mxu1 }
0x1c38   :  { %v6811_v2 = vsel %vm201_vm2, %v6805_v28, 0.0  ;;  %v8771_v16 = vpop.f32.mrb[181].mxu1 }
0x1c39   :  { %6812 = vadd.xlane.f32.xlu0 %v6811_v2 }
0x1cc6   :  { %v6813_v11 = vpop.xlane.xlu0 %6812 }
0x1cc7   :  { %v6814_v15 = vmul.f32 0.03125, %v6813_v11 }
0x1cc9   :  { %v6815_v21 = vsub.f32 %v6805_v28, %v6814_v15 }
0x1ccb   :  { %v6816_v24 = vmul.f32 %v6815_v21, %v6815_v21 }
0x1ccd   :  { %v6817_v42 = vsel %vm201_vm2, %v6816_v24, 0.0 }
0x1cce   :  { %6818 = vadd.xlane.f32.xlu1 %v6817_v42 }
0x1d5b   :  { %v6819_v43 = vpop.xlane.xlu1 %6818 }
0x1d5c   :  { %v6820_v14 = vmul.f32 0.03125, %v6819_v43 }
0x1d5e   :  { %v6821_v4 = vadd.f32 1e-05, %v6820_v14 }
0x1d60   :  { %9876 = vrsqrt.f32 %v6821_v4 }
0x1d6a   :  { %v9877_v34 = vpop.eup %9876 }
0x1d6b   :  { %v6823_v33 = vmul.f32 %v9877_v34, %v6815_v21 }
0x1d6d   :  { %v6830_v22 = vmul.f32 %v7561_v1, %v6823_v33 }
0x1d6f   :  { %v6837_v30 = vadd.f32 %v7562_v6, %v6830_v22 }
0x1d71   :  { %8781 = vmatmul.mubr.msk.f32.vlgmr.msra.gmra.mrb[150].mxu0 %vm194_vm1, %v6837_v30 }
0x1e44   :  { %v6918_v20 = vpop.f32.mrb[150].mxu0 }
0x1e45   :  { %v6919_v40 = vadd.f32 %v7563_v25, %v6918_v20  ;;  %v8782_v39 = vpop.f32.mrb[151].mxu0 }
0x1e47   :  { %v6923_v41 = vmul.f32 0.70710677, %v6919_v40  ;;  %v6922_v23 = vmul.f32 0.5, %v6919_v40 }
0x1e49   :  { %9878 = verf.f32 %v6923_v41 }
0x1e53   :  { %v9879_v19 = vpop.eup %9878 }
0x1e54   :  { %v6925_v56 = vadd.f32 1.0, %v9879_v19 }
0x1e56   :  { %v6926_v63 = vmul.f32 %v6925_v56, %v6922_v23 }
0x1e58   :  { %8788 = vmatmul.mubr.msk.f32.vlgmr.msra.gmra.mrb[182].mxu1 %vm526_vm4, %v6926_v63 }
0x1f2b   :  { %v7005_v37 = vpop.f32.mrb[182].mxu1 }
0x1f2c   :  { %v7006_v59 = vadd.f32 %v7565_v10, %v7005_v37  ;;  %v8789_v0 = vpop.f32.mrb[183].mxu1 }
0x1f2e   :  { %7010 = vst.msk [vmem:[#allocation2] sm:$0x3] %vm7009_vm9, %v7006_v59 }
0x1f2f   :  { %9894 = shalt.err (!%p9891_p4)
}
0x1f30   :  { %s9895_s10 = scalar_lea.hbm %s14009_s17, 32 }
0x1f31   :  { %p9896_p5 = scmp.ne.s32.totalorder %s14009_s17, %s9895_s10  ;;  %p9899_p6 = scmp.lt.u32.totalorder %s9895_s10, %s14009_s17 }
0x1f33   :  { %p9901_p7 = pnand %p9899_p6, %p9896_p5 }
0x1f35   :  { %9904 = shalt.err (!%p9901_p7)
}
0x1f36   :  { %7020 = dma.vmem_to_hbm [thread:$0]  %s7018_s18, 32, %s14009_s17, [#allocation3]  }
0x1f37   :  { %9905 = dma.done.wait [#allocation3], 32  }
0x1f38   :  { %9906 = vsyncadd [#allocation3], 4294967264 }
0x1f39   :  { %7024 = vsyncpa [#allocation3], 1 }

</bundles_post_ra>
